<compile_context>
chip_gen: v5e
topology: v5e:2x2
jax: 0.10.0
libtpu: 0.0.40
codegen_flags: <defaults>
</compile_context>

<pallas_src>
import jax
import jax.numpy as jnp
from jax import lax
from jax.experimental import pallas as pl
from jax.experimental.pallas import tpu as pltpu


NEG_SLOPE = 0.2
BN_EPS = 1e-5


def _leaky_relu(y):
    # For slope in (0, 1): max(y, slope*y) == LeakyReLU(y); one VALU op.
    return jnp.maximum(y, NEG_SLOPE * y)


# -----------------------------------------------------------------------------
# Pallas kernels
# -----------------------------------------------------------------------------

def _conv_lrelu_kernel(p_ref, w_ref, o_ref):
    """im2col conv tile as a matmul + fused LeakyReLU(0.2) epilogue."""
    acc = jnp.dot(p_ref[...], w_ref[...], preferred_element_type=jnp.float32)
    o_ref[...] = _leaky_relu(acc).astype(o_ref.dtype)


def _conv_bn_lrelu_kernel(p_ref, w_ref, g_ref, b_ref, o_ref):
    """Fused: matmul + training-mode BatchNorm (one-pass stats) + LeakyReLU."""
    y = jnp.dot(p_ref[...], w_ref[...], preferred_element_type=jnp.float32)  # (M, C) f32
    inv_m = 1.0 / y.shape[0]
    s1 = jnp.sum(y, axis=0, keepdims=True)                 # (1, C)
    s2 = jnp.sum(y * y, axis=0, keepdims=True)             # (1, C)
    mean = s1 * inv_m
    var = s2 * inv_m - mean * mean                         # biased variance (PyTorch train)
    z = (y - mean) * lax.rsqrt(var + BN_EPS) * g_ref[...] + b_ref[...]
    o_ref[...] = _leaky_relu(z).astype(o_ref.dtype)


def _conv_bn_lrelu_head_kernel(p_ref, w_ref, g_ref, b_ref, w5_ref, o_ref):
    """Fused final block: conv4 matmul + BN + LeakyReLU + conv5 as a VPU
    row-wise dot (no MXU pass with a 1-lane-wide weight)."""
    y = jnp.dot(p_ref[...], w_ref[...], preferred_element_type=jnp.float32)  # (M, 256) f32
    inv_m = 1.0 / y.shape[0]
    s1 = jnp.sum(y, axis=0, keepdims=True)
    s2 = jnp.sum(y * y, axis=0, keepdims=True)
    mean = s1 * inv_m
    var = s2 * inv_m - mean * mean
    z = (y - mean) * lax.rsqrt(var + BN_EPS) * g_ref[...] + b_ref[...]
    z = _leaky_relu(z)
    # conv5 (kernel 4x4, stride 1, no pad on a 4x4 map): per-row partial dot with
    # the (h, w)-indexed weight rows; per-sample grouping (16 rows) happens in
    # the wrapper on 32 scalars.
    prod = z * w5_ref[...]                                  # (M, 256) f32
    o_ref[...] = jnp.sum(prod, axis=1, keepdims=True)       # (M, 1)


# -----------------------------------------------------------------------------
# pallas_call wrappers
# -----------------------------------------------------------------------------

def conv_lrelu(patches, w, *, num_blocks=2):
    """patches: (M, K) bf16, w: (K, Cout) bf16 -> (M, Cout) bf16."""
    M, K = patches.shape
    _, Cout = w.shape
    if M % num_blocks != 0 or (M // num_blocks) % 8 != 0:
        num_blocks = 1
    tm = M // num_blocks
    return pl.pallas_call(
        _conv_lrelu_kernel,
        out_shape=jax.ShapeDtypeStruct((M, Cout), jnp.bfloat16),
        grid_spec=pltpu.PrefetchScalarGridSpec(
            num_scalar_prefetch=0,
            grid=(num_blocks,),
            in_specs=[
                pl.BlockSpec((tm, K), lambda i: (i, 0)),
                pl.BlockSpec((K, Cout), lambda i: (0, 0)),
            ],
            out_specs=pl.BlockSpec((tm, Cout), lambda i: (i, 0)),
        ),
        compiler_params=pltpu.CompilerParams(
            dimension_semantics=("parallel",)),
    )(patches, w)


def conv_bn_lrelu(patches, w, gamma, beta):
    """Single-block fused conv + BN(train) + LeakyReLU. patches (M,K) bf16."""
    M, K = patches.shape
    _, Cout = w.shape
    return pl.pallas_call(
        _conv_bn_lrelu_kernel,
        out_shape=jax.ShapeDtypeStruct((M, Cout), jnp.bfloat16),
        grid_spec=pltpu.PrefetchScalarGridSpec(
            num_scalar_prefetch=0,
            grid=(1,),
            in_specs=[
                pl.BlockSpec((M, K), lambda i: (0, 0)),
                pl.BlockSpec((K, Cout), lambda i: (0, 0)),
                pl.BlockSpec((1, Cout), lambda i: (0, 0)),
                pl.BlockSpec((1, Cout), lambda i: (0, 0)),
            ],
            out_specs=pl.BlockSpec((M, Cout), lambda i: (0, 0)),
        ),
        compiler_params=pltpu.CompilerParams(
            dimension_semantics=("arbitrary",)),
    )(patches, w, gamma, beta)


def conv_bn_lrelu_head(patches, w, gamma, beta, w5_rep):
    """Fused conv4 + BN + LReLU + conv5 row-dot. Returns (M, 1) f32 partial dots."""
    M, K = patches.shape
    _, Cout = w.shape
    return pl.pallas_call(
        _conv_bn_lrelu_head_kernel,
        out_shape=jax.ShapeDtypeStruct((M, 1), jnp.float32),
        grid_spec=pltpu.PrefetchScalarGridSpec(
            num_scalar_prefetch=0,
            grid=(1,),
            in_specs=[
                pl.BlockSpec((M, K), lambda i: (0, 0)),
                pl.BlockSpec((K, Cout), lambda i: (0, 0)),
                pl.BlockSpec((1, Cout), lambda i: (0, 0)),
                pl.BlockSpec((1, Cout), lambda i: (0, 0)),
                pl.BlockSpec((M, Cout), lambda i: (0, 0)),
            ],
            out_specs=pl.BlockSpec((M, 1), lambda i: (0, 0)),
        ),
        compiler_params=pltpu.CompilerParams(
            dimension_semantics=("arbitrary",)),
    )(patches, w, gamma, beta, w5_rep)


# -----------------------------------------------------------------------------
# Plain-JAX glue: im2col patch extraction (pure data movement)
# -----------------------------------------------------------------------------

def extract_patches(x_nhwc, ksize, stride, pad):
    """x_nhwc: (N, H, W, C) -> patches (N*Hout*Wout, C*ksize*ksize) with
    feature ordering (c_in, kh, kw) to match the flattened PyTorch conv weight."""
    N, H, W, C = x_nhwc.shape
    if pad > 0:
        x_nhwc = jnp.pad(x_nhwc, ((0, 0), (pad, pad), (pad, pad), (0, 0)))
    Hp, Wp = H + 2 * pad, W + 2 * pad
    Hout = (Hp - ksize) // stride + 1
    Wout = (Wp - ksize) // stride + 1
    slices = []
    for kh in range(ksize):
        for kw in range(ksize):
            sl = x_nhwc[:, kh:kh + (Hout - 1) * stride + 1:stride,
                           kw:kw + (Wout - 1) * stride + 1:stride, :]
            slices.append(sl)                                  # (N, Hout, Wout, C)
    p = jnp.stack(slices, axis=0).reshape(ksize, ksize, N, Hout, Wout, C)
    p = p.transpose(2, 3, 4, 5, 0, 1)                          # (N, Hout, Wout, C, kh, kw)
    p = p.reshape(N * Hout * Wout, C * ksize * ksize)
    return p, (N, Hout, Wout)


# -----------------------------------------------------------------------------
# Full Discriminator forward
# -----------------------------------------------------------------------------

def discriminator_forward(x_nchw, params):
    x = jnp.transpose(x_nchw, (0, 2, 3, 1)).astype(jnp.bfloat16)   # NCHW -> NHWC, bf16

    # Conv2d(3, 32, 4, 2, 1) + LeakyReLU(0.2)  — 2 large M-blocks (v7x: one per TC)
    p, (N, H, W) = extract_patches(x, 4, 2, 1)
    x = conv_lrelu(p, params["w1"], num_blocks=2).reshape(N, H, W, -1)

    # Conv2d(.., 4, 2, 1) + BatchNorm2d(train) + LeakyReLU(0.2), fused per layer
    for i in (2, 3):
        p, (N, H, W) = extract_patches(x, 4, 2, 1)
        x = conv_bn_lrelu(p, params[f"w{i}"], params[f"g{i}"], params[f"b{i}"])
        x = x.reshape(N, H, W, -1)

    # Conv4 + BN + LReLU + Conv2d(256, 1, 4, 1, 0) fused in one kernel.
    p, (N, H, W) = extract_patches(x, 4, 2, 1)                    # (N*4*4, 128*16)
    w5_rep = jnp.tile(params["w5_hw"], (N, 1))                    # (N*16, 256) f32
    rowdot = conv_bn_lrelu_head(p, params["w4"], params["g4"], params["b4"], w5_rep)
    out = rowdot.reshape(N, H * W).sum(axis=1)                    # per-sample 1x1 conv output
    return jnp.squeeze(out.reshape(N, 1, 1, 1))                   # matches torch .squeeze()


def init_params(key):
    conv_shapes = [
        (32, 3, 4, 4),
        (64, 32, 4, 4),
        (128, 64, 4, 4),
        (256, 128, 4, 4),
        (1, 256, 4, 4),
    ]
    keys = jax.random.split(key, len(conv_shapes))
    params = {}
    for i, (k, s) in enumerate(zip(keys, conv_shapes), start=1):
        w = jax.random.normal(k, s, dtype=jnp.float32) * 0.02      # DCGAN-style init
        if i < 5:
            # (Cout, Cin, KH, KW) -> (Cin*KH*KW, Cout), bf16 for MXU-native matmul
            params[f"w{i}"] = w.reshape(s[0], -1).T.astype(jnp.bfloat16)
        else:
            # conv5 weight rearranged to (KH*KW, Cin): row kh*4+kw, channel lanes
            params["w5_hw"] = jnp.transpose(w[0], (1, 2, 0)).reshape(16, 256)
    for i, c in zip((2, 3, 4), (64, 128, 256)):
        params[f"g{i}"] = jnp.ones((1, c), jnp.float32)            # BN weight init = 1
        params[f"b{i}"] = jnp.zeros((1, c), jnp.float32)           # BN bias init = 0
    return params


if __name__ == "__main__":
    key = jax.random.PRNGKey(0)
    k_params, k_x = jax.random.split(key)
    params = init_params(k_params)

    # DCGAN discriminator requires 64x64 spatial input; batch=2.
    x = jax.random.normal(k_x, (2, 3, 64, 64), dtype=jnp.float32)

    out = jax.jit(discriminator_forward)(x, params)
    out = jax.block_until_ready(out)

    assert out.shape == (2,), f"unexpected output shape {out.shape}"
    assert jnp.all(jnp.isfinite(out)), "non-finite output"
    print("KERNEL_OK")
</pallas_src>

<mosaic_0001>
module attributes {stable_mosaic.version = 11 : i64} {
  func.func @_conv_lrelu_kernel(%arg0: i32, %arg1: memref<1024x48xbf16, #tpu.memory_space<vmem>>, %arg2: memref<48x32xbf16, #tpu.memory_space<vmem>>, %arg3: memref<1024x32xbf16, #tpu.memory_space<vmem>>) attributes {dimension_semantics = [#tpu.dimension_semantics<parallel>], iteration_bounds = array<i64: 2>, scalar_prefetch = 0 : i64, scratch_operands = 0 : i64, tpu.core_type = #tpu.core_type<tc>, window_params = [{transform_indices = @transform_0, window_bounds = array<i64: 1024, 48>}, {pipeline_mode = #tpu.pipeline_mode<synchronous>, transform_indices = @transform_1, window_bounds = array<i64: 48, 32>}, {transform_indices = @transform_2, window_bounds = array<i64: 1024, 32>}]} {
    %c0 = arith.constant 0 : index
    %c0_0 = arith.constant 0 : index
    %0 = vector.load %arg1[%c0, %c0_0] : memref<1024x48xbf16, #tpu.memory_space<vmem>>, vector<1024x48xbf16>
    %c0_1 = arith.constant 0 : index
    %c0_2 = arith.constant 0 : index
    %1 = vector.load %arg2[%c0_1, %c0_2] : memref<48x32xbf16, #tpu.memory_space<vmem>>, vector<48x32xbf16>
    %cst = arith.constant dense<0.000000e+00> : vector<1024x32xf32>
    %2 = tpu.matmul %0, %1, %cst {dimension_numbers = #tpu.dot_dimension_numbers<[1], [0], [0], [1], [0, 0, 1, 1], [], []>} : vector<1024x48xbf16>, vector<48x32xbf16>, vector<1024x32xf32> -> vector<1024x32xf32>
    %cst_3 = arith.constant 2.000000e-01 : f32
    %3 = vector.broadcast %cst_3 : f32 to vector<1024x32xf32>
    %4 = arith.mulf %3, %2 : vector<1024x32xf32>
    %5 = arith.maximumf %2, %4 : vector<1024x32xf32>
    %6 = arith.truncf %5 : vector<1024x32xf32> to vector<1024x32xbf16>
    %c0_4 = arith.constant 0 : index
    %c0_5 = arith.constant 0 : index
    %7 = vector.load %arg3[%c0_4, %c0_5] : memref<1024x32xbf16, #tpu.memory_space<vmem>>, vector<1024x32xbf16>
    tpu.vector_store %arg3[%c0_4, %c0_5], %6 {strides = array<i32>} : memref<1024x32xbf16, #tpu.memory_space<vmem>>, vector<1024x32xbf16>,
    return
  }
  func.func @transform_0(%arg0: i32) -> (i32, i32) {
    %c0_i32 = arith.constant 0 : i32
    %c0_i32_0 = arith.constant 0 : i32
    return %arg0, %c0_i32 : i32, i32
  }
  func.func @transform_1(%arg0: i32) -> (i32, i32) {
    %c0_i32 = arith.constant 0 : i32
    %c0_i32_0 = arith.constant 0 : i32
    %c0_i32_1 = arith.constant 0 : i32
    return %c0_i32, %c0_i32_0 : i32, i32
  }
  func.func @transform_2(%arg0: i32) -> (i32, i32) {
    %c0_i32 = arith.constant 0 : i32
    %c0_i32_0 = arith.constant 0 : i32
    return %arg0, %c0_i32 : i32, i32
  }
}

module attributes {stable_mosaic.version = 11 : i64} {
  func.func @_conv_bn_lrelu_kernel(%arg0: i32, %arg1: memref<512x512xbf16, #tpu.memory_space<vmem>>, %arg2: memref<512x64xbf16, #tpu.memory_space<vmem>>, %arg3: memref<1x64xf32, #tpu.memory_space<vmem>>, %arg4: memref<1x64xf32, #tpu.memory_space<vmem>>, %arg5: memref<512x64xbf16, #tpu.memory_space<vmem>>) attributes {dimension_semantics = [#tpu.dimension_semantics<arbitrary>], iteration_bounds = array<i64: 1>, scalar_prefetch = 0 : i64, scratch_operands = 0 : i64, tpu.core_type = #tpu.core_type<tc>, window_params = [{pipeline_mode = #tpu.pipeline_mode<synchronous>, transform_indices = @transform_0, window_bounds = array<i64: 512, 512>}, {pipeline_mode = #tpu.pipeline_mode<synchronous>, transform_indices = @transform_1, window_bounds = array<i64: 512, 64>}, {pipeline_mode = #tpu.pipeline_mode<synchronous>, transform_indices = @transform_2, window_bounds = array<i64: 1, 64>}, {pipeline_mode = #tpu.pipeline_mode<synchronous>, transform_indices = @transform_3, window_bounds = array<i64: 1, 64>}, {pipeline_mode = #tpu.pipeline_mode<synchronous>, transform_indices = @transform_4, window_bounds = array<i64: 512, 64>}]} {
    %c0 = arith.constant 0 : index
    %c0_0 = arith.constant 0 : index
    %0 = vector.load %arg1[%c0, %c0_0] : memref<512x512xbf16, #tpu.memory_space<vmem>>, vector<512x512xbf16>
    %c0_1 = arith.constant 0 : index
    %c0_2 = arith.constant 0 : index
    %1 = vector.load %arg2[%c0_1, %c0_2] : memref<512x64xbf16, #tpu.memory_space<vmem>>, vector<512x64xbf16>
    %cst = arith.constant dense<0.000000e+00> : vector<512x64xf32>
    %2 = tpu.matmul %0, %1, %cst {dimension_numbers = #tpu.dot_dimension_numbers<[1], [0], [0], [1], [0, 0, 1, 1], [], []>} : vector<512x512xbf16>, vector<512x64xbf16>, vector<512x64xf32> -> vector<512x64xf32>
    %cst_3 = arith.constant dense<0.000000e+00> : vector<64xf32>
    %3 = vector.multi_reduction <add>, %2, %cst_3 [0] : vector<512x64xf32> to vector<64xf32>
    %4 = vector.shape_cast %3 : vector<64xf32> to vector<1x64xf32>
    %5 = arith.mulf %2, %2 : vector<512x64xf32>
    %cst_4 = arith.constant dense<0.000000e+00> : vector<64xf32>
    %6 = vector.multi_reduction <add>, %5, %cst_4 [0] : vector<512x64xf32> to vector<64xf32>
    %7 = vector.shape_cast %6 : vector<64xf32> to vector<1x64xf32>
    %cst_5 = arith.constant 0.001953125 : f32
    %8 = vector.broadcast %cst_5 : f32 to vector<1x64xf32>
    %9 = arith.mulf %4, %8 : vector<1x64xf32>
    %cst_6 = arith.constant 0.001953125 : f32
    %10 = vector.broadcast %cst_6 : f32 to vector<1x64xf32>
    %11 = arith.mulf %7, %10 : vector<1x64xf32>
    %12 = arith.mulf %9, %9 : vector<1x64xf32>
    %13 = arith.subf %11, %12 : vector<1x64xf32>
    %14 = vector.broadcast %9 : vector<1x64xf32> to vector<512x64xf32>
    %15 = arith.subf %2, %14 : vector<512x64xf32>
    %cst_7 = arith.constant 9.99999974E-6 : f32
    %16 = vector.broadcast %cst_7 : f32 to vector<1x64xf32>
    %17 = arith.addf %13, %16 : vector<1x64xf32>
    %18 = math.rsqrt %17 : vector<1x64xf32>
    %19 = vector.broadcast %18 : vector<1x64xf32> to vector<512x64xf32>
    %20 = arith.mulf %15, %19 : vector<512x64xf32>
    %c0_8 = arith.constant 0 : index
    %c0_9 = arith.constant 0 : index
    %21 = vector.load %arg3[%c0_8, %c0_9] : memref<1x64xf32, #tpu.memory_space<vmem>>, vector<1x64xf32>
    %22 = vector.broadcast %21 : vector<1x64xf32> to vector<512x64xf32>
    %23 = arith.mulf %20, %22 : vector<512x64xf32>
    %c0_10 = arith.constant 0 : index
    %c0_11 = arith.constant 0 : index
    %24 = vector.load %arg4[%c0_10, %c0_11] : memref<1x64xf32, #tpu.memory_space<vmem>>, vector<1x64xf32>
    %25 = vector.broadcast %24 : vector<1x64xf32> to vector<512x64xf32>
    %26 = arith.addf %23, %25 : vector<512x64xf32>
    %cst_12 = arith.constant 2.000000e-01 : f32
    %27 = vector.broadcast %cst_12 : f32 to vector<512x64xf32>
    %28 = arith.mulf %27, %26 : vector<512x64xf32>
    %29 = arith.maximumf %26, %28 : vector<512x64xf32>
    %30 = arith.truncf %29 : vector<512x64xf32> to vector<512x64xbf16>
    %c0_13 = arith.constant 0 : index
    %c0_14 = arith.constant 0 : index
    %31 = vector.load %arg5[%c0_13, %c0_14] : memref<512x64xbf16, #tpu.memory_space<vmem>>, vector<512x64xbf16>
    tpu.vector_store %arg5[%c0_13, %c0_14], %30 {strides = array<i32>} : memref<512x64xbf16, #tpu.memory_space<vmem>>, vector<512x64xbf16>,
    return
  }
  func.func @transform_0(%arg0: i32) -> (i32, i32) {
    %c0_i32 = arith.constant 0 : i32
    %c0_i32_0 = arith.constant 0 : i32
    %c0_i32_1 = arith.constant 0 : i32
    return %c0_i32, %c0_i32_0 : i32, i32
  }
  func.func @transform_1(%arg0: i32) -> (i32, i32) {
    %c0_i32 = arith.constant 0 : i32
    %c0_i32_0 = arith.constant 0 : i32
    %c0_i32_1 = arith.constant 0 : i32
    return %c0_i32, %c0_i32_0 : i32, i32
  }
  func.func @transform_2(%arg0: i32) -> (i32, i32) {
    %c0_i32 = arith.constant 0 : i32
    %c0_i32_0 = arith.constant 0 : i32
    %c0_i32_1 = arith.constant 0 : i32
    return %c0_i32, %c0_i32_0 : i32, i32
  }
  func.func @transform_3(%arg0: i32) -> (i32, i32) {
    %c0_i32 = arith.constant 0 : i32
    %c0_i32_0 = arith.constant 0 : i32
    %c0_i32_1 = arith.constant 0 : i32
    return %c0_i32, %c0_i32_0 : i32, i32
  }
  func.func @transform_4(%arg0: i32) -> (i32, i32) {
    %c0_i32 = arith.constant 0 : i32
    %c0_i32_0 = arith.constant 0 : i32
    %c0_i32_1 = arith.constant 0 : i32
    return %c0_i32, %c0_i32_0 : i32, i32
  }
}

module attributes {stable_mosaic.version = 11 : i64} {
  func.func @_conv_bn_lrelu_kernel(%arg0: i32, %arg1: memref<128x1024xbf16, #tpu.memory_space<vmem>>, %arg2: memref<1024x128xbf16, #tpu.memory_space<vmem>>, %arg3: memref<1x128xf32, #tpu.memory_space<vmem>>, %arg4: memref<1x128xf32, #tpu.memory_space<vmem>>, %arg5: memref<128x128xbf16, #tpu.memory_space<vmem>>) attributes {dimension_semantics = [#tpu.dimension_semantics<arbitrary>], iteration_bounds = array<i64: 1>, scalar_prefetch = 0 : i64, scratch_operands = 0 : i64, tpu.core_type = #tpu.core_type<tc>, window_params = [{pipeline_mode = #tpu.pipeline_mode<synchronous>, transform_indices = @transform_0, window_bounds = array<i64: 128, 1024>}, {pipeline_mode = #tpu.pipeline_mode<synchronous>, transform_indices = @transform_1, window_bounds = array<i64: 1024, 128>}, {pipeline_mode = #tpu.pipeline_mode<synchronous>, transform_indices = @transform_2, window_bounds = array<i64: 1, 128>}, {pipeline_mode = #tpu.pipeline_mode<synchronous>, transform_indices = @transform_3, window_bounds = array<i64: 1, 128>}, {pipeline_mode = #tpu.pipeline_mode<synchronous>, transform_indices = @transform_4, window_bounds = array<i64: 128, 128>}]} {
    %c0 = arith.constant 0 : index
    %c0_0 = arith.constant 0 : index
    %0 = vector.load %arg1[%c0, %c0_0] : memref<128x1024xbf16, #tpu.memory_space<vmem>>, vector<128x1024xbf16>
    %c0_1 = arith.constant 0 : index
    %c0_2 = arith.constant 0 : index
    %1 = vector.load %arg2[%c0_1, %c0_2] : memref<1024x128xbf16, #tpu.memory_space<vmem>>, vector<1024x128xbf16>
    %cst = arith.constant dense<0.000000e+00> : vector<128x128xf32>
    %2 = tpu.matmul %0, %1, %cst {dimension_numbers = #tpu.dot_dimension_numbers<[1], [0], [0], [1], [0, 0, 1, 1], [], []>} : vector<128x1024xbf16>, vector<1024x128xbf16>, vector<128x128xf32> -> vector<128x128xf32>
    %cst_3 = arith.constant dense<0.000000e+00> : vector<128xf32>
    %3 = vector.multi_reduction <add>, %2, %cst_3 [0] : vector<128x128xf32> to vector<128xf32>
    %4 = vector.shape_cast %3 : vector<128xf32> to vector<1x128xf32>
    %5 = arith.mulf %2, %2 : vector<128x128xf32>
    %cst_4 = arith.constant dense<0.000000e+00> : vector<128xf32>
    %6 = vector.multi_reduction <add>, %5, %cst_4 [0] : vector<128x128xf32> to vector<128xf32>
    %7 = vector.shape_cast %6 : vector<128xf32> to vector<1x128xf32>
    %cst_5 = arith.constant 7.812500e-03 : f32
    %8 = vector.broadcast %cst_5 : f32 to vector<1x128xf32>
    %9 = arith.mulf %4, %8 : vector<1x128xf32>
    %cst_6 = arith.constant 7.812500e-03 : f32
    %10 = vector.broadcast %cst_6 : f32 to vector<1x128xf32>
    %11 = arith.mulf %7, %10 : vector<1x128xf32>
    %12 = arith.mulf %9, %9 : vector<1x128xf32>
    %13 = arith.subf %11, %12 : vector<1x128xf32>
    %14 = vector.broadcast %9 : vector<1x128xf32> to vector<128x128xf32>
    %15 = arith.subf %2, %14 : vector<128x128xf32>
    %cst_7 = arith.constant 9.99999974E-6 : f32
    %16 = vector.broadcast %cst_7 : f32 to vector<1x128xf32>
    %17 = arith.addf %13, %16 : vector<1x128xf32>
    %18 = math.rsqrt %17 : vector<1x128xf32>
    %19 = vector.broadcast %18 : vector<1x128xf32> to vector<128x128xf32>
    %20 = arith.mulf %15, %19 : vector<128x128xf32>
    %c0_8 = arith.constant 0 : index
    %c0_9 = arith.constant 0 : index
    %21 = vector.load %arg3[%c0_8, %c0_9] : memref<1x128xf32, #tpu.memory_space<vmem>>, vector<1x128xf32>
    %22 = vector.broadcast %21 : vector<1x128xf32> to vector<128x128xf32>
    %23 = arith.mulf %20, %22 : vector<128x128xf32>
    %c0_10 = arith.constant 0 : index
    %c0_11 = arith.constant 0 : index
    %24 = vector.load %arg4[%c0_10, %c0_11] : memref<1x128xf32, #tpu.memory_space<vmem>>, vector<1x128xf32>
    %25 = vector.broadcast %24 : vector<1x128xf32> to vector<128x128xf32>
    %26 = arith.addf %23, %25 : vector<128x128xf32>
    %cst_12 = arith.constant 2.000000e-01 : f32
    %27 = vector.broadcast %cst_12 : f32 to vector<128x128xf32>
    %28 = arith.mulf %27, %26 : vector<128x128xf32>
    %29 = arith.maximumf %26, %28 : vector<128x128xf32>
    %30 = arith.truncf %29 : vector<128x128xf32> to vector<128x128xbf16>
    %c0_13 = arith.constant 0 : index
    %c0_14 = arith.constant 0 : index
    %31 = vector.load %arg5[%c0_13, %c0_14] : memref<128x128xbf16, #tpu.memory_space<vmem>>, vector<128x128xbf16>
    tpu.vector_store %arg5[%c0_13, %c0_14], %30 {strides = array<i32>} : memref<128x128xbf16, #tpu.memory_space<vmem>>, vector<128x128xbf16>,
    return
  }
  func.func @transform_0(%arg0: i32) -> (i32, i32) {
    %c0_i32 = arith.constant 0 : i32
    %c0_i32_0 = arith.constant 0 : i32
    %c0_i32_1 = arith.constant 0 : i32
    return %c0_i32, %c0_i32_0 : i32, i32
  }
  func.func @transform_1(%arg0: i32) -> (i32, i32) {
    %c0_i32 = arith.constant 0 : i32
    %c0_i32_0 = arith.constant 0 : i32
    %c0_i32_1 = arith.constant 0 : i32
    return %c0_i32, %c0_i32_0 : i32, i32
  }
  func.func @transform_2(%arg0: i32) -> (i32, i32) {
    %c0_i32 = arith.constant 0 : i32
    %c0_i32_0 = arith.constant 0 : i32
    %c0_i32_1 = arith.constant 0 : i32
    return %c0_i32, %c0_i32_0 : i32, i32
  }
  func.func @transform_3(%arg0: i32) -> (i32, i32) {
    %c0_i32 = arith.constant 0 : i32
    %c0_i32_0 = arith.constant 0 : i32
    %c0_i32_1 = arith.constant 0 : i32
    return %c0_i32, %c0_i32_0 : i32, i32
  }
  func.func @transform_4(%arg0: i32) -> (i32, i32) {
    %c0_i32 = arith.constant 0 : i32
    %c0_i32_0 = arith.constant 0 : i32
    %c0_i32_1 = arith.constant 0 : i32
    return %c0_i32, %c0_i32_0 : i32, i32
  }
}

module attributes {stable_mosaic.version = 11 : i64} {
  func.func @_conv_bn_lrelu_head_kernel(%arg0: i32, %arg1: memref<32x2048xbf16, #tpu.memory_space<vmem>>, %arg2: memref<2048x256xbf16, #tpu.memory_space<vmem>>, %arg3: memref<1x256xf32, #tpu.memory_space<vmem>>, %arg4: memref<1x256xf32, #tpu.memory_space<vmem>>, %arg5: memref<32x256xf32, #tpu.memory_space<vmem>>, %arg6: memref<32x1xf32, #tpu.memory_space<vmem>>) attributes {dimension_semantics = [#tpu.dimension_semantics<arbitrary>], iteration_bounds = array<i64: 1>, scalar_prefetch = 0 : i64, scratch_operands = 0 : i64, tpu.core_type = #tpu.core_type<tc>, window_params = [{pipeline_mode = #tpu.pipeline_mode<synchronous>, transform_indices = @transform_0, window_bounds = array<i64: 32, 2048>}, {pipeline_mode = #tpu.pipeline_mode<synchronous>, transform_indices = @transform_1, window_bounds = array<i64: 2048, 256>}, {pipeline_mode = #tpu.pipeline_mode<synchronous>, transform_indices = @transform_2, window_bounds = array<i64: 1, 256>}, {pipeline_mode = #tpu.pipeline_mode<synchronous>, transform_indices = @transform_3, window_bounds = array<i64: 1, 256>}, {pipeline_mode = #tpu.pipeline_mode<synchronous>, transform_indices = @transform_4, window_bounds = array<i64: 32, 256>}, {pipeline_mode = #tpu.pipeline_mode<synchronous>, transform_indices = @transform_5, window_bounds = array<i64: 32, 1>}]} {
    %c0 = arith.constant 0 : index
    %c0_0 = arith.constant 0 : index
    %0 = vector.load %arg1[%c0, %c0_0] : memref<32x2048xbf16, #tpu.memory_space<vmem>>, vector<32x2048xbf16>
    %c0_1 = arith.constant 0 : index
    %c0_2 = arith.constant 0 : index
    %1 = vector.load %arg2[%c0_1, %c0_2] : memref<2048x256xbf16, #tpu.memory_space<vmem>>, vector<2048x256xbf16>
    %cst = arith.constant dense<0.000000e+00> : vector<32x256xf32>
    %2 = tpu.matmul %0, %1, %cst {dimension_numbers = #tpu.dot_dimension_numbers<[1], [0], [0], [1], [0, 0, 1, 1], [], []>} : vector<32x2048xbf16>, vector<2048x256xbf16>, vector<32x256xf32> -> vector<32x256xf32>
    %cst_3 = arith.constant dense<0.000000e+00> : vector<256xf32>
    %3 = vector.multi_reduction <add>, %2, %cst_3 [0] : vector<32x256xf32> to vector<256xf32>
    %4 = vector.shape_cast %3 : vector<256xf32> to vector<1x256xf32>
    %5 = arith.mulf %2, %2 : vector<32x256xf32>
    %cst_4 = arith.constant dense<0.000000e+00> : vector<256xf32>
    %6 = vector.multi_reduction <add>, %5, %cst_4 [0] : vector<32x256xf32> to vector<256xf32>
    %7 = vector.shape_cast %6 : vector<256xf32> to vector<1x256xf32>
    %cst_5 = arith.constant 3.125000e-02 : f32
    %8 = vector.broadcast %cst_5 : f32 to vector<1x256xf32>
    %9 = arith.mulf %4, %8 : vector<1x256xf32>
    %cst_6 = arith.constant 3.125000e-02 : f32
    %10 = vector.broadcast %cst_6 : f32 to vector<1x256xf32>
    %11 = arith.mulf %7, %10 : vector<1x256xf32>
    %12 = arith.mulf %9, %9 : vector<1x256xf32>
    %13 = arith.subf %11, %12 : vector<1x256xf32>
    %14 = vector.broadcast %9 : vector<1x256xf32> to vector<32x256xf32>
    %15 = arith.subf %2, %14 : vector<32x256xf32>
    %cst_7 = arith.constant 9.99999974E-6 : f32
    %16 = vector.broadcast %cst_7 : f32 to vector<1x256xf32>
    %17 = arith.addf %13, %16 : vector<1x256xf32>
    %18 = math.rsqrt %17 : vector<1x256xf32>
    %19 = vector.broadcast %18 : vector<1x256xf32> to vector<32x256xf32>
    %20 = arith.mulf %15, %19 : vector<32x256xf32>
    %c0_8 = arith.constant 0 : index
    %c0_9 = arith.constant 0 : index
    %21 = vector.load %arg3[%c0_8, %c0_9] : memref<1x256xf32, #tpu.memory_space<vmem>>, vector<1x256xf32>
    %22 = vector.broadcast %21 : vector<1x256xf32> to vector<32x256xf32>
    %23 = arith.mulf %20, %22 : vector<32x256xf32>
    %c0_10 = arith.constant 0 : index
    %c0_11 = arith.constant 0 : index
    %24 = vector.load %arg4[%c0_10, %c0_11] : memref<1x256xf32, #tpu.memory_space<vmem>>, vector<1x256xf32>
    %25 = vector.broadcast %24 : vector<1x256xf32> to vector<32x256xf32>
    %26 = arith.addf %23, %25 : vector<32x256xf32>
    %cst_12 = arith.constant 2.000000e-01 : f32
    %27 = vector.broadcast %cst_12 : f32 to vector<32x256xf32>
    %28 = arith.mulf %27, %26 : vector<32x256xf32>
    %29 = arith.maximumf %26, %28 : vector<32x256xf32>
    %c0_13 = arith.constant 0 : index
    %c0_14 = arith.constant 0 : index
    %30 = vector.load %arg5[%c0_13, %c0_14] : memref<32x256xf32, #tpu.memory_space<vmem>>, vector<32x256xf32>
    %31 = arith.mulf %29, %30 : vector<32x256xf32>
    %cst_15 = arith.constant dense<0.000000e+00> : vector<32xf32>
    %32 = vector.multi_reduction <add>, %31, %cst_15 [1] : vector<32x256xf32> to vector<32xf32>
    %33 = vector.shape_cast %32 : vector<32xf32> to vector<32x1xf32>
    %c0_16 = arith.constant 0 : index
    %c0_17 = arith.constant 0 : index
    %34 = vector.load %arg6[%c0_16, %c0_17] : memref<32x1xf32, #tpu.memory_space<vmem>>, vector<32x1xf32>
    tpu.vector_store %arg6[%c0_16, %c0_17], %33 {strides = array<i32>} : memref<32x1xf32, #tpu.memory_space<vmem>>, vector<32x1xf32>,
    return
  }
  func.func @transform_0(%arg0: i32) -> (i32, i32) {
    %c0_i32 = arith.constant 0 : i32
    %c0_i32_0 = arith.constant 0 : i32
    %c0_i32_1 = arith.constant 0 : i32
    return %c0_i32, %c0_i32_0 : i32, i32
  }
  func.func @transform_1(%arg0: i32) -> (i32, i32) {
    %c0_i32 = arith.constant 0 : i32
    %c0_i32_0 = arith.constant 0 : i32
    %c0_i32_1 = arith.constant 0 : i32
    return %c0_i32, %c0_i32_0 : i32, i32
  }
  func.func @transform_2(%arg0: i32) -> (i32, i32) {
    %c0_i32 = arith.constant 0 : i32
    %c0_i32_0 = arith.constant 0 : i32
    %c0_i32_1 = arith.constant 0 : i32
    return %c0_i32, %c0_i32_0 : i32, i32
  }
  func.func @transform_3(%arg0: i32) -> (i32, i32) {
    %c0_i32 = arith.constant 0 : i32
    %c0_i32_0 = arith.constant 0 : i32
    %c0_i32_1 = arith.constant 0 : i32
    return %c0_i32, %c0_i32_0 : i32, i32
  }
  func.func @transform_4(%arg0: i32) -> (i32, i32) {
    %c0_i32 = arith.constant 0 : i32
    %c0_i32_0 = arith.constant 0 : i32
    %c0_i32_1 = arith.constant 0 : i32
    return %c0_i32, %c0_i32_0 : i32, i32
  }
  func.func @transform_5(%arg0: i32) -> (i32, i32) {
    %c0_i32 = arith.constant 0 : i32
    %c0_i32_0 = arith.constant 0 : i32
    %c0_i32_1 = arith.constant 0 : i32
    return %c0_i32, %c0_i32_0 : i32, i32
  }
}

</mosaic_0001>

<bundles_post_ra>
// kernel: discriminator_forward.4
= control target key start
LH: loop header
LB: loop body
LE: loop exit
PB: predicated region body
PF: predicated region fallthrough
CT: control target
= control target key end

     0   :  { %s2161_s9 = smov 0   ;;  %s2582_s0 = inlined_call_operand.vmem [shape: bf16[2048,48], index: 0, kind: input, shape index: {}]   ;;  %s2583_s1 = inlined_call_operand.vmem [shape: bf16[48,32], index: 1, kind: input, shape index: {}]   ;;  %s2584_s2 = inlined_call_operand.vmem [shape: bf16[2048,32], index: 2, kind: output, shape index: {}]  }
   0x1 LB: > { %s1711_s10 = sadd.s32 4294967295, %s2144_s9   ;;  %p1715_p0 = scmp.ge.s32.totalorder %s2144_s9, 1  ;;  %s2144_s9 = sphi %s2161_s9, %s12_s9  }
   0x2   : > { %p113_p1 = scmp.lt.s32.totalorder %s2144_s9, 3 }
   0x4   : > { %p114_p2 = pnand %p1715_p0, %p113_p1 }
   0x5   : > { %s1716_s13 = sshll.u32 (!%p114_p2), %s1711_s10, 7 }
   0x6   : > { %117 = sbr.rel (%p114_p2) target bundleno = 412 (0x19c), region = 28  ;;  %p136_p3 = scmp.lt.s32.totalorder (!%p114_p2), %s1716_s13, 255 }
   0xb   : > { %v2120_v0 = vld [vmem:[%s2583_s1 + $0x10] sm:$0xff]  ;;  %v2119_v1 = vld [vmem:[%s2583_s1 + $0x8] sm:$0xff]  ;;  %s2586_s13 = smov (!%p136_p3, %s1716_s13), 255  ;;  %v2118_v2 = vld [vmem:[%s2583_s1] sm:$0xff]  ;;  %vm620_vm0 = vcmask 392192   ;;  %vm1526_vm1 = vcmask 257024  }
   0xc   : > { %818 = vmatpush.bf16.msra.mxu0 %v2120_v0  ;;  %2121 = vmatpush.bf16.msra.mxu1 %v2120_v0  ;;  %s1717_s16 = sshll.u32 %s2586_s13, 2 }
   0xd   : > { %2122 = vmatpush.bf16.msra.mxu2 %v2120_v0  ;;  %2123 = vmatpush.bf16.msra.mxu3 %v2120_v0  ;;  %s2186_s21 = scalar_lea.vmem %s2582_s0, %s1717_s16  ;;  %s2263_s24 = scalar_lea.vmem %s2584_s2, %s1717_s16 }
   0xe   : > { %v2054_v3 = vld [vmem:[%s2186_s21] sm:$0xff]  ;;  %v2055_v7 = vld [vmem:[%s2186_s21 + $0x8] sm:$0xff]  ;;  %v2056_v11 = vld [vmem:[%s2186_s21 + $0x10] sm:$0xff] }
   0xf   : > { %v2070_v4 = vld [vmem:[%s2186_s21 + $0x80] sm:$0xff]  ;;  %v2071_v8 = vld [vmem:[%s2186_s21 + $0x88] sm:$0xff]  ;;  %v2072_v12 = vld [vmem:[%s2186_s21 + $0x90] sm:$0xff] }
  0x10   : > { %819 = vmatpush.bf16.msra.mxu0 %v2119_v1  ;;  %2124 = vmatpush.bf16.msra.mxu1 %v2119_v1  ;;  %v2086_v5 = vld [vmem:[%s2186_s21 + $0x100] sm:$0xff]  ;;  %v2087_v9 = vld [vmem:[%s2186_s21 + $0x108] sm:$0xff]  ;;  %v2088_v13 = vld [vmem:[%s2186_s21 + $0x110] sm:$0xff] }
  0x11   : > { %2125 = vmatpush.bf16.msra.mxu2 %v2119_v1  ;;  %2126 = vmatpush.bf16.msra.mxu3 %v2119_v1  ;;  %v2102_v6 = vld [vmem:[%s2186_s21 + $0x180] sm:$0xff]  ;;  %v2103_v10 = vld [vmem:[%s2186_s21 + $0x188] sm:$0xff]  ;;  %v2104_v14 = vld [vmem:[%s2186_s21 + $0x190] sm:$0xff] }
  0x12   : > { %v2057_v15 = vld [vmem:[%s2186_s21 + $0x18] sm:$0xff]  ;;  %v2058_v19 = vld [vmem:[%s2186_s21 + $0x20] sm:$0xff]  ;;  %v2059_v23 = vld [vmem:[%s2186_s21 + $0x28] sm:$0xff] }
  0x13   : > { %v2073_v16 = vld [vmem:[%s2186_s21 + $0x98] sm:$0xff]  ;;  %v2074_v20 = vld [vmem:[%s2186_s21 + $0xa0] sm:$0xff]  ;;  %v2075_v24 = vld [vmem:[%s2186_s21 + $0xa8] sm:$0xff] }
  0x14   : > { %820 = vmatpush.bf16.msra.mxu0 %v2118_v2  ;;  %2127 = vmatpush.bf16.msra.mxu1 %v2118_v2  ;;  %v2089_v17 = vld [vmem:[%s2186_s21 + $0x118] sm:$0xff]  ;;  %v2090_v21 = vld [vmem:[%s2186_s21 + $0x120] sm:$0xff]  ;;  %v2091_v25 = vld [vmem:[%s2186_s21 + $0x128] sm:$0xff] }
  0x15   : > { %2128 = vmatpush.bf16.msra.mxu2 %v2118_v2  ;;  %2129 = vmatpush.bf16.msra.mxu3 %v2118_v2  ;;  %v2105_v18 = vld [vmem:[%s2186_s21 + $0x198] sm:$0xff]  ;;  %v2106_v22 = vld [vmem:[%s2186_s21 + $0x1a0] sm:$0xff]  ;;  %v2107_v26 = vld [vmem:[%s2186_s21 + $0x1a8] sm:$0xff] }
  0x16   : > { %v2060_v27 = vld [vmem:[%s2186_s21 + $0x30] sm:$0xff]  ;;  %v2061_v31 = vld [vmem:[%s2186_s21 + $0x38] sm:$0xff]  ;;  %v2062_v35 = vld [vmem:[%s2186_s21 + $0x40] sm:$0xff] }
  0x17   : > { %1988 = vmatmul.msk.bf16.vlgmr.msra.gmra.mxu0 %vm620_vm0, %v2054_v3  ;;  %2004 = vmatmul.msk.bf16.vlgmr.msra.gmra.mxu1 %vm620_vm0, %v2070_v4  ;;  %v2076_v28 = vld [vmem:[%s2186_s21 + $0xb0] sm:$0xff]  ;;  %v2077_v32 = vld [vmem:[%s2186_s21 + $0xb8] sm:$0xff]  ;;  %v2078_v36 = vld [vmem:[%s2186_s21 + $0xc0] sm:$0xff] }
  0x18   : > { %2020 = vmatmul.msk.bf16.vlgmr.msra.gmra.mxu2 %vm620_vm0, %v2086_v5  ;;  %2036 = vmatmul.msk.bf16.vlgmr.msra.gmra.mxu3 %vm620_vm0, %v2102_v6  ;;  %v2092_v29 = vld [vmem:[%s2186_s21 + $0x130] sm:$0xff]  ;;  %v2093_v33 = vld [vmem:[%s2186_s21 + $0x138] sm:$0xff]  ;;  %v2094_v39 = vld [vmem:[%s2186_s21 + $0x140] sm:$0xff] }
  0x19   : > { %v2108_v30 = vld [vmem:[%s2186_s21 + $0x1b0] sm:$0xff]  ;;  %v2109_v34 = vld [vmem:[%s2186_s21 + $0x1b8] sm:$0xff]  ;;  %v2110_v40 = vld [vmem:[%s2186_s21 + $0x1c0] sm:$0xff] }
  0x1a   : > { %v2063_v63 = vld [vmem:[%s2186_s21 + $0x48] sm:$0xff] }
  0x1b   : > { %v2079_v2 = vld [vmem:[%s2186_s21 + $0xc8] sm:$0xff] }
  0x1c   : > { %v2095_v3 = vld [vmem:[%s2186_s21 + $0x148] sm:$0xff] }
  0x1d   : > { %v2111_v4 = vld [vmem:[%s2186_s21 + $0x1c8] sm:$0xff] }
  0x27   : > { %1989 = vmatmul.msk.bf16.gmra.mxu0 %vm620_vm0, %v2055_v7  ;;  %2005 = vmatmul.msk.bf16.gmra.mxu1 %vm620_vm0, %v2071_v8 }
  0x28   : > { %2021 = vmatmul.msk.bf16.gmra.mxu2 %vm620_vm0, %v2087_v9  ;;  %2037 = vmatmul.msk.bf16.gmra.mxu3 %vm620_vm0, %v2103_v10 }
  0x37   : > { %1990 = vmatmul.msk.bf16.gmra.mxu0 %vm620_vm0, %v2056_v11  ;;  %2006 = vmatmul.msk.bf16.gmra.mxu1 %vm620_vm0, %v2072_v12 }
  0x38   : > { %2022 = vmatmul.msk.bf16.gmra.mxu2 %vm620_vm0, %v2088_v13  ;;  %2038 = vmatmul.msk.bf16.gmra.mxu3 %vm620_vm0, %v2104_v14 }
  0x47   : > { %1991 = vmatmul.msk.bf16.gmra.mxu0 %vm620_vm0, %v2057_v15  ;;  %2007 = vmatmul.msk.bf16.gmra.mxu1 %vm620_vm0, %v2073_v16 }
  0x48   : > { %2023 = vmatmul.msk.bf16.gmra.mxu2 %vm620_vm0, %v2089_v17  ;;  %2039 = vmatmul.msk.bf16.gmra.mxu3 %vm620_vm0, %v2105_v18 }
  0x57   : > { %1992 = vmatmul.msk.bf16.gmra.mxu0 %vm620_vm0, %v2058_v19  ;;  %2008 = vmatmul.msk.bf16.gmra.mxu1 %vm620_vm0, %v2074_v20 }
  0x58   : > { %2024 = vmatmul.msk.bf16.gmra.mxu2 %vm620_vm0, %v2090_v21  ;;  %2040 = vmatmul.msk.bf16.gmra.mxu3 %vm620_vm0, %v2106_v22 }
  0x67   : > { %1993 = vmatmul.msk.bf16.gmra.mxu0 %vm620_vm0, %v2059_v23  ;;  %2009 = vmatmul.msk.bf16.gmra.mxu1 %vm620_vm0, %v2075_v24 }
  0x68   : > { %2025 = vmatmul.msk.bf16.gmra.mxu2 %vm620_vm0, %v2091_v25  ;;  %2041 = vmatmul.msk.bf16.gmra.mxu3 %vm620_vm0, %v2107_v26 }
  0x77   : > { %1994 = vmatmul.msk.bf16.gmra.mxu0 %vm620_vm0, %v2060_v27  ;;  %2010 = vmatmul.msk.bf16.gmra.mxu1 %vm620_vm0, %v2076_v28 }
  0x78   : > { %2026 = vmatmul.msk.bf16.gmra.mxu2 %vm620_vm0, %v2092_v29  ;;  %2042 = vmatmul.msk.bf16.gmra.mxu3 %vm620_vm0, %v2108_v30 }
  0x87   : > { %1995 = vmatmul.msk.bf16.gmra.mxu0 %vm620_vm0, %v2061_v31  ;;  %2011 = vmatmul.msk.bf16.gmra.mxu1 %vm620_vm0, %v2077_v32 }
  0x88   : > { %2027 = vmatmul.msk.bf16.gmra.mxu2 %vm620_vm0, %v2093_v33  ;;  %2043 = vmatmul.msk.bf16.gmra.mxu3 %vm620_vm0, %v2109_v34 }
  0x94   : > { %v822_v37 = vpop.f32.mrf.mxu0  ;;  %v902_v38 = vpop.f32.mrf.mxu1 }
  0x95   : > { %v1142_v41 = vmul.f32 0.2, %v822_v37  ;;  %v1174_v42 = vmul.f32 0.2, %v902_v38 }
  0x97   : > { %v1270_v43 = vmax.f32 %v822_v37, %v1142_v41  ;;  %v1302_v44 = vmax.f32 %v902_v38, %v1174_v42  ;;  %1996 = vmatmul.msk.bf16.gmra.mxu0 %vm620_vm0, %v2062_v35  ;;  %2012 = vmatmul.msk.bf16.gmra.mxu1 %vm620_vm0, %v2078_v36  ;;  %v2064_v35 = vld [vmem:[%s2186_s21 + $0x50] sm:$0xff] }
  0x98   : > { %2028 = vmatmul.msk.bf16.gmra.mxu2 %vm620_vm0, %v2094_v39  ;;  %2044 = vmatmul.msk.bf16.gmra.mxu3 %vm620_vm0, %v2110_v40  ;;  %v2080_v38 = vld [vmem:[%s2186_s21 + $0xd0] sm:$0xff] }
  0x99   : > { %v1398_v45 = vpack.c.bf16 %v1270_v43, %v1270_v43  ;;  %v1430_v46 = vpack.c.bf16 %v1302_v44, %v1302_v44  ;;  %v2096_v39 = vld [vmem:[%s2186_s21 + $0x150] sm:$0xff] }
  0x9a   : > { %v2112_v40 = vld [vmem:[%s2186_s21 + $0x1d0] sm:$0xff] }
  0x9b   : > { %1527 = vst.msk [vmem:[%s2263_s24] sm:$0xf] %vm1526_vm1, %v1398_v45  ;;  %v982_v47 = vpop.f32.mrf.mxu2  ;;  %v1062_v48 = vpop.f32.mrf.mxu3 }
  0x9c   : > { %1559 = vst.msk [vmem:[%s2263_s24 + $0x80] sm:$0xf] %vm1526_vm1, %v1430_v46  ;;  %v1206_v49 = vmul.f32 0.2, %v982_v47  ;;  %v1238_v50 = vmul.f32 0.2, %v1062_v48  ;;  %v824_v51 = vpop.f32.mrf.mxu0  ;;  %v904_v52 = vpop.f32.mrf.mxu1 }
  0x9d   : > { %v1143_v53 = vmul.f32 0.2, %v824_v51  ;;  %v1175_v54 = vmul.f32 0.2, %v904_v52 }
  0x9e   : > { %v1334_v55 = vmax.f32 %v982_v47, %v1206_v49  ;;  %v1366_v56 = vmax.f32 %v1062_v48, %v1238_v50 }
  0x9f   : > { %v1271_v57 = vmax.f32 %v824_v51, %v1143_v53  ;;  %v1303_v58 = vmax.f32 %v904_v52, %v1175_v54 }
  0xa0   : > { %v1462_v59 = vpack.c.bf16 %v1334_v55, %v1334_v55  ;;  %v1494_v60 = vpack.c.bf16 %v1366_v56, %v1366_v56 }
  0xa1   : > { %v1399_v61 = vpack.c.bf16 %v1271_v57, %v1271_v57  ;;  %v1431_v62 = vpack.c.bf16 %v1303_v58, %v1303_v58 }
  0xa2   : > { %1591 = vst.msk [vmem:[%s2263_s24 + $0x100] sm:$0xf] %vm1526_vm1, %v1462_v59 }
  0xa3   : > { %1623 = vst.msk [vmem:[%s2263_s24 + $0x180] sm:$0xf] %vm1526_vm1, %v1494_v60  ;;  %v984_v0 = vpop.f32.mrf.mxu2  ;;  %v1064_v1 = vpop.f32.mrf.mxu3 }
  0xa4   : > { %1528 = vst.msk [vmem:[%s2263_s24 + $0x4] sm:$0xf] %vm1526_vm1, %v1399_v61  ;;  %v1207_v5 = vmul.f32 0.2, %v984_v0  ;;  %v1239_v6 = vmul.f32 0.2, %v1064_v1  ;;  %v827_v7 = vpop.f32.mrf.mxu0  ;;  %v907_v8 = vpop.f32.mrf.mxu1 }
  0xa5   : > { %1560 = vst.msk [vmem:[%s2263_s24 + $0x84] sm:$0xf] %vm1526_vm1, %v1431_v62  ;;  %v1144_v9 = vmul.f32 0.2, %v827_v7  ;;  %v1176_v10 = vmul.f32 0.2, %v907_v8 }
  0xa6   : > { %v1335_v11 = vmax.f32 %v984_v0, %v1207_v5  ;;  %v1367_v12 = vmax.f32 %v1064_v1, %v1239_v6 }
  0xa7   : > { %v1272_v13 = vmax.f32 %v827_v7, %v1144_v9  ;;  %v1304_v14 = vmax.f32 %v907_v8, %v1176_v10  ;;  %1997 = vmatmul.msk.bf16.gmra.mxu0 %vm620_vm0, %v2063_v63  ;;  %2013 = vmatmul.msk.bf16.gmra.mxu1 %vm620_vm0, %v2079_v2  ;;  %v2065_v7 = vld [vmem:[%s2186_s21 + $0x58] sm:$0xff] }
  0xa8   : > { %v1463_v15 = vpack.c.bf16 %v1335_v11, %v1335_v11  ;;  %v1495_v16 = vpack.c.bf16 %v1367_v12, %v1367_v12  ;;  %2029 = vmatmul.msk.bf16.gmra.mxu2 %vm620_vm0, %v2095_v3  ;;  %2045 = vmatmul.msk.bf16.gmra.mxu3 %vm620_vm0, %v2111_v4  ;;  %v2081_v10 = vld [vmem:[%s2186_s21 + $0xd8] sm:$0xff] }
  0xa9   : > { %v1400_v17 = vpack.c.bf16 %v1272_v13, %v1272_v13  ;;  %v1432_v18 = vpack.c.bf16 %v1304_v14, %v1304_v14  ;;  %v2097_v11 = vld [vmem:[%s2186_s21 + $0x158] sm:$0xff] }
  0xaa   : > { %1592 = vst.msk [vmem:[%s2263_s24 + $0x104] sm:$0xf] %vm1526_vm1, %v1463_v15  ;;  %v2113_v12 = vld [vmem:[%s2186_s21 + $0x1d8] sm:$0xff] }
  0xab   : > { %1624 = vst.msk [vmem:[%s2263_s24 + $0x184] sm:$0xf] %vm1526_vm1, %v1495_v16  ;;  %v987_v19 = vpop.f32.mrf.mxu2  ;;  %v1067_v20 = vpop.f32.mrf.mxu3 }
  0xac   : > { %1529 = vst.msk [vmem:[%s2263_s24 + $0x8] sm:$0xf] %vm1526_vm1, %v1400_v17  ;;  %v1208_v21 = vmul.f32 0.2, %v987_v19  ;;  %v1240_v22 = vmul.f32 0.2, %v1067_v20  ;;  %v829_v23 = vpop.f32.mrf.mxu0  ;;  %v909_v24 = vpop.f32.mrf.mxu1 }
  0xad   : > { %1561 = vst.msk [vmem:[%s2263_s24 + $0x88] sm:$0xf] %vm1526_vm1, %v1432_v18  ;;  %v1145_v25 = vmul.f32 0.2, %v829_v23  ;;  %v1177_v26 = vmul.f32 0.2, %v909_v24 }
  0xae   : > { %v1336_v27 = vmax.f32 %v987_v19, %v1208_v21  ;;  %v1368_v28 = vmax.f32 %v1067_v20, %v1240_v22 }
  0xaf   : > { %v1273_v29 = vmax.f32 %v829_v23, %v1145_v25  ;;  %v1305_v30 = vmax.f32 %v909_v24, %v1177_v26 }
  0xb0   : > { %v1464_v31 = vpack.c.bf16 %v1336_v27, %v1336_v27  ;;  %v1496_v32 = vpack.c.bf16 %v1368_v28, %v1368_v28 }
  0xb1   : > { %v1401_v33 = vpack.c.bf16 %v1273_v29, %v1273_v29  ;;  %v1433_v34 = vpack.c.bf16 %v1305_v30, %v1305_v30 }
  0xb2   : > { %1593 = vst.msk [vmem:[%s2263_s24 + $0x108] sm:$0xf] %vm1526_vm1, %v1464_v31 }
  0xb3   : > { %1625 = vst.msk [vmem:[%s2263_s24 + $0x188] sm:$0xf] %vm1526_vm1, %v1496_v32  ;;  %v989_v36 = vpop.f32.mrf.mxu2  ;;  %v1069_v37 = vpop.f32.mrf.mxu3 }
  0xb4   : > { %1530 = vst.msk [vmem:[%s2263_s24 + $0xc] sm:$0xf] %vm1526_vm1, %v1401_v33  ;;  %v1209_v41 = vmul.f32 0.2, %v989_v36  ;;  %v1241_v42 = vmul.f32 0.2, %v1069_v37  ;;  %v832_v43 = vpop.f32.mrf.mxu0  ;;  %v912_v44 = vpop.f32.mrf.mxu1 }
  0xb5   : > { %1562 = vst.msk [vmem:[%s2263_s24 + $0x8c] sm:$0xf] %vm1526_vm1, %v1433_v34  ;;  %v1146_v45 = vmul.f32 0.2, %v832_v43  ;;  %v1178_v46 = vmul.f32 0.2, %v912_v44 }
  0xb6   : > { %v1337_v47 = vmax.f32 %v989_v36, %v1209_v41  ;;  %v1369_v48 = vmax.f32 %v1069_v37, %v1241_v42 }
  0xb7   : > { %v1274_v49 = vmax.f32 %v832_v43, %v1146_v45  ;;  %v1306_v50 = vmax.f32 %v912_v44, %v1178_v46  ;;  %1998 = vmatmul.msk.bf16.gmra.mxu0 %vm620_vm0, %v2064_v35  ;;  %2014 = vmatmul.msk.bf16.gmra.mxu1 %vm620_vm0, %v2080_v38  ;;  %v2066_v43 = vld [vmem:[%s2186_s21 + $0x60] sm:$0xff] }
  0xb8   : > { %v1465_v51 = vpack.c.bf16 %v1337_v47, %v1337_v47  ;;  %v1497_v52 = vpack.c.bf16 %v1369_v48, %v1369_v48  ;;  %2030 = vmatmul.msk.bf16.gmra.mxu2 %vm620_vm0, %v2096_v39  ;;  %2046 = vmatmul.msk.bf16.gmra.mxu3 %vm620_vm0, %v2112_v40  ;;  %v2082_v46 = vld [vmem:[%s2186_s21 + $0xe0] sm:$0xff] }
  0xb9   : > { %v1402_v53 = vpack.c.bf16 %v1274_v49, %v1274_v49  ;;  %v1434_v54 = vpack.c.bf16 %v1306_v50, %v1306_v50  ;;  %v2098_v47 = vld [vmem:[%s2186_s21 + $0x160] sm:$0xff] }
  0xba   : > { %1594 = vst.msk [vmem:[%s2263_s24 + $0x10c] sm:$0xf] %vm1526_vm1, %v1465_v51  ;;  %v2114_v48 = vld [vmem:[%s2186_s21 + $0x1e0] sm:$0xff] }
  0xbb   : > { %1626 = vst.msk [vmem:[%s2263_s24 + $0x18c] sm:$0xf] %vm1526_vm1, %v1497_v52  ;;  %v992_v55 = vpop.f32.mrf.mxu2  ;;  %v1072_v56 = vpop.f32.mrf.mxu3 }
  0xbc   : > { %1531 = vst.msk [vmem:[%s2263_s24 + $0x10] sm:$0xf] %vm1526_vm1, %v1402_v53  ;;  %v1210_v57 = vmul.f32 0.2, %v992_v55  ;;  %v1242_v58 = vmul.f32 0.2, %v1072_v56  ;;  %v834_v59 = vpop.f32.mrf.mxu0  ;;  %v914_v60 = vpop.f32.mrf.mxu1 }
  0xbd   : > { %1563 = vst.msk [vmem:[%s2263_s24 + $0x90] sm:$0xf] %vm1526_vm1, %v1434_v54  ;;  %v1147_v61 = vmul.f32 0.2, %v834_v59  ;;  %v1179_v62 = vmul.f32 0.2, %v914_v60 }
  0xbe   : > { %v1338_v63 = vmax.f32 %v992_v55, %v1210_v57  ;;  %v1370_v0 = vmax.f32 %v1072_v56, %v1242_v58 }
  0xbf   : > { %v1275_v1 = vmax.f32 %v834_v59, %v1147_v61  ;;  %v1307_v2 = vmax.f32 %v914_v60, %v1179_v62 }
  0xc0   : > { %v1466_v3 = vpack.c.bf16 %v1338_v63, %v1338_v63  ;;  %v1498_v4 = vpack.c.bf16 %v1370_v0, %v1370_v0 }
  0xc1   : > { %v1403_v5 = vpack.c.bf16 %v1275_v1, %v1275_v1  ;;  %v1435_v6 = vpack.c.bf16 %v1307_v2, %v1307_v2 }
  0xc2   : > { %1595 = vst.msk [vmem:[%s2263_s24 + $0x110] sm:$0xf] %vm1526_vm1, %v1466_v3 }
  0xc3   : > { %1627 = vst.msk [vmem:[%s2263_s24 + $0x190] sm:$0xf] %vm1526_vm1, %v1498_v4  ;;  %v994_v8 = vpop.f32.mrf.mxu2  ;;  %v1074_v9 = vpop.f32.mrf.mxu3 }
  0xc4   : > { %1532 = vst.msk [vmem:[%s2263_s24 + $0x14] sm:$0xf] %vm1526_vm1, %v1403_v5  ;;  %v1211_v13 = vmul.f32 0.2, %v994_v8  ;;  %v1243_v14 = vmul.f32 0.2, %v1074_v9  ;;  %v837_v15 = vpop.f32.mrf.mxu0  ;;  %v917_v16 = vpop.f32.mrf.mxu1 }
  0xc5   : > { %1564 = vst.msk [vmem:[%s2263_s24 + $0x94] sm:$0xf] %vm1526_vm1, %v1435_v6  ;;  %v1148_v17 = vmul.f32 0.2, %v837_v15  ;;  %v1180_v18 = vmul.f32 0.2, %v917_v16 }
  0xc6   : > { %v1339_v19 = vmax.f32 %v994_v8, %v1211_v13  ;;  %v1371_v20 = vmax.f32 %v1074_v9, %v1243_v14 }
  0xc7   : > { %v1276_v21 = vmax.f32 %v837_v15, %v1148_v17  ;;  %v1308_v22 = vmax.f32 %v917_v16, %v1180_v18  ;;  %1999 = vmatmul.msk.bf16.gmra.mxu0 %vm620_vm0, %v2065_v7  ;;  %2015 = vmatmul.msk.bf16.gmra.mxu1 %vm620_vm0, %v2081_v10  ;;  %v2067_v15 = vld [vmem:[%s2186_s21 + $0x68] sm:$0xff] }
  0xc8   : > { %v1467_v23 = vpack.c.bf16 %v1339_v19, %v1339_v19  ;;  %v1499_v24 = vpack.c.bf16 %v1371_v20, %v1371_v20  ;;  %2031 = vmatmul.msk.bf16.gmra.mxu2 %vm620_vm0, %v2097_v11  ;;  %2047 = vmatmul.msk.bf16.gmra.mxu3 %vm620_vm0, %v2113_v12  ;;  %v2083_v18 = vld [vmem:[%s2186_s21 + $0xe8] sm:$0xff] }
  0xc9   : > { %v1404_v25 = vpack.c.bf16 %v1276_v21, %v1276_v21  ;;  %v1436_v26 = vpack.c.bf16 %v1308_v22, %v1308_v22  ;;  %v2099_v19 = vld [vmem:[%s2186_s21 + $0x168] sm:$0xff] }
  0xca   : > { %1596 = vst.msk [vmem:[%s2263_s24 + $0x114] sm:$0xf] %vm1526_vm1, %v1467_v23  ;;  %v2115_v20 = vld [vmem:[%s2186_s21 + $0x1e8] sm:$0xff] }
  0xcb   : > { %1628 = vst.msk [vmem:[%s2263_s24 + $0x194] sm:$0xf] %vm1526_vm1, %v1499_v24  ;;  %v997_v27 = vpop.f32.mrf.mxu2  ;;  %v1077_v28 = vpop.f32.mrf.mxu3 }
  0xcc   : > { %1533 = vst.msk [vmem:[%s2263_s24 + $0x18] sm:$0xf] %vm1526_vm1, %v1404_v25  ;;  %v1212_v29 = vmul.f32 0.2, %v997_v27  ;;  %v1244_v30 = vmul.f32 0.2, %v1077_v28  ;;  %v839_v31 = vpop.f32.mrf.mxu0  ;;  %v919_v32 = vpop.f32.mrf.mxu1 }
  0xcd   : > { %1565 = vst.msk [vmem:[%s2263_s24 + $0x98] sm:$0xf] %vm1526_vm1, %v1436_v26  ;;  %v1149_v33 = vmul.f32 0.2, %v839_v31  ;;  %v1181_v34 = vmul.f32 0.2, %v919_v32 }
  0xce   : > { %v1340_v35 = vmax.f32 %v997_v27, %v1212_v29  ;;  %v1372_v36 = vmax.f32 %v1077_v28, %v1244_v30 }
  0xcf   : > { %v1277_v37 = vmax.f32 %v839_v31, %v1149_v33  ;;  %v1309_v38 = vmax.f32 %v919_v32, %v1181_v34 }
  0xd0   : > { %v1468_v39 = vpack.c.bf16 %v1340_v35, %v1340_v35  ;;  %v1500_v40 = vpack.c.bf16 %v1372_v36, %v1372_v36 }
  0xd1   : > { %v1405_v41 = vpack.c.bf16 %v1277_v37, %v1277_v37  ;;  %v1437_v42 = vpack.c.bf16 %v1309_v38, %v1309_v38 }
  0xd2   : > { %1597 = vst.msk [vmem:[%s2263_s24 + $0x118] sm:$0xf] %vm1526_vm1, %v1468_v39 }
  0xd3   : > { %1629 = vst.msk [vmem:[%s2263_s24 + $0x198] sm:$0xf] %vm1526_vm1, %v1500_v40  ;;  %v999_v44 = vpop.f32.mrf.mxu2  ;;  %v1079_v45 = vpop.f32.mrf.mxu3 }
  0xd4   : > { %1534 = vst.msk [vmem:[%s2263_s24 + $0x1c] sm:$0xf] %vm1526_vm1, %v1405_v41  ;;  %v1213_v49 = vmul.f32 0.2, %v999_v44  ;;  %v1245_v50 = vmul.f32 0.2, %v1079_v45  ;;  %v842_v51 = vpop.f32.mrf.mxu0  ;;  %v922_v52 = vpop.f32.mrf.mxu1 }
  0xd5   : > { %1566 = vst.msk [vmem:[%s2263_s24 + $0x9c] sm:$0xf] %vm1526_vm1, %v1437_v42  ;;  %v1150_v53 = vmul.f32 0.2, %v842_v51  ;;  %v1182_v54 = vmul.f32 0.2, %v922_v52 }
  0xd6   : > { %v1341_v55 = vmax.f32 %v999_v44, %v1213_v49  ;;  %v1373_v56 = vmax.f32 %v1079_v45, %v1245_v50 }
  0xd7   : > { %v1278_v57 = vmax.f32 %v842_v51, %v1150_v53  ;;  %v1310_v58 = vmax.f32 %v922_v52, %v1182_v54  ;;  %2000 = vmatmul.msk.bf16.gmra.mxu0 %vm620_vm0, %v2066_v43  ;;  %2016 = vmatmul.msk.bf16.gmra.mxu1 %vm620_vm0, %v2082_v46  ;;  %v2068_v51 = vld [vmem:[%s2186_s21 + $0x70] sm:$0xff] }
  0xd8   : > { %v1469_v59 = vpack.c.bf16 %v1341_v55, %v1341_v55  ;;  %v1501_v60 = vpack.c.bf16 %v1373_v56, %v1373_v56  ;;  %2032 = vmatmul.msk.bf16.gmra.mxu2 %vm620_vm0, %v2098_v47  ;;  %2048 = vmatmul.msk.bf16.gmra.mxu3 %vm620_vm0, %v2114_v48  ;;  %v2084_v54 = vld [vmem:[%s2186_s21 + $0xf0] sm:$0xff] }
  0xd9   : > { %v1406_v61 = vpack.c.bf16 %v1278_v57, %v1278_v57  ;;  %v1438_v62 = vpack.c.bf16 %v1310_v58, %v1310_v58  ;;  %v2100_v55 = vld [vmem:[%s2186_s21 + $0x170] sm:$0xff] }
  0xda   : > { %1598 = vst.msk [vmem:[%s2263_s24 + $0x11c] sm:$0xf] %vm1526_vm1, %v1469_v59  ;;  %v2116_v56 = vld [vmem:[%s2186_s21 + $0x1f0] sm:$0xff] }
  0xdb   : > { %1630 = vst.msk [vmem:[%s2263_s24 + $0x19c] sm:$0xf] %vm1526_vm1, %v1501_v60  ;;  %v1002_v63 = vpop.f32.mrf.mxu2  ;;  %v1082_v0 = vpop.f32.mrf.mxu3 }
  0xdc   : > { %1535 = vst.msk [vmem:[%s2263_s24 + $0x20] sm:$0xf] %vm1526_vm1, %v1406_v61  ;;  %v1214_v1 = vmul.f32 0.2, %v1002_v63  ;;  %v1246_v2 = vmul.f32 0.2, %v1082_v0  ;;  %v844_v3 = vpop.f32.mrf.mxu0  ;;  %v924_v4 = vpop.f32.mrf.mxu1 }
  0xdd   : > { %1567 = vst.msk [vmem:[%s2263_s24 + $0xa0] sm:$0xf] %vm1526_vm1, %v1438_v62  ;;  %v1151_v5 = vmul.f32 0.2, %v844_v3  ;;  %v1183_v6 = vmul.f32 0.2, %v924_v4 }
  0xde   : > { %v1342_v7 = vmax.f32 %v1002_v63, %v1214_v1  ;;  %v1374_v8 = vmax.f32 %v1082_v0, %v1246_v2 }
  0xdf   : > { %v1279_v9 = vmax.f32 %v844_v3, %v1151_v5  ;;  %v1311_v10 = vmax.f32 %v924_v4, %v1183_v6 }
  0xe0   : > { %v1470_v11 = vpack.c.bf16 %v1342_v7, %v1342_v7  ;;  %v1502_v12 = vpack.c.bf16 %v1374_v8, %v1374_v8 }
  0xe1   : > { %v1407_v13 = vpack.c.bf16 %v1279_v9, %v1279_v9  ;;  %v1439_v14 = vpack.c.bf16 %v1311_v10, %v1311_v10 }
  0xe2   : > { %1599 = vst.msk [vmem:[%s2263_s24 + $0x120] sm:$0xf] %vm1526_vm1, %v1470_v11 }
  0xe3   : > { %1631 = vst.msk [vmem:[%s2263_s24 + $0x1a0] sm:$0xf] %vm1526_vm1, %v1502_v12  ;;  %v1004_v16 = vpop.f32.mrf.mxu2  ;;  %v1084_v17 = vpop.f32.mrf.mxu3 }
  0xe4   : > { %1536 = vst.msk [vmem:[%s2263_s24 + $0x24] sm:$0xf] %vm1526_vm1, %v1407_v13  ;;  %v1215_v21 = vmul.f32 0.2, %v1004_v16  ;;  %v1247_v22 = vmul.f32 0.2, %v1084_v17  ;;  %v847_v23 = vpop.f32.mrf.mxu0  ;;  %v927_v24 = vpop.f32.mrf.mxu1 }
  0xe5   : > { %1568 = vst.msk [vmem:[%s2263_s24 + $0xa4] sm:$0xf] %vm1526_vm1, %v1439_v14  ;;  %v1152_v25 = vmul.f32 0.2, %v847_v23  ;;  %v1184_v26 = vmul.f32 0.2, %v927_v24 }
  0xe6   : > { %v1343_v27 = vmax.f32 %v1004_v16, %v1215_v21  ;;  %v1375_v28 = vmax.f32 %v1084_v17, %v1247_v22 }
  0xe7   : > { %v1280_v29 = vmax.f32 %v847_v23, %v1152_v25  ;;  %v1312_v30 = vmax.f32 %v927_v24, %v1184_v26  ;;  %2001 = vmatmul.msk.bf16.gmra.mxu0 %vm620_vm0, %v2067_v15  ;;  %2017 = vmatmul.msk.bf16.gmra.mxu1 %vm620_vm0, %v2083_v18  ;;  %v2069_v23 = vld [vmem:[%s2186_s21 + $0x78] sm:$0xff] }
  0xe8   : > { %v1471_v31 = vpack.c.bf16 %v1343_v27, %v1343_v27  ;;  %v1503_v32 = vpack.c.bf16 %v1375_v28, %v1375_v28  ;;  %2033 = vmatmul.msk.bf16.gmra.mxu2 %vm620_vm0, %v2099_v19  ;;  %2049 = vmatmul.msk.bf16.gmra.mxu3 %vm620_vm0, %v2115_v20  ;;  %v2085_v26 = vld [vmem:[%s2186_s21 + $0xf8] sm:$0xff] }
  0xe9   : > { %v1408_v33 = vpack.c.bf16 %v1280_v29, %v1280_v29  ;;  %v1440_v34 = vpack.c.bf16 %v1312_v30, %v1312_v30  ;;  %v2101_v27 = vld [vmem:[%s2186_s21 + $0x178] sm:$0xff] }
  0xea   : > { %1600 = vst.msk [vmem:[%s2263_s24 + $0x124] sm:$0xf] %vm1526_vm1, %v1471_v31  ;;  %v2117_v28 = vld [vmem:[%s2186_s21 + $0x1f8] sm:$0xff] }
  0xeb   : > { %1632 = vst.msk [vmem:[%s2263_s24 + $0x1a4] sm:$0xf] %vm1526_vm1, %v1503_v32  ;;  %v1007_v35 = vpop.f32.mrf.mxu2  ;;  %v1087_v36 = vpop.f32.mrf.mxu3 }
  0xec   : > { %1537 = vst.msk [vmem:[%s2263_s24 + $0x28] sm:$0xf] %vm1526_vm1, %v1408_v33  ;;  %v1216_v37 = vmul.f32 0.2, %v1007_v35  ;;  %v1248_v38 = vmul.f32 0.2, %v1087_v36  ;;  %v849_v39 = vpop.f32.mrf.mxu0  ;;  %v929_v40 = vpop.f32.mrf.mxu1 }
  0xed   : > { %1569 = vst.msk [vmem:[%s2263_s24 + $0xa8] sm:$0xf] %vm1526_vm1, %v1440_v34  ;;  %v1153_v41 = vmul.f32 0.2, %v849_v39  ;;  %v1185_v42 = vmul.f32 0.2, %v929_v40 }
  0xee   : > { %v1344_v43 = vmax.f32 %v1007_v35, %v1216_v37  ;;  %v1376_v44 = vmax.f32 %v1087_v36, %v1248_v38 }
  0xef   : > { %v1281_v45 = vmax.f32 %v849_v39, %v1153_v41  ;;  %v1313_v46 = vmax.f32 %v929_v40, %v1185_v42 }
  0xf0   : > { %v1472_v47 = vpack.c.bf16 %v1344_v43, %v1344_v43  ;;  %v1504_v48 = vpack.c.bf16 %v1376_v44, %v1376_v44 }
  0xf1   : > { %v1409_v49 = vpack.c.bf16 %v1281_v45, %v1281_v45  ;;  %v1441_v50 = vpack.c.bf16 %v1313_v46, %v1313_v46 }
  0xf2   : > { %1601 = vst.msk [vmem:[%s2263_s24 + $0x128] sm:$0xf] %vm1526_vm1, %v1472_v47 }
  0xf3   : > { %1633 = vst.msk [vmem:[%s2263_s24 + $0x1a8] sm:$0xf] %vm1526_vm1, %v1504_v48  ;;  %v1009_v52 = vpop.f32.mrf.mxu2  ;;  %v1089_v53 = vpop.f32.mrf.mxu3 }
  0xf4   : > { %1538 = vst.msk [vmem:[%s2263_s24 + $0x2c] sm:$0xf] %vm1526_vm1, %v1409_v49  ;;  %v1217_v57 = vmul.f32 0.2, %v1009_v52  ;;  %v1249_v58 = vmul.f32 0.2, %v1089_v53  ;;  %v852_v59 = vpop.f32.mrf.mxu0  ;;  %v932_v60 = vpop.f32.mrf.mxu1 }
  0xf5   : > { %1570 = vst.msk [vmem:[%s2263_s24 + $0xac] sm:$0xf] %vm1526_vm1, %v1441_v50  ;;  %v1154_v61 = vmul.f32 0.2, %v852_v59  ;;  %v1186_v62 = vmul.f32 0.2, %v932_v60 }
  0xf6   : > { %v1345_v63 = vmax.f32 %v1009_v52, %v1217_v57  ;;  %v1377_v0 = vmax.f32 %v1089_v53, %v1249_v58 }
  0xf7   : > { %v1282_v1 = vmax.f32 %v852_v59, %v1154_v61  ;;  %v1314_v2 = vmax.f32 %v932_v60, %v1186_v62  ;;  %2002 = vmatmul.msk.bf16.gmra.mxu0 %vm620_vm0, %v2068_v51  ;;  %2018 = vmatmul.msk.bf16.gmra.mxu1 %vm620_vm0, %v2084_v54 }
  0xf8   : > { %v1473_v3 = vpack.c.bf16 %v1345_v63, %v1345_v63  ;;  %v1505_v4 = vpack.c.bf16 %v1377_v0, %v1377_v0  ;;  %2034 = vmatmul.msk.bf16.gmra.mxu2 %vm620_vm0, %v2100_v55  ;;  %2050 = vmatmul.msk.bf16.gmra.mxu3 %vm620_vm0, %v2116_v56 }
  0xf9   : > { %v1410_v5 = vpack.c.bf16 %v1282_v1, %v1282_v1  ;;  %v1442_v6 = vpack.c.bf16 %v1314_v2, %v1314_v2 }
  0xfa   : > { %1602 = vst.msk [vmem:[%s2263_s24 + $0x12c] sm:$0xf] %vm1526_vm1, %v1473_v3 }
  0xfb   : > { %1634 = vst.msk [vmem:[%s2263_s24 + $0x1ac] sm:$0xf] %vm1526_vm1, %v1505_v4  ;;  %v1012_v7 = vpop.f32.mrf.mxu2  ;;  %v1092_v8 = vpop.f32.mrf.mxu3 }
  0xfc   : > { %1539 = vst.msk [vmem:[%s2263_s24 + $0x30] sm:$0xf] %vm1526_vm1, %v1410_v5  ;;  %v1218_v9 = vmul.f32 0.2, %v1012_v7  ;;  %v1250_v10 = vmul.f32 0.2, %v1092_v8  ;;  %v854_v11 = vpop.f32.mrf.mxu0  ;;  %v934_v12 = vpop.f32.mrf.mxu1 }
  0xfd   : > { %1571 = vst.msk [vmem:[%s2263_s24 + $0xb0] sm:$0xf] %vm1526_vm1, %v1442_v6  ;;  %v1155_v13 = vmul.f32 0.2, %v854_v11  ;;  %v1187_v14 = vmul.f32 0.2, %v934_v12 }
  0xfe   : > { %v1346_v15 = vmax.f32 %v1012_v7, %v1218_v9  ;;  %v1378_v16 = vmax.f32 %v1092_v8, %v1250_v10 }
  0xff   : > { %v1283_v17 = vmax.f32 %v854_v11, %v1155_v13  ;;  %v1315_v18 = vmax.f32 %v934_v12, %v1187_v14 }
 0x100   : > { %v1474_v19 = vpack.c.bf16 %v1346_v15, %v1346_v15  ;;  %v1506_v20 = vpack.c.bf16 %v1378_v16, %v1378_v16 }
 0x101   : > { %v1411_v21 = vpack.c.bf16 %v1283_v17, %v1283_v17  ;;  %v1443_v22 = vpack.c.bf16 %v1315_v18, %v1315_v18 }
 0x102   : > { %1603 = vst.msk [vmem:[%s2263_s24 + $0x130] sm:$0xf] %vm1526_vm1, %v1474_v19 }
 0x103   : > { %1635 = vst.msk [vmem:[%s2263_s24 + $0x1b0] sm:$0xf] %vm1526_vm1, %v1506_v20  ;;  %v1014_v24 = vpop.f32.mrf.mxu2  ;;  %v1094_v25 = vpop.f32.mrf.mxu3 }
 0x104   : > { %1540 = vst.msk [vmem:[%s2263_s24 + $0x34] sm:$0xf] %vm1526_vm1, %v1411_v21  ;;  %v1219_v29 = vmul.f32 0.2, %v1014_v24  ;;  %v1251_v30 = vmul.f32 0.2, %v1094_v25  ;;  %v857_v31 = vpop.f32.mrf.mxu0  ;;  %v937_v32 = vpop.f32.mrf.mxu1 }
 0x105   : > { %1572 = vst.msk [vmem:[%s2263_s24 + $0xb4] sm:$0xf] %vm1526_vm1, %v1443_v22  ;;  %v1156_v33 = vmul.f32 0.2, %v857_v31  ;;  %v1188_v34 = vmul.f32 0.2, %v937_v32 }
 0x106   : > { %v1347_v35 = vmax.f32 %v1014_v24, %v1219_v29  ;;  %v1379_v36 = vmax.f32 %v1094_v25, %v1251_v30 }
 0x107   : > { %v1284_v37 = vmax.f32 %v857_v31, %v1156_v33  ;;  %v1316_v38 = vmax.f32 %v937_v32, %v1188_v34  ;;  %2003 = vmatmul.msk.bf16.gmra.mxu0 %vm620_vm0, %v2069_v23  ;;  %2019 = vmatmul.msk.bf16.gmra.mxu1 %vm620_vm0, %v2085_v26 }
 0x108   : > { %v1475_v39 = vpack.c.bf16 %v1347_v35, %v1347_v35  ;;  %v1507_v40 = vpack.c.bf16 %v1379_v36, %v1379_v36  ;;  %2035 = vmatmul.msk.bf16.gmra.mxu2 %vm620_vm0, %v2101_v27  ;;  %2051 = vmatmul.msk.bf16.gmra.mxu3 %vm620_vm0, %v2117_v28 }
 0x109   : > { %v1412_v41 = vpack.c.bf16 %v1284_v37, %v1284_v37  ;;  %v1444_v42 = vpack.c.bf16 %v1316_v38, %v1316_v38 }
 0x10a   : > { %1604 = vst.msk [vmem:[%s2263_s24 + $0x134] sm:$0xf] %vm1526_vm1, %v1475_v39 }
 0x10b   : > { %1636 = vst.msk [vmem:[%s2263_s24 + $0x1b4] sm:$0xf] %vm1526_vm1, %v1507_v40  ;;  %v1017_v43 = vpop.f32.mrf.mxu2  ;;  %v1097_v44 = vpop.f32.mrf.mxu3 }
 0x10c   : > { %1541 = vst.msk [vmem:[%s2263_s24 + $0x38] sm:$0xf] %vm1526_vm1, %v1412_v41  ;;  %v1220_v45 = vmul.f32 0.2, %v1017_v43  ;;  %v1252_v46 = vmul.f32 0.2, %v1097_v44  ;;  %v859_v47 = vpop.f32.mrf.mxu0  ;;  %v939_v48 = vpop.f32.mrf.mxu1 }
 0x10d   : > { %1573 = vst.msk [vmem:[%s2263_s24 + $0xb8] sm:$0xf] %vm1526_vm1, %v1444_v42  ;;  %v1157_v49 = vmul.f32 0.2, %v859_v47  ;;  %v1189_v50 = vmul.f32 0.2, %v939_v48 }
 0x10e   : > { %v1348_v51 = vmax.f32 %v1017_v43, %v1220_v45  ;;  %v1380_v52 = vmax.f32 %v1097_v44, %v1252_v46 }
 0x10f   : > { %v1285_v53 = vmax.f32 %v859_v47, %v1157_v49  ;;  %v1317_v54 = vmax.f32 %v939_v48, %v1189_v50 }
 0x110   : > { %v1476_v55 = vpack.c.bf16 %v1348_v51, %v1348_v51  ;;  %v1508_v56 = vpack.c.bf16 %v1380_v52, %v1380_v52 }
 0x111   : > { %v1413_v57 = vpack.c.bf16 %v1285_v53, %v1285_v53  ;;  %v1445_v58 = vpack.c.bf16 %v1317_v54, %v1317_v54 }
 0x112   : > { %1605 = vst.msk [vmem:[%s2263_s24 + $0x138] sm:$0xf] %vm1526_vm1, %v1476_v55 }
 0x113   : > { %1637 = vst.msk [vmem:[%s2263_s24 + $0x1b8] sm:$0xf] %vm1526_vm1, %v1508_v56  ;;  %v1019_v59 = vpop.f32.mrf.mxu2  ;;  %v1099_v60 = vpop.f32.mrf.mxu3 }
 0x114   : > { %1542 = vst.msk [vmem:[%s2263_s24 + $0x3c] sm:$0xf] %vm1526_vm1, %v1413_v57  ;;  %v1221_v61 = vmul.f32 0.2, %v1019_v59  ;;  %v1253_v62 = vmul.f32 0.2, %v1099_v60  ;;  %v862_v63 = vpop.f32.mrf.mxu0  ;;  %v942_v0 = vpop.f32.mrf.mxu1 }
 0x115   : > { %1574 = vst.msk [vmem:[%s2263_s24 + $0xbc] sm:$0xf] %vm1526_vm1, %v1445_v58  ;;  %v1158_v1 = vmul.f32 0.2, %v862_v63  ;;  %v1190_v2 = vmul.f32 0.2, %v942_v0 }
 0x116   : > { %v1349_v3 = vmax.f32 %v1019_v59, %v1221_v61  ;;  %v1381_v4 = vmax.f32 %v1099_v60, %v1253_v62 }
 0x117   : > { %v1286_v5 = vmax.f32 %v862_v63, %v1158_v1  ;;  %v1318_v6 = vmax.f32 %v942_v0, %v1190_v2 }
 0x118   : > { %v1477_v7 = vpack.c.bf16 %v1349_v3, %v1349_v3  ;;  %v1509_v8 = vpack.c.bf16 %v1381_v4, %v1381_v4 }
 0x119   : > { %v1414_v9 = vpack.c.bf16 %v1286_v5, %v1286_v5  ;;  %v1446_v10 = vpack.c.bf16 %v1318_v6, %v1318_v6 }
 0x11a   : > { %1606 = vst.msk [vmem:[%s2263_s24 + $0x13c] sm:$0xf] %vm1526_vm1, %v1477_v7 }
 0x11b   : > { %1638 = vst.msk [vmem:[%s2263_s24 + $0x1bc] sm:$0xf] %vm1526_vm1, %v1509_v8  ;;  %v1022_v11 = vpop.f32.mrf.mxu2  ;;  %v1102_v12 = vpop.f32.mrf.mxu3 }
 0x11c   : > { %1543 = vst.msk [vmem:[%s2263_s24 + $0x40] sm:$0xf] %vm1526_vm1, %v1414_v9  ;;  %v1222_v13 = vmul.f32 0.2, %v1022_v11  ;;  %v1254_v14 = vmul.f32 0.2, %v1102_v12  ;;  %v864_v15 = vpop.f32.mrf.mxu0  ;;  %v944_v16 = vpop.f32.mrf.mxu1 }
 0x11d   : > { %1575 = vst.msk [vmem:[%s2263_s24 + $0xc0] sm:$0xf] %vm1526_vm1, %v1446_v10  ;;  %v1159_v17 = vmul.f32 0.2, %v864_v15  ;;  %v1191_v18 = vmul.f32 0.2, %v944_v16 }
 0x11e   : > { %v1350_v19 = vmax.f32 %v1022_v11, %v1222_v13  ;;  %v1382_v20 = vmax.f32 %v1102_v12, %v1254_v14 }
 0x11f   : > { %v1287_v21 = vmax.f32 %v864_v15, %v1159_v17  ;;  %v1319_v22 = vmax.f32 %v944_v16, %v1191_v18 }
 0x120   : > { %v1478_v23 = vpack.c.bf16 %v1350_v19, %v1350_v19  ;;  %v1510_v24 = vpack.c.bf16 %v1382_v20, %v1382_v20 }
 0x121   : > { %v1415_v25 = vpack.c.bf16 %v1287_v21, %v1287_v21  ;;  %v1447_v26 = vpack.c.bf16 %v1319_v22, %v1319_v22 }
 0x122   : > { %1607 = vst.msk [vmem:[%s2263_s24 + $0x140] sm:$0xf] %vm1526_vm1, %v1478_v23 }
 0x123   : > { %1639 = vst.msk [vmem:[%s2263_s24 + $0x1c0] sm:$0xf] %vm1526_vm1, %v1510_v24  ;;  %v1024_v27 = vpop.f32.mrf.mxu2  ;;  %v1104_v28 = vpop.f32.mrf.mxu3 }
 0x124   : > { %1544 = vst.msk [vmem:[%s2263_s24 + $0x44] sm:$0xf] %vm1526_vm1, %v1415_v25  ;;  %v1223_v29 = vmul.f32 0.2, %v1024_v27  ;;  %v1255_v30 = vmul.f32 0.2, %v1104_v28  ;;  %v867_v31 = vpop.f32.mrf.mxu0  ;;  %v947_v32 = vpop.f32.mrf.mxu1 }
 0x125   : > { %1576 = vst.msk [vmem:[%s2263_s24 + $0xc4] sm:$0xf] %vm1526_vm1, %v1447_v26  ;;  %v1160_v33 = vmul.f32 0.2, %v867_v31  ;;  %v1192_v34 = vmul.f32 0.2, %v947_v32 }
 0x126   : > { %v1351_v35 = vmax.f32 %v1024_v27, %v1223_v29  ;;  %v1383_v36 = vmax.f32 %v1104_v28, %v1255_v30 }
 0x127   : > { %v1288_v37 = vmax.f32 %v867_v31, %v1160_v33  ;;  %v1320_v38 = vmax.f32 %v947_v32, %v1192_v34 }
 0x128   : > { %v1479_v39 = vpack.c.bf16 %v1351_v35, %v1351_v35  ;;  %v1511_v40 = vpack.c.bf16 %v1383_v36, %v1383_v36 }
 0x129   : > { %v1416_v41 = vpack.c.bf16 %v1288_v37, %v1288_v37  ;;  %v1448_v42 = vpack.c.bf16 %v1320_v38, %v1320_v38 }
 0x12a   : > { %1608 = vst.msk [vmem:[%s2263_s24 + $0x144] sm:$0xf] %vm1526_vm1, %v1479_v39 }
 0x12b   : > { %1640 = vst.msk [vmem:[%s2263_s24 + $0x1c4] sm:$0xf] %vm1526_vm1, %v1511_v40  ;;  %v1027_v43 = vpop.f32.mrf.mxu2  ;;  %v1107_v44 = vpop.f32.mrf.mxu3 }
 0x12c   : > { %1545 = vst.msk [vmem:[%s2263_s24 + $0x48] sm:$0xf] %vm1526_vm1, %v1416_v41  ;;  %v1224_v45 = vmul.f32 0.2, %v1027_v43  ;;  %v1256_v46 = vmul.f32 0.2, %v1107_v44  ;;  %v869_v47 = vpop.f32.mrf.mxu0  ;;  %v949_v48 = vpop.f32.mrf.mxu1 }
 0x12d   : > { %1577 = vst.msk [vmem:[%s2263_s24 + $0xc8] sm:$0xf] %vm1526_vm1, %v1448_v42  ;;  %v1161_v49 = vmul.f32 0.2, %v869_v47  ;;  %v1193_v50 = vmul.f32 0.2, %v949_v48 }
 0x12e   : > { %v1352_v51 = vmax.f32 %v1027_v43, %v1224_v45  ;;  %v1384_v52 = vmax.f32 %v1107_v44, %v1256_v46 }
 0x12f   : > { %v1289_v53 = vmax.f32 %v869_v47, %v1161_v49  ;;  %v1321_v54 = vmax.f32 %v949_v48, %v1193_v50 }
 0x130   : > { %v1480_v55 = vpack.c.bf16 %v1352_v51, %v1352_v51  ;;  %v1512_v56 = vpack.c.bf16 %v1384_v52, %v1384_v52 }
 0x131   : > { %v1417_v57 = vpack.c.bf16 %v1289_v53, %v1289_v53  ;;  %v1449_v58 = vpack.c.bf16 %v1321_v54, %v1321_v54 }
 0x132   : > { %1609 = vst.msk [vmem:[%s2263_s24 + $0x148] sm:$0xf] %vm1526_vm1, %v1480_v55 }
 0x133   : > { %1641 = vst.msk [vmem:[%s2263_s24 + $0x1c8] sm:$0xf] %vm1526_vm1, %v1512_v56  ;;  %v1029_v59 = vpop.f32.mrf.mxu2  ;;  %v1109_v60 = vpop.f32.mrf.mxu3 }
 0x134   : > { %1546 = vst.msk [vmem:[%s2263_s24 + $0x4c] sm:$0xf] %vm1526_vm1, %v1417_v57  ;;  %v1225_v61 = vmul.f32 0.2, %v1029_v59  ;;  %v1257_v62 = vmul.f32 0.2, %v1109_v60  ;;  %v872_v63 = vpop.f32.mrf.mxu0  ;;  %v952_v0 = vpop.f32.mrf.mxu1 }
 0x135   : > { %1578 = vst.msk [vmem:[%s2263_s24 + $0xcc] sm:$0xf] %vm1526_vm1, %v1449_v58  ;;  %v1162_v1 = vmul.f32 0.2, %v872_v63  ;;  %v1194_v2 = vmul.f32 0.2, %v952_v0 }
 0x136   : > { %v1353_v3 = vmax.f32 %v1029_v59, %v1225_v61  ;;  %v1385_v4 = vmax.f32 %v1109_v60, %v1257_v62 }
 0x137   : > { %v1290_v5 = vmax.f32 %v872_v63, %v1162_v1  ;;  %v1322_v6 = vmax.f32 %v952_v0, %v1194_v2 }
 0x138   : > { %v1481_v7 = vpack.c.bf16 %v1353_v3, %v1353_v3  ;;  %v1513_v8 = vpack.c.bf16 %v1385_v4, %v1385_v4 }
 0x139   : > { %v1418_v9 = vpack.c.bf16 %v1290_v5, %v1290_v5  ;;  %v1450_v10 = vpack.c.bf16 %v1322_v6, %v1322_v6 }
 0x13a   : > { %1610 = vst.msk [vmem:[%s2263_s24 + $0x14c] sm:$0xf] %vm1526_vm1, %v1481_v7 }
 0x13b   : > { %1642 = vst.msk [vmem:[%s2263_s24 + $0x1cc] sm:$0xf] %vm1526_vm1, %v1513_v8  ;;  %v1032_v11 = vpop.f32.mrf.mxu2  ;;  %v1112_v12 = vpop.f32.mrf.mxu3 }
 0x13c   : > { %1547 = vst.msk [vmem:[%s2263_s24 + $0x50] sm:$0xf] %vm1526_vm1, %v1418_v9  ;;  %v1226_v13 = vmul.f32 0.2, %v1032_v11  ;;  %v1258_v14 = vmul.f32 0.2, %v1112_v12  ;;  %v874_v15 = vpop.f32.mrf.mxu0  ;;  %v954_v16 = vpop.f32.mrf.mxu1 }
 0x13d   : > { %1579 = vst.msk [vmem:[%s2263_s24 + $0xd0] sm:$0xf] %vm1526_vm1, %v1450_v10  ;;  %v1163_v17 = vmul.f32 0.2, %v874_v15  ;;  %v1195_v18 = vmul.f32 0.2, %v954_v16 }
 0x13e   : > { %v1354_v19 = vmax.f32 %v1032_v11, %v1226_v13  ;;  %v1386_v20 = vmax.f32 %v1112_v12, %v1258_v14 }
 0x13f   : > { %v1291_v21 = vmax.f32 %v874_v15, %v1163_v17  ;;  %v1323_v22 = vmax.f32 %v954_v16, %v1195_v18 }
 0x140   : > { %v1482_v23 = vpack.c.bf16 %v1354_v19, %v1354_v19  ;;  %v1514_v24 = vpack.c.bf16 %v1386_v20, %v1386_v20 }
 0x141   : > { %v1419_v25 = vpack.c.bf16 %v1291_v21, %v1291_v21  ;;  %v1451_v26 = vpack.c.bf16 %v1323_v22, %v1323_v22 }
 0x142   : > { %1611 = vst.msk [vmem:[%s2263_s24 + $0x150] sm:$0xf] %vm1526_vm1, %v1482_v23 }
 0x143   : > { %1643 = vst.msk [vmem:[%s2263_s24 + $0x1d0] sm:$0xf] %vm1526_vm1, %v1514_v24  ;;  %v1034_v27 = vpop.f32.mrf.mxu2  ;;  %v1114_v28 = vpop.f32.mrf.mxu3 }
 0x144   : > { %1548 = vst.msk [vmem:[%s2263_s24 + $0x54] sm:$0xf] %vm1526_vm1, %v1419_v25  ;;  %v1227_v29 = vmul.f32 0.2, %v1034_v27  ;;  %v1259_v30 = vmul.f32 0.2, %v1114_v28  ;;  %v877_v31 = vpop.f32.mrf.mxu0  ;;  %v957_v32 = vpop.f32.mrf.mxu1 }
 0x145   : > { %1580 = vst.msk [vmem:[%s2263_s24 + $0xd4] sm:$0xf] %vm1526_vm1, %v1451_v26  ;;  %v1164_v33 = vmul.f32 0.2, %v877_v31  ;;  %v1196_v34 = vmul.f32 0.2, %v957_v32 }
 0x146   : > { %v1355_v35 = vmax.f32 %v1034_v27, %v1227_v29  ;;  %v1387_v36 = vmax.f32 %v1114_v28, %v1259_v30 }
 0x147   : > { %v1292_v37 = vmax.f32 %v877_v31, %v1164_v33  ;;  %v1324_v38 = vmax.f32 %v957_v32, %v1196_v34 }
 0x148   : > { %v1483_v39 = vpack.c.bf16 %v1355_v35, %v1355_v35  ;;  %v1515_v40 = vpack.c.bf16 %v1387_v36, %v1387_v36 }
 0x149   : > { %v1420_v41 = vpack.c.bf16 %v1292_v37, %v1292_v37  ;;  %v1452_v42 = vpack.c.bf16 %v1324_v38, %v1324_v38 }
 0x14a   : > { %1612 = vst.msk [vmem:[%s2263_s24 + $0x154] sm:$0xf] %vm1526_vm1, %v1483_v39 }
 0x14b   : > { %1644 = vst.msk [vmem:[%s2263_s24 + $0x1d4] sm:$0xf] %vm1526_vm1, %v1515_v40  ;;  %v1037_v43 = vpop.f32.mrf.mxu2  ;;  %v1117_v44 = vpop.f32.mrf.mxu3 }
 0x14c   : > { %1549 = vst.msk [vmem:[%s2263_s24 + $0x58] sm:$0xf] %vm1526_vm1, %v1420_v41  ;;  %v1228_v45 = vmul.f32 0.2, %v1037_v43  ;;  %v1260_v46 = vmul.f32 0.2, %v1117_v44  ;;  %v879_v47 = vpop.f32.mrf.mxu0  ;;  %v959_v48 = vpop.f32.mrf.mxu1 }
 0x14d   : > { %1581 = vst.msk [vmem:[%s2263_s24 + $0xd8] sm:$0xf] %vm1526_vm1, %v1452_v42  ;;  %v1165_v49 = vmul.f32 0.2, %v879_v47  ;;  %v1197_v50 = vmul.f32 0.2, %v959_v48 }
 0x14e   : > { %v1356_v51 = vmax.f32 %v1037_v43, %v1228_v45  ;;  %v1388_v52 = vmax.f32 %v1117_v44, %v1260_v46 }
 0x14f   : > { %v1293_v53 = vmax.f32 %v879_v47, %v1165_v49  ;;  %v1325_v54 = vmax.f32 %v959_v48, %v1197_v50 }
 0x150   : > { %v1484_v55 = vpack.c.bf16 %v1356_v51, %v1356_v51  ;;  %v1516_v56 = vpack.c.bf16 %v1388_v52, %v1388_v52 }
 0x151   : > { %v1421_v57 = vpack.c.bf16 %v1293_v53, %v1293_v53  ;;  %v1453_v58 = vpack.c.bf16 %v1325_v54, %v1325_v54 }
 0x152   : > { %1613 = vst.msk [vmem:[%s2263_s24 + $0x158] sm:$0xf] %vm1526_vm1, %v1484_v55 }
 0x153   : > { %1645 = vst.msk [vmem:[%s2263_s24 + $0x1d8] sm:$0xf] %vm1526_vm1, %v1516_v56  ;;  %v1039_v59 = vpop.f32.mrf.mxu2  ;;  %v1119_v60 = vpop.f32.mrf.mxu3 }
 0x154   : > { %1550 = vst.msk [vmem:[%s2263_s24 + $0x5c] sm:$0xf] %vm1526_vm1, %v1421_v57  ;;  %v1229_v61 = vmul.f32 0.2, %v1039_v59  ;;  %v1261_v62 = vmul.f32 0.2, %v1119_v60  ;;  %v882_v63 = vpop.f32.mrf.mxu0  ;;  %v962_v0 = vpop.f32.mrf.mxu1 }
 0x155   : > { %1582 = vst.msk [vmem:[%s2263_s24 + $0xdc] sm:$0xf] %vm1526_vm1, %v1453_v58  ;;  %v1166_v1 = vmul.f32 0.2, %v882_v63  ;;  %v1198_v2 = vmul.f32 0.2, %v962_v0 }
 0x156   : > { %v1357_v3 = vmax.f32 %v1039_v59, %v1229_v61  ;;  %v1389_v4 = vmax.f32 %v1119_v60, %v1261_v62 }
 0x157   : > { %v1294_v5 = vmax.f32 %v882_v63, %v1166_v1  ;;  %v1326_v6 = vmax.f32 %v962_v0, %v1198_v2 }
 0x158   : > { %v1485_v7 = vpack.c.bf16 %v1357_v3, %v1357_v3  ;;  %v1517_v8 = vpack.c.bf16 %v1389_v4, %v1389_v4 }
 0x159   : > { %v1422_v9 = vpack.c.bf16 %v1294_v5, %v1294_v5  ;;  %v1454_v10 = vpack.c.bf16 %v1326_v6, %v1326_v6 }
 0x15a   : > { %1614 = vst.msk [vmem:[%s2263_s24 + $0x15c] sm:$0xf] %vm1526_vm1, %v1485_v7 }
 0x15b   : > { %1646 = vst.msk [vmem:[%s2263_s24 + $0x1dc] sm:$0xf] %vm1526_vm1, %v1517_v8  ;;  %v1042_v11 = vpop.f32.mrf.mxu2  ;;  %v1122_v12 = vpop.f32.mrf.mxu3 }
 0x15c   : > { %1551 = vst.msk [vmem:[%s2263_s24 + $0x60] sm:$0xf] %vm1526_vm1, %v1422_v9  ;;  %v1230_v13 = vmul.f32 0.2, %v1042_v11  ;;  %v1262_v14 = vmul.f32 0.2, %v1122_v12  ;;  %v884_v15 = vpop.f32.mrf.mxu0  ;;  %v964_v16 = vpop.f32.mrf.mxu1 }
 0x15d   : > { %1583 = vst.msk [vmem:[%s2263_s24 + $0xe0] sm:$0xf] %vm1526_vm1, %v1454_v10  ;;  %v1167_v17 = vmul.f32 0.2, %v884_v15  ;;  %v1199_v18 = vmul.f32 0.2, %v964_v16 }
 0x15e   : > { %v1358_v19 = vmax.f32 %v1042_v11, %v1230_v13  ;;  %v1390_v20 = vmax.f32 %v1122_v12, %v1262_v14 }
 0x15f   : > { %v1295_v21 = vmax.f32 %v884_v15, %v1167_v17  ;;  %v1327_v22 = vmax.f32 %v964_v16, %v1199_v18 }
 0x160   : > { %v1486_v23 = vpack.c.bf16 %v1358_v19, %v1358_v19  ;;  %v1518_v24 = vpack.c.bf16 %v1390_v20, %v1390_v20 }
 0x161   : > { %v1423_v25 = vpack.c.bf16 %v1295_v21, %v1295_v21  ;;  %v1455_v26 = vpack.c.bf16 %v1327_v22, %v1327_v22 }
 0x162   : > { %1615 = vst.msk [vmem:[%s2263_s24 + $0x160] sm:$0xf] %vm1526_vm1, %v1486_v23 }
 0x163   : > { %1647 = vst.msk [vmem:[%s2263_s24 + $0x1e0] sm:$0xf] %vm1526_vm1, %v1518_v24  ;;  %v1044_v27 = vpop.f32.mrf.mxu2  ;;  %v1124_v28 = vpop.f32.mrf.mxu3 }
 0x164   : > { %1552 = vst.msk [vmem:[%s2263_s24 + $0x64] sm:$0xf] %vm1526_vm1, %v1423_v25  ;;  %v1231_v29 = vmul.f32 0.2, %v1044_v27  ;;  %v1263_v30 = vmul.f32 0.2, %v1124_v28  ;;  %v887_v31 = vpop.f32.mrf.mxu0  ;;  %v967_v32 = vpop.f32.mrf.mxu1 }
 0x165   : > { %1584 = vst.msk [vmem:[%s2263_s24 + $0xe4] sm:$0xf] %vm1526_vm1, %v1455_v26  ;;  %v1168_v33 = vmul.f32 0.2, %v887_v31  ;;  %v1200_v34 = vmul.f32 0.2, %v967_v32 }
 0x166   : > { %v1359_v35 = vmax.f32 %v1044_v27, %v1231_v29  ;;  %v1391_v36 = vmax.f32 %v1124_v28, %v1263_v30 }
 0x167   : > { %v1296_v37 = vmax.f32 %v887_v31, %v1168_v33  ;;  %v1328_v38 = vmax.f32 %v967_v32, %v1200_v34 }
 0x168   : > { %v1487_v39 = vpack.c.bf16 %v1359_v35, %v1359_v35  ;;  %v1519_v40 = vpack.c.bf16 %v1391_v36, %v1391_v36 }
 0x169   : > { %v1424_v41 = vpack.c.bf16 %v1296_v37, %v1296_v37  ;;  %v1456_v42 = vpack.c.bf16 %v1328_v38, %v1328_v38 }
 0x16a   : > { %1616 = vst.msk [vmem:[%s2263_s24 + $0x164] sm:$0xf] %vm1526_vm1, %v1487_v39 }
 0x16b   : > { %1648 = vst.msk [vmem:[%s2263_s24 + $0x1e4] sm:$0xf] %vm1526_vm1, %v1519_v40  ;;  %v1047_v43 = vpop.f32.mrf.mxu2  ;;  %v1127_v44 = vpop.f32.mrf.mxu3 }
 0x16c   : > { %1553 = vst.msk [vmem:[%s2263_s24 + $0x68] sm:$0xf] %vm1526_vm1, %v1424_v41  ;;  %v1232_v45 = vmul.f32 0.2, %v1047_v43  ;;  %v1264_v46 = vmul.f32 0.2, %v1127_v44  ;;  %v889_v47 = vpop.f32.mrf.mxu0  ;;  %v969_v48 = vpop.f32.mrf.mxu1 }
 0x16d   : > { %1585 = vst.msk [vmem:[%s2263_s24 + $0xe8] sm:$0xf] %vm1526_vm1, %v1456_v42  ;;  %v1169_v49 = vmul.f32 0.2, %v889_v47  ;;  %v1201_v50 = vmul.f32 0.2, %v969_v48 }
 0x16e   : > { %v1360_v51 = vmax.f32 %v1047_v43, %v1232_v45  ;;  %v1392_v52 = vmax.f32 %v1127_v44, %v1264_v46 }
 0x16f   : > { %v1297_v53 = vmax.f32 %v889_v47, %v1169_v49  ;;  %v1329_v54 = vmax.f32 %v969_v48, %v1201_v50 }
 0x170   : > { %v1488_v55 = vpack.c.bf16 %v1360_v51, %v1360_v51  ;;  %v1520_v56 = vpack.c.bf16 %v1392_v52, %v1392_v52 }
 0x171   : > { %v1425_v57 = vpack.c.bf16 %v1297_v53, %v1297_v53  ;;  %v1457_v58 = vpack.c.bf16 %v1329_v54, %v1329_v54 }
 0x172   : > { %1617 = vst.msk [vmem:[%s2263_s24 + $0x168] sm:$0xf] %vm1526_vm1, %v1488_v55 }
 0x173   : > { %1649 = vst.msk [vmem:[%s2263_s24 + $0x1e8] sm:$0xf] %vm1526_vm1, %v1520_v56  ;;  %v1049_v59 = vpop.f32.mrf.mxu2  ;;  %v1129_v60 = vpop.f32.mrf.mxu3 }
 0x174   : > { %1554 = vst.msk [vmem:[%s2263_s24 + $0x6c] sm:$0xf] %vm1526_vm1, %v1425_v57  ;;  %v1233_v61 = vmul.f32 0.2, %v1049_v59  ;;  %v1265_v62 = vmul.f32 0.2, %v1129_v60  ;;  %v892_v63 = vpop.f32.mrf.mxu0  ;;  %v972_v0 = vpop.f32.mrf.mxu1 }
 0x175   : > { %1586 = vst.msk [vmem:[%s2263_s24 + $0xec] sm:$0xf] %vm1526_vm1, %v1457_v58  ;;  %v1170_v1 = vmul.f32 0.2, %v892_v63  ;;  %v1202_v2 = vmul.f32 0.2, %v972_v0 }
 0x176   : > { %v1361_v3 = vmax.f32 %v1049_v59, %v1233_v61  ;;  %v1393_v4 = vmax.f32 %v1129_v60, %v1265_v62 }
 0x177   : > { %v1298_v5 = vmax.f32 %v892_v63, %v1170_v1  ;;  %v1330_v6 = vmax.f32 %v972_v0, %v1202_v2 }
 0x178   : > { %v1489_v7 = vpack.c.bf16 %v1361_v3, %v1361_v3  ;;  %v1521_v8 = vpack.c.bf16 %v1393_v4, %v1393_v4 }
 0x179   : > { %v1426_v9 = vpack.c.bf16 %v1298_v5, %v1298_v5  ;;  %v1458_v10 = vpack.c.bf16 %v1330_v6, %v1330_v6 }
 0x17a   : > { %1618 = vst.msk [vmem:[%s2263_s24 + $0x16c] sm:$0xf] %vm1526_vm1, %v1489_v7 }
 0x17b   : > { %1650 = vst.msk [vmem:[%s2263_s24 + $0x1ec] sm:$0xf] %vm1526_vm1, %v1521_v8  ;;  %v1052_v11 = vpop.f32.mrf.mxu2  ;;  %v1132_v12 = vpop.f32.mrf.mxu3 }
 0x17c   : > { %1555 = vst.msk [vmem:[%s2263_s24 + $0x70] sm:$0xf] %vm1526_vm1, %v1426_v9  ;;  %v1234_v13 = vmul.f32 0.2, %v1052_v11  ;;  %v1266_v14 = vmul.f32 0.2, %v1132_v12  ;;  %v894_v15 = vpop.f32.mrf.mxu0  ;;  %v974_v16 = vpop.f32.mrf.mxu1 }
 0x17d   : > { %1587 = vst.msk [vmem:[%s2263_s24 + $0xf0] sm:$0xf] %vm1526_vm1, %v1458_v10  ;;  %v1171_v17 = vmul.f32 0.2, %v894_v15  ;;  %v1203_v18 = vmul.f32 0.2, %v974_v16 }
 0x17e   : > { %v1362_v19 = vmax.f32 %v1052_v11, %v1234_v13  ;;  %v1394_v20 = vmax.f32 %v1132_v12, %v1266_v14 }
 0x17f   : > { %v1299_v21 = vmax.f32 %v894_v15, %v1171_v17  ;;  %v1331_v22 = vmax.f32 %v974_v16, %v1203_v18 }
 0x180   : > { %v1490_v23 = vpack.c.bf16 %v1362_v19, %v1362_v19  ;;  %v1522_v24 = vpack.c.bf16 %v1394_v20, %v1394_v20 }
 0x181   : > { %v1427_v25 = vpack.c.bf16 %v1299_v21, %v1299_v21  ;;  %v1459_v26 = vpack.c.bf16 %v1331_v22, %v1331_v22 }
 0x182   : > { %1619 = vst.msk [vmem:[%s2263_s24 + $0x170] sm:$0xf] %vm1526_vm1, %v1490_v23 }
 0x183   : > { %1651 = vst.msk [vmem:[%s2263_s24 + $0x1f0] sm:$0xf] %vm1526_vm1, %v1522_v24  ;;  %v1054_v27 = vpop.f32.mrf.mxu2  ;;  %v1134_v28 = vpop.f32.mrf.mxu3 }
 0x184   : > { %1556 = vst.msk [vmem:[%s2263_s24 + $0x74] sm:$0xf] %vm1526_vm1, %v1427_v25  ;;  %v1235_v29 = vmul.f32 0.2, %v1054_v27  ;;  %v1267_v30 = vmul.f32 0.2, %v1134_v28  ;;  %v897_v31 = vpop.f32.mrf.mxu0  ;;  %v977_v32 = vpop.f32.mrf.mxu1 }
 0x185   : > { %1588 = vst.msk [vmem:[%s2263_s24 + $0xf4] sm:$0xf] %vm1526_vm1, %v1459_v26  ;;  %v1172_v33 = vmul.f32 0.2, %v897_v31  ;;  %v1204_v34 = vmul.f32 0.2, %v977_v32 }
 0x186   : > { %v1363_v35 = vmax.f32 %v1054_v27, %v1235_v29  ;;  %v1395_v36 = vmax.f32 %v1134_v28, %v1267_v30 }
 0x187   : > { %v1300_v37 = vmax.f32 %v897_v31, %v1172_v33  ;;  %v1332_v38 = vmax.f32 %v977_v32, %v1204_v34 }
 0x188   : > { %v1491_v39 = vpack.c.bf16 %v1363_v35, %v1363_v35  ;;  %v1523_v40 = vpack.c.bf16 %v1395_v36, %v1395_v36 }
 0x189   : > { %v1428_v41 = vpack.c.bf16 %v1300_v37, %v1300_v37  ;;  %v1460_v42 = vpack.c.bf16 %v1332_v38, %v1332_v38 }
 0x18a   : > { %1620 = vst.msk [vmem:[%s2263_s24 + $0x174] sm:$0xf] %vm1526_vm1, %v1491_v39 }
 0x18b   : > { %1652 = vst.msk [vmem:[%s2263_s24 + $0x1f4] sm:$0xf] %vm1526_vm1, %v1523_v40  ;;  %v1057_v43 = vpop.f32.mrf.mxu2  ;;  %v1137_v44 = vpop.f32.mrf.mxu3 }
 0x18c   : > { %1557 = vst.msk [vmem:[%s2263_s24 + $0x78] sm:$0xf] %vm1526_vm1, %v1428_v41  ;;  %v1236_v45 = vmul.f32 0.2, %v1057_v43  ;;  %v1268_v46 = vmul.f32 0.2, %v1137_v44  ;;  %v899_v47 = vpop.f32.mrf.mxu0  ;;  %v979_v48 = vpop.f32.mrf.mxu1 }
 0x18d   : > { %1589 = vst.msk [vmem:[%s2263_s24 + $0xf8] sm:$0xf] %vm1526_vm1, %v1460_v42  ;;  %v1173_v49 = vmul.f32 0.2, %v899_v47  ;;  %v1205_v50 = vmul.f32 0.2, %v979_v48 }
 0x18e   : > { %v1364_v51 = vmax.f32 %v1057_v43, %v1236_v45  ;;  %v1396_v52 = vmax.f32 %v1137_v44, %v1268_v46 }
 0x18f   : > { %v1301_v53 = vmax.f32 %v899_v47, %v1173_v49  ;;  %v1333_v54 = vmax.f32 %v979_v48, %v1205_v50 }
 0x190   : > { %v1492_v55 = vpack.c.bf16 %v1364_v51, %v1364_v51  ;;  %v1524_v56 = vpack.c.bf16 %v1396_v52, %v1396_v52 }
 0x191   : > { %v1429_v57 = vpack.c.bf16 %v1301_v53, %v1301_v53  ;;  %v1461_v58 = vpack.c.bf16 %v1333_v54, %v1333_v54 }
 0x192   : > { %1621 = vst.msk [vmem:[%s2263_s24 + $0x178] sm:$0xf] %vm1526_vm1, %v1492_v55 }
 0x193   : > { %1653 = vst.msk [vmem:[%s2263_s24 + $0x1f8] sm:$0xf] %vm1526_vm1, %v1524_v56  ;;  %v1059_v59 = vpop.f32.mrf.mxu2  ;;  %v1139_v60 = vpop.f32.mrf.mxu3 }
 0x194   : > { %1558 = vst.msk [vmem:[%s2263_s24 + $0x7c] sm:$0xf] %vm1526_vm1, %v1429_v57  ;;  %v1237_v61 = vmul.f32 0.2, %v1059_v59  ;;  %v1269_v62 = vmul.f32 0.2, %v1139_v60 }
 0x195   : > { %1590 = vst.msk [vmem:[%s2263_s24 + $0xfc] sm:$0xf] %vm1526_vm1, %v1461_v58 }
 0x196   : > { %v1365_v63 = vmax.f32 %v1059_v59, %v1237_v61  ;;  %v1397_v0 = vmax.f32 %v1139_v60, %v1269_v62 }
 0x198   : > { %v1493_v1 = vpack.c.bf16 %v1365_v63, %v1365_v63  ;;  %v1525_v2 = vpack.c.bf16 %v1397_v0, %v1397_v0 }
 0x19a   : > { %1622 = vst.msk [vmem:[%s2263_s24 + $0x17c] sm:$0xf] %vm1526_vm1, %v1493_v1 }
 0x19b   : > { %1654 = vst.msk [vmem:[%s2263_s24 + $0x1fc] sm:$0xf] %vm1526_vm1, %v1525_v2 }
 0x19c PF: > { %s12_s9 = sadd.s32 1, %s2144_s9  }
 0x19d   : > { %p9_p4 = scmp.ge.s32.totalorder %s12_s9, 4  }
 0x19f   :  { %11 = sbr.rel (!%p9_p4) target bundleno = 1 (0x1), region = 58 }

// kernel: discriminator_forward.5
= control target key start
LH: loop header
LB: loop body
LE: loop exit
PB: predicated region body
PF: predicated region fallthrough
CT: control target
= control target key end

     0   :  { %vm1717_vm0 = vcmask 523264   ;;  %vm2519_vm4 = vcmask 519168   ;;  %s5775_s1 = inlined_call_operand.vmem [shape: bf16[512,64], index: 1, kind: input, shape index: {}]   ;;  %s5776_s0 = inlined_call_operand.vmem [shape: bf16[512,512], index: 0, kind: input, shape index: {}]   ;;  %s5777_s2 = inlined_call_operand.vmem [shape: f32[1,64], index: 2, kind: input, shape index: {}]   ;;  %s5778_s3 = inlined_call_operand.vmem [shape: f32[1,64], index: 3, kind: input, shape index: {}]   ;;  %s5779_s4 = inlined_call_operand.vmem [shape: bf16[512,64], index: 4, kind: output, shape index: {}]  }
   0x1   :  { %v3363_v0 = vld [vmem:[%s5775_s1 + $0x38] sm:$0xff]  ;;  %v3362_v4 = vld [vmem:[%s5775_s1 + $0x30] sm:$0xff]  ;;  %v3361_v8 = vld [vmem:[%s5775_s1 + $0x28] sm:$0xff] }
   0x2   :  { %v3371_v1 = vld [vmem:[%s5775_s1 + $0x78] sm:$0xff]  ;;  %1041 = vmatpush.bf16.msra.mxu0 %v3363_v0  ;;  %v3370_v5 = vld [vmem:[%s5775_s1 + $0x70] sm:$0xff]  ;;  %v3369_v9 = vld [vmem:[%s5775_s1 + $0x68] sm:$0xff] }
   0x3   :  { %v3379_v2 = vld [vmem:[%s5775_s1 + $0xb8] sm:$0xff]  ;;  %1210 = vmatpush.bf16.msra.mxu1 %v3371_v1  ;;  %v3378_v6 = vld [vmem:[%s5775_s1 + $0xb0] sm:$0xff]  ;;  %v3377_v10 = vld [vmem:[%s5775_s1 + $0xa8] sm:$0xff] }
   0x4   :  { %v3387_v3 = vld [vmem:[%s5775_s1 + $0xf8] sm:$0xff]  ;;  %1379 = vmatpush.bf16.msra.mxu2 %v3379_v2  ;;  %v3386_v7 = vld [vmem:[%s5775_s1 + $0xf0] sm:$0xff]  ;;  %v3385_v11 = vld [vmem:[%s5775_s1 + $0xe8] sm:$0xff] }
   0x5   :  { %1548 = vmatpush.bf16.msra.mxu3 %v3387_v3  ;;  %v3360_v12 = vld [vmem:[%s5775_s1 + $0x20] sm:$0xff]  ;;  %v3359_v16 = vld [vmem:[%s5775_s1 + $0x18] sm:$0xff]  ;;  %v3358_v20 = vld [vmem:[%s5775_s1 + $0x10] sm:$0xff] }
   0x6   :  { %1042 = vmatpush.bf16.msra.mxu0 %v3362_v4  ;;  %v3368_v13 = vld [vmem:[%s5775_s1 + $0x60] sm:$0xff]  ;;  %v3367_v17 = vld [vmem:[%s5775_s1 + $0x58] sm:$0xff]  ;;  %v3366_v21 = vld [vmem:[%s5775_s1 + $0x50] sm:$0xff] }
   0x7   :  { %1211 = vmatpush.bf16.msra.mxu1 %v3370_v5  ;;  %v3376_v14 = vld [vmem:[%s5775_s1 + $0xa0] sm:$0xff]  ;;  %v3375_v18 = vld [vmem:[%s5775_s1 + $0x98] sm:$0xff]  ;;  %v3374_v22 = vld [vmem:[%s5775_s1 + $0x90] sm:$0xff] }
   0x8   :  { %1380 = vmatpush.bf16.msra.mxu2 %v3378_v6  ;;  %v3384_v15 = vld [vmem:[%s5775_s1 + $0xe0] sm:$0xff]  ;;  %v3383_v19 = vld [vmem:[%s5775_s1 + $0xd8] sm:$0xff]  ;;  %v3382_v23 = vld [vmem:[%s5775_s1 + $0xd0] sm:$0xff] }
   0x9   :  { %1549 = vmatpush.bf16.msra.mxu3 %v3386_v7  ;;  %v3357_v24 = vld [vmem:[%s5775_s1 + $0x8] sm:$0xff]  ;;  %v3356_v28 = vld [vmem:[%s5775_s1] sm:$0xff]  ;;  %v3230_v33 = vld [vmem:[%s5776_s0 + $0xc] sm:$0xf0] }
   0xa   :  { %1043 = vmatpush.bf16.msra.mxu0 %v3361_v8  ;;  %v3365_v25 = vld [vmem:[%s5775_s1 + $0x48] sm:$0xff]  ;;  %v3364_v29 = vld [vmem:[%s5775_s1 + $0x40] sm:$0xff]  ;;  %v2592_v35 = vld [vmem:[%s5776_s0 + $0x10] sm:$0xf0] }
   0xb   :  { %1212 = vmatpush.bf16.msra.mxu1 %v3369_v9  ;;  %v3373_v26 = vld [vmem:[%s5775_s1 + $0x88] sm:$0xff]  ;;  %v3372_v30 = vld [vmem:[%s5775_s1 + $0x80] sm:$0xff]  ;;  %v3231_v37 = vld [vmem:[%s5776_s0 + $0x14] sm:$0xf0] }
   0xc   :  { %1381 = vmatpush.bf16.msra.mxu2 %v3377_v10  ;;  %v3381_v27 = vld [vmem:[%s5775_s1 + $0xc8] sm:$0xff]  ;;  %v3380_v31 = vld [vmem:[%s5775_s1 + $0xc0] sm:$0xff]  ;;  %v2600_v39 = vld [vmem:[%s5776_s0 + $0x18] sm:$0xf0] }
   0xd   :  { %1550 = vmatpush.bf16.msra.mxu3 %v3385_v11  ;;  %v2590_v32 = vld [vmem:[%s5776_s0] sm:$0xf]  ;;  %v3228_v34 = vld [vmem:[%s5776_s0 + $0x4] sm:$0xf]  ;;  %v2598_v36 = vld [vmem:[%s5776_s0 + $0x8] sm:$0xf] }
   0xe   :  { %1044 = vmatpush.bf16.msra.mxu0 %v3360_v12  ;;  %v3229_v38 = vld [vmem:[%s5776_s0 + $0xc] sm:$0xf]  ;;  %v2591_v40 = vor.u32 %v3230_v33, %v2590_v32  ;;  %v2595_v41 = vor.u32 %v3228_v34, %v2592_v35  ;;  %v2599_v42 = vor.u32 %v3231_v37, %v2598_v36  ;;  %v2606_v44 = vld [vmem:[%s5776_s0 + $0x20] sm:$0xf]  ;;  %v3234_v45 = vld [vmem:[%s5776_s0 + $0x2c] sm:$0xf0] }
   0xf   :  { %1213 = vmatpush.bf16.msra.mxu1 %v3368_v13  ;;  %v2603_v43 = vor.u32 %v3229_v38, %v2600_v39  ;;  %v3232_v46 = vld [vmem:[%s5776_s0 + $0x24] sm:$0xf]  ;;  %v2608_v47 = vld [vmem:[%s5776_s0 + $0x30] sm:$0xf0]  ;;  %v2614_v48 = vld [vmem:[%s5776_s0 + $0x28] sm:$0xf]  ;;  %v2607_v52 = vor.u32 %v3234_v45, %v2606_v44 }
  0x10   :  { %1382 = vmatpush.bf16.msra.mxu2 %v3376_v14  ;;  %v3235_v49 = vld [vmem:[%s5776_s0 + $0x34] sm:$0xf0]  ;;  %v3233_v50 = vld [vmem:[%s5776_s0 + $0x2c] sm:$0xf]  ;;  %v2616_v51 = vld [vmem:[%s5776_s0 + $0x38] sm:$0xf0]  ;;  %v2611_v53 = vor.u32 %v3232_v46, %v2608_v47 }
  0x11   :  { %1551 = vmatpush.bf16.msra.mxu3 %v3384_v15  ;;  %v2615_v54 = vor.u32 %v3235_v49, %v2614_v48  ;;  %v2619_v55 = vor.u32 %v3233_v50, %v2616_v51  ;;  %v2622_v56 = vld [vmem:[%s5776_s0 + $0x40] sm:$0xf]  ;;  %v3238_v57 = vld [vmem:[%s5776_s0 + $0x4c] sm:$0xf0]  ;;  %v3236_v58 = vld [vmem:[%s5776_s0 + $0x44] sm:$0xf] }
  0x12   :  { %1045 = vmatpush.bf16.msra.mxu0 %v3359_v16  ;;  %v2624_v59 = vld [vmem:[%s5776_s0 + $0x50] sm:$0xf0]  ;;  %v2630_v60 = vld [vmem:[%s5776_s0 + $0x48] sm:$0xf]  ;;  %v3239_v61 = vld [vmem:[%s5776_s0 + $0x54] sm:$0xf0]  ;;  %v2623_v0 = vor.u32 %v3238_v57, %v2622_v56 }
  0x13   :  { %1214 = vmatpush.bf16.msra.mxu1 %v3367_v17  ;;  %v3237_v62 = vld [vmem:[%s5776_s0 + $0x4c] sm:$0xf]  ;;  %v2632_v63 = vld [vmem:[%s5776_s0 + $0x58] sm:$0xf0]  ;;  %v2627_v1 = vor.u32 %v3236_v58, %v2624_v59  ;;  %v2631_v2 = vor.u32 %v3239_v61, %v2630_v60  ;;  %v2638_v4 = vld [vmem:[%s5776_s0 + $0x60] sm:$0xf] }
  0x14   :  { %1383 = vmatpush.bf16.msra.mxu2 %v3375_v18  ;;  %v2635_v3 = vor.u32 %v3237_v62, %v2632_v63  ;;  %v3242_v5 = vld [vmem:[%s5776_s0 + $0x6c] sm:$0xf0]  ;;  %v3240_v6 = vld [vmem:[%s5776_s0 + $0x64] sm:$0xf]  ;;  %v2640_v7 = vld [vmem:[%s5776_s0 + $0x70] sm:$0xf0] }
  0x15   :  { %1552 = vmatpush.bf16.msra.mxu3 %v3383_v19  ;;  %v2646_v8 = vld [vmem:[%s5776_s0 + $0x68] sm:$0xf]  ;;  %v3243_v9 = vld [vmem:[%s5776_s0 + $0x74] sm:$0xf0]  ;;  %v3241_v10 = vld [vmem:[%s5776_s0 + $0x6c] sm:$0xf]  ;;  %v2639_v12 = vor.u32 %v3242_v5, %v2638_v4  ;;  %v2643_v13 = vor.u32 %v3240_v6, %v2640_v7 }
  0x16   :  { %1046 = vmatpush.bf16.msra.mxu0 %v3358_v20  ;;  %v2648_v11 = vld [vmem:[%s5776_s0 + $0x78] sm:$0xf0]  ;;  %v2647_v14 = vor.u32 %v3243_v9, %v2646_v8  ;;  %v2654_v16 = vld [vmem:[%s5776_s0 + $0x80] sm:$0xf]  ;;  %v3246_v17 = vld [vmem:[%s5776_s0 + $0x8c] sm:$0xf0] }
  0x17   :  { %1215 = vmatpush.bf16.msra.mxu1 %v3366_v21  ;;  %v2651_v15 = vor.u32 %v3241_v10, %v2648_v11  ;;  %v3244_v18 = vld [vmem:[%s5776_s0 + $0x84] sm:$0xf]  ;;  %v2656_v19 = vld [vmem:[%s5776_s0 + $0x90] sm:$0xf0]  ;;  %v2662_v20 = vld [vmem:[%s5776_s0 + $0x88] sm:$0xf] }
  0x18   :  { %1384 = vmatpush.bf16.msra.mxu2 %v3374_v22  ;;  %v3247_v21 = vld [vmem:[%s5776_s0 + $0x94] sm:$0xf0]  ;;  %v3245_v22 = vld [vmem:[%s5776_s0 + $0x8c] sm:$0xf]  ;;  %v2678_v32 = vld [vmem:[%s5776_s0 + $0xa8] sm:$0xf] }
  0x19   :  { %1553 = vmatpush.bf16.msra.mxu3 %v3382_v23  ;;  %v2664_v23 = vld [vmem:[%s5776_s0 + $0x98] sm:$0xf0]  ;;  %v3251_v33 = vld [vmem:[%s5776_s0 + $0xb4] sm:$0xf0]  ;;  %v3249_v34 = vld [vmem:[%s5776_s0 + $0xac] sm:$0xf] }
  0x1a   :  { %1047 = vmatpush.bf16.msra.mxu0 %v3357_v24  ;;  %v2655_v24 = vor.u32 %v3246_v17, %v2654_v16  ;;  %v2680_v35 = vld [vmem:[%s5776_s0 + $0xb8] sm:$0xf0]  ;;  %v2679_v38 = vor.u32 %v3251_v33, %v2678_v32  ;;  %v2694_v44 = vld [vmem:[%s5776_s0 + $0xc8] sm:$0xf]  ;;  %v3255_v45 = vld [vmem:[%s5776_s0 + $0xd4] sm:$0xf0] }
  0x1b   :  { %1216 = vmatpush.bf16.msra.mxu1 %v3365_v25  ;;  %v2659_v25 = vor.u32 %v3244_v18, %v2656_v19  ;;  %v2683_v39 = vor.u32 %v3249_v34, %v2680_v35  ;;  %v3253_v46 = vld [vmem:[%s5776_s0 + $0xcc] sm:$0xf]  ;;  %v2696_v47 = vld [vmem:[%s5776_s0 + $0xd8] sm:$0xf0]  ;;  %v2695_v50 = vor.u32 %v3255_v45, %v2694_v44  ;;  %v2710_v56 = vld [vmem:[%s5776_s0 + $0xe8] sm:$0xf] }
  0x1c   :  { %1385 = vmatpush.bf16.msra.mxu2 %v3373_v26  ;;  %v2663_v26 = vor.u32 %v3247_v21, %v2662_v20  ;;  %v2699_v51 = vor.u32 %v3253_v46, %v2696_v47  ;;  %v3259_v57 = vld [vmem:[%s5776_s0 + $0xf4] sm:$0xf0]  ;;  %v3257_v58 = vld [vmem:[%s5776_s0 + $0xec] sm:$0xf]  ;;  %v2712_v59 = vld [vmem:[%s5776_s0 + $0xf8] sm:$0xf0] }
  0x1d   :  { %1554 = vmatpush.bf16.msra.mxu3 %v3381_v27  ;;  %v2667_v27 = vor.u32 %v3245_v22, %v2664_v23  ;;  %v2711_v62 = vor.u32 %v3259_v57, %v2710_v56  ;;  %v2715_v63 = vor.u32 %v3257_v58, %v2712_v59  ;;  %v2726_v4 = vld [vmem:[%s5776_s0 + $0x108] sm:$0xf]  ;;  %v3263_v5 = vld [vmem:[%s5776_s0 + $0x114] sm:$0xf0]  ;;  %v3261_v6 = vld [vmem:[%s5776_s0 + $0x10c] sm:$0xf] }
  0x1e   :  { %1048 = vmatpush.bf16.msra.mxu0 %v3356_v28  ;;  %v2670_v28 = vld [vmem:[%s5776_s0 + $0xa0] sm:$0xf]  ;;  %v2728_v7 = vld [vmem:[%s5776_s0 + $0x118] sm:$0xf0]  ;;  %v3266_v23 = vld [vmem:[%s5776_s0 + $0x12c] sm:$0xf0] }
  0x1f   :  { %1217 = vmatpush.bf16.msra.mxu1 %v3364_v29  ;;  %v3250_v29 = vld [vmem:[%s5776_s0 + $0xac] sm:$0xf0]  ;;  %v2734_v22 = vld [vmem:[%s5776_s0 + $0x120] sm:$0xf] }
  0x20   :  { %1386 = vmatpush.bf16.msra.mxu2 %v3372_v30  ;;  %v3248_v30 = vld [vmem:[%s5776_s0 + $0xa4] sm:$0xf]  ;;  %v2671_v36 = vor.u32 %v3250_v29, %v2670_v28  ;;  %v3265_v28 = vld [vmem:[%s5776_s0 + $0x12c] sm:$0xf]  ;;  %v2744_v29 = vld [vmem:[%s5776_s0 + $0x138] sm:$0xf0]  ;;  %v2735_v32 = vor.u32 %v3266_v23, %v2734_v22 }
  0x21   :  { %1555 = vmatpush.bf16.msra.mxu3 %v3380_v31  ;;  %1049 = vmatmul.bf16.vlgmr.msra.gmra.mxu0 %v2591_v40  ;;  %v2672_v31 = vld [vmem:[%s5776_s0 + $0xb0] sm:$0xf0]  ;;  %v2686_v40 = vld [vmem:[%s5776_s0 + $0xc0] sm:$0xf] }
  0x22   :  { %1218 = vmatmul.bf16.vlgmr.msra.gmra.mxu1 %v2595_v41  ;;  %v2675_v37 = vor.u32 %v3248_v30, %v2672_v31  ;;  %v3254_v41 = vld [vmem:[%s5776_s0 + $0xcc] sm:$0xf0] }
  0x23   :  { %1387 = vmatmul.bf16.vlgmr.msra.gmra.mxu2 %v2599_v42  ;;  %v3252_v42 = vld [vmem:[%s5776_s0 + $0xc4] sm:$0xf]  ;;  %v2687_v48 = vor.u32 %v3254_v41, %v2686_v40 }
  0x24   :  { %1556 = vmatmul.bf16.vlgmr.msra.gmra.mxu3 %v2603_v43  ;;  %v2688_v43 = vld [vmem:[%s5776_s0 + $0xd0] sm:$0xf0] }
  0x25   :  { %v2691_v49 = vor.u32 %v3252_v42, %v2688_v43 }
  0x31   :  { %1054 = vmatmul.bf16.gmra.mxu0 %v2607_v52  ;;  %v2702_v52 = vld [vmem:[%s5776_s0 + $0xe0] sm:$0xf] }
  0x32   :  { %1223 = vmatmul.bf16.gmra.mxu1 %v2611_v53  ;;  %v3258_v53 = vld [vmem:[%s5776_s0 + $0xec] sm:$0xf0] }
  0x33   :  { %1392 = vmatmul.bf16.gmra.mxu2 %v2615_v54  ;;  %v3256_v54 = vld [vmem:[%s5776_s0 + $0xe4] sm:$0xf]  ;;  %v2703_v60 = vor.u32 %v3258_v53, %v2702_v52  ;;  %v2758_v52 = vld [vmem:[%s5776_s0 + $0x148] sm:$0xf]  ;;  %v3271_v53 = vld [vmem:[%s5776_s0 + $0x154] sm:$0xf0] }
  0x34   :  { %1561 = vmatmul.bf16.gmra.mxu3 %v2619_v55  ;;  %v2704_v55 = vld [vmem:[%s5776_s0 + $0xf0] sm:$0xf0] }
  0x35   :  { %v2707_v61 = vor.u32 %v3256_v54, %v2704_v55  ;;  %v3269_v54 = vld [vmem:[%s5776_s0 + $0x14c] sm:$0xf]  ;;  %v2760_v55 = vld [vmem:[%s5776_s0 + $0x158] sm:$0xf0] }
  0x41   :  { %1059 = vmatmul.bf16.gmra.mxu0 %v2623_v0  ;;  %v2718_v0 = vld [vmem:[%s5776_s0 + $0x100] sm:$0xf] }
  0x42   :  { %1228 = vmatmul.bf16.gmra.mxu1 %v2627_v1  ;;  %v3262_v1 = vld [vmem:[%s5776_s0 + $0x10c] sm:$0xf0] }
  0x43   :  { %1397 = vmatmul.bf16.gmra.mxu2 %v2631_v2  ;;  %v3260_v2 = vld [vmem:[%s5776_s0 + $0x104] sm:$0xf]  ;;  %v2719_v8 = vor.u32 %v3262_v1, %v2718_v0  ;;  %v2763_v0 = vor.u32 %v3269_v54, %v2760_v55 }
  0x44   :  { %1566 = vmatmul.bf16.gmra.mxu3 %v2635_v3  ;;  %v2720_v3 = vld [vmem:[%s5776_s0 + $0x110] sm:$0xf0] }
  0x45   :  { %v2723_v9 = vor.u32 %v3260_v2, %v2720_v3 }
  0x51   :  { %1064 = vmatmul.bf16.gmra.mxu0 %v2639_v12  ;;  %v2727_v12 = vor.u32 %v3263_v5, %v2726_v4 }
  0x52   :  { %1233 = vmatmul.bf16.gmra.mxu1 %v2643_v13  ;;  %v2731_v13 = vor.u32 %v3261_v6, %v2728_v7 }
  0x53   :  { %1402 = vmatmul.bf16.gmra.mxu2 %v2647_v14 }
  0x54   :  { %1571 = vmatmul.bf16.gmra.mxu3 %v2651_v15 }
  0x61   :  { %1069 = vmatmul.bf16.gmra.mxu0 %v2655_v24  ;;  %v3264_v24 = vld [vmem:[%s5776_s0 + $0x124] sm:$0xf] }
  0x62   :  { %1238 = vmatmul.bf16.gmra.mxu1 %v2659_v25  ;;  %v2736_v25 = vld [vmem:[%s5776_s0 + $0x130] sm:$0xf0] }
  0x63   :  { %1407 = vmatmul.bf16.gmra.mxu2 %v2663_v26  ;;  %v2742_v26 = vld [vmem:[%s5776_s0 + $0x128] sm:$0xf]  ;;  %v2739_v33 = vor.u32 %v3264_v24, %v2736_v25 }
  0x64   :  { %1576 = vmatmul.bf16.gmra.mxu3 %v2667_v27  ;;  %v3267_v27 = vld [vmem:[%s5776_s0 + $0x134] sm:$0xf0] }
  0x71   :  { %1074 = vmatmul.bf16.gmra.mxu0 %v2671_v36 }
  0x72   :  { %1243 = vmatmul.bf16.gmra.mxu1 %v2675_v37  ;;  %v2743_v37 = vor.u32 %v3267_v27, %v2742_v26 }
  0x73   :  { %1412 = vmatmul.bf16.gmra.mxu2 %v2679_v38  ;;  %v2747_v38 = vor.u32 %v3265_v28, %v2744_v29 }
  0x74   :  { %1581 = vmatmul.bf16.gmra.mxu3 %v2683_v39 }
  0x81   :  { %1079 = vmatmul.bf16.gmra.mxu0 %v2687_v48  ;;  %v2750_v48 = vld [vmem:[%s5776_s0 + $0x140] sm:$0xf] }
  0x82   :  { %1248 = vmatmul.bf16.gmra.mxu1 %v2691_v49  ;;  %v3270_v49 = vld [vmem:[%s5776_s0 + $0x14c] sm:$0xf0] }
  0x83   :  { %1417 = vmatmul.bf16.gmra.mxu2 %v2695_v50  ;;  %v3268_v50 = vld [vmem:[%s5776_s0 + $0x144] sm:$0xf]  ;;  %v2751_v58 = vor.u32 %v3270_v49, %v2750_v48 }
  0x84   :  { %1586 = vmatmul.bf16.gmra.mxu3 %v2699_v51  ;;  %v2752_v51 = vld [vmem:[%s5776_s0 + $0x150] sm:$0xf0] }
  0x85   :  { %v2755_v59 = vor.u32 %v3268_v50, %v2752_v51 }
  0x91   :  { %1084 = vmatmul.bf16.gmra.mxu0 %v2703_v60 }
  0x92   :  { %1253 = vmatmul.bf16.gmra.mxu1 %v2707_v61 }
  0x93   :  { %1422 = vmatmul.bf16.gmra.mxu2 %v2711_v62 }
  0x94   :  { %1591 = vmatmul.bf16.gmra.mxu3 %v2715_v63  ;;  %v2759_v63 = vor.u32 %v3271_v53, %v2758_v52 }
  0x9e   :  { %v1050_v10 = vpop.f32.mrf.mxu0 }
  0x9f   :  { %v1219_v11 = vpop.f32.mrf.mxu1 }
  0xa0   :  { %v1220_v14 = vadd.f32 %v1219_v11, %v1050_v10  ;;  %v2766_v10 = vld [vmem:[%s5776_s0 + $0x160] sm:$0xf]  ;;  %v3274_v11 = vld [vmem:[%s5776_s0 + $0x16c] sm:$0xf0] }
  0xa1   :  { %1089 = vmatmul.bf16.gmra.mxu0 %v2719_v8 }
  0xa2   :  { %1258 = vmatmul.bf16.gmra.mxu1 %v2723_v9 }
  0xa3   :  { %1427 = vmatmul.bf16.gmra.mxu2 %v2727_v12  ;;  %v3272_v12 = vld [vmem:[%s5776_s0 + $0x164] sm:$0xf] }
  0xa4   :  { %1596 = vmatmul.bf16.gmra.mxu3 %v2731_v13  ;;  %v2768_v13 = vld [vmem:[%s5776_s0 + $0x170] sm:$0xf0] }
  0xa5   :  { %v2771_v22 = vor.u32 %v3272_v12, %v2768_v13 }
  0xa6   :  { %v1388_v15 = vpop.f32.mrf.mxu2  ;;  %v1052_v18 = vpop.f32.mrf.mxu0 }
  0xa7   :  { %v1557_v16 = vpop.f32.mrf.mxu3  ;;  %v1389_v17 = vadd.f32 %v1388_v15, %v1220_v14  ;;  %v1221_v19 = vpop.f32.mrf.mxu1  ;;  %v2774_v14 = vld [vmem:[%s5776_s0 + $0x168] sm:$0xf]  ;;  %v3275_v15 = vld [vmem:[%s5776_s0 + $0x174] sm:$0xf0] }
  0xa8   :  { %v1222_v20 = vadd.f32 %v1221_v19, %v1052_v18  ;;  %v2775_v26 = vor.u32 %v3275_v15, %v2774_v14 }
  0xa9   :  { %v3729_v21 = vadd.f32 %v1557_v16, %v1389_v17  ;;  %v3273_v16 = vld [vmem:[%s5776_s0 + $0x16c] sm:$0xf]  ;;  %v2776_v17 = vld [vmem:[%s5776_s0 + $0x178] sm:$0xf0] }
  0xaa   :  { %v2779_v27 = vor.u32 %v3273_v16, %v2776_v17 }
  0xae   :  { %v1390_v30 = vpop.f32.mrf.mxu2  ;;  %v1055_v35 = vpop.f32.mrf.mxu0 }
  0xaf   :  { %v1559_v31 = vpop.f32.mrf.mxu3  ;;  %v1391_v34 = vadd.f32 %v1390_v30, %v1222_v20  ;;  %v1224_v36 = vpop.f32.mrf.mxu1  ;;  %v2767_v20 = vor.u32 %v3274_v11, %v2766_v10  ;;  %v2808_v10 = vld [vmem:[%s5776_s0 + $0x1b8] sm:$0xf0] }
  0xb0   :  { %v1225_v39 = vadd.f32 %v1224_v36, %v1055_v35 }
  0xb1   :  { %v3755_v40 = vadd.f32 %v1559_v31, %v1391_v34  ;;  %1094 = vmatmul.bf16.gmra.mxu0 %v2735_v32 }
  0xb2   :  { %1263 = vmatmul.bf16.gmra.mxu1 %v2739_v33 }
  0xb3   :  { %1432 = vmatmul.bf16.gmra.mxu2 %v2743_v37  ;;  %v2782_v37 = vld [vmem:[%s5776_s0 + $0x180] sm:$0xf] }
  0xb4   :  { %1601 = vmatmul.bf16.gmra.mxu3 %v2747_v38  ;;  %v3278_v38 = vld [vmem:[%s5776_s0 + $0x18c] sm:$0xf0] }
  0xb5   :  { %v2783_v49 = vor.u32 %v3278_v38, %v2782_v37  ;;  %v3287_v37 = vld [vmem:[%s5776_s0 + $0x1d4] sm:$0xf0]  ;;  %v3285_v38 = vld [vmem:[%s5776_s0 + $0x1cc] sm:$0xf] }
  0xb6   :  { %v1393_v41 = vpop.f32.mrf.mxu2  ;;  %v1057_v44 = vpop.f32.mrf.mxu0 }
  0xb7   :  { %v1562_v42 = vpop.f32.mrf.mxu3  ;;  %v1394_v43 = vadd.f32 %v1393_v41, %v1225_v39  ;;  %v1226_v45 = vpop.f32.mrf.mxu1  ;;  %v3276_v39 = vld [vmem:[%s5776_s0 + $0x184] sm:$0xf]  ;;  %v2784_v41 = vld [vmem:[%s5776_s0 + $0x190] sm:$0xf0] }
  0xb8   :  { %v1227_v46 = vadd.f32 %v1226_v45, %v1057_v44  ;;  %v3277_v44 = vld [vmem:[%s5776_s0 + $0x18c] sm:$0xf]  ;;  %v2792_v45 = vld [vmem:[%s5776_s0 + $0x198] sm:$0xf0]  ;;  %v2787_v50 = vor.u32 %v3276_v39, %v2784_v41 }
  0xb9   :  { %v3757_v47 = vadd.f32 %v1562_v42, %v1394_v43  ;;  %v2790_v42 = vld [vmem:[%s5776_s0 + $0x188] sm:$0xf]  ;;  %v3279_v43 = vld [vmem:[%s5776_s0 + $0x194] sm:$0xf0]  ;;  %v2795_v55 = vor.u32 %v3277_v44, %v2792_v45  ;;  %v2824_v39 = vld [vmem:[%s5776_s0 + $0x1d8] sm:$0xf0] }
  0xba   :  { %v2791_v54 = vor.u32 %v3279_v43, %v2790_v42 }
  0xbe   :  { %v1395_v56 = vpop.f32.mrf.mxu2  ;;  %v1060_v61 = vpop.f32.mrf.mxu0 }
  0xbf   :  { %v1564_v57 = vpop.f32.mrf.mxu3  ;;  %v1396_v60 = vadd.f32 %v1395_v56, %v1227_v46  ;;  %v1229_v62 = vpop.f32.mrf.mxu1 }
  0xc0   :  { %v1230_v1 = vadd.f32 %v1229_v62, %v1060_v61 }
  0xc1   :  { %v3783_v2 = vadd.f32 %v1564_v57, %v1396_v60  ;;  %1099 = vmatmul.bf16.gmra.mxu0 %v2751_v58 }
  0xc2   :  { %1268 = vmatmul.bf16.gmra.mxu1 %v2755_v59 }
  0xc3   :  { %1437 = vmatmul.bf16.gmra.mxu2 %v2759_v63 }
  0xc4   :  { %1606 = vmatmul.bf16.gmra.mxu3 %v2763_v0 }
  0xc6   :  { %v1398_v3 = vpop.f32.mrf.mxu2  ;;  %v1062_v6 = vpop.f32.mrf.mxu0 }
  0xc7   :  { %v1567_v4 = vpop.f32.mrf.mxu3  ;;  %v1399_v5 = vadd.f32 %v1398_v3, %v1230_v1  ;;  %v1231_v7 = vpop.f32.mrf.mxu1  ;;  %v2798_v1 = vld [vmem:[%s5776_s0 + $0x1a0] sm:$0xf]  ;;  %v3282_v3 = vld [vmem:[%s5776_s0 + $0x1ac] sm:$0xf0] }
  0xc8   :  { %v1232_v8 = vadd.f32 %v1231_v7, %v1062_v6  ;;  %v2806_v6 = vld [vmem:[%s5776_s0 + $0x1a8] sm:$0xf]  ;;  %v3283_v7 = vld [vmem:[%s5776_s0 + $0x1b4] sm:$0xf0]  ;;  %v2799_v13 = vor.u32 %v3282_v3, %v2798_v1  ;;  %v2832_v1 = vld [vmem:[%s5776_s0 + $0x1f0] sm:$0xf0] }
  0xc9   :  { %v3785_v9 = vadd.f32 %v1567_v4, %v1399_v5  ;;  %v3280_v4 = vld [vmem:[%s5776_s0 + $0x1a4] sm:$0xf]  ;;  %v2800_v5 = vld [vmem:[%s5776_s0 + $0x1b0] sm:$0xf0]  ;;  %v2838_v3 = vld [vmem:[%s5776_s0 + $0x1e8] sm:$0xf] }
  0xca   :  { %v2803_v14 = vor.u32 %v3280_v4, %v2800_v5  ;;  %v3291_v4 = vld [vmem:[%s5776_s0 + $0x1f4] sm:$0xf0]  ;;  %v3289_v5 = vld [vmem:[%s5776_s0 + $0x1ec] sm:$0xf] }
  0xce   :  { %v1400_v18 = vpop.f32.mrf.mxu2  ;;  %v1065_v24 = vpop.f32.mrf.mxu0 }
  0xcf   :  { %v1569_v19 = vpop.f32.mrf.mxu3  ;;  %v1401_v23 = vadd.f32 %v1400_v18, %v1232_v8  ;;  %v1234_v25 = vpop.f32.mrf.mxu1  ;;  %v3281_v8 = vld [vmem:[%s5776_s0 + $0x1ac] sm:$0xf]  ;;  %v2807_v18 = vor.u32 %v3283_v7, %v2806_v6  ;;  %v2840_v6 = vld [vmem:[%s5776_s0 + $0x1f8] sm:$0xf0] }
  0xd0   :  { %v1235_v28 = vadd.f32 %v1234_v25, %v1065_v24 }
  0xd1   :  { %v3811_v29 = vadd.f32 %v1569_v19, %v1401_v23  ;;  %1104 = vmatmul.bf16.gmra.mxu0 %v2767_v20  ;;  %v2811_v19 = vor.u32 %v3281_v8, %v2808_v10 }
  0xd2   :  { %1273 = vmatmul.bf16.gmra.mxu1 %v2771_v22 }
  0xd3   :  { %1442 = vmatmul.bf16.gmra.mxu2 %v2775_v26 }
  0xd4   :  { %1611 = vmatmul.bf16.gmra.mxu3 %v2779_v27 }
  0xd6   :  { %v1403_v30 = vpop.f32.mrf.mxu2  ;;  %v1067_v33 = vpop.f32.mrf.mxu0 }
  0xd7   :  { %v1572_v31 = vpop.f32.mrf.mxu3  ;;  %v1404_v32 = vadd.f32 %v1403_v30, %v1235_v28  ;;  %v1236_v34 = vpop.f32.mrf.mxu1 }
  0xd8   :  { %v1237_v35 = vadd.f32 %v1236_v34, %v1067_v33  ;;  %v3284_v33 = vld [vmem:[%s5776_s0 + $0x1c4] sm:$0xf]  ;;  %v2816_v34 = vld [vmem:[%s5776_s0 + $0x1d0] sm:$0xf0] }
  0xd9   :  { %v3813_v36 = vadd.f32 %v1572_v31, %v1404_v32  ;;  %v2814_v31 = vld [vmem:[%s5776_s0 + $0x1c0] sm:$0xf]  ;;  %v3286_v32 = vld [vmem:[%s5776_s0 + $0x1cc] sm:$0xf0]  ;;  %v2819_v44 = vor.u32 %v3284_v33, %v2816_v34  ;;  %v2848_v33 = vld [vmem:[%s5776_s0 + $0x210] sm:$0xf0] }
  0xda   :  { %v2815_v43 = vor.u32 %v3286_v32, %v2814_v31  ;;  %v3294_v31 = vld [vmem:[%s5776_s0 + $0x20c] sm:$0xf0]  ;;  %v3292_v32 = vld [vmem:[%s5776_s0 + $0x204] sm:$0xf]  ;;  %v2854_v34 = vld [vmem:[%s5776_s0 + $0x208] sm:$0xf] }
  0xde   :  { %v1405_v46 = vpop.f32.mrf.mxu2  ;;  %v1070_v52 = vpop.f32.mrf.mxu0 }
  0xdf   :  { %v1574_v48 = vpop.f32.mrf.mxu3  ;;  %v1406_v51 = vadd.f32 %v1405_v46, %v1237_v35  ;;  %v1239_v53 = vpop.f32.mrf.mxu1  ;;  %v2822_v35 = vld [vmem:[%s5776_s0 + $0x1c8] sm:$0xf] }
  0xe0   :  { %v1240_v56 = vadd.f32 %v1239_v53, %v1070_v52 }
  0xe1   :  { %v3839_v57 = vadd.f32 %v1574_v48, %v1406_v51  ;;  %1109 = vmatmul.bf16.gmra.mxu0 %v2783_v49  ;;  %v2823_v49 = vor.u32 %v3287_v37, %v2822_v35  ;;  %v3295_v35 = vld [vmem:[%s5776_s0 + $0x214] sm:$0xf0]  ;;  %v3293_v37 = vld [vmem:[%s5776_s0 + $0x20c] sm:$0xf] }
  0xe2   :  { %1278 = vmatmul.bf16.gmra.mxu1 %v2787_v50  ;;  %v2827_v50 = vor.u32 %v3285_v38, %v2824_v39  ;;  %v2856_v38 = vld [vmem:[%s5776_s0 + $0x218] sm:$0xf0] }
  0xe3   :  { %1447 = vmatmul.bf16.gmra.mxu2 %v2791_v54 }
  0xe4   :  { %1616 = vmatmul.bf16.gmra.mxu3 %v2795_v55 }
  0xe6   :  { %v1408_v58 = vpop.f32.mrf.mxu2  ;;  %v1072_v61 = vpop.f32.mrf.mxu0 }
  0xe7   :  { %v1577_v59 = vpop.f32.mrf.mxu3  ;;  %v1409_v60 = vadd.f32 %v1408_v58, %v1240_v56  ;;  %v1241_v62 = vpop.f32.mrf.mxu1 }
  0xe8   :  { %v1242_v63 = vadd.f32 %v1241_v62, %v1072_v61  ;;  %v2830_v61 = vld [vmem:[%s5776_s0 + $0x1e0] sm:$0xf]  ;;  %v3290_v62 = vld [vmem:[%s5776_s0 + $0x1ec] sm:$0xf0] }
  0xe9   :  { %v3841_v0 = vadd.f32 %v1577_v59, %v1409_v60  ;;  %v2831_v10 = vor.u32 %v3290_v62, %v2830_v61  ;;  %v2862_v62 = vld [vmem:[%s5776_s0 + $0x220] sm:$0xf] }
  0xee   :  { %v1410_v11 = vpop.f32.mrf.mxu2  ;;  %v1075_v16 = vpop.f32.mrf.mxu0 }
  0xef   :  { %v1579_v12 = vpop.f32.mrf.mxu3  ;;  %v1411_v15 = vadd.f32 %v1410_v11, %v1242_v63  ;;  %v1244_v17 = vpop.f32.mrf.mxu1  ;;  %v3288_v63 = vld [vmem:[%s5776_s0 + $0x1e4] sm:$0xf] }
  0xf0   :  { %v1245_v20 = vadd.f32 %v1244_v17, %v1075_v16  ;;  %v2835_v11 = vor.u32 %v3288_v63, %v2832_v1  ;;  %v2843_v16 = vor.u32 %v3289_v5, %v2840_v6  ;;  %v3298_v63 = vld [vmem:[%s5776_s0 + $0x22c] sm:$0xf0]  ;;  %v3296_v1 = vld [vmem:[%s5776_s0 + $0x224] sm:$0xf]  ;;  %v3299_v5 = vld [vmem:[%s5776_s0 + $0x234] sm:$0xf0] }
  0xf1   :  { %v3867_v22 = vadd.f32 %v1579_v12, %v1411_v15  ;;  %1114 = vmatmul.bf16.gmra.mxu0 %v2799_v13  ;;  %v2839_v15 = vor.u32 %v3291_v4, %v2838_v3  ;;  %v2864_v3 = vld [vmem:[%s5776_s0 + $0x230] sm:$0xf0]  ;;  %v2870_v4 = vld [vmem:[%s5776_s0 + $0x228] sm:$0xf]  ;;  %v3297_v6 = vld [vmem:[%s5776_s0 + $0x22c] sm:$0xf] }
  0xf2   :  { %1283 = vmatmul.bf16.gmra.mxu1 %v2803_v14 }
  0xf3   :  { %5839 = vst [vmem:[#allocation2_spill] sm:$0xff] %v3867_v22  ;;  %1452 = vmatmul.bf16.gmra.mxu2 %v2807_v18 }
  0xf4   :  { %1621 = vmatmul.bf16.gmra.mxu3 %v2811_v19 }
  0xf6   :  { %v1413_v23 = vpop.f32.mrf.mxu2  ;;  %v1077_v26 = vpop.f32.mrf.mxu0 }
  0xf7   :  { %v1582_v24 = vpop.f32.mrf.mxu3  ;;  %v1414_v25 = vadd.f32 %v1413_v23, %v1245_v20  ;;  %v1246_v27 = vpop.f32.mrf.mxu1 }
  0xf8   :  { %v1247_v28 = vadd.f32 %v1246_v27, %v1077_v26 }
  0xf9   :  { %v3869_v30 = vadd.f32 %v1582_v24, %v1414_v25 }
  0xfe   :  { %v1415_v41 = vpop.f32.mrf.mxu2  ;;  %v1080_v46 = vpop.f32.mrf.mxu0 }
  0xff   :  { %v1584_v42 = vpop.f32.mrf.mxu3  ;;  %v1416_v45 = vadd.f32 %v1415_v41, %v1247_v28  ;;  %v1249_v48 = vpop.f32.mrf.mxu1  ;;  %v2846_v28 = vld [vmem:[%s5776_s0 + $0x200] sm:$0xf] }
 0x100   :  { %v1250_v51 = vadd.f32 %v1249_v48, %v1080_v46  ;;  %v2855_v48 = vor.u32 %v3295_v35, %v2854_v34  ;;  %v3302_v34 = vld [vmem:[%s5776_s0 + $0x24c] sm:$0xf0]  ;;  %v3300_v35 = vld [vmem:[%s5776_s0 + $0x244] sm:$0xf] }
 0x101   :  { %v3895_v52 = vadd.f32 %v1584_v42, %v1416_v45  ;;  %1119 = vmatmul.bf16.gmra.mxu0 %v2815_v43  ;;  %v2847_v42 = vor.u32 %v3294_v31, %v2846_v28  ;;  %v2851_v43 = vor.u32 %v3292_v32, %v2848_v33  ;;  %v2878_v33 = vld [vmem:[%s5776_s0 + $0x240] sm:$0xf] }
 0x102   :  { %1288 = vmatmul.bf16.gmra.mxu1 %v2819_v44 }
 0x103   :  { %1457 = vmatmul.bf16.gmra.mxu2 %v2823_v49  ;;  %v2859_v49 = vor.u32 %v3293_v37, %v2856_v38  ;;  %v2880_v37 = vld [vmem:[%s5776_s0 + $0x250] sm:$0xf0]  ;;  %v2886_v38 = vld [vmem:[%s5776_s0 + $0x248] sm:$0xf] }
 0x104   :  { %1626 = vmatmul.bf16.gmra.mxu3 %v2827_v50 }
 0x106   :  { %v1418_v53 = vpop.f32.mrf.mxu2  ;;  %v1082_v56 = vpop.f32.mrf.mxu0 }
 0x107   :  { %v1587_v54 = vpop.f32.mrf.mxu3  ;;  %v1419_v55 = vadd.f32 %v1418_v53, %v1250_v51  ;;  %v1251_v58 = vpop.f32.mrf.mxu1 }
 0x108   :  { %v1252_v59 = vadd.f32 %v1251_v58, %v1082_v56 }
 0x109   :  { %v3897_v60 = vadd.f32 %v1587_v54, %v1419_v55 }
 0x10b   :  { %5840 = vst [vmem:[#allocation3_spill] sm:$0xff] %v3897_v60 }
 0x10e   :  { %v1420_v7 = vpop.f32.mrf.mxu2  ;;  %v1085_v13 = vpop.f32.mrf.mxu0 }
 0x10f   :  { %v1589_v8 = vpop.f32.mrf.mxu3  ;;  %v1421_v12 = vadd.f32 %v1420_v7, %v1252_v59  ;;  %v1254_v14 = vpop.f32.mrf.mxu1  ;;  %v2872_v7 = vld [vmem:[%s5776_s0 + $0x238] sm:$0xf0] }
 0x110   :  { %v1255_v17 = vadd.f32 %v1254_v14, %v1085_v13 }
 0x111   :  { %v3923_v18 = vadd.f32 %v1589_v8, %v1421_v12  ;;  %1124 = vmatmul.bf16.gmra.mxu0 %v2831_v10  ;;  %v2867_v12 = vor.u32 %v3296_v1, %v2864_v3 }
 0x112   :  { %1293 = vmatmul.bf16.gmra.mxu1 %v2835_v11  ;;  %v2863_v11 = vor.u32 %v3298_v63, %v2862_v62 }
 0x113   :  { %5841 = vst [vmem:[#allocation4_spill] sm:$0xff] %v3923_v18  ;;  %1462 = vmatmul.bf16.gmra.mxu2 %v2839_v15 }
 0x114   :  { %1631 = vmatmul.bf16.gmra.mxu3 %v2843_v16  ;;  %v2871_v16 = vor.u32 %v3299_v5, %v2870_v4  ;;  %v2894_v5 = vld [vmem:[%s5776_s0 + $0x260] sm:$0xf] }
 0x116   :  { %v1423_v19 = vpop.f32.mrf.mxu2  ;;  %v1087_v24 = vpop.f32.mrf.mxu0 }
 0x117   :  { %v1592_v20 = vpop.f32.mrf.mxu3  ;;  %v1424_v23 = vadd.f32 %v1423_v19, %v1255_v17  ;;  %v1256_v25 = vpop.f32.mrf.mxu1  ;;  %v2875_v17 = vor.u32 %v3297_v6, %v2872_v7  ;;  %v3306_v6 = vld [vmem:[%s5776_s0 + $0x26c] sm:$0xf0]  ;;  %v3304_v7 = vld [vmem:[%s5776_s0 + $0x264] sm:$0xf] }
 0x118   :  { %v1257_v26 = vadd.f32 %v1256_v25, %v1087_v24 }
 0x119   :  { %v3925_v27 = vadd.f32 %v1592_v20, %v1424_v23 }
 0x11b   :  { %5842 = vst [vmem:[#allocation5_spill] sm:$0xff] %v3925_v27 }
 0x11e   :  { %v1425_v39 = vpop.f32.mrf.mxu2  ;;  %v1090_v45 = vpop.f32.mrf.mxu0 }
 0x11f   :  { %v1594_v41 = vpop.f32.mrf.mxu3  ;;  %v1426_v44 = vadd.f32 %v1425_v39, %v1257_v26  ;;  %v1259_v46 = vpop.f32.mrf.mxu1  ;;  %v3303_v39 = vld [vmem:[%s5776_s0 + $0x254] sm:$0xf0] }
 0x120   :  { %v1260_v50 = vadd.f32 %v1259_v46, %v1090_v45  ;;  %v2879_v45 = vor.u32 %v3302_v34, %v2878_v33  ;;  %v2883_v46 = vor.u32 %v3300_v35, %v2880_v37 }
 0x121   :  { %v3951_v51 = vadd.f32 %v1594_v41, %v1426_v44  ;;  %1129 = vmatmul.bf16.gmra.mxu0 %v2847_v42  ;;  %v3301_v41 = vld [vmem:[%s5776_s0 + $0x24c] sm:$0xf]  ;;  %v2888_v42 = vld [vmem:[%s5776_s0 + $0x258] sm:$0xf0] }
 0x122   :  { %1298 = vmatmul.bf16.gmra.mxu1 %v2851_v43 }
 0x123   :  { %5843 = vst [vmem:[#allocation6_spill] sm:$0xff] %v3951_v51  ;;  %1467 = vmatmul.bf16.gmra.mxu2 %v2855_v48 }
 0x124   :  { %1636 = vmatmul.bf16.gmra.mxu3 %v2859_v49 }
 0x126   :  { %v1428_v53 = vpop.f32.mrf.mxu2  ;;  %v1092_v56 = vpop.f32.mrf.mxu0 }
 0x127   :  { %v1597_v54 = vpop.f32.mrf.mxu3  ;;  %v1429_v55 = vadd.f32 %v1428_v53, %v1260_v50  ;;  %v1261_v58 = vpop.f32.mrf.mxu1  ;;  %v2887_v53 = vor.u32 %v3303_v39, %v2886_v38 }
 0x128   :  { %v1262_v59 = vadd.f32 %v1261_v58, %v1092_v56 }
 0x129   :  { %v3953_v61 = vadd.f32 %v1597_v54, %v1429_v55  ;;  %v2891_v54 = vor.u32 %v3301_v41, %v2888_v42  ;;  %v2910_v42 = vld [vmem:[%s5776_s0 + $0x280] sm:$0xf] }
 0x12b   :  { %5844 = vst [vmem:[#allocation7_spill] sm:$0xff] %v3953_v61 }
 0x12e   :  { %v1430_v8 = vpop.f32.mrf.mxu2  ;;  %v1095_v14 = vpop.f32.mrf.mxu0 }
 0x12f   :  { %v1599_v10 = vpop.f32.mrf.mxu3  ;;  %v1431_v13 = vadd.f32 %v1430_v8, %v1262_v59  ;;  %v1264_v15 = vpop.f32.mrf.mxu1  ;;  %v2896_v8 = vld [vmem:[%s5776_s0 + $0x270] sm:$0xf0] }
 0x130   :  { %v1265_v19 = vadd.f32 %v1264_v15, %v1095_v14 }
 0x131   :  { %v3979_v20 = vadd.f32 %v1599_v10, %v1431_v13  ;;  %1134 = vmatmul.bf16.gmra.mxu0 %v2863_v11  ;;  %v2902_v10 = vld [vmem:[%s5776_s0 + $0x268] sm:$0xf]  ;;  %v3307_v11 = vld [vmem:[%s5776_s0 + $0x274] sm:$0xf0]  ;;  %v2904_v13 = vld [vmem:[%s5776_s0 + $0x278] sm:$0xf0] }
 0x132   :  { %1303 = vmatmul.bf16.gmra.mxu1 %v2867_v12  ;;  %v3305_v12 = vld [vmem:[%s5776_s0 + $0x26c] sm:$0xf] }
 0x133   :  { %5845 = vst [vmem:[#allocation8_spill] sm:$0xff] %v3979_v20  ;;  %1472 = vmatmul.bf16.gmra.mxu2 %v2871_v16  ;;  %v2895_v16 = vor.u32 %v3306_v6, %v2894_v5 }
 0x134   :  { %1641 = vmatmul.bf16.gmra.mxu3 %v2875_v17  ;;  %v2899_v17 = vor.u32 %v3304_v7, %v2896_v8 }
 0x136   :  { %v1433_v23 = vpop.f32.mrf.mxu2  ;;  %v1097_v26 = vpop.f32.mrf.mxu0 }
 0x137   :  { %v1602_v24 = vpop.f32.mrf.mxu3  ;;  %v1434_v25 = vadd.f32 %v1433_v23, %v1265_v19  ;;  %v1266_v28 = vpop.f32.mrf.mxu1 }
 0x138   :  { %v1267_v31 = vadd.f32 %v1266_v28, %v1097_v26  ;;  %v2907_v26 = vor.u32 %v3305_v12, %v2904_v13 }
 0x139   :  { %v3981_v32 = vadd.f32 %v1602_v24, %v1434_v25  ;;  %v2903_v25 = vor.u32 %v3307_v11, %v2902_v10 }
 0x13b   :  { %5846 = vst [vmem:[#allocation9_spill] sm:$0xff] %v3981_v32 }
 0x13e   :  { %v1435_v43 = vpop.f32.mrf.mxu2  ;;  %v1100_v49 = vpop.f32.mrf.mxu0 }
 0x13f   :  { %v1604_v44 = vpop.f32.mrf.mxu3  ;;  %v1436_v48 = vadd.f32 %v1435_v43, %v1267_v31  ;;  %v1269_v50 = vpop.f32.mrf.mxu1  ;;  %v3310_v43 = vld [vmem:[%s5776_s0 + $0x28c] sm:$0xf0] }
 0x140   :  { %v1270_v55 = vadd.f32 %v1269_v50, %v1100_v49  ;;  %v3309_v49 = vld [vmem:[%s5776_s0 + $0x28c] sm:$0xf]  ;;  %v2920_v50 = vld [vmem:[%s5776_s0 + $0x298] sm:$0xf0] }
 0x141   :  { %v4007_v56 = vadd.f32 %v1604_v44, %v1436_v48  ;;  %1139 = vmatmul.bf16.gmra.mxu0 %v2879_v45  ;;  %v3308_v44 = vld [vmem:[%s5776_s0 + $0x284] sm:$0xf]  ;;  %v2912_v45 = vld [vmem:[%s5776_s0 + $0x290] sm:$0xf0]  ;;  %v3311_v48 = vld [vmem:[%s5776_s0 + $0x294] sm:$0xf0] }
 0x142   :  { %1308 = vmatmul.bf16.gmra.mxu1 %v2883_v46  ;;  %v2918_v46 = vld [vmem:[%s5776_s0 + $0x288] sm:$0xf] }
 0x143   :  { %5847 = vst [vmem:[#allocation10_spill] sm:$0xff] %v4007_v56  ;;  %1477 = vmatmul.bf16.gmra.mxu2 %v2887_v53 }
 0x144   :  { %1646 = vmatmul.bf16.gmra.mxu3 %v2891_v54 }
 0x146   :  { %v1438_v58 = vpop.f32.mrf.mxu2  ;;  %v1102_v63 = vpop.f32.mrf.mxu0 }
 0x147   :  { %v1607_v59 = vpop.f32.mrf.mxu3  ;;  %v1439_v62 = vadd.f32 %v1438_v58, %v1270_v55  ;;  %v1271_v1 = vpop.f32.mrf.mxu1  ;;  %v2911_v55 = vor.u32 %v3310_v43, %v2910_v42  ;;  %v2915_v58 = vor.u32 %v3308_v44, %v2912_v45 }
 0x148   :  { %v1272_v3 = vadd.f32 %v1271_v1, %v1102_v63  ;;  %v2919_v1 = vor.u32 %v3311_v48, %v2918_v46 }
 0x149   :  { %v4009_v4 = vadd.f32 %v1607_v59, %v1439_v62 }
 0x14b   :  { %5848 = vst [vmem:[#allocation11_spill] sm:$0xff] %v4009_v4 }
 0x14e   :  { %v1440_v14 = vpop.f32.mrf.mxu2  ;;  %v1105_v23 = vpop.f32.mrf.mxu0 }
 0x14f   :  { %v1609_v15 = vpop.f32.mrf.mxu3  ;;  %v1441_v19 = vadd.f32 %v1440_v14, %v1272_v3  ;;  %v1274_v24 = vpop.f32.mrf.mxu1  ;;  %v2923_v3 = vor.u32 %v3309_v49, %v2920_v50 }
 0x150   :  { %v1275_v28 = vadd.f32 %v1274_v24, %v1105_v23  ;;  %v2934_v23 = vld [vmem:[%s5776_s0 + $0x2a8] sm:$0xf]  ;;  %v3315_v24 = vld [vmem:[%s5776_s0 + $0x2b4] sm:$0xf0] }
 0x151   :  { %v4035_v31 = vadd.f32 %v1609_v15, %v1441_v19  ;;  %1144 = vmatmul.bf16.gmra.mxu0 %v2895_v16  ;;  %v2926_v15 = vld [vmem:[%s5776_s0 + $0x2a0] sm:$0xf]  ;;  %v3314_v16 = vld [vmem:[%s5776_s0 + $0x2ac] sm:$0xf0]  ;;  %v2928_v19 = vld [vmem:[%s5776_s0 + $0x2b0] sm:$0xf0]  ;;  %v2935_v42 = vor.u32 %v3315_v24, %v2934_v23 }
 0x152   :  { %1313 = vmatmul.bf16.gmra.mxu1 %v2899_v17  ;;  %v3312_v17 = vld [vmem:[%s5776_s0 + $0x2a4] sm:$0xf] }
 0x153   :  { %5849 = vst [vmem:[#allocation12_spill] sm:$0xff] %v4035_v31  ;;  %1482 = vmatmul.bf16.gmra.mxu2 %v2903_v25  ;;  %v3313_v25 = vld [vmem:[%s5776_s0 + $0x2ac] sm:$0xf] }
 0x154   :  { %1651 = vmatmul.bf16.gmra.mxu3 %v2907_v26  ;;  %v2936_v26 = vld [vmem:[%s5776_s0 + $0x2b8] sm:$0xf0] }
 0x155   :  { %v2939_v43 = vor.u32 %v3313_v25, %v2936_v26 }
 0x156   :  { %v1443_v33 = vpop.f32.mrf.mxu2  ;;  %v1107_v37 = vpop.f32.mrf.mxu0 }
 0x157   :  { %v1612_v34 = vpop.f32.mrf.mxu3  ;;  %v1444_v35 = vadd.f32 %v1443_v33, %v1275_v28  ;;  %v1276_v38 = vpop.f32.mrf.mxu1 }
 0x158   :  { %v1277_v39 = vadd.f32 %v1276_v38, %v1107_v37 }
 0x159   :  { %v4037_v41 = vadd.f32 %v1612_v34, %v1444_v35  ;;  %v2927_v34 = vor.u32 %v3314_v16, %v2926_v15  ;;  %v2931_v35 = vor.u32 %v3312_v17, %v2928_v19 }
 0x15b   :  { %5850 = vst [vmem:[#allocation13_spill] sm:$0xff] %v4037_v41 }
 0x15e   :  { %v1445_v53 = vpop.f32.mrf.mxu2  ;;  %v1110_v62 = vpop.f32.mrf.mxu0 }
 0x15f   :  { %v1614_v54 = vpop.f32.mrf.mxu3  ;;  %v1446_v59 = vadd.f32 %v1445_v53, %v1277_v39  ;;  %v1279_v63 = vpop.f32.mrf.mxu1 }
 0x160   :  { %v1280_v5 = vadd.f32 %v1279_v63, %v1110_v62  ;;  %v3316_v62 = vld [vmem:[%s5776_s0 + $0x2c4] sm:$0xf]  ;;  %v2944_v63 = vld [vmem:[%s5776_s0 + $0x2d0] sm:$0xf0] }
 0x161   :  { %v4063_v6 = vadd.f32 %v1614_v54, %v1446_v59  ;;  %1149 = vmatmul.bf16.gmra.mxu0 %v2911_v55  ;;  %v3318_v59 = vld [vmem:[%s5776_s0 + $0x2cc] sm:$0xf0] }
 0x162   :  { %1318 = vmatmul.bf16.gmra.mxu1 %v2915_v58  ;;  %v2942_v58 = vld [vmem:[%s5776_s0 + $0x2c0] sm:$0xf] }
 0x163   :  { %5851 = vst [vmem:[#allocation14_spill] sm:$0xff] %v4063_v6  ;;  %1487 = vmatmul.bf16.gmra.mxu2 %v2919_v1  ;;  %v2950_v1 = vld [vmem:[%s5776_s0 + $0x2c8] sm:$0xf] }
 0x164   :  { %1656 = vmatmul.bf16.gmra.mxu3 %v2923_v3  ;;  %v3319_v3 = vld [vmem:[%s5776_s0 + $0x2d4] sm:$0xf0] }
 0x165   :  { %v2951_v17 = vor.u32 %v3319_v3, %v2950_v1 }
 0x166   :  { %v1448_v7 = vpop.f32.mrf.mxu2  ;;  %v1112_v11 = vpop.f32.mrf.mxu0 }
 0x167   :  { %v1617_v8 = vpop.f32.mrf.mxu3  ;;  %v1449_v10 = vadd.f32 %v1448_v7, %v1280_v5  ;;  %v1281_v12 = vpop.f32.mrf.mxu1  ;;  %v3317_v5 = vld [vmem:[%s5776_s0 + $0x2cc] sm:$0xf]  ;;  %v2952_v7 = vld [vmem:[%s5776_s0 + $0x2d8] sm:$0xf0] }
 0x168   :  { %v1282_v13 = vadd.f32 %v1281_v12, %v1112_v11  ;;  %v2943_v11 = vor.u32 %v3318_v59, %v2942_v58  ;;  %v2947_v12 = vor.u32 %v3316_v62, %v2944_v63  ;;  %v2955_v19 = vor.u32 %v3317_v5, %v2952_v7 }
 0x169   :  { %v4065_v14 = vadd.f32 %v1617_v8, %v1449_v10 }
 0x16b   :  { %5852 = vst [vmem:[#allocation15_spill] sm:$0xff] %v4065_v14 }
 0x16e   :  { %v1450_v28 = vpop.f32.mrf.mxu2  ;;  %v1115_v38 = vpop.f32.mrf.mxu0 }
 0x16f   :  { %v1619_v33 = vpop.f32.mrf.mxu3  ;;  %v1451_v37 = vadd.f32 %v1450_v28, %v1282_v13  ;;  %v1284_v39 = vpop.f32.mrf.mxu1 }
 0x170   :  { %v1285_v44 = vadd.f32 %v1284_v39, %v1115_v38  ;;  %v2958_v38 = vld [vmem:[%s5776_s0 + $0x2e0] sm:$0xf]  ;;  %v3322_v39 = vld [vmem:[%s5776_s0 + $0x2ec] sm:$0xf0] }
 0x171   :  { %v4091_v45 = vadd.f32 %v1619_v33, %v1451_v37  ;;  %1154 = vmatmul.bf16.gmra.mxu0 %v2927_v34 }
 0x172   :  { %1323 = vmatmul.bf16.gmra.mxu1 %v2931_v35 }
 0x173   :  { %5853 = vst [vmem:[#allocation16_spill] sm:$0xff] %v4091_v45  ;;  %1492 = vmatmul.bf16.gmra.mxu2 %v2935_v42  ;;  %v3320_v42 = vld [vmem:[%s5776_s0 + $0x2e4] sm:$0xf] }
 0x174   :  { %1661 = vmatmul.bf16.gmra.mxu3 %v2939_v43  ;;  %v2960_v43 = vld [vmem:[%s5776_s0 + $0x2f0] sm:$0xf0] }
 0x175   :  { %v2963_v58 = vor.u32 %v3320_v42, %v2960_v43 }
 0x176   :  { %v1453_v46 = vpop.f32.mrf.mxu2  ;;  %v1117_v50 = vpop.f32.mrf.mxu0 }
 0x177   :  { %v1622_v48 = vpop.f32.mrf.mxu3  ;;  %v1454_v49 = vadd.f32 %v1453_v46, %v1285_v44  ;;  %v1286_v53 = vpop.f32.mrf.mxu1  ;;  %v2966_v44 = vld [vmem:[%s5776_s0 + $0x2e8] sm:$0xf]  ;;  %v3323_v46 = vld [vmem:[%s5776_s0 + $0x2f4] sm:$0xf0] }
 0x178   :  { %v1287_v54 = vadd.f32 %v1286_v53, %v1117_v50  ;;  %v2967_v1 = vor.u32 %v3323_v46, %v2966_v44 }
 0x179   :  { %v4093_v55 = vadd.f32 %v1622_v48, %v1454_v49  ;;  %v3321_v48 = vld [vmem:[%s5776_s0 + $0x2ec] sm:$0xf]  ;;  %v2968_v49 = vld [vmem:[%s5776_s0 + $0x2f8] sm:$0xf0] }
 0x17a   :  { %v2971_v3 = vor.u32 %v3321_v48, %v2968_v49 }
 0x17b   :  { %5854 = vst [vmem:[#allocation17_spill] sm:$0xff] %v4093_v55 }
 0x17e   :  { %v1455_v8 = vpop.f32.mrf.mxu2  ;;  %v1120_v15 = vpop.f32.mrf.mxu0 }
 0x17f   :  { %v1624_v10 = vpop.f32.mrf.mxu3  ;;  %v1456_v13 = vadd.f32 %v1455_v8, %v1287_v54  ;;  %v1289_v16 = vpop.f32.mrf.mxu1  ;;  %v2959_v54 = vor.u32 %v3322_v39, %v2958_v38 }
 0x180   :  { %v1290_v23 = vadd.f32 %v1289_v16, %v1120_v15 }
 0x181   :  { %v4119_v24 = vadd.f32 %v1624_v10, %v1456_v13  ;;  %1159 = vmatmul.bf16.gmra.mxu0 %v2943_v11 }
 0x182   :  { %1328 = vmatmul.bf16.gmra.mxu1 %v2947_v12 }
 0x183   :  { %5855 = vst [vmem:[#allocation18_spill] sm:$0xff] %v4119_v24  ;;  %1497 = vmatmul.bf16.gmra.mxu2 %v2951_v17  ;;  %v2974_v17 = vld [vmem:[%s5776_s0 + $0x300] sm:$0xf] }
 0x184   :  { %1666 = vmatmul.bf16.gmra.mxu3 %v2955_v19  ;;  %v3326_v19 = vld [vmem:[%s5776_s0 + $0x30c] sm:$0xf0] }
 0x185   :  { %v2975_v39 = vor.u32 %v3326_v19, %v2974_v17  ;;  %v3000_v17 = vld [vmem:[%s5776_s0 + $0x338] sm:$0xf0] }
 0x186   :  { %v1458_v25 = vpop.f32.mrf.mxu2  ;;  %v1122_v33 = vpop.f32.mrf.mxu0 }
 0x187   :  { %v1627_v26 = vpop.f32.mrf.mxu3  ;;  %v1459_v28 = vadd.f32 %v1458_v25, %v1290_v23  ;;  %v1291_v34 = vpop.f32.mrf.mxu1  ;;  %v3324_v23 = vld [vmem:[%s5776_s0 + $0x304] sm:$0xf]  ;;  %v2976_v25 = vld [vmem:[%s5776_s0 + $0x310] sm:$0xf0] }
 0x188   :  { %v1292_v35 = vadd.f32 %v1291_v34, %v1122_v33  ;;  %v3325_v33 = vld [vmem:[%s5776_s0 + $0x30c] sm:$0xf]  ;;  %v2984_v34 = vld [vmem:[%s5776_s0 + $0x318] sm:$0xf0]  ;;  %v2979_v42 = vor.u32 %v3324_v23, %v2976_v25 }
 0x189   :  { %v4121_v37 = vadd.f32 %v1627_v26, %v1459_v28  ;;  %v2982_v26 = vld [vmem:[%s5776_s0 + $0x308] sm:$0xf]  ;;  %v3327_v28 = vld [vmem:[%s5776_s0 + $0x314] sm:$0xf0]  ;;  %v2987_v49 = vor.u32 %v3325_v33, %v2984_v34 }
 0x18a   :  { %v2983_v48 = vor.u32 %v3327_v28, %v2982_v26 }
 0x18b   :  { %5856 = vst [vmem:[#allocation19_spill] sm:$0xff] %v4121_v37 }
 0x18e   :  { %v1460_v50 = vpop.f32.mrf.mxu2  ;;  %v1125_v62 = vpop.f32.mrf.mxu0 }
 0x18f   :  { %v1629_v53 = vpop.f32.mrf.mxu3  ;;  %v1461_v59 = vadd.f32 %v1460_v50, %v1292_v35  ;;  %v1294_v63 = vpop.f32.mrf.mxu1 }
 0x190   :  { %v1295_v5 = vadd.f32 %v1294_v63, %v1125_v62 }
 0x191   :  { %v4147_v7 = vadd.f32 %v1629_v53, %v1461_v59  ;;  %1164 = vmatmul.bf16.gmra.mxu0 %v2959_v54 }
 0x192   :  { %1333 = vmatmul.bf16.gmra.mxu1 %v2963_v58 }
 0x193   :  { %5857 = vst [vmem:[#allocation20_spill] sm:$0xff] %v4147_v7  ;;  %1502 = vmatmul.bf16.gmra.mxu2 %v2967_v1 }
 0x194   :  { %1671 = vmatmul.bf16.gmra.mxu3 %v2971_v3 }
 0x196   :  { %v1463_v8 = vpop.f32.mrf.mxu2  ;;  %v1127_v12 = vpop.f32.mrf.mxu0 }
 0x197   :  { %v1632_v10 = vpop.f32.mrf.mxu3  ;;  %v1464_v11 = vadd.f32 %v1463_v8, %v1295_v5  ;;  %v1296_v13 = vpop.f32.mrf.mxu1  ;;  %v2990_v5 = vld [vmem:[%s5776_s0 + $0x320] sm:$0xf]  ;;  %v3330_v8 = vld [vmem:[%s5776_s0 + $0x32c] sm:$0xf0] }
 0x198   :  { %v1297_v15 = vadd.f32 %v1296_v13, %v1127_v12  ;;  %v2998_v12 = vld [vmem:[%s5776_s0 + $0x328] sm:$0xf]  ;;  %v3331_v13 = vld [vmem:[%s5776_s0 + $0x334] sm:$0xf0]  ;;  %v2991_v25 = vor.u32 %v3330_v8, %v2990_v5  ;;  %v3333_v8 = vld [vmem:[%s5776_s0 + $0x34c] sm:$0xf] }
 0x199   :  { %v4149_v16 = vadd.f32 %v1632_v10, %v1464_v11  ;;  %v3328_v10 = vld [vmem:[%s5776_s0 + $0x324] sm:$0xf]  ;;  %v2992_v11 = vld [vmem:[%s5776_s0 + $0x330] sm:$0xf0]  ;;  %v3335_v5 = vld [vmem:[%s5776_s0 + $0x354] sm:$0xf0] }
 0x19a   :  { %v2995_v26 = vor.u32 %v3328_v10, %v2992_v11  ;;  %v3016_v10 = vld [vmem:[%s5776_s0 + $0x358] sm:$0xf0] }
 0x19b   :  { %5858 = vst [vmem:[#allocation21_spill] sm:$0xff] %v4149_v16 }
 0x19e   :  { %v1465_v35 = vpop.f32.mrf.mxu2  ;;  %v1130_v44 = vpop.f32.mrf.mxu0 }
 0x19f   :  { %v1634_v38 = vpop.f32.mrf.mxu3  ;;  %v1466_v43 = vadd.f32 %v1465_v35, %v1297_v15  ;;  %v1299_v46 = vpop.f32.mrf.mxu1  ;;  %v3329_v15 = vld [vmem:[%s5776_s0 + $0x32c] sm:$0xf]  ;;  %v2999_v35 = vor.u32 %v3331_v13, %v2998_v12 }
 0x1a0   :  { %v1300_v50 = vadd.f32 %v1299_v46, %v1130_v44 }
 0x1a1   :  { %v4175_v53 = vadd.f32 %v1634_v38, %v1466_v43  ;;  %1169 = vmatmul.bf16.gmra.mxu0 %v2975_v39  ;;  %v3003_v38 = vor.u32 %v3329_v15, %v3000_v17 }
 0x1a2   :  { %1338 = vmatmul.bf16.gmra.mxu1 %v2979_v42 }
 0x1a3   :  { %5859 = vst [vmem:[#allocation22_spill] sm:$0xff] %v4175_v53  ;;  %1507 = vmatmul.bf16.gmra.mxu2 %v2983_v48 }
 0x1a4   :  { %1676 = vmatmul.bf16.gmra.mxu3 %v2987_v49 }
 0x1a6   :  { %v1468_v54 = vpop.f32.mrf.mxu2  ;;  %v1132_v62 = vpop.f32.mrf.mxu0 }
 0x1a7   :  { %v1637_v58 = vpop.f32.mrf.mxu3  ;;  %v1469_v59 = vadd.f32 %v1468_v54, %v1300_v50  ;;  %v1301_v63 = vpop.f32.mrf.mxu1 }
 0x1a8   :  { %v1302_v1 = vadd.f32 %v1301_v63, %v1132_v62  ;;  %v3332_v62 = vld [vmem:[%s5776_s0 + $0x344] sm:$0xf]  ;;  %v3008_v63 = vld [vmem:[%s5776_s0 + $0x350] sm:$0xf0] }
 0x1a9   :  { %v4177_v3 = vadd.f32 %v1637_v58, %v1469_v59  ;;  %v3006_v58 = vld [vmem:[%s5776_s0 + $0x340] sm:$0xf]  ;;  %v3334_v59 = vld [vmem:[%s5776_s0 + $0x34c] sm:$0xf0]  ;;  %v3011_v15 = vor.u32 %v3332_v62, %v3008_v63  ;;  %v3339_v62 = vld [vmem:[%s5776_s0 + $0x374] sm:$0xf0] }
 0x1aa   :  { %v3007_v13 = vor.u32 %v3334_v59, %v3006_v58  ;;  %v3024_v58 = vld [vmem:[%s5776_s0 + $0x370] sm:$0xf0]  ;;  %v3030_v59 = vld [vmem:[%s5776_s0 + $0x368] sm:$0xf]  ;;  %v3337_v63 = vld [vmem:[%s5776_s0 + $0x36c] sm:$0xf] }
 0x1ab   :  { %5860 = vst [vmem:[#allocation23_spill] sm:$0xff] %v4177_v3 }
 0x1ae   :  { %v1470_v19 = vpop.f32.mrf.mxu2  ;;  %v1135_v33 = vpop.f32.mrf.mxu0 }
 0x1af   :  { %v1639_v23 = vpop.f32.mrf.mxu3  ;;  %v1471_v28 = vadd.f32 %v1470_v19, %v1302_v1  ;;  %v1304_v34 = vpop.f32.mrf.mxu1  ;;  %v3014_v1 = vld [vmem:[%s5776_s0 + $0x348] sm:$0xf] }
 0x1b0   :  { %v1305_v39 = vadd.f32 %v1304_v34, %v1135_v33 }
 0x1b1   :  { %v4203_v42 = vadd.f32 %v1639_v23, %v1471_v28  ;;  %1174 = vmatmul.bf16.gmra.mxu0 %v2991_v25  ;;  %v3015_v25 = vor.u32 %v3335_v5, %v3014_v1  ;;  %v3032_v1 = vld [vmem:[%s5776_s0 + $0x378] sm:$0xf0] }
 0x1b2   :  { %1343 = vmatmul.bf16.gmra.mxu1 %v2995_v26  ;;  %v3019_v26 = vor.u32 %v3333_v8, %v3016_v10 }
 0x1b3   :  { %5861 = vst [vmem:[#allocation24_spill] sm:$0xff] %v4203_v42  ;;  %1512 = vmatmul.bf16.gmra.mxu2 %v2999_v35 }
 0x1b4   :  { %1681 = vmatmul.bf16.gmra.mxu3 %v3003_v38 }
 0x1b6   :  { %v1473_v43 = vpop.f32.mrf.mxu2  ;;  %v1137_v48 = vpop.f32.mrf.mxu0 }
 0x1b7   :  { %v1642_v44 = vpop.f32.mrf.mxu3  ;;  %v1474_v46 = vadd.f32 %v1473_v43, %v1305_v39  ;;  %v1306_v49 = vpop.f32.mrf.mxu1 }
 0x1b8   :  { %v1307_v50 = vadd.f32 %v1306_v49, %v1137_v48  ;;  %v3022_v48 = vld [vmem:[%s5776_s0 + $0x360] sm:$0xf]  ;;  %v3338_v49 = vld [vmem:[%s5776_s0 + $0x36c] sm:$0xf0] }
 0x1b9   :  { %v4205_v54 = vadd.f32 %v1642_v44, %v1474_v46  ;;  %v3023_v10 = vor.u32 %v3338_v49, %v3022_v48  ;;  %v3342_v48 = vld [vmem:[%s5776_s0 + $0x38c] sm:$0xf0]  ;;  %v3340_v49 = vld [vmem:[%s5776_s0 + $0x384] sm:$0xf] }
 0x1bb   :  { %5862 = vst [vmem:[#allocation25_spill] sm:$0xff] %v4205_v54 }
 0x1be   :  { %v1475_v11 = vpop.f32.mrf.mxu2  ;;  %v1140_v19 = vpop.f32.mrf.mxu0 }
 0x1bf   :  { %v1644_v12 = vpop.f32.mrf.mxu3  ;;  %v1476_v17 = vadd.f32 %v1475_v11, %v1307_v50  ;;  %v1309_v23 = vpop.f32.mrf.mxu1  ;;  %v3336_v50 = vld [vmem:[%s5776_s0 + $0x364] sm:$0xf] }
 0x1c0   :  { %v1310_v28 = vadd.f32 %v1309_v23, %v1140_v19  ;;  %v3027_v11 = vor.u32 %v3336_v50, %v3024_v58  ;;  %v3035_v19 = vor.u32 %v3337_v63, %v3032_v1  ;;  %v3040_v50 = vld [vmem:[%s5776_s0 + $0x390] sm:$0xf0]  ;;  %v3046_v58 = vld [vmem:[%s5776_s0 + $0x388] sm:$0xf]  ;;  %v3048_v63 = vld [vmem:[%s5776_s0 + $0x398] sm:$0xf0] }
 0x1c1   :  { %v4231_v33 = vadd.f32 %v1644_v12, %v1476_v17  ;;  %1179 = vmatmul.bf16.gmra.mxu0 %v3007_v13  ;;  %v3031_v17 = vor.u32 %v3339_v62, %v3030_v59  ;;  %v3343_v59 = vld [vmem:[%s5776_s0 + $0x394] sm:$0xf0]  ;;  %v3341_v62 = vld [vmem:[%s5776_s0 + $0x38c] sm:$0xf] }
 0x1c2   :  { %1348 = vmatmul.bf16.gmra.mxu1 %v3011_v15 }
 0x1c3   :  { %5863 = vst [vmem:[#allocation26_spill] sm:$0xff] %v4231_v33  ;;  %1517 = vmatmul.bf16.gmra.mxu2 %v3015_v25 }
 0x1c4   :  { %1686 = vmatmul.bf16.gmra.mxu3 %v3019_v26 }
 0x1c6   :  { %v1478_v34 = vpop.f32.mrf.mxu2  ;;  %v1142_v39 = vpop.f32.mrf.mxu0 }
 0x1c7   :  { %v1647_v35 = vpop.f32.mrf.mxu3  ;;  %v1479_v38 = vadd.f32 %v1478_v34, %v1310_v28  ;;  %v1311_v43 = vpop.f32.mrf.mxu1 }
 0x1c8   :  { %v1312_v44 = vadd.f32 %v1311_v43, %v1142_v39 }
 0x1c9   :  { %v4233_v46 = vadd.f32 %v1647_v35, %v1479_v38 }
 0x1cb   :  { %5864 = vst [vmem:[#allocation27_spill] sm:$0xff] %v4233_v46 }
 0x1ce   :  { %v1480_v5 = vpop.f32.mrf.mxu2  ;;  %v1145_v13 = vpop.f32.mrf.mxu0 }
 0x1cf   :  { %v1649_v8 = vpop.f32.mrf.mxu3  ;;  %v1481_v12 = vadd.f32 %v1480_v5, %v1312_v44  ;;  %v1314_v15 = vpop.f32.mrf.mxu1  ;;  %v3038_v44 = vld [vmem:[%s5776_s0 + $0x380] sm:$0xf] }
 0x1d0   :  { %v1315_v23 = vadd.f32 %v1314_v15, %v1145_v13  ;;  %v3047_v15 = vor.u32 %v3343_v59, %v3046_v58  ;;  %v3062_v58 = vld [vmem:[%s5776_s0 + $0x3a8] sm:$0xf]  ;;  %v3347_v59 = vld [vmem:[%s5776_s0 + $0x3b4] sm:$0xf0] }
 0x1d1   :  { %v4259_v25 = vadd.f32 %v1649_v8, %v1481_v12  ;;  %1184 = vmatmul.bf16.gmra.mxu0 %v3023_v10  ;;  %v3039_v8 = vor.u32 %v3342_v48, %v3038_v44  ;;  %v3043_v10 = vor.u32 %v3340_v49, %v3040_v50  ;;  %v3346_v48 = vld [vmem:[%s5776_s0 + $0x3ac] sm:$0xf0]  ;;  %v3344_v49 = vld [vmem:[%s5776_s0 + $0x3a4] sm:$0xf]  ;;  %v3056_v50 = vld [vmem:[%s5776_s0 + $0x3b0] sm:$0xf0] }
 0x1d2   :  { %1353 = vmatmul.bf16.gmra.mxu1 %v3027_v11 }
 0x1d3   :  { %5865 = vst [vmem:[#allocation28_spill] sm:$0xff] %v4259_v25  ;;  %1522 = vmatmul.bf16.gmra.mxu2 %v3031_v17  ;;  %v3051_v17 = vor.u32 %v3341_v62, %v3048_v63  ;;  %v3345_v62 = vld [vmem:[%s5776_s0 + $0x3ac] sm:$0xf]  ;;  %v3064_v63 = vld [vmem:[%s5776_s0 + $0x3b8] sm:$0xf0] }
 0x1d4   :  { %1691 = vmatmul.bf16.gmra.mxu3 %v3035_v19 }
 0x1d6   :  { %v1483_v26 = vpop.f32.mrf.mxu2  ;;  %v1147_v35 = vpop.f32.mrf.mxu0 }
 0x1d7   :  { %v1652_v28 = vpop.f32.mrf.mxu3  ;;  %v1484_v34 = vadd.f32 %v1483_v26, %v1315_v23  ;;  %v1316_v38 = vpop.f32.mrf.mxu1 }
 0x1d8   :  { %v1317_v39 = vadd.f32 %v1316_v38, %v1147_v35 }
 0x1d9   :  { %v4261_v43 = vadd.f32 %v1652_v28, %v1484_v34 }
 0x1db   :  { %5866 = vst [vmem:[#allocation29_spill] sm:$0xff] %v4261_v43 }
 0x1de   :  { %v1485_v1 = vpop.f32.mrf.mxu2  ;;  %v1150_v12 = vpop.f32.mrf.mxu0 }
 0x1df   :  { %v1654_v5 = vpop.f32.mrf.mxu3  ;;  %v1486_v11 = vadd.f32 %v1485_v1, %v1317_v39  ;;  %v1319_v13 = vpop.f32.mrf.mxu1  ;;  %v3054_v39 = vld [vmem:[%s5776_s0 + $0x3a0] sm:$0xf] }
 0x1e0   :  { %v1320_v19 = vadd.f32 %v1319_v13, %v1150_v12 }
 0x1e1   :  { %v4287_v23 = vadd.f32 %v1654_v5, %v1486_v11  ;;  %1189 = vmatmul.bf16.gmra.mxu0 %v3039_v8  ;;  %v3055_v8 = vor.u32 %v3346_v48, %v3054_v39  ;;  %v3350_v48 = vld [vmem:[%s5776_s0 + $0x3cc] sm:$0xf0] }
 0x1e2   :  { %1358 = vmatmul.bf16.gmra.mxu1 %v3043_v10  ;;  %v3059_v10 = vor.u32 %v3344_v49, %v3056_v50  ;;  %v3348_v49 = vld [vmem:[%s5776_s0 + $0x3c4] sm:$0xf]  ;;  %v3072_v50 = vld [vmem:[%s5776_s0 + $0x3d0] sm:$0xf0] }
 0x1e3   :  { %5867 = vst [vmem:[#allocation30_spill] sm:$0xff] %v4287_v23  ;;  %1527 = vmatmul.bf16.gmra.mxu2 %v3047_v15  ;;  %v3063_v15 = vor.u32 %v3347_v59, %v3062_v58  ;;  %v3351_v58 = vld [vmem:[%s5776_s0 + $0x3d4] sm:$0xf0]  ;;  %v3349_v59 = vld [vmem:[%s5776_s0 + $0x3cc] sm:$0xf] }
 0x1e4   :  { %1696 = vmatmul.bf16.gmra.mxu3 %v3051_v17  ;;  %v3067_v17 = vor.u32 %v3345_v62, %v3064_v63  ;;  %v3080_v62 = vld [vmem:[%s5776_s0 + $0x3d8] sm:$0xf0] }
 0x1e6   :  { %v1488_v26 = vpop.f32.mrf.mxu2  ;;  %v1152_v35 = vpop.f32.mrf.mxu0 }
 0x1e7   :  { %v1657_v28 = vpop.f32.mrf.mxu3  ;;  %v1489_v34 = vadd.f32 %v1488_v26, %v1320_v19  ;;  %v1321_v38 = vpop.f32.mrf.mxu1 }
 0x1e8   :  { %v1322_v43 = vadd.f32 %v1321_v38, %v1152_v35 }
 0x1e9   :  { %v4289_v44 = vadd.f32 %v1657_v28, %v1489_v34 }
 0x1eb   :  { %5868 = vst [vmem:[#allocation31_spill] sm:$0xff] %v4289_v44 }
 0x1ee   :  { %v1490_v1 = vpop.f32.mrf.mxu2  ;;  %v1155_v12 = vpop.f32.mrf.mxu0 }
 0x1ef   :  { %v1659_v5 = vpop.f32.mrf.mxu3  ;;  %v1491_v11 = vadd.f32 %v1490_v1, %v1322_v43  ;;  %v1324_v13 = vpop.f32.mrf.mxu1  ;;  %v3070_v43 = vld [vmem:[%s5776_s0 + $0x3c0] sm:$0xf] }
 0x1f0   :  { %v1325_v19 = vadd.f32 %v1324_v13, %v1155_v12 }
 0x1f1   :  { %v4315_v26 = vadd.f32 %v1659_v5, %v1491_v11  ;;  %1194 = vmatmul.bf16.gmra.mxu0 %v3055_v8  ;;  %v3071_v5 = vor.u32 %v3350_v48, %v3070_v43  ;;  %v3075_v8 = vor.u32 %v3348_v49, %v3072_v50  ;;  %v3354_v48 = vld [vmem:[%s5776_s0 + $0x3ec] sm:$0xf0]  ;;  %v3352_v49 = vld [vmem:[%s5776_s0 + $0x3e4] sm:$0xf]  ;;  %v3088_v50 = vld [vmem:[%s5776_s0 + $0x3f0] sm:$0xf0] }
 0x1f2   :  { %1363 = vmatmul.bf16.gmra.mxu1 %v3059_v10 }
 0x1f3   :  { %5869 = vst [vmem:[#allocation32_spill] sm:$0xff] %v4315_v26  ;;  %1532 = vmatmul.bf16.gmra.mxu2 %v3063_v15  ;;  %v3083_v15 = vor.u32 %v3349_v59, %v3080_v62  ;;  %v3096_v59 = vld [vmem:[%s5776_s0 + $0x3f8] sm:$0xf0] }
 0x1f4   :  { %1701 = vmatmul.bf16.gmra.mxu3 %v3067_v17 }
 0x1f6   :  { %v1493_v28 = vpop.f32.mrf.mxu2  ;;  %v1157_v38 = vpop.f32.mrf.mxu0 }
 0x1f7   :  { %v1662_v34 = vpop.f32.mrf.mxu3  ;;  %v1494_v35 = vadd.f32 %v1493_v28, %v1325_v19  ;;  %v1326_v44 = vpop.f32.mrf.mxu1 }
 0x1f8   :  { %v1327_v23 = vadd.f32 %v1326_v44, %v1157_v38  ;;  %v3078_v44 = vld [vmem:[%s5776_s0 + $0x3c8] sm:$0xf] }
 0x1f9   :  { %v4317_v39 = vadd.f32 %v1662_v34, %v1494_v35  ;;  %v3079_v13 = vor.u32 %v3351_v58, %v3078_v44  ;;  %v3355_v44 = vld [vmem:[%s5776_s0 + $0x3f4] sm:$0xf0]  ;;  %v3353_v58 = vld [vmem:[%s5776_s0 + $0x3ec] sm:$0xf] }
 0x1fb   :  { %5870 = vst [vmem:[#allocation33_spill] sm:$0xff] %v4317_v39 }
 0x1fe   :  { %v1495_v63 = vpop.f32.mrf.mxu2  ;;  %v1160_v11 = vpop.f32.mrf.mxu0 }
 0x1ff   :  { %v1664_v1 = vpop.f32.mrf.mxu3  ;;  %v1496_v10 = vadd.f32 %v1495_v63, %v1327_v23  ;;  %v1329_v12 = vpop.f32.mrf.mxu1  ;;  %v3086_v23 = vld [vmem:[%s5776_s0 + $0x3e0] sm:$0xf] }
 0x200   :  { %v1330_v17 = vadd.f32 %v1329_v12, %v1160_v11 }
 0x201   :  { %v4343_v19 = vadd.f32 %v1664_v1, %v1496_v10  ;;  %1199 = vmatmul.bf16.gmra.mxu0 %v3071_v5  ;;  %v3087_v1 = vor.u32 %v3354_v48, %v3086_v23  ;;  %v3091_v5 = vor.u32 %v3352_v49, %v3088_v50 }
 0x202   :  { %1368 = vmatmul.bf16.gmra.mxu1 %v3075_v8 }
 0x203   :  { %5871 = vst [vmem:[#allocation34_spill] sm:$0xff] %v4343_v19  ;;  %1537 = vmatmul.bf16.gmra.mxu2 %v3079_v13  ;;  %v3099_v13 = vor.u32 %v3353_v58, %v3096_v59  ;;  %v1852_v59 = vmul.f32 %v3755_v40, %v3755_v40 }
 0x204   :  { %1706 = vmatmul.bf16.gmra.mxu3 %v3083_v15 }
 0x206   :  { %v1498_v28 = vpop.f32.mrf.mxu2  ;;  %v1162_v38 = vpop.f32.mrf.mxu0 }
 0x207   :  { %v1667_v34 = vpop.f32.mrf.mxu3  ;;  %v1499_v35 = vadd.f32 %v1498_v28, %v1330_v17  ;;  %v1331_v39 = vpop.f32.mrf.mxu1 }
 0x208   :  { %v1332_v26 = vadd.f32 %v1331_v39, %v1162_v38  ;;  %v3094_v39 = vld [vmem:[%s5776_s0 + $0x3e8] sm:$0xf] }
 0x209   :  { %v4345_v43 = vadd.f32 %v1667_v34, %v1499_v35  ;;  %v3095_v12 = vor.u32 %v3355_v44, %v3094_v39 }
 0x20b   :  { %5872 = vst [vmem:[#allocation35_spill] sm:$0xff] %v4345_v43 }
 0x20e   :  { %v1500_v62 = vpop.f32.mrf.mxu2  ;;  %v1165_v10 = vpop.f32.mrf.mxu0 }
 0x20f   :  { %v1669_v63 = vpop.f32.mrf.mxu3  ;;  %v1501_v8 = vadd.f32 %v1500_v62, %v1332_v26  ;;  %v1334_v11 = vpop.f32.mrf.mxu1  ;;  %v1851_v62 = vmul.f32 %v3729_v21, %v3729_v21 }
 0x210   :  { %v1335_v15 = vadd.f32 %v1334_v11, %v1165_v10  ;;  %v1718_v10 = vsel %vm1717_vm0, %v3729_v21, 0.0 }
 0x211   :  { %v4371_v17 = vadd.f32 %v1669_v63, %v1501_v8  ;;  %1204 = vmatmul.bf16.gmra.mxu0 %v3087_v1  ;;  %v1719_v63 = vsel %vm1717_vm0, %v3755_v40, 0.0  ;;  %v1854_v1 = vmul.f32 %v3783_v2, %v3783_v2  ;;  %v1915_v11 = vsel %vm1717_vm0, %v1851_v62, 0.0 }
 0x212   :  { %1373 = vmatmul.bf16.gmra.mxu1 %v3091_v5 }
 0x213   :  { %5873 = vst [vmem:[#allocation36_spill] sm:$0xff] %v4371_v17  ;;  %1542 = vmatmul.bf16.gmra.mxu2 %v3095_v12  ;;  %v1721_v12 = vsel %vm1717_vm0, %v3757_v47, 0.0 }
 0x214   :  { %1711 = vmatmul.bf16.gmra.mxu3 %v3099_v13 }
 0x216   :  { %v1503_v28 = vpop.f32.mrf.mxu2  ;;  %v1167_v38 = vpop.f32.mrf.mxu0 }
 0x217   :  { %v1672_v34 = vpop.f32.mrf.mxu3  ;;  %v1504_v35 = vadd.f32 %v1503_v28, %v1335_v15  ;;  %v1336_v43 = vpop.f32.mrf.mxu1 }
 0x218   :  { %v1337_v19 = vadd.f32 %v1336_v43, %v1167_v38  ;;  %v1853_v43 = vmul.f32 %v3757_v47, %v3757_v47  ;;  %v1855_v38 = vmul.f32 %v3785_v9, %v3785_v9 }
 0x219   :  { %v4373_v23 = vadd.f32 %v1672_v34, %v1504_v35  ;;  %v1720_v34 = vadd.f32 %v1719_v63, %v1718_v10 }
 0x21a   :  { %v1918_v35 = vsel %vm1717_vm0, %v1853_v43, 0.0  ;;  %v1725_v43 = vsel %vm1717_vm0, %v3785_v9, 0.0 }
 0x21b   :  { %5874 = vst [vmem:[#allocation37_spill] sm:$0xff] %v4373_v23 }
 0x21e   :  { %v1505_v26 = vpop.f32.mrf.mxu2  ;;  %v1170_v50 = vpop.f32.mrf.mxu0 }
 0x21f   :  { %v1674_v48 = vpop.f32.mrf.mxu3  ;;  %v1506_v49 = vadd.f32 %v1505_v26, %v1337_v19  ;;  %v1339_v39 = vpop.f32.mrf.mxu1  ;;  %v1916_v19 = vsel %vm1717_vm0, %v1852_v59, 0.0  ;;  %v1920_v59 = vsel %vm1717_vm0, %v1854_v1, 0.0 }
 0x220   :  { %v1340_v44 = vadd.f32 %v1339_v39, %v1170_v50  ;;  %v1722_v39 = vadd.f32 %v1721_v12, %v1720_v34  ;;  %v1858_v12 = vmul.f32 %v3839_v57, %v3839_v57  ;;  %v1729_v34 = vsel %vm1717_vm0, %v3813_v36, 0.0 }
 0x221   :  { %v4375_v58 = vadd.f32 %v1674_v48, %v1506_v49  ;;  %v1917_v48 = vadd.f32 %v1916_v19, %v1915_v11  ;;  %v1723_v49 = vsel %vm1717_vm0, %v3783_v2, 0.0  ;;  %v1857_v19 = vmul.f32 %v3813_v36, %v3813_v36 }
 0x222   :  { %v1724_v63 = vadd.f32 %v1723_v49, %v1722_v39 }
 0x223   :  { %v1919_v62 = vadd.f32 %v1918_v35, %v1917_v48  ;;  %v1926_v39 = vsel %vm1717_vm0, %v1857_v19, 0.0  ;;  %v1733_v19 = vsel %vm1717_vm0, %v3841_v0, 0.0 }
 0x224   :  { %v1726_v11 = vadd.f32 %v1725_v43, %v1724_v63  ;;  %v1731_v43 = vsel %vm1717_vm0, %v3839_v57, 0.0 }
 0x225   :  { %v1921_v10 = vadd.f32 %v1920_v59, %v1919_v62  ;;  %v1859_v59 = vmul.f32 %v3841_v0, %v3841_v0 }
 0x226   :  { %v1508_v5 = vpop.f32.mrf.mxu2  ;;  %v1172_v15 = vpop.f32.mrf.mxu0 }
 0x227   :  { %v1677_v8 = vpop.f32.mrf.mxu3  ;;  %v1509_v13 = vadd.f32 %v1508_v5, %v1340_v44  ;;  %v1341_v28 = vpop.f32.mrf.mxu1  ;;  %v1856_v44 = vmul.f32 %v3811_v29, %v3811_v29  ;;  %v1922_v5 = vsel %vm1717_vm0, %v1855_v38, 0.0 }
 0x228   :  { %v1342_v26 = vadd.f32 %v1341_v28, %v1172_v15  ;;  %v1923_v28 = vadd.f32 %v1922_v5, %v1921_v10  ;;  %v1928_v10 = vsel %vm1717_vm0, %v1858_v12, 0.0 }
 0x229   :  { %v4398_v50 = vadd.f32 %v1677_v8, %v1509_v13  ;;  %v1727_v8 = vsel %vm1717_vm0, %v3811_v29, 0.0  ;;  %v1924_v1 = vsel %vm1717_vm0, %v1856_v44, 0.0 }
 0x22a   :  { %v1728_v49 = vadd.f32 %v1727_v8, %v1726_v11  ;;  %v1925_v44 = vadd.f32 %v1924_v1, %v1923_v28  ;;  %v1930_v11 = vsel %vm1717_vm0, %v1859_v59, 0.0  ;;  %v1861_v1 = vmul.f32 %v3869_v30, %v3869_v30 }
 0x22c   :  { %v1730_v5 = vadd.f32 %v1729_v34, %v1728_v49 }
 0x22e   :  { %v1510_v13 = vpop.f32.mrf.mxu2  ;;  %v1175_v38 = vpop.f32.mrf.mxu0  ;;  %v1732_v8 = vadd.f32 %v1731_v43, %v1730_v5 }
 0x22f   :  { %v1679_v15 = vpop.f32.mrf.mxu3  ;;  %v1511_v35 = vadd.f32 %v1510_v13, %v1342_v26  ;;  %v1344_v48 = vpop.f32.mrf.mxu1  ;;  %v1860_v26 = vmul.f32 %v3867_v22, %v3867_v22  ;;  %v1927_v13 = vadd.f32 %v1926_v39, %v1925_v44  ;;  %v1737_v39 = vsel %vm1717_vm0, %v3869_v30, 0.0 }
 0x230   :  { %v1345_v62 = vadd.f32 %v1344_v48, %v1175_v38  ;;  %v1734_v34 = vadd.f32 %v1733_v19, %v1732_v8  ;;  %v1739_v8 = vsel %vm1717_vm0, %v3895_v52, 0.0 }
 0x231   :  { %v4420_v63 = vadd.f32 %v1679_v15, %v1511_v35  ;;  %v1929_v28 = vadd.f32 %v1928_v10, %v1927_v13  ;;  %v1735_v15 = vsel %vm1717_vm0, %v3867_v22, 0.0  ;;  %v1932_v12 = vsel %vm1717_vm0, %v1860_v26, 0.0 }
 0x232   :  { %v1862_v35 = vmul.f32 %v3895_v52, %v3895_v52  ;;  %v1736_v5 = vadd.f32 %v1735_v15, %v1734_v34  ;;  %v1934_v10 = vsel %vm1717_vm0, %v1861_v1, 0.0  ;;  %v1863_v13 = vmul.f32 %v3897_v60, %v3897_v60 }
 0x233   :  { %v1931_v49 = vadd.f32 %v1930_v11, %v1929_v28  ;;  %v1741_v1 = vsel %vm1717_vm0, %v3897_v60, 0.0 }
 0x234   :  { %v1738_v11 = vadd.f32 %v1737_v39, %v1736_v5  ;;  %v1936_v28 = vsel %vm1717_vm0, %v1862_v35, 0.0  ;;  %v1938_v34 = vsel %vm1717_vm0, %v1863_v13, 0.0 }
 0x235   :  { %v1933_v26 = vadd.f32 %v1932_v12, %v1931_v49  ;;  %v1865_v12 = vmul.f32 %v3925_v27, %v3925_v27 }
 0x236   :  { %v1513_v38 = vpop.f32.mrf.mxu2  ;;  %v1177_v44 = vpop.f32.mrf.mxu0  ;;  %v1740_v15 = vadd.f32 %v1739_v8, %v1738_v11 }
 0x237   :  { %v1682_v48 = vpop.f32.mrf.mxu3  ;;  %v1514_v59 = vadd.f32 %v1513_v38, %v1345_v62  ;;  %v1346_v43 = vpop.f32.mrf.mxu1  ;;  %v1864_v62 = vmul.f32 %v3923_v18, %v3923_v18  ;;  %v1935_v38 = vadd.f32 %v1934_v10, %v1933_v26  ;;  %v1745_v10 = vsel %vm1717_vm0, %v3925_v27, 0.0 }
 0x238   :  { %v1347_v19 = vadd.f32 %v1346_v43, %v1177_v44  ;;  %v1742_v39 = vadd.f32 %v1741_v1, %v1740_v15  ;;  %v1747_v15 = vsel %vm1717_vm0, %v3951_v51, 0.0 }
 0x239   :  { %v4442_v22 = vadd.f32 %v1682_v48, %v1514_v59  ;;  %v1937_v49 = vadd.f32 %v1936_v28, %v1935_v38  ;;  %v1743_v48 = vsel %vm1717_vm0, %v3923_v18, 0.0  ;;  %v1940_v35 = vsel %vm1717_vm0, %v1864_v62, 0.0 }
 0x23a   :  { %v1866_v59 = vmul.f32 %v3951_v51, %v3951_v51  ;;  %v1744_v11 = vadd.f32 %v1743_v48, %v1742_v39  ;;  %v1942_v28 = vsel %vm1717_vm0, %v1865_v12, 0.0  ;;  %v1867_v38 = vmul.f32 %v3953_v61, %v3953_v61 }
 0x23b   :  { %v1939_v5 = vadd.f32 %v1938_v34, %v1937_v49  ;;  %v1749_v12 = vsel %vm1717_vm0, %v3953_v61, 0.0 }
 0x23c   :  { %v1746_v34 = vadd.f32 %v1745_v10, %v1744_v11  ;;  %v1944_v49 = vsel %vm1717_vm0, %v1866_v59, 0.0  ;;  %v1946_v39 = vsel %vm1717_vm0, %v1867_v38, 0.0 }
 0x23d   :  { %v1941_v62 = vadd.f32 %v1940_v35, %v1939_v5  ;;  %v1869_v35 = vmul.f32 %v3981_v32, %v3981_v32 }
 0x23e   :  { %v1515_v44 = vpop.f32.mrf.mxu2  ;;  %v1180_v26 = vpop.f32.mrf.mxu0  ;;  %v1748_v48 = vadd.f32 %v1747_v15, %v1746_v34 }
 0x23f   :  { %v1684_v43 = vpop.f32.mrf.mxu3  ;;  %v1516_v13 = vadd.f32 %v1515_v44, %v1347_v19  ;;  %v1349_v8 = vpop.f32.mrf.mxu1  ;;  %v1868_v19 = vmul.f32 %v3979_v20, %v3979_v20  ;;  %v1943_v44 = vadd.f32 %v1942_v28, %v1941_v62  ;;  %v1753_v28 = vsel %vm1717_vm0, %v3981_v32, 0.0 }
 0x240   :  { %v1350_v1 = vadd.f32 %v1349_v8, %v1180_v26  ;;  %v1750_v10 = vadd.f32 %v1749_v12, %v1748_v48  ;;  %v1755_v12 = vsel %vm1717_vm0, %v4007_v56, 0.0 }
 0x241   :  { %v4464_v18 = vadd.f32 %v1684_v43, %v1516_v13  ;;  %v1945_v5 = vadd.f32 %v1944_v49, %v1943_v44  ;;  %v1751_v43 = vsel %vm1717_vm0, %v3979_v20, 0.0  ;;  %v1948_v59 = vsel %vm1717_vm0, %v1868_v19, 0.0 }
 0x242   :  { %v1870_v13 = vmul.f32 %v4007_v56, %v4007_v56  ;;  %v1752_v34 = vadd.f32 %v1751_v43, %v1750_v10  ;;  %v1950_v49 = vsel %vm1717_vm0, %v1869_v35, 0.0  ;;  %v1871_v19 = vmul.f32 %v4009_v4, %v4009_v4 }
 0x243   :  { %v1947_v11 = vadd.f32 %v1946_v39, %v1945_v5  ;;  %v1757_v43 = vsel %vm1717_vm0, %v4009_v4, 0.0  ;;  %v1765_v4 = vsel %vm1717_vm0, %v4065_v14, 0.0 }
 0x244   :  { %v1754_v39 = vadd.f32 %v1753_v28, %v1752_v34  ;;  %v1952_v5 = vsel %vm1717_vm0, %v1870_v13, 0.0  ;;  %v1954_v10 = vsel %vm1717_vm0, %v1871_v19, 0.0  ;;  %v1761_v19 = vsel %vm1717_vm0, %v4037_v41, 0.0 }
 0x245   :  { %v1949_v44 = vadd.f32 %v1948_v59, %v1947_v11  ;;  %v1873_v59 = vmul.f32 %v4037_v41, %v4037_v41 }
 0x246   :  { %v1518_v26 = vpop.f32.mrf.mxu2  ;;  %v4481_v62 = vpop.f32.mrf.mxu0  ;;  %v1756_v35 = vadd.f32 %v1755_v12, %v1754_v39 }
 0x247   :  { %v1687_v8 = vpop.f32.mrf.mxu3  ;;  %v1519_v38 = vadd.f32 %v1518_v26, %v1350_v1  ;;  %v4483_v15 = vpop.f32.mrf.mxu1  ;;  %v1872_v1 = vmul.f32 %v4035_v31, %v4035_v31  ;;  %v1951_v26 = vadd.f32 %v1950_v49, %v1949_v44 }
 0x248   :  { %v1758_v28 = vadd.f32 %v1757_v43, %v1756_v35  ;;  %v1763_v35 = vsel %vm1717_vm0, %v4063_v6, 0.0 }
 0x249   :  { %v4490_v48 = vadd.f32 %v1687_v8, %v1519_v38  ;;  %v1953_v11 = vadd.f32 %v1952_v5, %v1951_v26  ;;  %v1759_v8 = vsel %vm1717_vm0, %v4035_v31, 0.0  ;;  %v1956_v13 = vsel %vm1717_vm0, %v1872_v1, 0.0 }
 0x24a   :  { %v1874_v38 = vmul.f32 %v4063_v6, %v4063_v6  ;;  %v1760_v5 = vadd.f32 %v1759_v8, %v1758_v28  ;;  %v1958_v26 = vsel %vm1717_vm0, %v1873_v59, 0.0  ;;  %v1875_v1 = vmul.f32 %v4065_v14, %v4065_v14 }
 0x24b   :  { %v1955_v44 = vadd.f32 %v1954_v10, %v1953_v11  ;;  %v1876_v11 = vmul.f32 %v4091_v45, %v4091_v45  ;;  %v1877_v28 = vmul.f32 %v4093_v55, %v4093_v55  ;;  %v1773_v6 = vsel %vm1717_vm0, %v4121_v37, 0.0 }
 0x24c   :  { %v1762_v31 = vadd.f32 %v1761_v19, %v1760_v5  ;;  %v1960_v10 = vsel %vm1717_vm0, %v1874_v38, 0.0  ;;  %v1962_v59 = vsel %vm1717_vm0, %v1875_v1, 0.0  ;;  %v1878_v5 = vmul.f32 %v4119_v24, %v4119_v24 }
 0x24d   :  { %v1957_v43 = vadd.f32 %v1956_v13, %v1955_v44  ;;  %v1767_v44 = vsel %vm1717_vm0, %v4091_v45, 0.0  ;;  %v1964_v38 = vsel %vm1717_vm0, %v1876_v11, 0.0  ;;  %v1769_v1 = vsel %vm1717_vm0, %v4093_v55, 0.0 }
 0x24e   :  { %v4505_v34 = vpop.f32.mrf.mxu2  ;;  %v4511_v12 = vpop.f32.mrf.mxu0  ;;  %v1764_v8 = vadd.f32 %v1763_v35, %v1762_v31  ;;  %v1879_v11 = vmul.f32 %v4121_v37, %v4121_v37  ;;  %v1771_v45 = vsel %vm1717_vm0, %v4119_v24, 0.0  ;;  %v1781_v24 = vsel %vm1717_vm0, %v4177_v3, 0.0 }
 0x24f   :  { %v4507_v49 = vpop.f32.mrf.mxu3  ;;  %v4513_v39 = vpop.f32.mrf.mxu1  ;;  %v1959_v41 = vadd.f32 %v1958_v26, %v1957_v43 }
 0x250   :  { %v1766_v19 = vadd.f32 %v1765_v4, %v1764_v8  ;;  %v1966_v4 = vsel %vm1717_vm0, %v1877_v28, 0.0  ;;  %v1970_v28 = vsel %vm1717_vm0, %v1879_v11, 0.0 }
 0x251   :  { %v1961_v13 = vadd.f32 %v1960_v10, %v1959_v41 }
 0x252   :  { %v1768_v10 = vadd.f32 %v1767_v44, %v1766_v19  ;;  %v1881_v19 = vmul.f32 %v4149_v16, %v4149_v16 }
 0x253   :  { %v1963_v31 = vadd.f32 %v1962_v59, %v1961_v13  ;;  %v1968_v59 = vsel %vm1717_vm0, %v1878_v5, 0.0  ;;  %v1880_v13 = vmul.f32 %v4147_v7, %v4147_v7 }
 0x254   :  { %v1770_v14 = vadd.f32 %v1769_v1, %v1768_v10  ;;  %v1882_v10 = vmul.f32 %v4175_v53, %v4175_v53 }
 0x255   :  { %v1965_v8 = vadd.f32 %v1964_v38, %v1963_v31  ;;  %v1775_v31 = vsel %vm1717_vm0, %v4147_v7, 0.0  ;;  %v1972_v5 = vsel %vm1717_vm0, %v1880_v13, 0.0  ;;  %v1883_v13 = vmul.f32 %v4177_v3, %v4177_v3 }
 0x256   :  { %v4533_v26 = vpop.f32.mrf.mxu2  ;;  %v4539_v35 = vpop.f32.mrf.mxu0  ;;  %v1772_v44 = vadd.f32 %v1771_v45, %v1770_v14  ;;  %v1777_v45 = vsel %vm1717_vm0, %v4149_v16, 0.0  ;;  %v1779_v7 = vsel %vm1717_vm0, %v4175_v53, 0.0  ;;  %v1789_v53 = vsel %vm1717_vm0, %v4233_v46, 0.0 }
 0x257   :  { %v4535_v43 = vpop.f32.mrf.mxu3  ;;  %v4541_v41 = vpop.f32.mrf.mxu1  ;;  %v1967_v55 = vadd.f32 %v1966_v4, %v1965_v8 }
 0x258   :  { %v1774_v1 = vadd.f32 %v1773_v6, %v1772_v44  ;;  %v1974_v6 = vsel %vm1717_vm0, %v1881_v19, 0.0  ;;  %v1978_v19 = vsel %vm1717_vm0, %v1883_v13, 0.0 }
 0x259   :  { %v1969_v38 = vadd.f32 %v1968_v59, %v1967_v55 }
 0x25a   :  { %v1776_v59 = vadd.f32 %v1775_v31, %v1774_v1  ;;  %v1885_v1 = vmul.f32 %v4205_v54, %v4205_v54 }
 0x25b   :  { %v1971_v14 = vadd.f32 %v1970_v28, %v1969_v38  ;;  %v1976_v28 = vsel %vm1717_vm0, %v1882_v10, 0.0  ;;  %v1884_v38 = vmul.f32 %v4203_v42, %v4203_v42 }
 0x25c   :  { %v1778_v37 = vadd.f32 %v1777_v45, %v1776_v59  ;;  %v1886_v59 = vmul.f32 %v4231_v33, %v4231_v33 }
 0x25d   :  { %v1973_v44 = vadd.f32 %v1972_v5, %v1971_v14  ;;  %v1783_v14 = vsel %vm1717_vm0, %v4203_v42, 0.0  ;;  %v1980_v10 = vsel %vm1717_vm0, %v1884_v38, 0.0  ;;  %v1887_v38 = vmul.f32 %v4233_v46, %v4233_v46 }
 0x25e   :  { %v4561_v4 = vpop.f32.mrf.mxu2  ;;  %v4567_v11 = vpop.f32.mrf.mxu0  ;;  %v1780_v31 = vadd.f32 %v1779_v7, %v1778_v37  ;;  %v1785_v7 = vsel %vm1717_vm0, %v4205_v54, 0.0  ;;  %v1787_v42 = vsel %vm1717_vm0, %v4231_v33, 0.0 }
 0x25f   :  { %v4563_v8 = vpop.f32.mrf.mxu3  ;;  %v4569_v55 = vpop.f32.mrf.mxu1  ;;  %v1975_v16 = vadd.f32 %v1974_v6, %v1973_v44 }
 0x260   :  { %v1782_v45 = vadd.f32 %v1781_v24, %v1780_v31  ;;  %v1982_v24 = vsel %vm1717_vm0, %v1885_v1, 0.0  ;;  %v1986_v1 = vsel %vm1717_vm0, %v1887_v38, 0.0 }
 0x261   :  { %v1977_v5 = vadd.f32 %v1976_v28, %v1975_v16 }
 0x262   :  { %v1784_v28 = vadd.f32 %v1783_v14, %v1782_v45  ;;  %v5875_v45 = vld [vmem:[#allocation29_spill] sm:$0xff] }
 0x263   :  { %v1979_v37 = vadd.f32 %v1978_v19, %v1977_v5  ;;  %v1984_v19 = vsel %vm1717_vm0, %v1886_v59, 0.0  ;;  %v1888_v5 = vmul.f32 %v4259_v25, %v4259_v25  ;;  %v1889_v56 = vmul.f32 %v5875_v45, %v5875_v45 }
 0x264   :  { %v1786_v3 = vadd.f32 %v1785_v7, %v1784_v28  ;;  %v5876_v28 = vld [vmem:[#allocation30_spill] sm:$0xff] }
 0x265   :  { %v1981_v31 = vadd.f32 %v1980_v10, %v1979_v37  ;;  %v1791_v37 = vsel %vm1717_vm0, %v4259_v25, 0.0  ;;  %v1988_v59 = vsel %vm1717_vm0, %v1888_v5, 0.0  ;;  %v1890_v33 = vmul.f32 %v5876_v28, %v5876_v28 }
 0x266   :  { %v4589_v6 = vpop.f32.mrf.mxu2  ;;  %v4595_v13 = vpop.f32.mrf.mxu0  ;;  %v1788_v14 = vadd.f32 %v1787_v42, %v1786_v3  ;;  %v1793_v42 = vsel %vm1717_vm0, %v5875_v45, 0.0  ;;  %v1795_v46 = vsel %vm1717_vm0, %v5876_v28, 0.0 }
 0x267   :  { %v4591_v44 = vpop.f32.mrf.mxu3  ;;  %v4597_v16 = vpop.f32.mrf.mxu1  ;;  %v1983_v54 = vadd.f32 %v1982_v24, %v1981_v31 }
 0x268   :  { %v1790_v7 = vadd.f32 %v1789_v53, %v1788_v14  ;;  %v1990_v53 = vsel %vm1717_vm0, %v1889_v56, 0.0  ;;  %v5877_v14 = vld [vmem:[#allocation31_spill] sm:$0xff] }
 0x269   :  { %v1985_v10 = vadd.f32 %v1984_v19, %v1983_v54  ;;  %v1891_v5 = vmul.f32 %v5877_v14, %v5877_v14  ;;  %v1797_v61 = vsel %vm1717_vm0, %v5877_v14, 0.0 }
 0x26a   :  { %v1792_v19 = vadd.f32 %v1791_v37, %v1790_v7  ;;  %v5879_v7 = vld [vmem:[#allocation33_spill] sm:$0xff] }
 0x26b   :  { %v1987_v3 = vadd.f32 %v1986_v1, %v1985_v10  ;;  %v1992_v1 = vsel %vm1717_vm0, %v1890_v33, 0.0  ;;  %v5878_v10 = vld [vmem:[#allocation32_spill] sm:$0xff]  ;;  %v1994_v56 = vsel %vm1717_vm0, %v1891_v5, 0.0  ;;  %v1893_v51 = vmul.f32 %v5879_v7, %v5879_v7 }
 0x26c   :  { %v1794_v32 = vadd.f32 %v1793_v42, %v1792_v19  ;;  %v1892_v45 = vmul.f32 %v5878_v10, %v5878_v10  ;;  %v5880_v19 = vld [vmem:[#allocation34_spill] sm:$0xff] }
 0x26d   :  { %v1989_v25 = vadd.f32 %v1988_v59, %v1987_v3  ;;  %v1799_v3 = vsel %vm1717_vm0, %v5878_v10, 0.0  ;;  %v1894_v28 = vmul.f32 %v5880_v19, %v5880_v19  ;;  %v1803_v14 = vsel %vm1717_vm0, %v5880_v19, 0.0 }
 0x26e   :  { %v4617_v24 = vpop.f32.mrf.mxu2  ;;  %v4623_v38 = vpop.f32.mrf.mxu0  ;;  %v1796_v37 = vadd.f32 %v1795_v46, %v1794_v32  ;;  %v1996_v33 = vsel %vm1717_vm0, %v1892_v45, 0.0  ;;  %v1801_v46 = vsel %vm1717_vm0, %v5879_v7, 0.0 }
 0x26f   :  { %v4619_v31 = vpop.f32.mrf.mxu3  ;;  %v4625_v54 = vpop.f32.mrf.mxu1  ;;  %v1991_v20 = vadd.f32 %v1990_v53, %v1989_v25 }
 0x270   :  { %v1798_v42 = vadd.f32 %v1797_v61, %v1796_v37  ;;  %v1998_v61 = vsel %vm1717_vm0, %v1893_v51, 0.0  ;;  %v5881_v37 = vld [vmem:[#allocation35_spill] sm:$0xff] }
 0x271   :  { %v1993_v59 = vadd.f32 %v1992_v1, %v1991_v20  ;;  %v1895_v45 = vmul.f32 %v5881_v37, %v5881_v37  ;;  %v1805_v60 = vsel %vm1717_vm0, %v5881_v37, 0.0 }
 0x272   :  { %v1800_v1 = vadd.f32 %v1799_v3, %v1798_v42  ;;  %v1897_v42 = vmul.f32 %v4373_v23, %v4373_v23 }
 0x273   :  { %v1995_v32 = vadd.f32 %v1994_v56, %v1993_v59  ;;  %v2000_v56 = vsel %vm1717_vm0, %v1894_v28, 0.0  ;;  %v1896_v59 = vmul.f32 %v4371_v17, %v4371_v17  ;;  %v2002_v51 = vsel %vm1717_vm0, %v1895_v45, 0.0 }
 0x274   :  { %v1802_v27 = vadd.f32 %v1801_v46, %v1800_v1  ;;  %v1898_v1 = vmul.f32 %v4375_v58, %v4375_v58 }
 0x275   :  { %v1997_v10 = vadd.f32 %v1996_v33, %v1995_v32  ;;  %v1807_v32 = vsel %vm1717_vm0, %v4371_v17, 0.0  ;;  %v2004_v28 = vsel %vm1717_vm0, %v1896_v59, 0.0 }
 0x276   :  { %v4645_v25 = vpop.f32.mrf.mxu2  ;;  %v4651_v5 = vpop.f32.mrf.mxu0  ;;  %v1804_v3 = vadd.f32 %v1803_v14, %v1802_v27  ;;  %v1809_v14 = vsel %vm1717_vm0, %v4373_v23, 0.0  ;;  %v2008_v19 = vsel %vm1717_vm0, %v1898_v1, 0.0  ;;  %v1813_v23 = vsel %vm1717_vm0, %v4398_v50, 0.0 }
 0x277   :  { %v4647_v53 = vpop.f32.mrf.mxu3  ;;  %v4653_v20 = vpop.f32.mrf.mxu1  ;;  %v1999_v7 = vadd.f32 %v1998_v61, %v1997_v10  ;;  %v1815_v1 = vsel %vm1717_vm0, %v4420_v63, 0.0 }
 0x278   :  { %v1806_v46 = vadd.f32 %v1805_v60, %v1804_v3  ;;  %v1899_v60 = vmul.f32 %v4398_v50, %v4398_v50  ;;  %v1811_v3 = vsel %vm1717_vm0, %v4375_v58, 0.0 }
 0x279   :  { %v2001_v33 = vadd.f32 %v2000_v56, %v1999_v7  ;;  %v2006_v56 = vsel %vm1717_vm0, %v1897_v42, 0.0  ;;  %v1352_v42 = vadd.f32 %v4483_v15, %v4481_v62  ;;  %v1360_v62 = vadd.f32 %v4569_v55, %v4567_v11 }
 0x27a   :  { %v1808_v7 = vadd.f32 %v1807_v32, %v1806_v46  ;;  %v1355_v32 = vadd.f32 %v4513_v39, %v4511_v12  ;;  %v1817_v39 = vsel %vm1717_vm0, %v4442_v22, 0.0 }
 0x27b   :  { %v2003_v27 = vadd.f32 %v2002_v51, %v2001_v33  ;;  %v1900_v51 = vmul.f32 %v4420_v63, %v4420_v63 }
 0x27c   :  { %v1810_v17 = vadd.f32 %v1809_v14, %v1808_v7  ;;  %v1521_v14 = vadd.f32 %v4505_v34, %v1352_v42 }
 0x27d   :  { %v2005_v59 = vadd.f32 %v2004_v28, %v2003_v27  ;;  %v2010_v28 = vsel %vm1717_vm0, %v1899_v60, 0.0 }
 0x27e   :  { %v4673_v10 = vpop.f32.mrf.mxu2  ;;  %v1200_v45 = vpop.f32.mrf.mxu0  ;;  %v1812_v46 = vadd.f32 %v1811_v3, %v1810_v17  ;;  %v4712_v11 = vadd.f32 %v4507_v49, %v1521_v14  ;;  %v1362_v49 = vadd.f32 %v4597_v16, %v4595_v13 }
 0x27f   :  { %v4675_v61 = vpop.f32.mrf.mxu3  ;;  %v1369_v37 = vpop.f32.mrf.mxu1  ;;  %v2007_v33 = vadd.f32 %v2006_v56, %v2005_v59  ;;  %v2012_v56 = vsel %vm1717_vm0, %v1900_v51, 0.0  ;;  %v1901_v59 = vmul.f32 %v4442_v22, %v4442_v22 }
 0x280   :  { %v1814_v7 = vadd.f32 %v1813_v23, %v1812_v46  ;;  %v1357_v23 = vadd.f32 %v4541_v41, %v4539_v35  ;;  %v1529_v35 = vadd.f32 %v4589_v6, %v1360_v62  ;;  %v1821_v41 = vsel %vm1717_vm0, %v4490_v48, 0.0 }
 0x281   :  { %v2009_v27 = vadd.f32 %v2008_v19, %v2007_v33  ;;  %v1524_v19 = vadd.f32 %v4533_v26, %v1355_v32  ;;  %v1819_v33 = vsel %vm1717_vm0, %v4464_v18, 0.0  ;;  %v2014_v46 = vsel %vm1717_vm0, %v1901_v59, 0.0 }
 0x282   :  { %v1816_v3 = vadd.f32 %v1815_v1, %v1814_v7  ;;  %v1526_v55 = vadd.f32 %v4561_v4, %v1357_v23  ;;  %v1902_v26 = vmul.f32 %v4464_v18, %v4464_v18  ;;  %v1365_v4 = vadd.f32 %v4625_v54, %v4623_v38 }
 0x283   :  { %v2011_v17 = vadd.f32 %v2010_v28, %v2009_v27  ;;  %v4722_v32 = vadd.f32 %v4535_v43, %v1524_v19  ;;  %v1823_v1 = vsel %vm1717_vm0, %v4712_v11, 0.0  ;;  %v1531_v6 = vadd.f32 %v4617_v24, %v1362_v49 }
 0x284   :  { %v1818_v42 = vadd.f32 %v1817_v39, %v1816_v3  ;;  %v4731_v14 = vadd.f32 %v4563_v8, %v1526_v55  ;;  %v2016_v7 = vsel %vm1717_vm0, %v1902_v26, 0.0  ;;  %v4738_v13 = vadd.f32 %v4591_v44, %v1529_v35 }
 0x285   :  { %v2013_v51 = vadd.f32 %v2012_v56, %v2011_v17  ;;  %v1903_v56 = vmul.f32 %v4490_v48, %v4490_v48  ;;  %v1825_v54 = vsel %vm1717_vm0, %v4722_v32, 0.0  ;;  %v1534_v59 = vadd.f32 %v4645_v25, %v1365_v4 }
 0x286   :  { %v1538_v15 = vpop.f32.mrf.mxu2  ;;  %v1202_v34 = vpop.f32.mrf.mxu0  ;;  %v1820_v28 = vadd.f32 %v1819_v33, %v1818_v42  ;;  %5882 = vst [vmem:[#allocation38_spill] sm:$0xff] %v4738_v13  ;;  %v1367_v8 = vadd.f32 %v4653_v20, %v4651_v5  ;;  %v1370_v24 = vadd.f32 %v1369_v37, %v1200_v45  ;;  %v1904_v17 = vmul.f32 %v4712_v11, %v4712_v11 }
 0x287   :  { %v4702_v12 = vpop.f32.mrf.mxu3  ;;  %v1371_v60 = vpop.f32.mrf.mxu1  ;;  %v2015_v27 = vadd.f32 %v2014_v46, %v2013_v51  ;;  %v1827_v44 = vsel %vm1717_vm0, %v4731_v14, 0.0  ;;  %v4750_v3 = vadd.f32 %v4619_v31, %v1531_v6  ;;  %v2018_v25 = vsel %vm1717_vm0, %v1903_v56, 0.0 }
 0x288   :  { %v1822_v43 = vadd.f32 %v1821_v41, %v1820_v28  ;;  %v1536_v51 = vadd.f32 %v4673_v10, %v1367_v8  ;;  %v1905_v5 = vmul.f32 %v4722_v32, %v4722_v32  ;;  %v1829_v20 = vsel %vm1717_vm0, %v4738_v13, 0.0 }
 0x289   :  { %v2017_v23 = vadd.f32 %v2016_v7, %v2015_v27  ;;  %5883 = vst [vmem:[#allocation39_spill] sm:$0xff] %v4750_v3  ;;  %v4759_v37 = vadd.f32 %v4647_v53, %v1534_v59  ;;  %v1539_v45 = vadd.f32 %v1538_v15, %v1370_v24  ;;  %v1372_v55 = vadd.f32 %v1371_v60, %v1202_v34 }
 0x28a   :  { %v1824_v62 = vadd.f32 %v1823_v1, %v1822_v43  ;;  %v2020_v31 = vsel %vm1717_vm0, %v1904_v17, 0.0  ;;  %v1906_v10 = vmul.f32 %v4731_v14, %v4731_v14  ;;  %v1831_v35 = vsel %vm1717_vm0, %v4750_v3, 0.0 }
 0x28b   :  { %5884 = vst [vmem:[#allocation40_spill] sm:$0xff] %v4759_v37  ;;  %v2019_v26 = vadd.f32 %v2018_v25, %v2017_v23  ;;  %v4767_v41 = vadd.f32 %v4675_v61, %v1536_v51  ;;  %v2022_v53 = vsel %vm1717_vm0, %v1905_v5, 0.0  ;;  %v1907_v15 = vmul.f32 %v4738_v13, %v4738_v13 }
 0x28c   :  { %v1826_v33 = vadd.f32 %v1825_v54, %v1824_v62  ;;  %v1833_v27 = vsel %vm1717_vm0, %v4759_v37, 0.0  ;;  %v4775_v1 = vadd.f32 %v4702_v12, %v1539_v45  ;;  %v2024_v61 = vsel %vm1717_vm0, %v1906_v10, 0.0 }
 0x28d   :  { %5885 = vst [vmem:[#allocation41_spill] sm:$0xff] %v4767_v41  ;;  %v2021_v28 = vadd.f32 %v2020_v31, %v2019_v26  ;;  %v1908_v43 = vmul.f32 %v4750_v3, %v4750_v3  ;;  %v2026_v59 = vsel %vm1717_vm0, %v1907_v15, 0.0  ;;  %v1909_v12 = vmul.f32 %v4759_v37, %v4759_v37 }
 0x28e   :  { %v1540_v16 = vpop.f32.mrf.mxu2  ;;  %v1205_v39 = vpop.f32.mrf.mxu0  ;;  %v1828_v46 = vadd.f32 %v1827_v44, %v1826_v33  ;;  %5886 = vst [vmem:[#allocation42_spill] sm:$0xff] %v4775_v1  ;;  %v1911_v45 = vmul.f32 %v4775_v1, %v4775_v1 }
 0x28f   :  { %v1709_v38 = vpop.f32.mrf.mxu3  ;;  %v1374_v19 = vpop.f32.mrf.mxu1  ;;  %v1541_v49 = vadd.f32 %v1540_v16, %v1372_v55  ;;  %v2023_v56 = vadd.f32 %v2022_v53, %v2021_v28  ;;  %v1835_v16 = vsel %vm1717_vm0, %v4767_v41, 0.0  ;;  %v2028_v23 = vsel %vm1717_vm0, %v1908_v43, 0.0 }
 0x290   :  { %v1375_v42 = vadd.f32 %v1374_v19, %v1205_v39  ;;  %v1830_v4 = vadd.f32 %v1829_v20, %v1828_v46  ;;  %v1837_v39 = vsel %vm1717_vm0, %v4775_v1, 0.0  ;;  %v2030_v5 = vsel %vm1717_vm0, %v1909_v12, 0.0 }
 0x291   :  { %v4782_v54 = vadd.f32 %v1709_v38, %v1541_v49  ;;  %v2025_v17 = vadd.f32 %v2024_v61, %v2023_v56  ;;  %v1910_v38 = vmul.f32 %v4767_v41, %v4767_v41  ;;  %v2034_v15 = vsel %vm1717_vm0, %v1911_v45, 0.0 }
 0x292   :  { %v1832_v7 = vadd.f32 %v1831_v35, %v1830_v4 }
 0x293   :  { %5887 = vst [vmem:[#allocation43_spill] sm:$0xff] %v4782_v54  ;;  %v2027_v51 = vadd.f32 %v2026_v59, %v2025_v17  ;;  %v1839_v25 = vsel %vm1717_vm0, %v4782_v54, 0.0  ;;  %v2032_v10 = vsel %vm1717_vm0, %v1910_v38, 0.0  ;;  %v1912_v35 = vmul.f32 %v4782_v54, %v4782_v54 }
 0x294   :  { %v1834_v8 = vadd.f32 %v1833_v27, %v1832_v7 }
 0x296   :  { %v1543_v34 = vpop.f32.mrf.mxu2  ;;  %v1207_v24 = vpop.f32.mrf.mxu0  ;;  %v1836_v44 = vadd.f32 %v1835_v16, %v1834_v8 }
 0x297   :  { %v1712_v60 = vpop.f32.mrf.mxu3  ;;  %v1544_v6 = vadd.f32 %v1543_v34, %v1375_v42  ;;  %v1376_v62 = vpop.f32.mrf.mxu1  ;;  %v2029_v42 = vadd.f32 %v2028_v23, %v2027_v51 }
 0x298   :  { %v1377_v33 = vadd.f32 %v1376_v62, %v1207_v24  ;;  %v1838_v20 = vadd.f32 %v1837_v39, %v1836_v44 }
 0x299   :  { %v4789_v19 = vadd.f32 %v1712_v60, %v1544_v6  ;;  %v2031_v53 = vadd.f32 %v2030_v5, %v2029_v42  ;;  %v2036_v6 = vsel %vm1717_vm0, %v1912_v35, 0.0 }
 0x29a   :  { %v1840_v26 = vadd.f32 %v1839_v25, %v1838_v20 }
 0x29b   :  { %5888 = vst [vmem:[#allocation44_spill] sm:$0xff] %v4789_v19  ;;  %v1841_v31 = vsel %vm1717_vm0, %v4789_v19, 0.0  ;;  %v1913_v60 = vmul.f32 %v4789_v19, %v4789_v19  ;;  %v2033_v28 = vadd.f32 %v2032_v10, %v2031_v53 }
 0x29c   :  { %v1842_v34 = vadd.f32 %v1841_v31, %v1840_v26 }
 0x29d   :  { %v2035_v43 = vadd.f32 %v2034_v15, %v2033_v28  ;;  %v2038_v56 = vsel %vm1717_vm0, %v1913_v60, 0.0 }
 0x29e   :  { %v1545_v55 = vpop.f32.mrf.mxu2 }
 0x29f   :  { %v1546_v46 = vadd.f32 %v1545_v55, %v1377_v33  ;;  %v1714_v49 = vpop.f32.mrf.mxu3  ;;  %v2037_v16 = vadd.f32 %v2036_v6, %v2035_v43 }
 0x2a1   :  { %v1715_v4 = vadd.f32 %v1714_v49, %v1546_v46  ;;  %v2039_v12 = vadd.f32 %v2038_v56, %v2037_v16 }
 0x2a3   :  { %v1843_v27 = vsel %vm1717_vm0, %v1715_v4, 0.0  ;;  %v1914_v7 = vmul.f32 %v1715_v4, %v1715_v4 }
 0x2a4   :  { %v1844_v61 = vadd.f32 %v1843_v27, %v1842_v34 }
 0x2a5   :  { %v2040_v8 = vsel %vm1717_vm0, %v1914_v7, 0.0  ;;  %v4830_v7 = vld [vmem:[%s5777_s2] ss:$0 sm:$0xff] }
 0x2a6   :  { %v1845_v59 = vrot.slane %v1844_v61, 4  ;;  %v2041_v62 = vadd.f32 %v2040_v8, %v2039_v12  ;;  %5891 = vst [vmem:[#allocation47_spill] sm:$0xff] %v4830_v7 }
 0x2a8   :  { %v1846_v24 = vadd.f32 %v1845_v59, %v1844_v61  ;;  %v2042_v39 = vrot.slane %v2041_v62, 4 }
 0x2aa   :  { %v1847_v17 = vrot.slane %v1846_v24, 2  ;;  %v2043_v44 = vadd.f32 %v2042_v39, %v2041_v62 }
 0x2ac   :  { %v1848_v23 = vadd.f32 %v1847_v17, %v1846_v24  ;;  %v2044_v51 = vrot.slane %v2043_v44, 2 }
 0x2ae   :  { %v1849_v38 = vrot.slane %v1848_v23, 1  ;;  %v2045_v33 = vadd.f32 %v2044_v51, %v2043_v44  ;;  %v5898_v51 = vld [vmem:[#allocation7_spill] sm:$0xff] }
 0x2b0   :  { %v1850_v25 = vadd.f32 %v1849_v38, %v1848_v23  ;;  %v2046_v5 = vrot.slane %v2045_v33, 1  ;;  %v5897_v38 = vld [vmem:[#allocation6_spill] sm:$0xff] }
 0x2b2   :  { %v4811_v20 = vmul.f32 0.001953125, %v1850_v25  ;;  %v2047_v45 = vadd.f32 %v2046_v5, %v2045_v33  ;;  %v5899_v25 = vld [vmem:[#allocation8_spill] sm:$0xff]  ;;  %v5900_v5 = vld [vmem:[#allocation9_spill] sm:$0xff] }
 0x2b4   :  { %5889 = vst [vmem:[#allocation45_spill] sm:$0xff] %v4811_v20  ;;  %v2115_v10 = vsub.f32 %v1715_v4, %v4811_v20  ;;  %v2049_v26 = vmul.f32 0.001953125, %v2047_v45  ;;  %v2050_v35 = vmul.f32 %v4811_v20, %v4811_v20  ;;  %v2052_v56 = vsub.f32 %v3729_v21, %v4811_v20 }
 0x2b5   :  { %v2053_v16 = vsub.f32 %v3755_v40, %v4811_v20  ;;  %v2054_v59 = vsub.f32 %v3757_v47, %v4811_v20  ;;  %v2055_v8 = vsub.f32 %v3783_v2, %v4811_v20  ;;  %v2056_v12 = vsub.f32 %v3785_v9, %v4811_v20  ;;  %v5892_v47 = vld [vmem:[#allocation2_spill] sm:$0xff] }
 0x2b6   :  { %v2051_v49 = vsub.f32 %v2049_v26, %v2050_v35  ;;  %v2057_v24 = vsub.f32 %v3811_v29, %v4811_v20  ;;  %v2058_v62 = vsub.f32 %v3813_v36, %v4811_v20  ;;  %v2059_v21 = vsub.f32 %v3839_v57, %v4811_v20  ;;  %v5893_v29 = vld [vmem:[#allocation3_spill] sm:$0xff]  ;;  %v5894_v36 = vld [vmem:[#allocation4_spill] sm:$0xff]  ;;  %v5895_v57 = vld [vmem:[#allocation5_spill] sm:$0xff] }
 0x2b7   :  { %v2060_v40 = vsub.f32 %v3841_v0, %v4811_v20  ;;  %v2061_v17 = vsub.f32 %v5892_v47, %v4811_v20  ;;  %v2062_v2 = vsub.f32 %v3869_v30, %v4811_v20  ;;  %v2063_v9 = vsub.f32 %v3895_v52, %v4811_v20  ;;  %v4866_v0 = vld [vmem:[%s5778_s3] ss:$0 sm:$0xff]  ;;  %v5902_v35 = vld [vmem:[#allocation11_spill] sm:$0xff]  ;;  %v5907_v47 = vld [vmem:[#allocation16_spill] sm:$0xff] }
 0x2b8   :  { %v2116_v53 = vadd.f32 1e-05, %v2051_v49  ;;  %v2064_v39 = vsub.f32 %v5893_v29, %v4811_v20  ;;  %v2065_v23 = vsub.f32 %v5894_v36, %v4811_v20  ;;  %v2066_v44 = vsub.f32 %v5895_v57, %v4811_v20  ;;  %5896 = vst [vmem:[#allocation2_spill] sm:$0xff] %v4866_v0  ;;  %v5908_v36 = vld [vmem:[#allocation17_spill] sm:$0xff] }
 0x2b9   :  { %v2067_v30 = vsub.f32 %v5897_v38, %v4811_v20  ;;  %v2068_v52 = vsub.f32 %v5898_v51, %v4811_v20  ;;  %v2069_v33 = vsub.f32 %v5899_v25, %v4811_v20  ;;  %v2070_v45 = vsub.f32 %v5900_v5, %v4811_v20  ;;  %v5909_v38 = vld [vmem:[#allocation18_spill] sm:$0xff]  ;;  %v5910_v25 = vld [vmem:[#allocation19_spill] sm:$0xff] }
 0x2ba   :  { %3390 = vrsqrt.f32 %v2116_v53  ;;  %vm2123_vm2 = vweird.f32 %v2116_v53  ;;  %v2072_v49 = vsub.f32 %v5902_v35, %v4811_v20  ;;  %v2077_v29 = vsub.f32 %v5907_v47, %v4811_v20 }
 0x2bb   :  { %v2078_v57 = vsub.f32 %v5908_v36, %v4811_v20  ;;  %v2079_v51 = vsub.f32 %v5909_v38, %v4811_v20  ;;  %v2080_v5 = vsub.f32 %v5910_v25, %v4811_v20  ;;  %v5915_v36 = vld [vmem:[#allocation23_spill] sm:$0xff]  ;;  %v5916_v38 = vld [vmem:[#allocation24_spill] sm:$0xff]  ;;  %v5917_v25 = vld [vmem:[#allocation25_spill] sm:$0xff] }
 0x2bc   :  { %v2084_v46 = vsub.f32 %v5915_v36, %v4811_v20  ;;  %v2085_v31 = vsub.f32 %v5916_v38, %v4811_v20  ;;  %v2086_v42 = vsub.f32 %v5917_v25, %v4811_v20  ;;  %v5922_v36 = vld [vmem:[#allocation30_spill] sm:$0xff]  ;;  %v5923_v38 = vld [vmem:[#allocation31_spill] sm:$0xff]  ;;  %v5924_v25 = vld [vmem:[#allocation32_spill] sm:$0xff] }
 0x2bd   :  { %v2091_v19 = vsub.f32 %v5922_v36, %v4811_v20  ;;  %v2092_v54 = vsub.f32 %v5923_v38, %v4811_v20  ;;  %v2093_v1 = vsub.f32 %v5924_v25, %v4811_v20  ;;  %v5929_v36 = vld [vmem:[#allocation37_spill] sm:$0xff]  ;;  %v2099_v38 = vsub.f32 %v4375_v58, %v4811_v20 }
 0x2be   :  { %v2098_v13 = vsub.f32 %v5929_v36, %v4811_v20  ;;  %v2100_v25 = vsub.f32 %v4398_v50, %v4811_v20  ;;  %v2105_v36 = vsub.f32 %v4712_v11, %v4811_v20  ;;  %v2106_v58 = vsub.f32 %v4722_v32, %v4811_v20  ;;  %v5932_v11 = vld [vmem:[#allocation40_spill] sm:$0xff] }
 0x2bf   :  { %v2107_v50 = vsub.f32 %v4731_v14, %v4811_v20  ;;  %v2110_v32 = vsub.f32 %v5932_v11, %v4811_v20 }
 0x2c0   :  { %v3391_v15 = vpop.eup %3390 }
 0x2c1   :  { %v2118_v34 = vmul.f32 %v3391_v15, %v2116_v53  ;;  %vm2124_vm1 = vweird.f32 %v3391_v15  ;;  %v5903_v53 = vld [vmem:[#allocation12_spill] sm:$0xff] }
 0x2c2   :  { %vm2125_vm3 = vmor %vm2123_vm2, %vm2124_vm1 }
 0x2c3   :  { %v2119_v60 = vmul.f32 %v3391_v15, %v2118_v34  ;;  %v5904_v34 = vld [vmem:[#allocation13_spill] sm:$0xff] }
 0x2c5   :  { %v2120_v28 = vmul.f32 0.5, %v2119_v60  ;;  %v2074_v60 = vsub.f32 %v5904_v34, %v4811_v20  ;;  %v5913_v34 = vld [vmem:[#allocation21_spill] sm:$0xff] }
 0x2c7   :  { %v2121_v27 = vsub.f32 1.5, %v2120_v28  ;;  %v5905_v28 = vld [vmem:[#allocation14_spill] sm:$0xff] }
 0x2c9   :  { %v2122_v6 = vmul.f32 %v3391_v15, %v2121_v27  ;;  %v2075_v27 = vsub.f32 %v5905_v28, %v4811_v20  ;;  %v2082_v28 = vsub.f32 %v5913_v34, %v4811_v20  ;;  %v5920_v34 = vld [vmem:[#allocation28_spill] sm:$0xff] }
 0x2cb   :  { %v4824_v61 = vsel %vm2125_vm3, %v3391_v15, %v2122_v6  ;;  %v2073_v15 = vsub.f32 %v5903_v53, %v4811_v20  ;;  %v5906_v6 = vld [vmem:[#allocation15_spill] sm:$0xff] }
 0x2cc   :  { %5890 = vst [vmem:[#allocation46_spill] sm:$0xff] %v4824_v61  ;;  %v2190_v4 = vmul.f32 %v4824_v61, %v2115_v10  ;;  %v5901_v10 = vld [vmem:[#allocation10_spill] sm:$0xff] }
 0x2cd   :  { %v2071_v26 = vsub.f32 %v5901_v10, %v4811_v20  ;;  %v5911_v10 = vld [vmem:[#allocation20_spill] sm:$0xff] }
 0x2ce   :  { %v2258_v43 = vmul.f32 %v4830_v7, %v2190_v4  ;;  %v2076_v4 = vsub.f32 %v5906_v6, %v4811_v20  ;;  %v2081_v35 = vsub.f32 %v5911_v10, %v4811_v20  ;;  %v5914_v6 = vld [vmem:[#allocation22_spill] sm:$0xff] }
 0x2cf   :  { %v2083_v47 = vsub.f32 %v5914_v6, %v4811_v20  ;;  %v5918_v10 = vld [vmem:[#allocation26_spill] sm:$0xff]  ;;  %v5921_v6 = vld [vmem:[#allocation29_spill] sm:$0xff] }
 0x2d0   :  { %v4899_v53 = vadd.f32 %v4866_v0, %v2258_v43  ;;  %v2087_v55 = vsub.f32 %v5918_v10, %v4811_v20  ;;  %v5919_v43 = vld [vmem:[#allocation27_spill] sm:$0xff]  ;;  %v2089_v0 = vsub.f32 %v5920_v34, %v4811_v20  ;;  %v2090_v7 = vsub.f32 %v5921_v6, %v4811_v20  ;;  %v5925_v10 = vld [vmem:[#allocation33_spill] sm:$0xff]  ;;  %v5928_v6 = vld [vmem:[#allocation36_spill] sm:$0xff] }
 0x2d1   :  { %v2094_v41 = vsub.f32 %v5925_v10, %v4811_v20  ;;  %v5927_v34 = vld [vmem:[#allocation35_spill] sm:$0xff]  ;;  %v2097_v3 = vsub.f32 %v5928_v6, %v4811_v20  ;;  %v2101_v10 = vsub.f32 %v4420_v63, %v4811_v20  ;;  %v2104_v6 = vsub.f32 %v4490_v48, %v4811_v20  ;;  %v5930_v63 = vld [vmem:[#allocation38_spill] sm:$0xff] }
 0x2d2   :  { %5912 = vst [vmem:[#allocation3_spill] sm:$0xff] %v4899_v53  ;;  %v2088_v53 = vsub.f32 %v5919_v43, %v4811_v20  ;;  %v5926_v43 = vld [vmem:[#allocation34_spill] sm:$0xff]  ;;  %v2096_v37 = vsub.f32 %v5927_v34, %v4811_v20  ;;  %v2103_v34 = vsub.f32 %v4464_v18, %v4811_v20  ;;  %v5931_v18 = vld [vmem:[#allocation39_spill] sm:$0xff] }
 0x2d3   :  { %v2095_v61 = vsub.f32 %v5926_v43, %v4811_v20  ;;  %v2102_v43 = vsub.f32 %v4442_v22, %v4811_v20  ;;  %v2108_v22 = vsub.f32 %v5930_v63, %v4811_v20  ;;  %v2109_v48 = vsub.f32 %v5931_v18, %v4811_v20  ;;  %v5933_v14 = vld [vmem:[#allocation46_spill] sm:$0xff] }
 0x2d4   :  { %v4960_v63 = vmul.f32 %v5933_v14, %v2052_v56  ;;  %v4963_v18 = vmul.f32 %v5933_v14, %v2053_v16  ;;  %v4966_v11 = vmul.f32 %v5933_v14, %v2054_v59  ;;  %v4969_v20 = vmul.f32 %v5933_v14, %v2055_v8 }
 0x2d5   :  { %v4972_v56 = vmul.f32 %v5933_v14, %v2056_v12  ;;  %v4978_v16 = vmul.f32 %v5933_v14, %v2058_v62  ;;  %v4984_v59 = vmul.f32 %v5933_v14, %v2060_v40  ;;  %v4990_v8 = vmul.f32 %v5933_v14, %v2062_v2 }
 0x2d6   :  { %5934 = vst [vmem:[#allocation4_spill] sm:$0xff] %v4960_v63  ;;  %v4975_v63 = vmul.f32 %v5933_v14, %v2057_v24  ;;  %v4993_v12 = vmul.f32 %v5933_v14, %v2063_v9  ;;  %v4996_v24 = vmul.f32 %v5933_v14, %v2064_v39  ;;  %v4999_v62 = vmul.f32 %v5933_v14, %v2065_v23 }
 0x2d7   :  { %5935 = vst [vmem:[#allocation5_spill] sm:$0xff] %v4963_v18  ;;  %v4981_v18 = vmul.f32 %v5933_v14, %v2059_v21  ;;  %v5002_v21 = vmul.f32 %v5933_v14, %v2066_v44  ;;  %v5005_v40 = vmul.f32 %v5933_v14, %v2067_v30  ;;  %v5011_v2 = vmul.f32 %v5933_v14, %v2069_v33 }
 0x2d8   :  { %5936 = vst [vmem:[#allocation6_spill] sm:$0xff] %v4966_v11  ;;  %v4987_v11 = vmul.f32 %v5933_v14, %v2061_v17  ;;  %v5008_v17 = vmul.f32 %v5933_v14, %v2068_v52  ;;  %v5014_v9 = vmul.f32 %v5933_v14, %v2070_v45  ;;  %v5017_v39 = vmul.f32 %v5933_v14, %v2071_v26 }
 0x2d9   :  { %v5020_v23 = vmul.f32 %v5933_v14, %v2072_v49  ;;  %v5023_v44 = vmul.f32 %v5933_v14, %v2073_v15  ;;  %v5026_v30 = vmul.f32 %v5933_v14, %v2074_v60  ;;  %v5029_v52 = vmul.f32 %v5933_v14, %v2075_v27 }
 0x2da   :  { %v5032_v33 = vmul.f32 %v5933_v14, %v2076_v4  ;;  %v5035_v45 = vmul.f32 %v5933_v14, %v2077_v29  ;;  %v5038_v26 = vmul.f32 %v5933_v14, %v2078_v57  ;;  %v5041_v49 = vmul.f32 %v5933_v14, %v2079_v51 }
 0x2db   :  { %v5044_v15 = vmul.f32 %v5933_v14, %v2080_v5  ;;  %v5047_v60 = vmul.f32 %v5933_v14, %v2081_v35  ;;  %v5050_v27 = vmul.f32 %v5933_v14, %v2082_v28  ;;  %v5053_v4 = vmul.f32 %v5933_v14, %v2083_v47 }
 0x2dc   :  { %v5056_v29 = vmul.f32 %v5933_v14, %v2084_v46  ;;  %v5059_v57 = vmul.f32 %v5933_v14, %v2085_v31  ;;  %v5062_v51 = vmul.f32 %v5933_v14, %v2086_v42  ;;  %v5065_v5 = vmul.f32 %v5933_v14, %v2087_v55 }
 0x2dd   :  { %v5068_v35 = vmul.f32 %v5933_v14, %v2088_v53  ;;  %v5071_v28 = vmul.f32 %v5933_v14, %v2089_v0  ;;  %v5074_v47 = vmul.f32 %v5933_v14, %v2090_v7  ;;  %v5077_v46 = vmul.f32 %v5933_v14, %v2091_v19 }
 0x2de   :  { %v5080_v31 = vmul.f32 %v5933_v14, %v2092_v54  ;;  %v5083_v42 = vmul.f32 %v5933_v14, %v2093_v1  ;;  %v5086_v55 = vmul.f32 %v5933_v14, %v2094_v41  ;;  %v5089_v53 = vmul.f32 %v5933_v14, %v2095_v61 }
 0x2df   :  { %v5092_v0 = vmul.f32 %v5933_v14, %v2096_v37  ;;  %v5095_v7 = vmul.f32 %v5933_v14, %v2097_v3  ;;  %v5098_v19 = vmul.f32 %v5933_v14, %v2098_v13  ;;  %v5101_v54 = vmul.f32 %v5933_v14, %v2099_v38 }
 0x2e0   :  { %v5104_v1 = vmul.f32 %v5933_v14, %v2100_v25  ;;  %v5107_v41 = vmul.f32 %v5933_v14, %v2101_v10  ;;  %v5110_v61 = vmul.f32 %v5933_v14, %v2102_v43  ;;  %v5113_v37 = vmul.f32 %v5933_v14, %v2103_v34 }
 0x2e1   :  { %v5116_v3 = vmul.f32 %v5933_v14, %v2104_v6  ;;  %v5119_v13 = vmul.f32 %v5933_v14, %v2105_v36  ;;  %v5122_v38 = vmul.f32 %v5933_v14, %v2106_v58  ;;  %v5125_v25 = vmul.f32 %v5933_v14, %v2107_v50  ;;  %v5944_v6 = vld [vmem:[#allocation41_spill] sm:$0xff]  ;;  %v5948_v58 = vld [vmem:[#allocation42_spill] sm:$0xff] }
 0x2e2   :  { %5937 = vst [vmem:[#allocation7_spill] sm:$0xff] %v5113_v37  ;;  %v5128_v10 = vmul.f32 %v5933_v14, %v2108_v22  ;;  %v5131_v43 = vmul.f32 %v5933_v14, %v2109_v48  ;;  %v5134_v34 = vmul.f32 %v5933_v14, %v2110_v32  ;;  %v5951_v22 = vld [vmem:[#allocation43_spill] sm:$0xff]  ;;  %v5953_v32 = vld [vmem:[#allocation44_spill] sm:$0xff] }
 0x2e3   :  { %5938 = vst [vmem:[#allocation8_spill] sm:$0xff] %v5116_v3  ;;  %v5945_v3 = vld [vmem:[#allocation45_spill] sm:$0xff] }
 0x2e4   :  { %5939 = vst [vmem:[#allocation9_spill] sm:$0xff] %v5122_v38  ;;  %v5946_v37 = vsub.f32 %v5944_v6, %v5945_v3  ;;  %v5949_v38 = vsub.f32 %v5948_v58, %v5945_v3 }
 0x2e5   :  { %5940 = vst [vmem:[#allocation10_spill] sm:$0xff] %v5125_v25  ;;  %v5957_v25 = vld [vmem:[#allocation5_spill] sm:$0xff] }
 0x2e6   :  { %5941 = vst [vmem:[#allocation11_spill] sm:$0xff] %v5128_v10  ;;  %v5140_v36 = vmul.f32 %v5933_v14, %v5946_v37  ;;  %v5146_v50 = vmul.f32 %v5933_v14, %v5949_v38  ;;  %v5952_v10 = vsub.f32 %v5951_v22, %v5945_v3  ;;  %v5955_v37 = vld [vmem:[#allocation4_spill] sm:$0xff]  ;;  %v5958_v38 = vld [vmem:[#allocation6_spill] sm:$0xff] }
 0x2e7   :  { %5942 = vst [vmem:[#allocation12_spill] sm:$0xff] %v5131_v43 }
 0x2e8   :  { %5943 = vst [vmem:[#allocation13_spill] sm:$0xff] %v5134_v34  ;;  %v5152_v48 = vmul.f32 %v5933_v14, %v5952_v10  ;;  %v5954_v34 = vsub.f32 %v5953_v32, %v5945_v3 }
 0x2e9   :  { %5947 = vst [vmem:[#allocation14_spill] sm:$0xff] %v5140_v36  ;;  %v5956_v36 = vld [vmem:[#allocation47_spill] sm:$0xff] }
 0x2ea   :  { %5950 = vst [vmem:[#allocation15_spill] sm:$0xff] %v5146_v50  ;;  %v5158_v6 = vmul.f32 %v5933_v14, %v5954_v34  ;;  %v2195_v43 = vmul.f32 %v5956_v36, %v5955_v37  ;;  %v2196_v58 = vmul.f32 %v5956_v36, %v5957_v25  ;;  %v2197_v50 = vmul.f32 %v5956_v36, %v5958_v38  ;;  %v5969_v38 = vld [vmem:[#allocation8_spill] sm:$0xff] }
 0x2eb   :  { %v2198_v22 = vmul.f32 %v5956_v36, %v4969_v20  ;;  %v2199_v10 = vmul.f32 %v5956_v36, %v4972_v56  ;;  %v2200_v3 = vmul.f32 %v5956_v36, %v4975_v63  ;;  %v2201_v14 = vmul.f32 %v5956_v36, %v4978_v16 }
 0x2ec   :  { %v5176_v34 = vmul.f32 %v5956_v36, %v4981_v18  ;;  %v5180_v25 = vmul.f32 %v5956_v36, %v4984_v59  ;;  %v5184_v20 = vmul.f32 %v5956_v36, %v4987_v11  ;;  %v5188_v56 = vmul.f32 %v5956_v36, %v4990_v8 }
 0x2ed   :  { %v5192_v63 = vmul.f32 %v5956_v36, %v4993_v12  ;;  %v5196_v18 = vmul.f32 %v5956_v36, %v4996_v24  ;;  %v5200_v16 = vmul.f32 %v5956_v36, %v4999_v62  ;;  %v5204_v11 = vmul.f32 %v5956_v36, %v5002_v21 }
 0x2ee   :  { %v5208_v59 = vmul.f32 %v5956_v36, %v5005_v40  ;;  %v5212_v8 = vmul.f32 %v5956_v36, %v5008_v17  ;;  %v5216_v12 = vmul.f32 %v5956_v36, %v5011_v2  ;;  %v5220_v24 = vmul.f32 %v5956_v36, %v5014_v9 }
 0x2ef   :  { %v5224_v62 = vmul.f32 %v5956_v36, %v5017_v39  ;;  %v5228_v21 = vmul.f32 %v5956_v36, %v5020_v23  ;;  %v5232_v40 = vmul.f32 %v5956_v36, %v5023_v44  ;;  %v5236_v17 = vmul.f32 %v5956_v36, %v5026_v30 }
 0x2f0   :  { %v5240_v2 = vmul.f32 %v5956_v36, %v5029_v52  ;;  %v5244_v9 = vmul.f32 %v5956_v36, %v5032_v33  ;;  %v5248_v39 = vmul.f32 %v5956_v36, %v5035_v45  ;;  %v5252_v23 = vmul.f32 %v5956_v36, %v5038_v26 }
 0x2f1   :  { %v5256_v44 = vmul.f32 %v5956_v36, %v5041_v49  ;;  %v5260_v30 = vmul.f32 %v5956_v36, %v5044_v15  ;;  %v5264_v52 = vmul.f32 %v5956_v36, %v5047_v60  ;;  %v5268_v33 = vmul.f32 %v5956_v36, %v5050_v27 }
 0x2f2   :  { %v5272_v45 = vmul.f32 %v5956_v36, %v5053_v4  ;;  %v5276_v26 = vmul.f32 %v5956_v36, %v5056_v29  ;;  %v5280_v49 = vmul.f32 %v5956_v36, %v5059_v57  ;;  %v5284_v15 = vmul.f32 %v5956_v36, %v5062_v51 }
 0x2f3   :  { %v5288_v60 = vmul.f32 %v5956_v36, %v5065_v5  ;;  %v5292_v27 = vmul.f32 %v5956_v36, %v5068_v35  ;;  %v5296_v4 = vmul.f32 %v5956_v36, %v5071_v28  ;;  %v5300_v29 = vmul.f32 %v5956_v36, %v5074_v47  ;;  %v5959_v28 = vld [vmem:[#allocation2_spill] sm:$0xff] }
 0x2f4   :  { %v5304_v57 = vmul.f32 %v5956_v36, %v5077_v46  ;;  %v5308_v51 = vmul.f32 %v5956_v36, %v5080_v31  ;;  %v5312_v5 = vmul.f32 %v5956_v36, %v5083_v42  ;;  %v5316_v35 = vmul.f32 %v5956_v36, %v5086_v55 }
 0x2f5   :  { %v2263_v32 = vadd.f32 %v5959_v28, %v2195_v43  ;;  %v5321_v47 = vmul.f32 %v5956_v36, %v5089_v53  ;;  %v5325_v46 = vmul.f32 %v5956_v36, %v5092_v0  ;;  %v5329_v31 = vmul.f32 %v5956_v36, %v5095_v7 }
 0x2f6   :  { %v2264_v42 = vadd.f32 %v5959_v28, %v2196_v58  ;;  %v5334_v55 = vmul.f32 %v5956_v36, %v5098_v19  ;;  %v5338_v43 = vmul.f32 %v5956_v36, %v5101_v54  ;;  %v5342_v53 = vmul.f32 %v5956_v36, %v5104_v1  ;;  %v5967_v19 = vld [vmem:[#allocation7_spill] sm:$0xff] }
 0x2f7   :  { %5960 = vst [vmem:[#allocation16_spill] sm:$0xff] %v5325_v46  ;;  %v2265_v0 = vadd.f32 %v5959_v28, %v2197_v50  ;;  %v5347_v7 = vmul.f32 %v5956_v36, %v5107_v41  ;;  %v5351_v37 = vmul.f32 %v5956_v36, %v5110_v61  ;;  %v5355_v58 = vmul.f32 %v5956_v36, %v5967_v19 }
 0x2f8   :  { %5961 = vst [vmem:[#allocation17_spill] sm:$0xff] %v5329_v31  ;;  %v2266_v54 = vadd.f32 %v5959_v28, %v2198_v22  ;;  %v5360_v1 = vmul.f32 %v5956_v36, %v5969_v38  ;;  %v5364_v50 = vmul.f32 %v5956_v36, %v5119_v13  ;;  %v2267_v41 = vadd.f32 %v5959_v28, %v2199_v10  ;;  %v5976_v38 = vld [vmem:[#allocation11_spill] sm:$0xff]  ;;  %v5978_v13 = vld [vmem:[#allocation12_spill] sm:$0xff] }
 0x2f9   :  { %5962 = vst [vmem:[#allocation18_spill] sm:$0xff] %v5334_v55  ;;  %v2268_v22 = vadd.f32 %v5959_v28, %v2200_v3  ;;  %v2269_v10 = vadd.f32 %v5959_v28, %v2201_v14  ;;  %v2270_v3 = vadd.f32 %v5959_v28, %v5176_v34  ;;  %v2271_v14 = vadd.f32 %v5959_v28, %v5180_v25 }
 0x2fa   :  { %5963 = vst [vmem:[#allocation19_spill] sm:$0xff] %v5338_v43  ;;  %v2329_v43 = vmul.f32 0.2, %v2265_v0  ;;  %v5409_v34 = vmul.f32 %v5956_v36, %v5158_v6  ;;  %v2277_v6 = vadd.f32 %v5959_v28, %v5204_v11  ;;  %v2280_v11 = vadd.f32 %v5959_v28, %v5216_v12 }
 0x2fb   :  { %5964 = vst [vmem:[#allocation20_spill] sm:$0xff] %v5342_v53  ;;  %v5972_v53 = vld [vmem:[#allocation9_spill] sm:$0xff]  ;;  %v2282_v12 = vadd.f32 %v5959_v28, %v5224_v62  ;;  %v2284_v62 = vadd.f32 %v5959_v28, %v5232_v40  ;;  %v2286_v40 = vadd.f32 %v5959_v28, %v5240_v2  ;;  %v2288_v2 = vadd.f32 %v5959_v28, %v5248_v39 }
 0x2fc   :  { %5965 = vst [vmem:[#allocation21_spill] sm:$0xff] %v5347_v7  ;;  %v2327_v7 = vmul.f32 0.2, %v2263_v32  ;;  %v5369_v61 = vmul.f32 %v5956_v36, %v5972_v53  ;;  %v5980_v53 = vld [vmem:[#allocation13_spill] sm:$0xff]  ;;  %v2393_v25 = vmax.f32 %v2265_v0, %v2329_v43  ;;  %v2290_v39 = vadd.f32 %v5959_v28, %v5256_v44 }
 0x2fd   :  { %5966 = vst [vmem:[#allocation22_spill] sm:$0xff] %v5351_v37  ;;  %v5974_v37 = vld [vmem:[#allocation10_spill] sm:$0xff]  ;;  %v2292_v44 = vadd.f32 %v5959_v28, %v5264_v52  ;;  %v2294_v52 = vadd.f32 %v5959_v28, %v5272_v45  ;;  %v2296_v45 = vadd.f32 %v5959_v28, %v5280_v49  ;;  %v2298_v49 = vadd.f32 %v5959_v28, %v5288_v60 }
 0x2fe   :  { %5968 = vst [vmem:[#allocation23_spill] sm:$0xff] %v5355_v58  ;;  %v5373_v19 = vmul.f32 %v5956_v36, %v5974_v37  ;;  %v2328_v58 = vmul.f32 0.2, %v2264_v42  ;;  %v5982_v37 = vld [vmem:[#allocation14_spill] sm:$0xff]  ;;  %v2300_v60 = vadd.f32 %v5959_v28, %v5296_v4  ;;  %v2302_v4 = vadd.f32 %v5959_v28, %v5304_v57 }
 0x2ff   :  { %5970 = vst [vmem:[#allocation24_spill] sm:$0xff] %v5360_v1  ;;  %v5378_v1 = vmul.f32 %v5956_v36, %v5976_v38  ;;  %v2330_v38 = vmul.f32 0.2, %v2266_v54  ;;  %v2304_v57 = vadd.f32 %v5959_v28, %v5312_v5  ;;  %v2306_v5 = vadd.f32 %v5959_v28, %v5321_v47  ;;  %v5989_v47 = vld [vmem:[#allocation17_spill] sm:$0xff] }
 0x300   :  { %5971 = vst [vmem:[#allocation25_spill] sm:$0xff] %v5364_v50  ;;  %v5382_v50 = vmul.f32 %v5956_v36, %v5978_v13  ;;  %v2331_v13 = vmul.f32 0.2, %v2267_v41 }
 0x301   :  { %5973 = vst [vmem:[#allocation26_spill] sm:$0xff] %v5369_v61  ;;  %v5387_v61 = vmul.f32 %v5956_v36, %v5980_v53  ;;  %v5403_v53 = vmul.f32 %v5956_v36, %v5152_v48  ;;  %v2275_v48 = vadd.f32 %v5959_v28, %v5196_v18  ;;  %v2457_v18 = vpack.c.bf16 %v2393_v25, %v2393_v25 }
 0x302   :  { %5975 = vst [vmem:[#allocation27_spill] sm:$0xff] %v5373_v19  ;;  %v5391_v19 = vmul.f32 %v5956_v36, %v5982_v37  ;;  %v2272_v37 = vadd.f32 %v5959_v28, %v5184_v20  ;;  %v2276_v20 = vadd.f32 %v5959_v28, %v5200_v16  ;;  %v2279_v16 = vadd.f32 %v5959_v28, %v5212_v8 }
 0x303   :  { %5977 = vst [vmem:[#allocation28_spill] sm:$0xff] %v5378_v1  ;;  %v5984_v1 = vld [vmem:[#allocation15_spill] sm:$0xff]  ;;  %v2281_v8 = vadd.f32 %v5959_v28, %v5220_v24  ;;  %v2283_v24 = vadd.f32 %v5959_v28, %v5228_v21  ;;  %v2285_v21 = vadd.f32 %v5959_v28, %v5236_v17  ;;  %v2287_v17 = vadd.f32 %v5959_v28, %v5244_v9 }
 0x304   :  { %5979 = vst [vmem:[#allocation29_spill] sm:$0xff] %v5382_v50  ;;  %v5397_v55 = vmul.f32 %v5956_v36, %v5984_v1  ;;  %v2391_v50 = vmax.f32 %v2263_v32, %v2327_v7  ;;  %v2273_v1 = vadd.f32 %v5959_v28, %v5188_v56  ;;  %v2274_v32 = vadd.f32 %v5959_v28, %v5192_v63 }
 0x305   :  { %5981 = vst [vmem:[#allocation30_spill] sm:$0xff] %v5387_v61  ;;  %v2392_v61 = vmax.f32 %v2264_v42, %v2328_v58  ;;  %v2334_v7 = vmul.f32 0.2, %v2270_v3  ;;  %v2335_v42 = vmul.f32 0.2, %v2271_v14  ;;  %v2395_v58 = vmax.f32 %v2267_v41, %v2331_v13 }
 0x306   :  { %5983 = vst [vmem:[#allocation31_spill] sm:$0xff] %v5391_v19  ;;  %v2332_v19 = vmul.f32 0.2, %v2268_v22  ;;  %v2455_v36 = vpack.c.bf16 %v2391_v50, %v2391_v50  ;;  %v2336_v56 = vmul.f32 0.2, %v2272_v37  ;;  %v2278_v63 = vadd.f32 %v5959_v28, %v5208_v59 }
 0x307   :  { %5985 = vst [vmem:[#allocation32_spill] sm:$0xff] %v5397_v55  ;;  %v2333_v55 = vmul.f32 0.2, %v2269_v10  ;;  %v2456_v43 = vpack.c.bf16 %v2392_v61, %v2392_v61  ;;  %v2337_v0 = vmul.f32 0.2, %v2273_v1  ;;  %v2399_v41 = vmax.f32 %v2271_v14, %v2335_v42 }
 0x308   :  { %5986 = vst [vmem:[#allocation33_spill] sm:$0xff] %v5403_v53  ;;  %v2394_v53 = vmax.f32 %v2266_v54, %v2330_v38  ;;  %v2338_v46 = vmul.f32 0.2, %v2274_v32  ;;  %v2398_v54 = vmax.f32 %v2270_v3, %v2334_v7  ;;  %v2339_v50 = vmul.f32 0.2, %v2275_v48 }
 0x309   :  { %5987 = vst [vmem:[#allocation34_spill] sm:$0xff] %v5409_v34  ;;  %v2396_v34 = vmax.f32 %v2268_v22, %v2332_v19  ;;  %v2397_v31 = vmax.f32 %v2269_v10, %v2333_v55  ;;  %v2459_v13 = vpack.c.bf16 %v2395_v58, %v2395_v58  ;;  %v2340_v59 = vmul.f32 0.2, %v2276_v20 }
 0x30a   :  { %v2458_v38 = vpack.c.bf16 %v2394_v53, %v2394_v53  ;;  %2520 = vst.msk [vmem:[%s5779_s4] sm:$0xf] %vm2519_vm4, %v2455_v36  ;;  %v2400_v55 = vmax.f32 %v2272_v37, %v2336_v56  ;;  %v2341_v19 = vmul.f32 0.2, %v2277_v6  ;;  %v2401_v22 = vmax.f32 %v2273_v1, %v2337_v0 }
 0x30b   :  { %v2460_v61 = vpack.c.bf16 %v2396_v34, %v2396_v34  ;;  %2521 = vst.msk [vmem:[%s5779_s4 + $0x4] sm:$0xf] %vm2519_vm4, %v2456_v43  ;;  %v2461_v10 = vpack.c.bf16 %v2397_v31, %v2397_v31  ;;  %v2342_v3 = vmul.f32 0.2, %v2278_v63  ;;  %v2402_v14 = vmax.f32 %v2274_v32, %v2338_v46 }
 0x30c   :  { %2522 = vst.msk [vmem:[%s5779_s4 + $0x8] sm:$0xf] %vm2519_vm4, %v2457_v18  ;;  %v2462_v53 = vpack.c.bf16 %v2398_v54, %v2398_v54  ;;  %v2343_v31 = vmul.f32 0.2, %v2279_v16  ;;  %v2403_v37 = vmax.f32 %v2275_v48, %v2339_v50  ;;  %v2463_v34 = vpack.c.bf16 %v2399_v41, %v2399_v41 }
 0x30d   :  { %2523 = vst.msk [vmem:[%s5779_s4 + $0xc] sm:$0xf] %vm2519_vm4, %v2458_v38  ;;  %v2344_v46 = vmul.f32 0.2, %v2280_v11  ;;  %v2404_v1 = vmax.f32 %v2276_v20, %v2340_v59  ;;  %v2464_v25 = vpack.c.bf16 %v2400_v55, %v2400_v55  ;;  %v2345_v32 = vmul.f32 0.2, %v2281_v8 }
 0x30e   :  { %2524 = vst.msk [vmem:[%s5779_s4 + $0x10] sm:$0xf] %vm2519_vm4, %v2459_v13  ;;  %v2405_v48 = vmax.f32 %v2277_v6, %v2341_v19  ;;  %v2465_v7 = vpack.c.bf16 %v2401_v22, %v2401_v22  ;;  %v2346_v20 = vmul.f32 0.2, %v2282_v12  ;;  %v2406_v42 = vmax.f32 %v2278_v63, %v2342_v3 }
 0x30f   :  { %2525 = vst.msk [vmem:[%s5779_s4 + $0x14] sm:$0xf] %vm2519_vm4, %v2460_v61  ;;  %v2466_v58 = vpack.c.bf16 %v2402_v14, %v2402_v14  ;;  %v2347_v36 = vmul.f32 0.2, %v2283_v24  ;;  %v2407_v6 = vmax.f32 %v2279_v16, %v2343_v31  ;;  %v2467_v56 = vpack.c.bf16 %v2403_v37, %v2403_v37 }
 0x310   :  { %2526 = vst.msk [vmem:[%s5779_s4 + $0x18] sm:$0xf] %vm2519_vm4, %v2461_v10  ;;  %v2348_v43 = vmul.f32 0.2, %v2284_v62  ;;  %v2408_v63 = vmax.f32 %v2280_v11, %v2344_v46  ;;  %v2468_v0 = vpack.c.bf16 %v2404_v1, %v2404_v1  ;;  %v2289_v9 = vadd.f32 %v5959_v28, %v5252_v23 }
 0x311   :  { %2527 = vst.msk [vmem:[%s5779_s4 + $0x1c] sm:$0xf] %vm2519_vm4, %v2462_v53  ;;  %v2349_v18 = vmul.f32 0.2, %v2285_v21  ;;  %v2409_v54 = vmax.f32 %v2281_v8, %v2345_v32  ;;  %v2469_v38 = vpack.c.bf16 %v2405_v48, %v2405_v48  ;;  %v2350_v16 = vmul.f32 0.2, %v2286_v40 }
 0x312   :  { %2528 = vst.msk [vmem:[%s5779_s4 + $0x20] sm:$0xf] %vm2519_vm4, %v2463_v34  ;;  %v2410_v50 = vmax.f32 %v2282_v12, %v2346_v20  ;;  %v2470_v41 = vpack.c.bf16 %v2406_v42, %v2406_v42  ;;  %v2291_v23 = vadd.f32 %v5959_v28, %v5260_v30  ;;  %v2351_v13 = vmul.f32 0.2, %v2287_v17 }
 0x313   :  { %2529 = vst.msk [vmem:[%s5779_s4 + $0x24] sm:$0xf] %vm2519_vm4, %v2464_v25  ;;  %v2411_v11 = vmax.f32 %v2283_v24, %v2347_v36  ;;  %v2471_v59 = vpack.c.bf16 %v2407_v6, %v2407_v6  ;;  %v2352_v55 = vmul.f32 0.2, %v2288_v2  ;;  %v2412_v61 = vmax.f32 %v2284_v62, %v2348_v43 }
 0x314   :  { %2530 = vst.msk [vmem:[%s5779_s4 + $0x28] sm:$0xf] %vm2519_vm4, %v2465_v7  ;;  %v2472_v8 = vpack.c.bf16 %v2408_v63, %v2408_v63  ;;  %v2293_v30 = vadd.f32 %v5959_v28, %v5268_v33  ;;  %v2353_v19 = vmul.f32 0.2, %v2289_v9  ;;  %v2413_v22 = vmax.f32 %v2285_v21, %v2349_v18 }
 0x315   :  { %2531 = vst.msk [vmem:[%s5779_s4 + $0x2c] sm:$0xf] %vm2519_vm4, %v2466_v58  ;;  %v2473_v10 = vpack.c.bf16 %v2409_v54, %v2409_v54  ;;  %v2354_v12 = vmul.f32 0.2, %v2290_v39  ;;  %v2414_v3 = vmax.f32 %v2286_v40, %v2350_v16  ;;  %v2474_v14 = vpack.c.bf16 %v2410_v50, %v2410_v50 }
 0x316   :  { %2532 = vst.msk [vmem:[%s5779_s4 + $0x30] sm:$0xf] %vm2519_vm4, %v2467_v56  ;;  %v2295_v33 = vadd.f32 %v5959_v28, %v5276_v26  ;;  %v2355_v53 = vmul.f32 0.2, %v2291_v23  ;;  %v2415_v24 = vmax.f32 %v2287_v17, %v2351_v13  ;;  %v2475_v31 = vpack.c.bf16 %v2411_v11, %v2411_v11 }
 0x317   :  { %2533 = vst.msk [vmem:[%s5779_s4 + $0x34] sm:$0xf] %vm2519_vm4, %v2468_v0  ;;  %v2356_v37 = vmul.f32 0.2, %v2292_v44  ;;  %v2416_v34 = vmax.f32 %v2288_v2, %v2352_v55  ;;  %v2476_v62 = vpack.c.bf16 %v2412_v61, %v2412_v61  ;;  %v2297_v26 = vadd.f32 %v5959_v28, %v5284_v15 }
 0x318   :  { %2534 = vst.msk [vmem:[%s5779_s4 + $0x38] sm:$0xf] %vm2519_vm4, %v2469_v38  ;;  %v2357_v46 = vmul.f32 0.2, %v2293_v30  ;;  %v2417_v1 = vmax.f32 %v2289_v9, %v2353_v19  ;;  %v2477_v25 = vpack.c.bf16 %v2413_v22, %v2413_v22  ;;  %v2358_v21 = vmul.f32 0.2, %v2294_v52 }
 0x319   :  { %2535 = vst.msk [vmem:[%s5779_s4 + $0x3c] sm:$0xf] %vm2519_vm4, %v2470_v41  ;;  %v2418_v32 = vmax.f32 %v2290_v39, %v2354_v12  ;;  %v2478_v48 = vpack.c.bf16 %v2414_v3, %v2414_v3  ;;  %v2299_v15 = vadd.f32 %v5959_v28, %v5292_v27  ;;  %v2359_v7 = vmul.f32 0.2, %v2295_v33 }
 0x31a   :  { %2536 = vst.msk [vmem:[%s5779_s4 + $0x40] sm:$0xf] %vm2519_vm4, %v2471_v59  ;;  %v2419_v40 = vmax.f32 %v2291_v23, %v2355_v53  ;;  %v2479_v20 = vpack.c.bf16 %v2415_v24, %v2415_v24  ;;  %v2360_v42 = vmul.f32 0.2, %v2296_v45  ;;  %v2420_v58 = vmax.f32 %v2292_v44, %v2356_v37  ;;  %v5992_v37 = vld [vmem:[#allocation20_spill] sm:$0xff] }
 0x31b   :  { %2537 = vst.msk [vmem:[%s5779_s4 + $0x44] sm:$0xf] %vm2519_vm4, %v2472_v8  ;;  %v2480_v17 = vpack.c.bf16 %v2416_v34, %v2416_v34  ;;  %v2301_v27 = vadd.f32 %v5959_v28, %v5300_v29  ;;  %v2361_v36 = vmul.f32 0.2, %v2297_v26  ;;  %v2421_v6 = vmax.f32 %v2293_v30, %v2357_v46 }
 0x31c   :  { %2538 = vst.msk [vmem:[%s5779_s4 + $0x48] sm:$0xf] %vm2519_vm4, %v2473_v10  ;;  %v2481_v56 = vpack.c.bf16 %v2417_v1, %v2417_v1  ;;  %v2362_v2 = vmul.f32 0.2, %v2298_v49  ;;  %v2422_v43 = vmax.f32 %v2294_v52, %v2358_v21  ;;  %v2482_v63 = vpack.c.bf16 %v2418_v32, %v2418_v32  ;;  %v5990_v10 = vld [vmem:[#allocation18_spill] sm:$0xff]  ;;  %v5993_v1 = vld [vmem:[#allocation21_spill] sm:$0xff] }
 0x31d   :  { %2539 = vst.msk [vmem:[%s5779_s4 + $0x4c] sm:$0xf] %vm2519_vm4, %v2474_v14  ;;  %v2303_v29 = vadd.f32 %v5959_v28, %v5308_v51  ;;  %v2363_v0 = vmul.f32 0.2, %v2299_v15  ;;  %v2423_v9 = vmax.f32 %v2295_v33, %v2359_v7  ;;  %v2483_v18 = vpack.c.bf16 %v2419_v40, %v2419_v40  ;;  %v5991_v33 = vld [vmem:[#allocation19_spill] sm:$0xff] }
 0x31e   :  { %2540 = vst.msk [vmem:[%s5779_s4 + $0x50] sm:$0xf] %vm2519_vm4, %v2475_v31  ;;  %v2364_v54 = vmul.f32 0.2, %v2300_v60  ;;  %v2424_v38 = vmax.f32 %v2296_v45, %v2360_v42  ;;  %v2484_v39 = vpack.c.bf16 %v2420_v58, %v2420_v58  ;;  %v2305_v51 = vadd.f32 %v5959_v28, %v5316_v35  ;;  %v5988_v35 = vld [vmem:[#allocation16_spill] sm:$0xff] }
 0x31f   :  { %2541 = vst.msk [vmem:[%s5779_s4 + $0x54] sm:$0xf] %vm2519_vm4, %v2476_v62  ;;  %v2365_v16 = vmul.f32 0.2, %v2301_v27  ;;  %v2425_v50 = vmax.f32 %v2297_v26, %v2361_v36  ;;  %v2485_v41 = vpack.c.bf16 %v2421_v6, %v2421_v6  ;;  %v2366_v23 = vmul.f32 0.2, %v2302_v4 }
 0x320   :  { %2542 = vst.msk [vmem:[%s5779_s4 + $0x58] sm:$0xf] %vm2519_vm4, %v2477_v25  ;;  %v2426_v13 = vmax.f32 %v2298_v49, %v2362_v2  ;;  %v2486_v11 = vpack.c.bf16 %v2422_v43, %v2422_v43  ;;  %v2307_v59 = vadd.f32 %v5959_v28, %v5988_v35  ;;  %v2367_v44 = vmul.f32 0.2, %v2303_v29  ;;  %v5996_v36 = vld [vmem:[#allocation24_spill] sm:$0xff]  ;;  %v5997_v43 = vld [vmem:[#allocation25_spill] sm:$0xff] }
 0x321   :  { %2543 = vst.msk [vmem:[%s5779_s4 + $0x5c] sm:$0xf] %vm2519_vm4, %v2478_v48  ;;  %v2427_v55 = vmax.f32 %v2299_v15, %v2363_v0  ;;  %v2487_v61 = vpack.c.bf16 %v2423_v9, %v2423_v9  ;;  %v2308_v8 = vadd.f32 %v5959_v28, %v5989_v47  ;;  %v2368_v30 = vmul.f32 0.2, %v2304_v57  ;;  %v5994_v48 = vld [vmem:[#allocation22_spill] sm:$0xff] }
 0x322   :  { %2544 = vst.msk [vmem:[%s5779_s4 + $0x60] sm:$0xf] %vm2519_vm4, %v2479_v20  ;;  %v2428_v19 = vmax.f32 %v2300_v60, %v2364_v54  ;;  %v2488_v22 = vpack.c.bf16 %v2424_v38, %v2424_v38  ;;  %v2309_v52 = vadd.f32 %v5959_v28, %v5990_v10  ;;  %v2369_v12 = vmul.f32 0.2, %v2305_v51  ;;  %v5995_v60 = vld [vmem:[#allocation23_spill] sm:$0xff] }
 0x323   :  { %2545 = vst.msk [vmem:[%s5779_s4 + $0x64] sm:$0xf] %vm2519_vm4, %v2480_v17  ;;  %v2429_v3 = vmax.f32 %v2301_v27, %v2365_v16  ;;  %v2489_v14 = vpack.c.bf16 %v2425_v50, %v2425_v50  ;;  %v2310_v53 = vadd.f32 %v5959_v28, %v5991_v33  ;;  %v2370_v24 = vmul.f32 0.2, %v2306_v5 }
 0x324   :  { %2546 = vst.msk [vmem:[%s5779_s4 + $0x68] sm:$0xf] %vm2519_vm4, %v2481_v56  ;;  %v2430_v31 = vmax.f32 %v2302_v4, %v2366_v23  ;;  %v2490_v45 = vpack.c.bf16 %v2426_v13, %v2426_v13  ;;  %v2311_v34 = vadd.f32 %v5959_v28, %v5992_v37  ;;  %v2371_v62 = vmul.f32 0.2, %v2307_v59  ;;  %v6000_v23 = vld [vmem:[#allocation28_spill] sm:$0xff] }
 0x325   :  { %2547 = vst.msk [vmem:[%s5779_s4 + $0x6c] sm:$0xf] %vm2519_vm4, %v2482_v63  ;;  %v2431_v26 = vmax.f32 %v2303_v29, %v2367_v44  ;;  %v2491_v46 = vpack.c.bf16 %v2427_v55, %v2427_v55  ;;  %v2312_v25 = vadd.f32 %v5959_v28, %v5993_v1  ;;  %v2372_v49 = vmul.f32 0.2, %v2308_v8  ;;  %v6001_v44 = vld [vmem:[#allocation29_spill] sm:$0xff] }
 0x326   :  { %2548 = vst.msk [vmem:[%s5779_s4 + $0x70] sm:$0xf] %vm2519_vm4, %v2483_v18  ;;  %v2432_v21 = vmax.f32 %v2304_v57, %v2368_v30  ;;  %v2492_v32 = vpack.c.bf16 %v2428_v19, %v2428_v19  ;;  %v2313_v15 = vadd.f32 %v5959_v28, %v5994_v48  ;;  %v2373_v7 = vmul.f32 0.2, %v2309_v52  ;;  %v5998_v18 = vld [vmem:[#allocation26_spill] sm:$0xff] }
 0x327   :  { %2549 = vst.msk [vmem:[%s5779_s4 + $0x74] sm:$0xf] %vm2519_vm4, %v2484_v39  ;;  %v2433_v40 = vmax.f32 %v2305_v51, %v2369_v12  ;;  %v2493_v20 = vpack.c.bf16 %v2429_v3, %v2429_v3  ;;  %v2314_v42 = vadd.f32 %v5959_v28, %v5995_v60  ;;  %v2374_v58 = vmul.f32 0.2, %v2310_v53  ;;  %v5999_v51 = vld [vmem:[#allocation27_spill] sm:$0xff]  ;;  %v6002_v30 = vld [vmem:[#allocation30_spill] sm:$0xff] }
 0x328   :  { %2550 = vst.msk [vmem:[%s5779_s4 + $0x78] sm:$0xf] %vm2519_vm4, %v2485_v41  ;;  %v2434_v17 = vmax.f32 %v2306_v5, %v2370_v24  ;;  %v2494_v27 = vpack.c.bf16 %v2430_v31, %v2430_v31  ;;  %v2315_v6 = vadd.f32 %v5959_v28, %v5996_v36  ;;  %v2375_v56 = vmul.f32 0.2, %v2311_v34  ;;  %v6003_v12 = vld [vmem:[#allocation31_spill] sm:$0xff]  ;;  %v6004_v24 = vld [vmem:[#allocation32_spill] sm:$0xff] }
 0x329   :  { %2551 = vst.msk [vmem:[%s5779_s4 + $0x7c] sm:$0xf] %vm2519_vm4, %v2486_v11  ;;  %v2435_v4 = vmax.f32 %v2307_v59, %v2371_v62  ;;  %v2495_v2 = vpack.c.bf16 %v2431_v26, %v2431_v26  ;;  %v2316_v63 = vadd.f32 %v5959_v28, %v5997_v43  ;;  %v2376_v29 = vmul.f32 0.2, %v2312_v25  ;;  %v6005_v62 = vld [vmem:[#allocation33_spill] sm:$0xff] }
 0x32a   :  { %2552 = vst.msk [vmem:[%s5779_s4 + $0x80] sm:$0xf] %vm2519_vm4, %v2487_v61  ;;  %v2436_v0 = vmax.f32 %v2308_v8, %v2372_v49  ;;  %v2496_v9 = vpack.c.bf16 %v2432_v21, %v2432_v21  ;;  %v2317_v57 = vadd.f32 %v5959_v28, %v5998_v18  ;;  %v2377_v54 = vmul.f32 0.2, %v2313_v15  ;;  %v6006_v49 = vld [vmem:[#allocation34_spill] sm:$0xff] }
 0x32b   :  { %2553 = vst.msk [vmem:[%s5779_s4 + $0x84] sm:$0xf] %vm2519_vm4, %v2488_v22  ;;  %v2437_v38 = vmax.f32 %v2309_v52, %v2373_v7  ;;  %v2497_v39 = vpack.c.bf16 %v2433_v40, %v2433_v40  ;;  %v2318_v16 = vadd.f32 %v5959_v28, %v5999_v51  ;;  %v2378_v50 = vmul.f32 0.2, %v2314_v42 }
 0x32c   :  { %2554 = vst.msk [vmem:[%s5779_s4 + $0x88] sm:$0xf] %vm2519_vm4, %v2489_v14  ;;  %v2438_v41 = vmax.f32 %v2310_v53, %v2374_v58  ;;  %v2498_v5 = vpack.c.bf16 %v2434_v17, %v2434_v17  ;;  %v2319_v13 = vadd.f32 %v5959_v28, %v6000_v23  ;;  %v2379_v11 = vmul.f32 0.2, %v2315_v6 }
 0x32d   :  { %2555 = vst.msk [vmem:[%s5779_s4 + $0x8c] sm:$0xf] %vm2519_vm4, %v2490_v45  ;;  %v2439_v35 = vmax.f32 %v2311_v34, %v2375_v56  ;;  %v2499_v59 = vpack.c.bf16 %v2435_v4, %v2435_v4  ;;  %v2320_v55 = vadd.f32 %v5959_v28, %v6001_v44  ;;  %v2380_v61 = vmul.f32 0.2, %v2316_v63  ;;  %v6007_v4 = vld [vmem:[#allocation3_spill] sm:$0xff] }
 0x32e   :  { %2556 = vst.msk [vmem:[%s5779_s4 + $0x90] sm:$0xf] %vm2519_vm4, %v2491_v46  ;;  %v2440_v47 = vmax.f32 %v2312_v25, %v2376_v29  ;;  %v2500_v8 = vpack.c.bf16 %v2436_v0, %v2436_v0  ;;  %v2321_v19 = vadd.f32 %v5959_v28, %v6002_v30  ;;  %v2381_v22 = vmul.f32 0.2, %v2317_v57 }
 0x32f   :  { %2557 = vst.msk [vmem:[%s5779_s4 + $0x94] sm:$0xf] %vm2519_vm4, %v2492_v32  ;;  %v2441_v10 = vmax.f32 %v2313_v15, %v2377_v54  ;;  %v2501_v52 = vpack.c.bf16 %v2437_v38, %v2437_v38  ;;  %v2322_v3 = vadd.f32 %v5959_v28, %v6003_v12  ;;  %v2382_v14 = vmul.f32 0.2, %v2318_v16 }
 0x330   :  { %2558 = vst.msk [vmem:[%s5779_s4 + $0x98] sm:$0xf] %vm2519_vm4, %v2493_v20  ;;  %v2442_v33 = vmax.f32 %v2314_v42, %v2378_v50  ;;  %v2502_v53 = vpack.c.bf16 %v2438_v41, %v2438_v41  ;;  %v2323_v31 = vadd.f32 %v5959_v28, %v6004_v24  ;;  %v2383_v45 = vmul.f32 0.2, %v2319_v13 }
 0x331   :  { %2559 = vst.msk [vmem:[%s5779_s4 + $0x9c] sm:$0xf] %vm2519_vm4, %v2494_v27  ;;  %v2443_v37 = vmax.f32 %v2315_v6, %v2379_v11  ;;  %v2503_v34 = vpack.c.bf16 %v2439_v35, %v2439_v35  ;;  %v2324_v26 = vadd.f32 %v5959_v28, %v6005_v62  ;;  %v2384_v46 = vmul.f32 0.2, %v2320_v55 }
 0x332   :  { %2560 = vst.msk [vmem:[%s5779_s4 + $0xa0] sm:$0xf] %vm2519_vm4, %v2495_v2  ;;  %v2444_v1 = vmax.f32 %v2316_v63, %v2380_v61  ;;  %v2504_v25 = vpack.c.bf16 %v2440_v47, %v2440_v47  ;;  %v2325_v21 = vadd.f32 %v5959_v28, %v6006_v49  ;;  %v2385_v32 = vmul.f32 0.2, %v2321_v19 }
 0x333   :  { %2561 = vst.msk [vmem:[%s5779_s4 + $0xa4] sm:$0xf] %vm2519_vm4, %v2496_v9  ;;  %v2445_v48 = vmax.f32 %v2317_v57, %v2381_v22  ;;  %v2505_v15 = vpack.c.bf16 %v2441_v10, %v2441_v10  ;;  %v2386_v7 = vmul.f32 0.2, %v2322_v3  ;;  %v2446_v40 = vmax.f32 %v2318_v16, %v2382_v14 }
 0x334   :  { %2562 = vst.msk [vmem:[%s5779_s4 + $0xa8] sm:$0xf] %vm2519_vm4, %v2497_v39  ;;  %v2506_v20 = vpack.c.bf16 %v2442_v33, %v2442_v33  ;;  %v2387_v60 = vmul.f32 0.2, %v2323_v31  ;;  %v2447_v42 = vmax.f32 %v2319_v13, %v2383_v45  ;;  %v2507_v58 = vpack.c.bf16 %v2443_v37, %v2443_v37 }
 0x335   :  { %2563 = vst.msk [vmem:[%s5779_s4 + $0xac] sm:$0xf] %vm2519_vm4, %v2498_v5  ;;  %v2388_v28 = vmul.f32 0.2, %v2324_v26  ;;  %v2448_v17 = vmax.f32 %v2320_v55, %v2384_v46  ;;  %v2508_v27 = vpack.c.bf16 %v2444_v1, %v2444_v1  ;;  %v2389_v36 = vmul.f32 0.2, %v2325_v21 }
 0x336   :  { %2564 = vst.msk [vmem:[%s5779_s4 + $0xb0] sm:$0xf] %vm2519_vm4, %v2499_v59  ;;  %v2449_v6 = vmax.f32 %v2321_v19, %v2385_v32  ;;  %v2509_v56 = vpack.c.bf16 %v2445_v48, %v2445_v48  ;;  %v2390_v2 = vmul.f32 0.2, %v6007_v4  ;;  %v2450_v43 = vmax.f32 %v2322_v3, %v2386_v7 }
 0x337   :  { %2565 = vst.msk [vmem:[%s5779_s4 + $0xb4] sm:$0xf] %vm2519_vm4, %v2500_v8  ;;  %v2510_v63 = vpack.c.bf16 %v2446_v40, %v2446_v40  ;;  %v2451_v29 = vmax.f32 %v2323_v31, %v2387_v60  ;;  %v2511_v0 = vpack.c.bf16 %v2447_v42, %v2447_v42  ;;  %v2452_v9 = vmax.f32 %v2324_v26, %v2388_v28 }
 0x338   :  { %2566 = vst.msk [vmem:[%s5779_s4 + $0xb8] sm:$0xf] %vm2519_vm4, %v2501_v52  ;;  %v2512_v18 = vpack.c.bf16 %v2448_v17, %v2448_v17  ;;  %v2453_v57 = vmax.f32 %v2325_v21, %v2389_v36  ;;  %v2513_v54 = vpack.c.bf16 %v2449_v6, %v2449_v6  ;;  %v2454_v38 = vmax.f32 %v6007_v4, %v2390_v2 }
 0x339   :  { %2567 = vst.msk [vmem:[%s5779_s4 + $0xbc] sm:$0xf] %vm2519_vm4, %v2502_v53  ;;  %v2514_v39 = vpack.c.bf16 %v2450_v43, %v2450_v43  ;;  %v2515_v51 = vpack.c.bf16 %v2451_v29, %v2451_v29  ;;  %v2516_v16 = vpack.c.bf16 %v2452_v9, %v2452_v9 }
 0x33a   :  { %2568 = vst.msk [vmem:[%s5779_s4 + $0xc0] sm:$0xf] %vm2519_vm4, %v2503_v34  ;;  %v2517_v50 = vpack.c.bf16 %v2453_v57, %v2453_v57  ;;  %v2518_v41 = vpack.c.bf16 %v2454_v38, %v2454_v38 }
 0x33b   :  { %2569 = vst.msk [vmem:[%s5779_s4 + $0xc4] sm:$0xf] %vm2519_vm4, %v2504_v25 }
 0x33c   :  { %2570 = vst.msk [vmem:[%s5779_s4 + $0xc8] sm:$0xf] %vm2519_vm4, %v2505_v15 }
 0x33d   :  { %2571 = vst.msk [vmem:[%s5779_s4 + $0xcc] sm:$0xf] %vm2519_vm4, %v2506_v20 }
 0x33e   :  { %2572 = vst.msk [vmem:[%s5779_s4 + $0xd0] sm:$0xf] %vm2519_vm4, %v2507_v58 }
 0x33f   :  { %2573 = vst.msk [vmem:[%s5779_s4 + $0xd4] sm:$0xf] %vm2519_vm4, %v2508_v27 }
 0x340   :  { %2574 = vst.msk [vmem:[%s5779_s4 + $0xd8] sm:$0xf] %vm2519_vm4, %v2509_v56 }
 0x341   :  { %2575 = vst.msk [vmem:[%s5779_s4 + $0xdc] sm:$0xf] %vm2519_vm4, %v2510_v63 }
 0x342   :  { %2576 = vst.msk [vmem:[%s5779_s4 + $0xe0] sm:$0xf] %vm2519_vm4, %v2511_v0 }
 0x343   :  { %2577 = vst.msk [vmem:[%s5779_s4 + $0xe4] sm:$0xf] %vm2519_vm4, %v2512_v18 }
 0x344   :  { %2578 = vst.msk [vmem:[%s5779_s4 + $0xe8] sm:$0xf] %vm2519_vm4, %v2513_v54 }
 0x345   :  { %2579 = vst.msk [vmem:[%s5779_s4 + $0xec] sm:$0xf] %vm2519_vm4, %v2514_v39 }
 0x346   :  { %2580 = vst.msk [vmem:[%s5779_s4 + $0xf0] sm:$0xf] %vm2519_vm4, %v2515_v51 }
 0x347   :  { %2581 = vst.msk [vmem:[%s5779_s4 + $0xf4] sm:$0xf] %vm2519_vm4, %v2516_v16 }
 0x348   :  { %2582 = vst.msk [vmem:[%s5779_s4 + $0xf8] sm:$0xf] %vm2519_vm4, %v2517_v50 }
 0x349   :  { %2583 = vst.msk [vmem:[%s5779_s4 + $0xfc] sm:$0xf] %vm2519_vm4, %v2518_v41 }

// kernel: discriminator_forward.6
= control target key start
LH: loop header
LB: loop body
LE: loop exit
PB: predicated region body
PF: predicated region fallthrough
CT: control target
= control target key end

     0   :  { %s2984_s1 = inlined_call_operand.vmem [shape: bf16[1024,128], index: 1, kind: input, shape index: {}]   ;;  %s2985_s0 = inlined_call_operand.vmem [shape: bf16[128,1024], index: 0, kind: input, shape index: {}]   ;;  %s2986_s2 = inlined_call_operand.vmem [shape: f32[1,128], index: 2, kind: input, shape index: {}]   ;;  %s2987_s3 = inlined_call_operand.vmem [shape: f32[1,128], index: 3, kind: input, shape index: {}]   ;;  %s2988_s4 = inlined_call_operand.vmem [shape: bf16[128,128], index: 4, kind: output, shape index: {}]  }
   0x1   :  { %v2101_v0 = vld [vmem:[%s2984_s1 + $0x38] sm:$0xff]  ;;  %v2100_v4 = vld [vmem:[%s2984_s1 + $0x30] sm:$0xff]  ;;  %v2099_v8 = vld [vmem:[%s2984_s1 + $0x28] sm:$0xff] }
   0x2   :  { %v2109_v1 = vld [vmem:[%s2984_s1 + $0x78] sm:$0xff]  ;;  %913 = vmatpush.bf16.msra.mxu0 %v2101_v0  ;;  %v2108_v5 = vld [vmem:[%s2984_s1 + $0x70] sm:$0xff]  ;;  %v2107_v9 = vld [vmem:[%s2984_s1 + $0x68] sm:$0xff] }
   0x3   :  { %v2117_v2 = vld [vmem:[%s2984_s1 + $0xb8] sm:$0xff]  ;;  %962 = vmatpush.bf16.msra.mxu1 %v2109_v1  ;;  %v2116_v6 = vld [vmem:[%s2984_s1 + $0xb0] sm:$0xff]  ;;  %v2115_v10 = vld [vmem:[%s2984_s1 + $0xa8] sm:$0xff] }
   0x4   :  { %v2125_v3 = vld [vmem:[%s2984_s1 + $0xf8] sm:$0xff]  ;;  %1011 = vmatpush.bf16.msra.mxu2 %v2117_v2  ;;  %v2124_v7 = vld [vmem:[%s2984_s1 + $0xf0] sm:$0xff]  ;;  %v2123_v11 = vld [vmem:[%s2984_s1 + $0xe8] sm:$0xff] }
   0x5   :  { %1060 = vmatpush.bf16.msra.mxu3 %v2125_v3  ;;  %v2098_v12 = vld [vmem:[%s2984_s1 + $0x20] sm:$0xff]  ;;  %v2097_v16 = vld [vmem:[%s2984_s1 + $0x18] sm:$0xff]  ;;  %v2096_v20 = vld [vmem:[%s2984_s1 + $0x10] sm:$0xff] }
   0x6   :  { %914 = vmatpush.bf16.msra.mxu0 %v2100_v4  ;;  %v2106_v13 = vld [vmem:[%s2984_s1 + $0x60] sm:$0xff]  ;;  %v2105_v17 = vld [vmem:[%s2984_s1 + $0x58] sm:$0xff]  ;;  %v2104_v21 = vld [vmem:[%s2984_s1 + $0x50] sm:$0xff] }
   0x7   :  { %963 = vmatpush.bf16.msra.mxu1 %v2108_v5  ;;  %v2114_v14 = vld [vmem:[%s2984_s1 + $0xa0] sm:$0xff]  ;;  %v2113_v18 = vld [vmem:[%s2984_s1 + $0x98] sm:$0xff]  ;;  %v2112_v22 = vld [vmem:[%s2984_s1 + $0x90] sm:$0xff] }
   0x8   :  { %1012 = vmatpush.bf16.msra.mxu2 %v2116_v6  ;;  %v2122_v15 = vld [vmem:[%s2984_s1 + $0xe0] sm:$0xff]  ;;  %v2121_v19 = vld [vmem:[%s2984_s1 + $0xd8] sm:$0xff]  ;;  %v2120_v23 = vld [vmem:[%s2984_s1 + $0xd0] sm:$0xff] }
   0x9   :  { %1061 = vmatpush.bf16.msra.mxu3 %v2124_v7  ;;  %v2095_v24 = vld [vmem:[%s2984_s1 + $0x8] sm:$0xff]  ;;  %v2094_v28 = vld [vmem:[%s2984_s1] sm:$0xff]  ;;  %v2149_v40 = vld [vmem:[%s2984_s1 + $0x1b8] sm:$0xff] }
   0xa   :  { %915 = vmatpush.bf16.msra.mxu0 %v2099_v8  ;;  %v2103_v25 = vld [vmem:[%s2984_s1 + $0x48] sm:$0xff]  ;;  %v2102_v29 = vld [vmem:[%s2984_s1 + $0x40] sm:$0xff]  ;;  %v2133_v41 = vld [vmem:[%s2984_s1 + $0x138] sm:$0xff] }
   0xb   :  { %964 = vmatpush.bf16.msra.mxu1 %v2107_v9  ;;  %v2111_v26 = vld [vmem:[%s2984_s1 + $0x88] sm:$0xff]  ;;  %v2110_v30 = vld [vmem:[%s2984_s1 + $0x80] sm:$0xff]  ;;  %v2157_v46 = vld [vmem:[%s2984_s1 + $0x1f8] sm:$0xff] }
   0xc   :  { %1013 = vmatpush.bf16.msra.mxu2 %v2115_v10  ;;  %v2119_v27 = vld [vmem:[%s2984_s1 + $0xc8] sm:$0xff]  ;;  %v2118_v31 = vld [vmem:[%s2984_s1 + $0xc0] sm:$0xff]  ;;  %v2141_v47 = vld [vmem:[%s2984_s1 + $0x178] sm:$0xff] }
   0xd   :  { %1062 = vmatpush.bf16.msra.mxu3 %v2123_v11  ;;  %v1520_v32 = vld [vmem:[%s2985_s0] sm:$0xf]  ;;  %v2030_v34 = vld [vmem:[%s2985_s0 + $0x4] sm:$0xf]  ;;  %v1528_v36 = vld [vmem:[%s2985_s0 + $0x8] sm:$0xf] }
   0xe   :  { %916 = vmatpush.bf16.msra.mxu0 %v2098_v12  ;;  %v2034_v33 = vld [vmem:[%s2985_s0 + $0x1c] sm:$0xf0]  ;;  %v1522_v35 = vld [vmem:[%s2985_s0 + $0x20] sm:$0xf0]  ;;  %v2035_v37 = vld [vmem:[%s2985_s0 + $0x24] sm:$0xf0] }
   0xf   :  { %965 = vmatpush.bf16.msra.mxu1 %v2106_v13  ;;  %v2031_v38 = vld [vmem:[%s2985_s0 + $0xc] sm:$0xf]  ;;  %v1521_v42 = vor.u32 %v2034_v33, %v1520_v32  ;;  %v1525_v43 = vor.u32 %v2030_v34, %v1522_v35  ;;  %v1529_v44 = vor.u32 %v2035_v37, %v1528_v36  ;;  %v2148_v48 = vld [vmem:[%s2984_s1 + $0x1b0] sm:$0xff]  ;;  %v1552_v56 = vld [vmem:[%s2985_s0 + $0x40] sm:$0xf] }
  0x10   :  { %1014 = vmatpush.bf16.msra.mxu2 %v2114_v14  ;;  %v1530_v39 = vld [vmem:[%s2985_s0 + $0x28] sm:$0xf0]  ;;  %v2132_v49 = vld [vmem:[%s2984_s1 + $0x130] sm:$0xff]  ;;  %v2042_v57 = vld [vmem:[%s2985_s0 + $0x5c] sm:$0xf0] }
  0x11   :  { %1063 = vmatpush.bf16.msra.mxu3 %v2122_v15  ;;  %v1533_v45 = vor.u32 %v2031_v38, %v1530_v39  ;;  %v2156_v50 = vld [vmem:[%s2984_s1 + $0x1f0] sm:$0xff]  ;;  %v2147_v52 = vld [vmem:[%s2984_s1 + $0x1a8] sm:$0xff]  ;;  %v2038_v58 = vld [vmem:[%s2985_s0 + $0x44] sm:$0xf]  ;;  %v1553_v0 = vor.u32 %v2042_v57, %v1552_v56 }
  0x12   :  { %917 = vmatpush.bf16.msra.mxu0 %v2097_v16  ;;  %v2140_v51 = vld [vmem:[%s2984_s1 + $0x170] sm:$0xff]  ;;  %v2131_v53 = vld [vmem:[%s2984_s1 + $0x128] sm:$0xff]  ;;  %v1554_v59 = vld [vmem:[%s2985_s0 + $0x60] sm:$0xf0] }
  0x13   :  { %966 = vmatpush.bf16.msra.mxu1 %v2105_v17  ;;  %v2155_v54 = vld [vmem:[%s2984_s1 + $0x1e8] sm:$0xff]  ;;  %v1557_v1 = vor.u32 %v2038_v58, %v1554_v59  ;;  %v2146_v4 = vld [vmem:[%s2984_s1 + $0x1a0] sm:$0xff]  ;;  %v2144_v36 = vld [vmem:[%s2984_s1 + $0x190] sm:$0xff] }
  0x14   :  { %1015 = vmatpush.bf16.msra.mxu2 %v2113_v18  ;;  %v2139_v55 = vld [vmem:[%s2984_s1 + $0x168] sm:$0xff]  ;;  %v2130_v5 = vld [vmem:[%s2984_s1 + $0x120] sm:$0xff]  ;;  %v2128_v37 = vld [vmem:[%s2984_s1 + $0x110] sm:$0xff] }
  0x15   :  { %1064 = vmatpush.bf16.msra.mxu3 %v2121_v19  ;;  %v1560_v60 = vld [vmem:[%s2985_s0 + $0x48] sm:$0xf]  ;;  %v2039_v62 = vld [vmem:[%s2985_s0 + $0x4c] sm:$0xf]  ;;  %v2154_v6 = vld [vmem:[%s2984_s1 + $0x1e0] sm:$0xff] }
  0x16   :  { %918 = vmatpush.bf16.msra.mxu0 %v2096_v20  ;;  %v2043_v61 = vld [vmem:[%s2985_s0 + $0x64] sm:$0xf0]  ;;  %v1562_v63 = vld [vmem:[%s2985_s0 + $0x68] sm:$0xf0]  ;;  %v2138_v7 = vld [vmem:[%s2984_s1 + $0x160] sm:$0xff] }
  0x17   :  { %967 = vmatpush.bf16.msra.mxu1 %v2104_v21  ;;  %v1561_v2 = vor.u32 %v2043_v61, %v1560_v60  ;;  %v1565_v3 = vor.u32 %v2039_v62, %v1562_v63  ;;  %v1584_v8 = vld [vmem:[%s2985_s0 + $0x80] sm:$0xf]  ;;  %v2046_v10 = vld [vmem:[%s2985_s0 + $0x84] sm:$0xf]  ;;  %v1592_v12 = vld [vmem:[%s2985_s0 + $0x88] sm:$0xf] }
  0x18   :  { %1016 = vmatpush.bf16.msra.mxu2 %v2112_v22  ;;  %v2050_v9 = vld [vmem:[%s2985_s0 + $0x9c] sm:$0xf0]  ;;  %v1586_v11 = vld [vmem:[%s2985_s0 + $0xa0] sm:$0xf0]  ;;  %v2051_v13 = vld [vmem:[%s2985_s0 + $0xa4] sm:$0xf0] }
  0x19   :  { %1065 = vmatpush.bf16.msra.mxu3 %v2120_v23  ;;  %v2047_v14 = vld [vmem:[%s2985_s0 + $0x8c] sm:$0xf]  ;;  %v1585_v16 = vor.u32 %v2050_v9, %v1584_v8  ;;  %v1589_v17 = vor.u32 %v2046_v10, %v1586_v11  ;;  %v1593_v18 = vor.u32 %v2051_v13, %v1592_v12  ;;  %v2145_v20 = vld [vmem:[%s2984_s1 + $0x198] sm:$0xff]  ;;  %v2152_v38 = vld [vmem:[%s2984_s1 + $0x1d0] sm:$0xff] }
  0x1a   :  { %919 = vmatpush.bf16.msra.mxu0 %v2095_v24  ;;  %v1594_v15 = vld [vmem:[%s2985_s0 + $0xa8] sm:$0xf0]  ;;  %v2129_v21 = vld [vmem:[%s2984_s1 + $0x118] sm:$0xff]  ;;  %v1616_v24 = vld [vmem:[%s2985_s0 + $0xc0] sm:$0xf] }
  0x1b   :  { %968 = vmatpush.bf16.msra.mxu1 %v2103_v25  ;;  %v1597_v19 = vor.u32 %v2047_v14, %v1594_v15  ;;  %v2153_v22 = vld [vmem:[%s2984_s1 + $0x1d8] sm:$0xff]  ;;  %v2058_v25 = vld [vmem:[%s2985_s0 + $0xdc] sm:$0xf0]  ;;  %v2136_v39 = vld [vmem:[%s2984_s1 + $0x150] sm:$0xff] }
  0x1c   :  { %1017 = vmatpush.bf16.msra.mxu2 %v2111_v26  ;;  %v2137_v23 = vld [vmem:[%s2984_s1 + $0x158] sm:$0xff]  ;;  %v2054_v26 = vld [vmem:[%s2985_s0 + $0xc4] sm:$0xf]  ;;  %v1617_v32 = vor.u32 %v2058_v25, %v1616_v24  ;;  %v1680_v56 = vld [vmem:[%s2985_s0 + $0x140] sm:$0xf] }
  0x1d   :  { %1066 = vmatpush.bf16.msra.mxu3 %v2119_v27  ;;  %v1618_v27 = vld [vmem:[%s2985_s0 + $0xe0] sm:$0xf0]  ;;  %v2074_v57 = vld [vmem:[%s2985_s0 + $0x15c] sm:$0xf0]  ;;  %v1688_v60 = vld [vmem:[%s2985_s0 + $0x148] sm:$0xf] }
  0x1e   :  { %920 = vmatpush.bf16.msra.mxu0 %v2094_v28  ;;  %v1624_v28 = vld [vmem:[%s2985_s0 + $0xc8] sm:$0xf]  ;;  %v1621_v33 = vor.u32 %v2054_v26, %v1618_v27  ;;  %v2070_v58 = vld [vmem:[%s2985_s0 + $0x144] sm:$0xf]  ;;  %v2071_v62 = vld [vmem:[%s2985_s0 + $0x14c] sm:$0xf] }
  0x1f   :  { %969 = vmatpush.bf16.msra.mxu1 %v2102_v29  ;;  %v2059_v29 = vld [vmem:[%s2985_s0 + $0xe4] sm:$0xf0]  ;;  %v1682_v59 = vld [vmem:[%s2985_s0 + $0x160] sm:$0xf0]  ;;  %v1690_v63 = vld [vmem:[%s2985_s0 + $0x168] sm:$0xf0] }
  0x20   :  { %1018 = vmatpush.bf16.msra.mxu2 %v2110_v30  ;;  %v2055_v30 = vld [vmem:[%s2985_s0 + $0xcc] sm:$0xf]  ;;  %v1625_v34 = vor.u32 %v2059_v29, %v1624_v28  ;;  %v2075_v61 = vld [vmem:[%s2985_s0 + $0x164] sm:$0xf0]  ;;  %v1712_v8 = vld [vmem:[%s2985_s0 + $0x180] sm:$0xf] }
  0x21   :  { %1067 = vmatpush.bf16.msra.mxu3 %v2118_v31  ;;  %921 = vmatmul.bf16.vlgmr.msra.gmra.mxu0 %v1521_v42  ;;  %v1626_v31 = vld [vmem:[%s2985_s0 + $0xe8] sm:$0xf0]  ;;  %v2062_v42 = vld [vmem:[%s2985_s0 + $0x104] sm:$0xf]  ;;  %v2082_v9 = vld [vmem:[%s2985_s0 + $0x19c] sm:$0xf0] }
  0x22   :  { %1109 = vmatpush.bf16.msrb.mxu0 %v2133_v41  ;;  %970 = vmatmul.bf16.vlgmr.msra.gmra.mxu1 %v1525_v43  ;;  %v1629_v35 = vor.u32 %v2055_v30, %v1626_v31  ;;  %v2066_v41 = vld [vmem:[%s2985_s0 + $0x11c] sm:$0xf0]  ;;  %v1650_v43 = vld [vmem:[%s2985_s0 + $0x120] sm:$0xf0]  ;;  %v1720_v12 = vld [vmem:[%s2985_s0 + $0x188] sm:$0xf] }
  0x23   :  { %1019 = vmatmul.bf16.vlgmr.msra.gmra.mxu2 %v1529_v44  ;;  %1158 = vmatpush.bf16.msrb.mxu1 %v2141_v47  ;;  %v1656_v44 = vld [vmem:[%s2985_s0 + $0x108] sm:$0xf]  ;;  %v1658_v47 = vld [vmem:[%s2985_s0 + $0x128] sm:$0xf0]  ;;  %v2078_v10 = vld [vmem:[%s2985_s0 + $0x184] sm:$0xf] }
  0x24   :  { %1207 = vmatpush.bf16.msrb.mxu2 %v2149_v40  ;;  %1068 = vmatmul.bf16.vlgmr.msra.gmra.mxu3 %v1533_v45  ;;  %v1648_v40 = vld [vmem:[%s2985_s0 + $0x100] sm:$0xf]  ;;  %v2067_v45 = vld [vmem:[%s2985_s0 + $0x124] sm:$0xf0]  ;;  %v1714_v11 = vld [vmem:[%s2985_s0 + $0x1a0] sm:$0xf0] }
  0x25   :  { %1256 = vmatpush.bf16.msrb.mxu3 %v2157_v46  ;;  %v2063_v46 = vld [vmem:[%s2985_s0 + $0x10c] sm:$0xf]  ;;  %v2083_v13 = vld [vmem:[%s2985_s0 + $0x1a4] sm:$0xf0] }
  0x26   :  { %1110 = vmatpush.bf16.msrb.mxu0 %v2132_v49  ;;  %v1653_v49 = vor.u32 %v2062_v42, %v1650_v43  ;;  %v2079_v14 = vld [vmem:[%s2985_s0 + $0x18c] sm:$0xf]  ;;  %v1752_v24 = vld [vmem:[%s2985_s0 + $0x1c8] sm:$0xf] }
  0x27   :  { %1159 = vmatpush.bf16.msrb.mxu1 %v2140_v51  ;;  %v1661_v51 = vor.u32 %v2063_v46, %v1658_v47  ;;  %v1722_v15 = vld [vmem:[%s2985_s0 + $0x1a8] sm:$0xf0]  ;;  %v2091_v25 = vld [vmem:[%s2985_s0 + $0x1e4] sm:$0xf0] }
  0x28   :  { %1208 = vmatpush.bf16.msrb.mxu2 %v2148_v48  ;;  %v1649_v48 = vor.u32 %v2066_v41, %v1648_v40  ;;  %v2087_v26 = vld [vmem:[%s2985_s0 + $0x1cc] sm:$0xf]  ;;  %v1753_v30 = vor.u32 %v2091_v25, %v1752_v24 }
  0x29   :  { %1257 = vmatpush.bf16.msrb.mxu3 %v2156_v50  ;;  %v1657_v50 = vor.u32 %v2067_v45, %v1656_v44  ;;  %v1754_v27 = vld [vmem:[%s2985_s0 + $0x1e8] sm:$0xf0] }
  0x2a   :  { %1111 = vmatpush.bf16.msrb.mxu0 %v2131_v53  ;;  %v2127_v53 = vld [vmem:[%s2984_s1 + $0x108] sm:$0xff]  ;;  %v1757_v31 = vor.u32 %v2087_v26, %v1754_v27 }
  0x2b   :  { %1160 = vmatpush.bf16.msrb.mxu1 %v2139_v55  ;;  %v2135_v55 = vld [vmem:[%s2984_s1 + $0x148] sm:$0xff] }
  0x2c   :  { %1209 = vmatpush.bf16.msrb.mxu2 %v2147_v52  ;;  %v2143_v52 = vld [vmem:[%s2984_s1 + $0x188] sm:$0xff] }
  0x2d   :  { %1258 = vmatpush.bf16.msrb.mxu3 %v2155_v54  ;;  %v2151_v54 = vld [vmem:[%s2984_s1 + $0x1c8] sm:$0xff] }
  0x2e   :  { %1112 = vmatpush.bf16.msrb.mxu0 %v2130_v5  ;;  %v2126_v5 = vld [vmem:[%s2984_s1 + $0x100] sm:$0xff] }
  0x2f   :  { %1161 = vmatpush.bf16.msrb.mxu1 %v2138_v7  ;;  %v2134_v7 = vld [vmem:[%s2984_s1 + $0x140] sm:$0xff] }
  0x30   :  { %1210 = vmatpush.bf16.msrb.mxu2 %v2146_v4  ;;  %v2142_v4 = vld [vmem:[%s2984_s1 + $0x180] sm:$0xff] }
  0x31   :  { %926 = vmatmul.bf16.gmra.mxu0 %v1553_v0  ;;  %1259 = vmatpush.bf16.msrb.mxu3 %v2154_v6  ;;  %v1681_v0 = vor.u32 %v2074_v57, %v1680_v56  ;;  %v2150_v6 = vld [vmem:[%s2984_s1 + $0x1c0] sm:$0xff]  ;;  %v2040_v56 = vld [vmem:[%s2985_s0 + $0x54] sm:$0xf] }
  0x32   :  { %975 = vmatmul.bf16.gmra.mxu1 %v1557_v1  ;;  %1113 = vmatpush.bf16.msrb.mxu0 %v2129_v21  ;;  %v1685_v1 = vor.u32 %v2070_v58, %v1682_v59  ;;  %v2090_v21 = vld [vmem:[%s2985_s0 + $0x1dc] sm:$0xf0]  ;;  %v1570_v57 = vld [vmem:[%s2985_s0 + $0x70] sm:$0xf0]  ;;  %v1576_v58 = vld [vmem:[%s2985_s0 + $0x58] sm:$0xf] }
  0x33   :  { %1024 = vmatmul.bf16.gmra.mxu2 %v1561_v2  ;;  %1162 = vmatpush.bf16.msrb.mxu1 %v2137_v23  ;;  %v1689_v2 = vor.u32 %v2075_v61, %v1688_v60  ;;  %v1746_v23 = vld [vmem:[%s2985_s0 + $0x1e0] sm:$0xf0]  ;;  %v2045_v59 = vld [vmem:[%s2985_s0 + $0x74] sm:$0xf0]  ;;  %v2041_v60 = vld [vmem:[%s2985_s0 + $0x5c] sm:$0xf] }
  0x34   :  { %1073 = vmatmul.bf16.gmra.mxu3 %v1565_v3  ;;  %1211 = vmatpush.bf16.msrb.mxu2 %v2145_v20  ;;  %v1693_v3 = vor.u32 %v2071_v62, %v1690_v63  ;;  %v1744_v20 = vld [vmem:[%s2985_s0 + $0x1c0] sm:$0xf]  ;;  %v1578_v61 = vld [vmem:[%s2985_s0 + $0x78] sm:$0xf0] }
  0x35   :  { %1260 = vmatpush.bf16.msrb.mxu3 %v2153_v22  ;;  %v2086_v22 = vld [vmem:[%s2985_s0 + $0x1c4] sm:$0xf]  ;;  %v1745_v28 = vor.u32 %v2090_v21, %v1744_v20  ;;  %v1608_v20 = vld [vmem:[%s2985_s0 + $0x98] sm:$0xf] }
  0x36   :  { %1114 = vmatpush.bf16.msrb.mxu0 %v2128_v37  ;;  %v1749_v29 = vor.u32 %v2086_v22, %v1746_v23  ;;  %v2037_v37 = vld [vmem:[%s2985_s0 + $0x34] sm:$0xf0]  ;;  %v2049_v22 = vld [vmem:[%s2985_s0 + $0x9c] sm:$0xf] }
  0x37   :  { %1163 = vmatpush.bf16.msrb.mxu1 %v2136_v39  ;;  %v1546_v39 = vld [vmem:[%s2985_s0 + $0x38] sm:$0xf0]  ;;  %v2053_v21 = vld [vmem:[%s2985_s0 + $0xb4] sm:$0xf0] }
  0x38   :  { %1212 = vmatpush.bf16.msrb.mxu2 %v2144_v36  ;;  %v1544_v36 = vld [vmem:[%s2985_s0 + $0x18] sm:$0xf]  ;;  %v1610_v23 = vld [vmem:[%s2985_s0 + $0xb8] sm:$0xf0] }
  0x39   :  { %1261 = vmatpush.bf16.msrb.mxu3 %v2152_v38  ;;  %v2033_v38 = vld [vmem:[%s2985_s0 + $0x1c] sm:$0xf]  ;;  %v1545_v44 = vor.u32 %v2037_v37, %v1544_v36 }
  0x3a   :  { %1115 = vmatpush.bf16.msrb.mxu0 %v2127_v53  ;;  %v1549_v45 = vor.u32 %v2033_v38, %v1546_v39 }
  0x3b   :  { %1164 = vmatpush.bf16.msrb.mxu1 %v2135_v55  ;;  %v2044_v55 = vld [vmem:[%s2985_s0 + $0x6c] sm:$0xf0] }
  0x3c   :  { %1213 = vmatpush.bf16.msrb.mxu2 %v2143_v52 }
  0x3d   :  { %1262 = vmatpush.bf16.msrb.mxu3 %v2151_v54  ;;  %v1568_v54 = vld [vmem:[%s2985_s0 + $0x50] sm:$0xf] }
  0x3e   :  { %1116 = vmatpush.bf16.msrb.mxu0 %v2126_v5  ;;  %v1577_v5 = vor.u32 %v2045_v59, %v1576_v58 }
  0x3f   :  { %1165 = vmatpush.bf16.msrb.mxu1 %v2134_v7 }
  0x40   :  { %1214 = vmatpush.bf16.msrb.mxu2 %v2142_v4 }
  0x41   :  { %931 = vmatmul.bf16.gmra.mxu0 %v1585_v16  ;;  %1263 = vmatpush.bf16.msrb.mxu3 %v2150_v6  ;;  %v1713_v16 = vor.u32 %v2082_v9, %v1712_v8  ;;  %v1581_v6 = vor.u32 %v2041_v60, %v1578_v61 }
  0x42   :  { %980 = vmatmul.bf16.gmra.mxu1 %v1589_v17  ;;  %v1717_v17 = vor.u32 %v2078_v10, %v1714_v11 }
  0x43   :  { %1029 = vmatmul.bf16.gmra.mxu2 %v1593_v18  ;;  %v1721_v18 = vor.u32 %v2083_v13, %v1720_v12 }
  0x44   :  { %1078 = vmatmul.bf16.gmra.mxu3 %v1597_v19  ;;  %v1725_v19 = vor.u32 %v2079_v14, %v1722_v15 }
  0x51   :  { %936 = vmatmul.bf16.gmra.mxu0 %v1617_v32  ;;  %v1536_v32 = vld [vmem:[%s2985_s0 + $0x10] sm:$0xf] }
  0x52   :  { %985 = vmatmul.bf16.gmra.mxu1 %v1621_v33  ;;  %v2036_v33 = vld [vmem:[%s2985_s0 + $0x2c] sm:$0xf0] }
  0x53   :  { %1034 = vmatmul.bf16.gmra.mxu2 %v1625_v34  ;;  %v2032_v34 = vld [vmem:[%s2985_s0 + $0x14] sm:$0xf]  ;;  %v1537_v40 = vor.u32 %v2036_v33, %v1536_v32  ;;  %v1613_v32 = vor.u32 %v2049_v22, %v1610_v23 }
  0x54   :  { %1083 = vmatmul.bf16.gmra.mxu3 %v1629_v35  ;;  %v1538_v35 = vld [vmem:[%s2985_s0 + $0x30] sm:$0xf0] }
  0x55   :  { %v1541_v41 = vor.u32 %v2032_v34, %v1538_v35 }
  0x61   :  { %941 = vmatmul.bf16.gmra.mxu0 %v1649_v48 }
  0x62   :  { %990 = vmatmul.bf16.gmra.mxu1 %v1653_v49 }
  0x63   :  { %1039 = vmatmul.bf16.gmra.mxu2 %v1657_v50 }
  0x64   :  { %1088 = vmatmul.bf16.gmra.mxu3 %v1661_v51 }
  0x71   :  { %946 = vmatmul.bf16.gmra.mxu0 %v1681_v0  ;;  %v1569_v0 = vor.u32 %v2044_v55, %v1568_v54 }
  0x72   :  { %995 = vmatmul.bf16.gmra.mxu1 %v1685_v1  ;;  %v1573_v1 = vor.u32 %v2040_v56, %v1570_v57 }
  0x73   :  { %1044 = vmatmul.bf16.gmra.mxu2 %v1689_v2 }
  0x74   :  { %1093 = vmatmul.bf16.gmra.mxu3 %v1693_v3 }
  0x81   :  { %951 = vmatmul.bf16.gmra.mxu0 %v1713_v16  ;;  %v1600_v16 = vld [vmem:[%s2985_s0 + $0x90] sm:$0xf] }
  0x82   :  { %1000 = vmatmul.bf16.gmra.mxu1 %v1717_v17  ;;  %v2052_v17 = vld [vmem:[%s2985_s0 + $0xac] sm:$0xf0] }
  0x83   :  { %1049 = vmatmul.bf16.gmra.mxu2 %v1721_v18  ;;  %v2048_v18 = vld [vmem:[%s2985_s0 + $0x94] sm:$0xf]  ;;  %v1601_v26 = vor.u32 %v2052_v17, %v1600_v16 }
  0x84   :  { %1098 = vmatmul.bf16.gmra.mxu3 %v1725_v19  ;;  %v1602_v19 = vld [vmem:[%s2985_s0 + $0xb0] sm:$0xf0] }
  0x85   :  { %v1605_v27 = vor.u32 %v2048_v18, %v1602_v19 }
  0x91   :  { %956 = vmatmul.bf16.gmra.mxu0 %v1745_v28 }
  0x92   :  { %1005 = vmatmul.bf16.gmra.mxu1 %v1749_v29 }
  0x93   :  { %1054 = vmatmul.bf16.gmra.mxu2 %v1753_v30 }
  0x94   :  { %1103 = vmatmul.bf16.gmra.mxu3 %v1757_v31  ;;  %v1609_v31 = vor.u32 %v2053_v21, %v1608_v20 }
  0x9e   :  { %v922_v42 = vpop.f32.mrf.mxu0 }
  0x9f   :  { %v971_v43 = vpop.f32.mrf.mxu1 }
  0xa0   :  { %v972_v46 = vadd.f32 %v971_v43, %v922_v42  ;;  %v1632_v42 = vld [vmem:[%s2985_s0 + $0xd0] sm:$0xf] }
  0xa1   :  { %1117 = vmatmul.bf16.vlgmr.msrb.gmra.mxu0 %v1537_v40  ;;  %v2060_v43 = vld [vmem:[%s2985_s0 + $0xec] sm:$0xf0] }
  0xa2   :  { %1166 = vmatmul.bf16.vlgmr.msrb.gmra.mxu1 %v1541_v41 }
  0xa3   :  { %1215 = vmatmul.bf16.vlgmr.msrb.gmra.mxu2 %v1545_v44  ;;  %v2056_v44 = vld [vmem:[%s2985_s0 + $0xd4] sm:$0xf] }
  0xa4   :  { %1264 = vmatmul.bf16.vlgmr.msrb.gmra.mxu3 %v1549_v45  ;;  %v1634_v45 = vld [vmem:[%s2985_s0 + $0xf0] sm:$0xf0] }
  0xa5   :  { %v1637_v54 = vor.u32 %v2056_v44, %v1634_v45 }
  0xa6   :  { %v1020_v47 = vpop.f32.mrf.mxu2  ;;  %v924_v50 = vpop.f32.mrf.mxu0 }
  0xa7   :  { %v1069_v48 = vpop.f32.mrf.mxu3  ;;  %v1021_v49 = vadd.f32 %v1020_v47, %v972_v46  ;;  %v973_v51 = vpop.f32.mrf.mxu1  ;;  %v1640_v46 = vld [vmem:[%s2985_s0 + $0xd8] sm:$0xf] }
  0xa8   :  { %v974_v52 = vadd.f32 %v973_v51, %v924_v50  ;;  %v2061_v47 = vld [vmem:[%s2985_s0 + $0xf4] sm:$0xf0] }
  0xa9   :  { %v2642_v53 = vadd.f32 %v1069_v48, %v1021_v49  ;;  %v2057_v48 = vld [vmem:[%s2985_s0 + $0xdc] sm:$0xf]  ;;  %v1641_v58 = vor.u32 %v2061_v47, %v1640_v46 }
  0xaa   :  { %v1642_v49 = vld [vmem:[%s2985_s0 + $0xf8] sm:$0xf0] }
  0xab   :  { %v1645_v59 = vor.u32 %v2057_v48, %v1642_v49 }
  0xae   :  { %v1022_v62 = vpop.f32.mrf.mxu2  ;;  %v927_v3 = vpop.f32.mrf.mxu0 }
  0xaf   :  { %v1071_v63 = vpop.f32.mrf.mxu3  ;;  %v1023_v2 = vadd.f32 %v1022_v62, %v974_v52  ;;  %v976_v4 = vpop.f32.mrf.mxu1  ;;  %v1633_v52 = vor.u32 %v2060_v43, %v1632_v42  ;;  %v1706_v42 = vld [vmem:[%s2985_s0 + $0x178] sm:$0xf0] }
  0xb0   :  { %v977_v7 = vadd.f32 %v976_v4, %v927_v3 }
  0xb1   :  { %v2668_v8 = vadd.f32 %v1071_v63, %v1023_v2  ;;  %1122 = vmatmul.bf16.gmra.mxu0 %v1569_v0 }
  0xb2   :  { %1171 = vmatmul.bf16.gmra.mxu1 %v1573_v1 }
  0xb3   :  { %1220 = vmatmul.bf16.gmra.mxu2 %v1577_v5  ;;  %v1664_v5 = vld [vmem:[%s2985_s0 + $0x110] sm:$0xf] }
  0xb4   :  { %1269 = vmatmul.bf16.gmra.mxu3 %v1581_v6  ;;  %v2068_v6 = vld [vmem:[%s2985_s0 + $0x12c] sm:$0xf0] }
  0xb5   :  { %v1665_v17 = vor.u32 %v2068_v6, %v1664_v5  ;;  %v2085_v5 = vld [vmem:[%s2985_s0 + $0x1b4] sm:$0xf0]  ;;  %v2081_v6 = vld [vmem:[%s2985_s0 + $0x19c] sm:$0xf] }
  0xb6   :  { %v1025_v9 = vpop.f32.mrf.mxu2  ;;  %v929_v12 = vpop.f32.mrf.mxu0 }
  0xb7   :  { %v1074_v10 = vpop.f32.mrf.mxu3  ;;  %v1026_v11 = vadd.f32 %v1025_v9, %v977_v7  ;;  %v978_v13 = vpop.f32.mrf.mxu1  ;;  %v2064_v7 = vld [vmem:[%s2985_s0 + $0x114] sm:$0xf] }
  0xb8   :  { %v979_v14 = vadd.f32 %v978_v13, %v929_v12  ;;  %v1666_v9 = vld [vmem:[%s2985_s0 + $0x130] sm:$0xf0]  ;;  %v2065_v12 = vld [vmem:[%s2985_s0 + $0x11c] sm:$0xf] }
  0xb9   :  { %v2670_v15 = vadd.f32 %v1074_v10, %v1026_v11  ;;  %v1672_v10 = vld [vmem:[%s2985_s0 + $0x118] sm:$0xf]  ;;  %v1674_v13 = vld [vmem:[%s2985_s0 + $0x138] sm:$0xf0]  ;;  %v1669_v18 = vor.u32 %v2064_v7, %v1666_v9 }
  0xba   :  { %v2069_v11 = vld [vmem:[%s2985_s0 + $0x134] sm:$0xf0]  ;;  %v1677_v23 = vor.u32 %v2065_v12, %v1674_v13  ;;  %v1738_v7 = vld [vmem:[%s2985_s0 + $0x1b8] sm:$0xf0] }
  0xbb   :  { %v1673_v22 = vor.u32 %v2069_v11, %v1672_v10 }
  0xbe   :  { %v1027_v24 = vpop.f32.mrf.mxu2  ;;  %v932_v29 = vpop.f32.mrf.mxu0 }
  0xbf   :  { %v1076_v25 = vpop.f32.mrf.mxu3  ;;  %v1028_v28 = vadd.f32 %v1027_v24, %v979_v14  ;;  %v981_v30 = vpop.f32.mrf.mxu1 }
  0xc0   :  { %v982_v33 = vadd.f32 %v981_v30, %v932_v29 }
  0xc1   :  { %v2696_v34 = vadd.f32 %v1076_v25, %v1028_v28  ;;  %1127 = vmatmul.bf16.gmra.mxu0 %v1601_v26 }
  0xc2   :  { %1176 = vmatmul.bf16.gmra.mxu1 %v1605_v27 }
  0xc3   :  { %1225 = vmatmul.bf16.gmra.mxu2 %v1609_v31 }
  0xc4   :  { %1274 = vmatmul.bf16.gmra.mxu3 %v1613_v32 }
  0xc6   :  { %v1030_v35 = vpop.f32.mrf.mxu2  ;;  %v934_v38 = vpop.f32.mrf.mxu0 }
  0xc7   :  { %v1079_v36 = vpop.f32.mrf.mxu3  ;;  %v1031_v37 = vadd.f32 %v1030_v35, %v982_v33  ;;  %v983_v39 = vpop.f32.mrf.mxu1  ;;  %v1696_v33 = vld [vmem:[%s2985_s0 + $0x150] sm:$0xf] }
  0xc8   :  { %v984_v40 = vadd.f32 %v983_v39, %v934_v38  ;;  %v2076_v35 = vld [vmem:[%s2985_s0 + $0x16c] sm:$0xf0]  ;;  %v1704_v38 = vld [vmem:[%s2985_s0 + $0x158] sm:$0xf] }
  0xc9   :  { %v2698_v41 = vadd.f32 %v1079_v36, %v1031_v37  ;;  %v2072_v36 = vld [vmem:[%s2985_s0 + $0x154] sm:$0xf]  ;;  %v2077_v39 = vld [vmem:[%s2985_s0 + $0x174] sm:$0xf0]  ;;  %v1697_v45 = vor.u32 %v2076_v35, %v1696_v33 }
  0xca   :  { %v1698_v37 = vld [vmem:[%s2985_s0 + $0x170] sm:$0xf0]  ;;  %v1768_v35 = vld [vmem:[%s2985_s0 + $0x1d8] sm:$0xf] }
  0xcb   :  { %v1701_v46 = vor.u32 %v2072_v36, %v1698_v37  ;;  %v1762_v33 = vld [vmem:[%s2985_s0 + $0x1f0] sm:$0xf0]  ;;  %v2093_v36 = vld [vmem:[%s2985_s0 + $0x1f4] sm:$0xf0]  ;;  %v2089_v37 = vld [vmem:[%s2985_s0 + $0x1dc] sm:$0xf] }
  0xce   :  { %v1032_v50 = vpop.f32.mrf.mxu2  ;;  %v937_v56 = vpop.f32.mrf.mxu0 }
  0xcf   :  { %v1081_v51 = vpop.f32.mrf.mxu3  ;;  %v1033_v55 = vadd.f32 %v1032_v50, %v984_v40  ;;  %v986_v57 = vpop.f32.mrf.mxu1  ;;  %v2073_v40 = vld [vmem:[%s2985_s0 + $0x15c] sm:$0xf]  ;;  %v1705_v50 = vor.u32 %v2077_v39, %v1704_v38 }
  0xd0   :  { %v987_v60 = vadd.f32 %v986_v57, %v937_v56  ;;  %v1770_v38 = vld [vmem:[%s2985_s0 + $0x1f8] sm:$0xf0] }
  0xd1   :  { %v2724_v61 = vadd.f32 %v1081_v51, %v1033_v55  ;;  %1132 = vmatmul.bf16.gmra.mxu0 %v1633_v52  ;;  %v1709_v51 = vor.u32 %v2073_v40, %v1706_v42 }
  0xd2   :  { %1181 = vmatmul.bf16.gmra.mxu1 %v1637_v54 }
  0xd3   :  { %1230 = vmatmul.bf16.gmra.mxu2 %v1641_v58 }
  0xd4   :  { %1279 = vmatmul.bf16.gmra.mxu3 %v1645_v59 }
  0xd6   :  { %v1035_v62 = vpop.f32.mrf.mxu2  ;;  %v939_v1 = vpop.f32.mrf.mxu0 }
  0xd7   :  { %v1084_v63 = vpop.f32.mrf.mxu3  ;;  %v1036_v0 = vadd.f32 %v1035_v62, %v987_v60  ;;  %v988_v2 = vpop.f32.mrf.mxu1 }
  0xd8   :  { %v989_v3 = vadd.f32 %v988_v2, %v939_v1  ;;  %v2080_v1 = vld [vmem:[%s2985_s0 + $0x194] sm:$0xf] }
  0xd9   :  { %v2726_v4 = vadd.f32 %v1084_v63, %v1036_v0  ;;  %v1728_v63 = vld [vmem:[%s2985_s0 + $0x190] sm:$0xf]  ;;  %v1730_v2 = vld [vmem:[%s2985_s0 + $0x1b0] sm:$0xf0] }
  0xda   :  { %v2084_v0 = vld [vmem:[%s2985_s0 + $0x1ac] sm:$0xf0]  ;;  %v1733_v12 = vor.u32 %v2080_v1, %v1730_v2 }
  0xdb   :  { %v1729_v11 = vor.u32 %v2084_v0, %v1728_v63 }
  0xde   :  { %v1037_v14 = vpop.f32.mrf.mxu2  ;;  %v942_v20 = vpop.f32.mrf.mxu0 }
  0xdf   :  { %v1086_v16 = vpop.f32.mrf.mxu3  ;;  %v1038_v19 = vadd.f32 %v1037_v14, %v989_v3  ;;  %v991_v21 = vpop.f32.mrf.mxu1  ;;  %v1736_v3 = vld [vmem:[%s2985_s0 + $0x198] sm:$0xf] }
  0xe0   :  { %v992_v24 = vadd.f32 %v991_v21, %v942_v20 }
  0xe1   :  { %v2752_v25 = vadd.f32 %v1086_v16, %v1038_v19  ;;  %1137 = vmatmul.bf16.gmra.mxu0 %v1665_v17  ;;  %v1737_v17 = vor.u32 %v2085_v5, %v1736_v3 }
  0xe2   :  { %1186 = vmatmul.bf16.gmra.mxu1 %v1669_v18  ;;  %v1741_v18 = vor.u32 %v2081_v6, %v1738_v7 }
  0xe3   :  { %1235 = vmatmul.bf16.gmra.mxu2 %v1673_v22 }
  0xe4   :  { %1284 = vmatmul.bf16.gmra.mxu3 %v1677_v23 }
  0xe6   :  { %v1040_v26 = vpop.f32.mrf.mxu2  ;;  %v944_v29 = vpop.f32.mrf.mxu0 }
  0xe7   :  { %v1089_v27 = vpop.f32.mrf.mxu3  ;;  %v1041_v28 = vadd.f32 %v1040_v26, %v992_v24  ;;  %v993_v30 = vpop.f32.mrf.mxu1 }
  0xe8   :  { %v994_v31 = vadd.f32 %v993_v30, %v944_v29  ;;  %v1760_v29 = vld [vmem:[%s2985_s0 + $0x1d0] sm:$0xf] }
  0xe9   :  { %v2754_v32 = vadd.f32 %v1089_v27, %v1041_v28  ;;  %v2092_v30 = vld [vmem:[%s2985_s0 + $0x1ec] sm:$0xf0] }
  0xea   :  { %v1761_v42 = vor.u32 %v2092_v30, %v1760_v29 }
  0xee   :  { %v1042_v43 = vpop.f32.mrf.mxu2  ;;  %v947_v48 = vpop.f32.mrf.mxu0 }
  0xef   :  { %v1091_v44 = vpop.f32.mrf.mxu3  ;;  %v1043_v47 = vadd.f32 %v1042_v43, %v994_v31  ;;  %v996_v49 = vpop.f32.mrf.mxu1  ;;  %v2088_v31 = vld [vmem:[%s2985_s0 + $0x1d4] sm:$0xf] }
  0xf0   :  { %v997_v52 = vadd.f32 %v996_v49, %v947_v48  ;;  %v1765_v43 = vor.u32 %v2088_v31, %v1762_v33  ;;  %v1773_v48 = vor.u32 %v2089_v37, %v1770_v38 }
  0xf1   :  { %v2780_v54 = vadd.f32 %v1091_v44, %v1043_v47  ;;  %1142 = vmatmul.bf16.gmra.mxu0 %v1697_v45  ;;  %v1769_v47 = vor.u32 %v2093_v36, %v1768_v35 }
  0xf2   :  { %1191 = vmatmul.bf16.gmra.mxu1 %v1701_v46 }
  0xf3   :  { %1240 = vmatmul.bf16.gmra.mxu2 %v1705_v50 }
  0xf4   :  { %1289 = vmatmul.bf16.gmra.mxu3 %v1709_v51 }
  0xf6   :  { %v1045_v55 = vpop.f32.mrf.mxu2  ;;  %v949_v58 = vpop.f32.mrf.mxu0 }
  0xf7   :  { %v1094_v56 = vpop.f32.mrf.mxu3  ;;  %v1046_v57 = vadd.f32 %v1045_v55, %v997_v52  ;;  %v998_v59 = vpop.f32.mrf.mxu1 }
  0xf8   :  { %v999_v60 = vadd.f32 %v998_v59, %v949_v58 }
  0xf9   :  { %v2782_v62 = vadd.f32 %v1094_v56, %v1046_v57 }
  0xfe   :  { %v1047_v9 = vpop.f32.mrf.mxu2  ;;  %v952_v14 = vpop.f32.mrf.mxu0 }
  0xff   :  { %v1096_v10 = vpop.f32.mrf.mxu3  ;;  %v1048_v13 = vadd.f32 %v1047_v9, %v999_v60  ;;  %v1001_v16 = vpop.f32.mrf.mxu1 }
 0x100   :  { %v1002_v19 = vadd.f32 %v1001_v16, %v952_v14 }
 0x101   :  { %v2808_v20 = vadd.f32 %v1096_v10, %v1048_v13  ;;  %1147 = vmatmul.bf16.gmra.mxu0 %v1729_v11 }
 0x102   :  { %1196 = vmatmul.bf16.gmra.mxu1 %v1733_v12 }
 0x103   :  { %1245 = vmatmul.bf16.gmra.mxu2 %v1737_v17 }
 0x104   :  { %1294 = vmatmul.bf16.gmra.mxu3 %v1741_v18 }
 0x106   :  { %v1050_v21 = vpop.f32.mrf.mxu2  ;;  %v954_v24 = vpop.f32.mrf.mxu0 }
 0x107   :  { %v1099_v22 = vpop.f32.mrf.mxu3  ;;  %v1051_v23 = vadd.f32 %v1050_v21, %v1002_v19  ;;  %v1003_v26 = vpop.f32.mrf.mxu1 }
 0x108   :  { %v1004_v27 = vadd.f32 %v1003_v26, %v954_v24 }
 0x109   :  { %v2810_v28 = vadd.f32 %v1099_v22, %v1051_v23 }
 0x10e   :  { %v1052_v39 = vpop.f32.mrf.mxu2  ;;  %v957_v45 = vpop.f32.mrf.mxu0 }
 0x10f   :  { %v1101_v40 = vpop.f32.mrf.mxu3  ;;  %v1053_v44 = vadd.f32 %v1052_v39, %v1004_v27  ;;  %v1006_v46 = vpop.f32.mrf.mxu1 }
 0x110   :  { %v1007_v49 = vadd.f32 %v1006_v46, %v957_v45 }
 0x111   :  { %v2836_v50 = vadd.f32 %v1101_v40, %v1053_v44  ;;  %1152 = vmatmul.bf16.gmra.mxu0 %v1761_v42 }
 0x112   :  { %1201 = vmatmul.bf16.gmra.mxu1 %v1765_v43 }
 0x113   :  { %1250 = vmatmul.bf16.gmra.mxu2 %v1769_v47 }
 0x114   :  { %1299 = vmatmul.bf16.gmra.mxu3 %v1773_v48 }
 0x116   :  { %v1055_v51 = vpop.f32.mrf.mxu2  ;;  %v959_v56 = vpop.f32.mrf.mxu0 }
 0x117   :  { %v1104_v52 = vpop.f32.mrf.mxu3  ;;  %v1056_v55 = vadd.f32 %v1055_v51, %v1007_v49  ;;  %v1008_v57 = vpop.f32.mrf.mxu1 }
 0x118   :  { %v1009_v58 = vadd.f32 %v1008_v57, %v959_v56 }
 0x119   :  { %v2838_v59 = vadd.f32 %v1104_v52, %v1056_v55 }
 0x11e   :  { %v1057_v60 = vpop.f32.mrf.mxu2  ;;  %v1118_v1 = vpop.f32.mrf.mxu0 }
 0x11f   :  { %v1106_v63 = vpop.f32.mrf.mxu3  ;;  %v1058_v0 = vadd.f32 %v1057_v60, %v1009_v58  ;;  %v1167_v2 = vpop.f32.mrf.mxu1  ;;  %v1119_v3 = vadd.f32 %v1118_v1, %v2642_v53 }
 0x121   :  { %v2841_v5 = vadd.f32 %v1106_v63, %v1058_v0  ;;  %v1168_v6 = vadd.f32 %v1167_v2, %v1119_v3 }
 0x126   :  { %v1216_v7 = vpop.f32.mrf.mxu2  ;;  %v1120_v11 = vpop.f32.mrf.mxu0 }
 0x127   :  { %v1265_v9 = vpop.f32.mrf.mxu3  ;;  %v1217_v10 = vadd.f32 %v1216_v7, %v1168_v6  ;;  %v1169_v12 = vpop.f32.mrf.mxu1  ;;  %v1121_v13 = vadd.f32 %v1120_v11, %v2668_v8 }
 0x129   :  { %v2844_v14 = vadd.f32 %v1265_v9, %v1217_v10  ;;  %v1170_v16 = vadd.f32 %v1169_v12, %v1121_v13 }
 0x12b   :  { %v1326_v45 = vmul.f32 %v2844_v14, %v2844_v14 }
 0x12e   :  { %v1218_v17 = vpop.f32.mrf.mxu2  ;;  %v1123_v21 = vpop.f32.mrf.mxu0 }
 0x12f   :  { %v1267_v18 = vpop.f32.mrf.mxu3  ;;  %v1219_v19 = vadd.f32 %v1218_v17, %v1170_v16  ;;  %v1172_v22 = vpop.f32.mrf.mxu1  ;;  %v1124_v53 = vadd.f32 %v1123_v21, %v2670_v15 }
 0x131   :  { %v2847_v23 = vadd.f32 %v1267_v18, %v1219_v19  ;;  %v1173_v24 = vadd.f32 %v1172_v22, %v1124_v53 }
 0x133   :  { %v1327_v44 = vmul.f32 %v2847_v23, %v2847_v23 }
 0x135   :  { %v1342_v49 = vadd.f32 %v1327_v44, %v1326_v45 }
 0x136   :  { %v1221_v26 = vpop.f32.mrf.mxu2  ;;  %v1125_v30 = vpop.f32.mrf.mxu0 }
 0x137   :  { %v1270_v27 = vpop.f32.mrf.mxu3  ;;  %v1222_v29 = vadd.f32 %v1221_v26, %v1173_v24  ;;  %v1174_v31 = vpop.f32.mrf.mxu1  ;;  %v1126_v8 = vadd.f32 %v1125_v30, %v2696_v34  ;;  %v1305_v34 = vadd.f32 %v2847_v23, %v2844_v14 }
 0x139   :  { %v2850_v33 = vadd.f32 %v1270_v27, %v1222_v29  ;;  %v1175_v35 = vadd.f32 %v1174_v31, %v1126_v8 }
 0x13b   :  { %v1328_v46 = vmul.f32 %v2850_v33, %v2850_v33 }
 0x13d   :  { %v1343_v57 = vadd.f32 %v1342_v49, %v1328_v46 }
 0x13e   :  { %v1223_v36 = vpop.f32.mrf.mxu2  ;;  %v1128_v39 = vpop.f32.mrf.mxu0 }
 0x13f   :  { %v1272_v37 = vpop.f32.mrf.mxu3  ;;  %v1224_v38 = vadd.f32 %v1223_v36, %v1175_v35  ;;  %v1177_v40 = vpop.f32.mrf.mxu1  ;;  %v1129_v15 = vadd.f32 %v1128_v39, %v2698_v41  ;;  %v1306_v41 = vadd.f32 %v1305_v34, %v2850_v33 }
 0x141   :  { %v2853_v42 = vadd.f32 %v1272_v37, %v1224_v38  ;;  %v1178_v43 = vadd.f32 %v1177_v40, %v1129_v15 }
 0x143   :  { %v1329_v51 = vmul.f32 %v2853_v42, %v2853_v42  ;;  %v1307_v58 = vadd.f32 %v1306_v41, %v2853_v42 }
 0x145   :  { %v1344_v0 = vadd.f32 %v1343_v57, %v1329_v51 }
 0x146   :  { %v1226_v47 = vpop.f32.mrf.mxu2  ;;  %v1130_v55 = vpop.f32.mrf.mxu0 }
 0x147   :  { %v1275_v48 = vpop.f32.mrf.mxu3  ;;  %v1227_v52 = vadd.f32 %v1226_v47, %v1178_v43  ;;  %v1179_v56 = vpop.f32.mrf.mxu1  ;;  %v1131_v63 = vadd.f32 %v1130_v55, %v2724_v61 }
 0x149   :  { %v2867_v60 = vadd.f32 %v1275_v48, %v1227_v52  ;;  %v1180_v6 = vadd.f32 %v1179_v56, %v1131_v63 }
 0x14b   :  { %v1308_v1 = vadd.f32 %v1307_v58, %v2867_v60  ;;  %v1330_v2 = vmul.f32 %v2867_v60, %v2867_v60 }
 0x14d   :  { %v1345_v3 = vadd.f32 %v1344_v0, %v1330_v2 }
 0x14e   :  { %v1228_v7 = vpop.f32.mrf.mxu2  ;;  %v1133_v11 = vpop.f32.mrf.mxu0 }
 0x14f   :  { %v1277_v9 = vpop.f32.mrf.mxu3  ;;  %v1229_v10 = vadd.f32 %v1228_v7, %v1180_v6  ;;  %v1182_v12 = vpop.f32.mrf.mxu1  ;;  %v1134_v16 = vadd.f32 %v1133_v11, %v2726_v4 }
 0x151   :  { %v2873_v13 = vadd.f32 %v1277_v9, %v1229_v10  ;;  %v1183_v19 = vadd.f32 %v1182_v12, %v1134_v16 }
 0x153   :  { %v1309_v17 = vadd.f32 %v1308_v1, %v2873_v13  ;;  %v1331_v61 = vmul.f32 %v2873_v13, %v2873_v13 }
 0x155   :  { %v1346_v18 = vadd.f32 %v1345_v3, %v1331_v61 }
 0x156   :  { %v1231_v21 = vpop.f32.mrf.mxu2  ;;  %v1135_v24 = vpop.f32.mrf.mxu0 }
 0x157   :  { %v1280_v22 = vpop.f32.mrf.mxu3  ;;  %v1232_v53 = vadd.f32 %v1231_v21, %v1183_v19  ;;  %v1184_v26 = vpop.f32.mrf.mxu1  ;;  %v1136_v29 = vadd.f32 %v1135_v24, %v2752_v25 }
 0x159   :  { %v2879_v27 = vadd.f32 %v1280_v22, %v1232_v53  ;;  %v1185_v8 = vadd.f32 %v1184_v26, %v1136_v29 }
 0x15b   :  { %v1310_v30 = vadd.f32 %v1309_v17, %v2879_v27  ;;  %v1332_v4 = vmul.f32 %v2879_v27, %v2879_v27 }
 0x15d   :  { %v1347_v31 = vadd.f32 %v1346_v18, %v1332_v4 }
 0x15e   :  { %v1233_v35 = vpop.f32.mrf.mxu2  ;;  %v1138_v38 = vpop.f32.mrf.mxu0 }
 0x15f   :  { %v1282_v36 = vpop.f32.mrf.mxu3  ;;  %v1234_v37 = vadd.f32 %v1233_v35, %v1185_v8  ;;  %v1187_v39 = vpop.f32.mrf.mxu1  ;;  %v1139_v15 = vadd.f32 %v1138_v38, %v2754_v32 }
 0x161   :  { %v2885_v40 = vadd.f32 %v1282_v36, %v1234_v37  ;;  %v1188_v45 = vadd.f32 %v1187_v39, %v1139_v15 }
 0x163   :  { %v1311_v43 = vadd.f32 %v1310_v30, %v2885_v40  ;;  %v1333_v25 = vmul.f32 %v2885_v40, %v2885_v40 }
 0x165   :  { %v1348_v44 = vadd.f32 %v1347_v31, %v1333_v25 }
 0x166   :  { %v1236_v34 = vpop.f32.mrf.mxu2  ;;  %v1140_v48 = vpop.f32.mrf.mxu0 }
 0x167   :  { %v1285_v46 = vpop.f32.mrf.mxu3  ;;  %v1237_v47 = vadd.f32 %v1236_v34, %v1188_v45  ;;  %v1189_v49 = vpop.f32.mrf.mxu1  ;;  %v1141_v51 = vadd.f32 %v1140_v48, %v2780_v54 }
 0x169   :  { %v2891_v41 = vadd.f32 %v1285_v46, %v1237_v47  ;;  %v1190_v56 = vadd.f32 %v1189_v49, %v1141_v51 }
 0x16b   :  { %v1312_v52 = vadd.f32 %v1311_v43, %v2891_v41  ;;  %v1334_v32 = vmul.f32 %v2891_v41, %v2891_v41 }
 0x16d   :  { %v1349_v55 = vadd.f32 %v1348_v44, %v1334_v32 }
 0x16e   :  { %v1238_v57 = vpop.f32.mrf.mxu2  ;;  %v1143_v0 = vpop.f32.mrf.mxu0 }
 0x16f   :  { %v1287_v58 = vpop.f32.mrf.mxu3  ;;  %v1239_v63 = vadd.f32 %v1238_v57, %v1190_v56  ;;  %v1192_v1 = vpop.f32.mrf.mxu1  ;;  %v1144_v3 = vadd.f32 %v1143_v0, %v2782_v62 }
 0x171   :  { %v2897_v2 = vadd.f32 %v1287_v58, %v1239_v63  ;;  %v1193_v9 = vadd.f32 %v1192_v1, %v1144_v3 }
 0x173   :  { %v1313_v6 = vadd.f32 %v1312_v52, %v2897_v2  ;;  %v1335_v54 = vmul.f32 %v2897_v2, %v2897_v2 }
 0x175   :  { %v1350_v7 = vadd.f32 %v1349_v55, %v1335_v54 }
 0x176   :  { %v1241_v10 = vpop.f32.mrf.mxu2  ;;  %v1145_v16 = vpop.f32.mrf.mxu0 }
 0x177   :  { %v1290_v11 = vpop.f32.mrf.mxu3  ;;  %v1242_v12 = vadd.f32 %v1241_v10, %v1193_v9  ;;  %v1194_v17 = vpop.f32.mrf.mxu1  ;;  %v1146_v18 = vadd.f32 %v1145_v16, %v2808_v20 }
 0x179   :  { %v2903_v61 = vadd.f32 %v1290_v11, %v1242_v12  ;;  %v1195_v22 = vadd.f32 %v1194_v17, %v1146_v18 }
 0x17b   :  { %v1314_v19 = vadd.f32 %v1313_v6, %v2903_v61  ;;  %v1336_v62 = vmul.f32 %v2903_v61, %v2903_v61 }
 0x17d   :  { %v1351_v21 = vadd.f32 %v1350_v7, %v1336_v62 }
 0x17e   :  { %v1243_v53 = vpop.f32.mrf.mxu2  ;;  %v1148_v29 = vpop.f32.mrf.mxu0 }
 0x17f   :  { %v1292_v24 = vpop.f32.mrf.mxu3  ;;  %v1244_v26 = vadd.f32 %v1243_v53, %v1195_v22  ;;  %v1197_v30 = vpop.f32.mrf.mxu1  ;;  %v1149_v31 = vadd.f32 %v1148_v29, %v2810_v28 }
 0x181   :  { %v2909_v4 = vadd.f32 %v1292_v24, %v1244_v26  ;;  %v1198_v36 = vadd.f32 %v1197_v30, %v1149_v31 }
 0x183   :  { %v1315_v8 = vadd.f32 %v1314_v19, %v2909_v4  ;;  %v1337_v20 = vmul.f32 %v2909_v4, %v2909_v4 }
 0x185   :  { %v1352_v35 = vadd.f32 %v1351_v21, %v1337_v20 }
 0x186   :  { %v1246_v37 = vpop.f32.mrf.mxu2  ;;  %v1150_v15 = vpop.f32.mrf.mxu0 }
 0x187   :  { %v1295_v38 = vpop.f32.mrf.mxu3  ;;  %v1247_v39 = vadd.f32 %v1246_v37, %v1198_v36  ;;  %v1199_v43 = vpop.f32.mrf.mxu1  ;;  %v1151_v44 = vadd.f32 %v1150_v15, %v2836_v50 }
 0x189   :  { %v2915_v25 = vadd.f32 %v1295_v38, %v1247_v39  ;;  %v1200_v46 = vadd.f32 %v1199_v43, %v1151_v44 }
 0x18b   :  { %v1316_v45 = vadd.f32 %v1315_v8, %v2915_v25  ;;  %v1338_v28 = vmul.f32 %v2915_v25, %v2915_v25 }
 0x18d   :  { %v1353_v34 = vadd.f32 %v1352_v35, %v1338_v28 }
 0x18e   :  { %v1248_v47 = vpop.f32.mrf.mxu2  ;;  %v1153_v51 = vpop.f32.mrf.mxu0 }
 0x18f   :  { %v1297_v48 = vpop.f32.mrf.mxu3  ;;  %v1249_v49 = vadd.f32 %v1248_v47, %v1200_v46  ;;  %v1154_v32 = vadd.f32 %v1153_v51, %v2838_v59  ;;  %v1202_v55 = vpop.f32.mrf.mxu1 }
 0x191   :  { %v2921_v52 = vadd.f32 %v1297_v48, %v1249_v49  ;;  %v1203_v58 = vadd.f32 %v1202_v55, %v1154_v32 }
 0x193   :  { %v1317_v56 = vadd.f32 %v1316_v45, %v2921_v52  ;;  %v1339_v50 = vmul.f32 %v2921_v52, %v2921_v52 }
 0x195   :  { %v1354_v57 = vadd.f32 %v1353_v34, %v1339_v50 }
 0x196   :  { %v1251_v63 = vpop.f32.mrf.mxu2  ;;  %v1155_v3 = vpop.f32.mrf.mxu0 }
 0x197   :  { %v1300_v0 = vpop.f32.mrf.mxu3  ;;  %v1252_v1 = vadd.f32 %v1251_v63, %v1203_v58  ;;  %v1156_v54 = vadd.f32 %v1155_v3, %v2841_v5  ;;  %v1204_v9 = vpop.f32.mrf.mxu1 }
 0x199   :  { %v2927_v6 = vadd.f32 %v1300_v0, %v1252_v1  ;;  %v1205_v11 = vadd.f32 %v1204_v9, %v1156_v54  ;;  %v2205_v0 = vld [vmem:[%s2986_s2] ss:$0 sm:$0xff] }
 0x19b   :  { %v1318_v7 = vadd.f32 %v1317_v56, %v2927_v6  ;;  %v1340_v59 = vmul.f32 %v2927_v6, %v2927_v6 }
 0x19d   :  { %v1355_v10 = vadd.f32 %v1354_v57, %v1340_v59 }
 0x19e   :  { %v1253_v12 = vpop.f32.mrf.mxu2 }
 0x19f   :  { %v1254_v16 = vadd.f32 %v1253_v12, %v1205_v11  ;;  %v1302_v17 = vpop.f32.mrf.mxu3 }
 0x1a1   :  { %v2933_v18 = vadd.f32 %v1302_v17, %v1254_v16 }
 0x1a3   :  { %v1319_v19 = vadd.f32 %v1318_v7, %v2933_v18  ;;  %v1341_v62 = vmul.f32 %v2933_v18, %v2933_v18 }
 0x1a5   :  { %v1320_v21 = vrot.slane %v1319_v19, 4  ;;  %v1356_v5 = vadd.f32 %v1355_v10, %v1341_v62 }
 0x1a7   :  { %v1321_v22 = vadd.f32 %v1320_v21, %v1319_v19  ;;  %v1357_v53 = vrot.slane %v1356_v5, 4 }
 0x1a9   :  { %v1322_v24 = vrot.slane %v1321_v22, 2  ;;  %v1358_v26 = vadd.f32 %v1357_v53, %v1356_v5 }
 0x1ab   :  { %v1323_v29 = vadd.f32 %v1322_v24, %v1321_v22  ;;  %v1359_v30 = vrot.slane %v1358_v26, 2 }
 0x1ad   :  { %v1324_v31 = vrot.slane %v1323_v29, 1  ;;  %v1360_v8 = vadd.f32 %v1359_v30, %v1358_v26 }
 0x1af   :  { %v1325_v20 = vadd.f32 %v1324_v31, %v1323_v29  ;;  %v1361_v35 = vrot.slane %v1360_v8, 1 }
 0x1b1   :  { %v1362_v36 = vadd.f32 %v1361_v35, %v1360_v8  ;;  %v1363_v37 = vmul.f32 0.0078125, %v1325_v20 }
 0x1b3   :  { %v1364_v38 = vmul.f32 0.0078125, %v1362_v36  ;;  %v1365_v39 = vmul.f32 %v1363_v37, %v1363_v37  ;;  %v1370_v15 = vsub.f32 %v2853_v42, %v1363_v37  ;;  %v1371_v43 = vsub.f32 %v2867_v60, %v1363_v37 }
 0x1b4   :  { %v1372_v44 = vsub.f32 %v2873_v13, %v1363_v37  ;;  %v1373_v28 = vsub.f32 %v2879_v27, %v1363_v37  ;;  %v1374_v34 = vsub.f32 %v2885_v40, %v1363_v37  ;;  %v1375_v46 = vsub.f32 %v2891_v41, %v1363_v37 }
 0x1b5   :  { %v1366_v45 = vsub.f32 %v1364_v38, %v1365_v39  ;;  %v1376_v47 = vsub.f32 %v2897_v2, %v1363_v37  ;;  %v1377_v48 = vsub.f32 %v2903_v61, %v1363_v37  ;;  %v1378_v49 = vsub.f32 %v2909_v4, %v1363_v37 }
 0x1b6   :  { %v1379_v51 = vsub.f32 %v2915_v25, %v1363_v37  ;;  %v1380_v42 = vsub.f32 %v2921_v52, %v1363_v37  ;;  %v1381_v60 = vsub.f32 %v2927_v6, %v1363_v37  ;;  %v1382_v13 = vsub.f32 %v2933_v18, %v1363_v37  ;;  %v2206_v18 = vld [vmem:[%s2987_s3] ss:$0 sm:$0xff] }
 0x1b7   :  { %v1383_v32 = vadd.f32 1e-05, %v1366_v45  ;;  %v1367_v61 = vsub.f32 %v2844_v14, %v1363_v37  ;;  %v1368_v4 = vsub.f32 %v2847_v23, %v1363_v37  ;;  %v1369_v25 = vsub.f32 %v2850_v33, %v1363_v37 }
 0x1b9   :  { %2207 = vrsqrt.f32 %v1383_v32  ;;  %vm1390_vm1 = vweird.f32 %v1383_v32 }
 0x1bf   :  { %v2208_v27 = vpop.eup %2207 }
 0x1c0   :  { %v1385_v40 = vmul.f32 %v2208_v27, %v1383_v32  ;;  %vm1391_vm0 = vweird.f32 %v2208_v27 }
 0x1c1   :  { %vm1392_vm2 = vmor %vm1390_vm1, %vm1391_vm0 }
 0x1c2   :  { %v1386_v55 = vmul.f32 %v2208_v27, %v1385_v40 }
 0x1c4   :  { %v1387_v41 = vmul.f32 0.5, %v1386_v55 }
 0x1c6   :  { %v1388_v56 = vsub.f32 1.5, %v1387_v41 }
 0x1c8   :  { %v1389_v2 = vmul.f32 %v2208_v27, %v1388_v56 }
 0x1ca   :  { %v1393_v52 = vsel %vm1392_vm2, %v2208_v27, %v1389_v2 }
 0x1cb   :  { %v1394_v50 = vmul.f32 %v1393_v52, %v1367_v61  ;;  %v1395_v57 = vmul.f32 %v1393_v52, %v1368_v4  ;;  %v1396_v58 = vmul.f32 %v1393_v52, %v1369_v25  ;;  %v1397_v63 = vmul.f32 %v1393_v52, %v1370_v15 }
 0x1cc   :  { %v1398_v1 = vmul.f32 %v1393_v52, %v1371_v43  ;;  %v1399_v3 = vmul.f32 %v1393_v52, %v1372_v44  ;;  %v1400_v6 = vmul.f32 %v1393_v52, %v1373_v28  ;;  %v1401_v54 = vmul.f32 %v1393_v52, %v1374_v34 }
 0x1cd   :  { %v1402_v7 = vmul.f32 %v1393_v52, %v1375_v46  ;;  %v1403_v14 = vmul.f32 %v1393_v52, %v1376_v47  ;;  %v1404_v59 = vmul.f32 %v1393_v52, %v1377_v48  ;;  %v1405_v23 = vmul.f32 %v1393_v52, %v1378_v49 }
 0x1ce   :  { %v1406_v9 = vmul.f32 %v1393_v52, %v1379_v51  ;;  %v1407_v33 = vmul.f32 %v1393_v52, %v1380_v42  ;;  %v1408_v10 = vmul.f32 %v1393_v52, %v1381_v60  ;;  %v1409_v11 = vmul.f32 %v1393_v52, %v1382_v13 }
 0x1cf   :  { %v1414_v12 = vmul.f32 %v2205_v0, %v1394_v50  ;;  %v1415_v16 = vmul.f32 %v2205_v0, %v1395_v57  ;;  %v1416_v17 = vmul.f32 %v2205_v0, %v1396_v58  ;;  %v1417_v19 = vmul.f32 %v2205_v0, %v1397_v63 }
 0x1d0   :  { %v1418_v62 = vmul.f32 %v2205_v0, %v1398_v1  ;;  %v1419_v21 = vmul.f32 %v2205_v0, %v1399_v3  ;;  %v1420_v5 = vmul.f32 %v2205_v0, %v1400_v6  ;;  %v1421_v22 = vmul.f32 %v2205_v0, %v1401_v54 }
 0x1d1   :  { %v1422_v53 = vmul.f32 %v2205_v0, %v1402_v7  ;;  %v1423_v24 = vmul.f32 %v2205_v0, %v1403_v14  ;;  %v1424_v26 = vmul.f32 %v2205_v0, %v1404_v59  ;;  %v1425_v29 = vmul.f32 %v2205_v0, %v1405_v23 }
 0x1d2   :  { %v1426_v30 = vmul.f32 %v2205_v0, %v1406_v9  ;;  %v1427_v31 = vmul.f32 %v2205_v0, %v1407_v33  ;;  %v1428_v8 = vmul.f32 %v2205_v0, %v1408_v10  ;;  %v1434_v20 = vadd.f32 %v2206_v18, %v1414_v12 }
 0x1d3   :  { %v1435_v35 = vadd.f32 %v2206_v18, %v1415_v16  ;;  %v1436_v36 = vadd.f32 %v2206_v18, %v1416_v17  ;;  %v1429_v37 = vmul.f32 %v2205_v0, %v1409_v11  ;;  %v1437_v38 = vadd.f32 %v2206_v18, %v1417_v19 }
 0x1d4   :  { %v1438_v39 = vadd.f32 %v2206_v18, %v1418_v62  ;;  %v1439_v15 = vadd.f32 %v2206_v18, %v1419_v21  ;;  %v1440_v43 = vadd.f32 %v2206_v18, %v1420_v5  ;;  %v1441_v44 = vadd.f32 %v2206_v18, %v1421_v22 }
 0x1d5   :  { %v1442_v45 = vadd.f32 %v2206_v18, %v1422_v53  ;;  %v1443_v28 = vadd.f32 %v2206_v18, %v1423_v24  ;;  %v1444_v34 = vadd.f32 %v2206_v18, %v1424_v26  ;;  %v1445_v46 = vadd.f32 %v2206_v18, %v1425_v29 }
 0x1d6   :  { %v1446_v47 = vadd.f32 %v2206_v18, %v1426_v30  ;;  %v1447_v48 = vadd.f32 %v2206_v18, %v1427_v31  ;;  %v1448_v49 = vadd.f32 %v2206_v18, %v1428_v8  ;;  %v1450_v51 = vmul.f32 0.2, %v1434_v20 }
 0x1d7   :  { %v1451_v42 = vmul.f32 0.2, %v1435_v35  ;;  %v1452_v60 = vmul.f32 0.2, %v1436_v36  ;;  %v1449_v13 = vadd.f32 %v2206_v18, %v1429_v37  ;;  %v1453_v32 = vmul.f32 0.2, %v1437_v38 }
 0x1d8   :  { %v1454_v27 = vmul.f32 0.2, %v1438_v39  ;;  %v1455_v40 = vmul.f32 0.2, %v1439_v15  ;;  %v1456_v55 = vmul.f32 0.2, %v1440_v43  ;;  %v1466_v2 = vmax.f32 %v1434_v20, %v1450_v51 }
 0x1d9   :  { %v1457_v41 = vmul.f32 0.2, %v1441_v44  ;;  %v1458_v56 = vmul.f32 0.2, %v1442_v45  ;;  %v1459_v61 = vmul.f32 0.2, %v1443_v28  ;;  %v1467_v52 = vmax.f32 %v1435_v35, %v1451_v42 }
 0x1da   :  { %v1460_v4 = vmul.f32 0.2, %v1444_v34  ;;  %v1461_v25 = vmul.f32 0.2, %v1445_v46  ;;  %v1462_v50 = vmul.f32 0.2, %v1446_v47  ;;  %v1468_v63 = vmax.f32 %v1436_v36, %v1452_v60 }
 0x1db   :  { %v1463_v57 = vmul.f32 0.2, %v1447_v48  ;;  %v1464_v58 = vmul.f32 0.2, %v1448_v49  ;;  %v1465_v0 = vmul.f32 0.2, %v1449_v13  ;;  %v1469_v1 = vmax.f32 %v1437_v38, %v1453_v32 }
 0x1dc   :  { %v1470_v3 = vmax.f32 %v1438_v39, %v1454_v27  ;;  %v1471_v6 = vmax.f32 %v1439_v15, %v1455_v40  ;;  %v1472_v54 = vmax.f32 %v1440_v43, %v1456_v55  ;;  %v1473_v7 = vmax.f32 %v1441_v44, %v1457_v41 }
 0x1dd   :  { %v1474_v14 = vmax.f32 %v1442_v45, %v1458_v56  ;;  %v1475_v59 = vmax.f32 %v1443_v28, %v1459_v61  ;;  %v1476_v23 = vmax.f32 %v1444_v34, %v1460_v4  ;;  %v1477_v9 = vmax.f32 %v1445_v46, %v1461_v25 }
 0x1de   :  { %v1478_v33 = vmax.f32 %v1446_v47, %v1462_v50  ;;  %v1479_v10 = vmax.f32 %v1447_v48, %v1463_v57  ;;  %v1480_v11 = vmax.f32 %v1448_v49, %v1464_v58  ;;  %v1481_v12 = vmax.f32 %v1449_v13, %v1465_v0 }
 0x1df   :  { %v2161_v16 = vpack.c.bf16 %v1467_v52, %v1466_v2  ;;  %v2166_v17 = vpack.c.bf16 %v1469_v1, %v1468_v63  ;;  %v2171_v18 = vpack.c.bf16 %v1471_v6, %v1470_v3  ;;  %v2176_v19 = vpack.c.bf16 %v1473_v7, %v1472_v54 }
 0x1e0   :  { %v2181_v62 = vpack.c.bf16 %v1475_v59, %v1474_v14  ;;  %v2186_v21 = vpack.c.bf16 %v1477_v9, %v1476_v23  ;;  %v2191_v5 = vpack.c.bf16 %v1479_v10, %v1478_v33  ;;  %v2196_v22 = vpack.c.bf16 %v1481_v12, %v1480_v11 }
 0x1e1   :  { %2162 = vst [vmem:[%s2988_s4] sm:$0xff] %v2161_v16  }
 0x1e2   :  { %2198 = vst [vmem:[%s2988_s4 + $0x8] sm:$0xff] %v2166_v17  }
 0x1e3   :  { %2199 = vst [vmem:[%s2988_s4 + $0x10] sm:$0xff] %v2171_v18  }
 0x1e4   :  { %2200 = vst [vmem:[%s2988_s4 + $0x18] sm:$0xff] %v2176_v19  }
 0x1e5   :  { %2201 = vst [vmem:[%s2988_s4 + $0x20] sm:$0xff] %v2181_v62  }
 0x1e6   :  { %2202 = vst [vmem:[%s2988_s4 + $0x28] sm:$0xff] %v2186_v21  }
 0x1e7   :  { %2203 = vst [vmem:[%s2988_s4 + $0x30] sm:$0xff] %v2191_v5  }
 0x1e8   :  { %2204 = vst [vmem:[%s2988_s4 + $0x38] sm:$0xff] %v2196_v22  }

// kernel: discriminator_forward.7
= control target key start
LH: loop header
LB: loop body
LE: loop exit
PB: predicated region body
PF: predicated region fallthrough
CT: control target
= control target key end

     0   :  { %vm2518_vm6 = vcmask 7168   ;;  %s5983_s1 = inlined_call_operand.vmem [shape: bf16[2048,256], index: 1, kind: input, shape index: {}]   ;;  %s5984_s0 = inlined_call_operand.vmem [shape: bf16[32,2048], index: 0, kind: input, shape index: {}]   ;;  %s5985_s2 = inlined_call_operand.vmem [shape: f32[1,256], index: 2, kind: input, shape index: {}]   ;;  %s5986_s3 = inlined_call_operand.vmem [shape: f32[1,256], index: 3, kind: input, shape index: {}]   ;;  %s5987_s4 = inlined_call_operand.vmem [shape: f32[32,256], index: 4, kind: input, shape index: {}]   ;;  %s5988_s5 = inlined_call_operand.vmem [shape: f32[32,1], index: 5, kind: output, shape index: {}]  }
   0x1   :  { %v2713_v0 = vld [vmem:[%s5983_s1 + $0x70] sm:$0xf]  ;;  %v3726_v1 = vld [vmem:[%s5983_s1 + $0x74] sm:$0xf0]  ;;  %v2705_v11 = vld [vmem:[%s5983_s1 + $0x60] sm:$0xf] }
   0x2   :  { %v2777_v2 = vld [vmem:[%s5983_s1 + $0xf0] sm:$0xf]  ;;  %v2714_v3 = vor.u32 %v3726_v1, %v2713_v0  ;;  %v3742_v4 = vld [vmem:[%s5983_s1 + $0xf4] sm:$0xf0]  ;;  %v3724_v13 = vld [vmem:[%s5983_s1 + $0x64] sm:$0xf0] }
   0x3   :  { %v2841_v5 = vld [vmem:[%s5983_s1 + $0x170] sm:$0xf]  ;;  %v3758_v6 = vld [vmem:[%s5983_s1 + $0x174] sm:$0xf0]  ;;  %v2778_v7 = vor.u32 %v3742_v4, %v2777_v2  ;;  %v2769_v14 = vld [vmem:[%s5983_s1 + $0xe0] sm:$0xf]  ;;  %v2706_v16 = vor.u32 %v3724_v13, %v2705_v11 }
   0x4   :  { %v2842_v8 = vor.u32 %v3758_v6, %v2841_v5  ;;  %v2905_v9 = vld [vmem:[%s5983_s1 + $0x1f0] sm:$0xf]  ;;  %v3774_v10 = vld [vmem:[%s5983_s1 + $0x1f4] sm:$0xf0]  ;;  %1748 = vmatpush.bf16.msra.mxu0 %v2714_v3  ;;  %v3740_v15 = vld [vmem:[%s5983_s1 + $0xe4] sm:$0xf0] }
   0x5   :  { %v2906_v12 = vor.u32 %v3774_v10, %v2905_v9  ;;  %1767 = vmatpush.bf16.msra.mxu1 %v2778_v7  ;;  %v2770_v17 = vor.u32 %v3740_v15, %v2769_v14  ;;  %v2833_v18 = vld [vmem:[%s5983_s1 + $0x160] sm:$0xf]  ;;  %v3756_v19 = vld [vmem:[%s5983_s1 + $0x164] sm:$0xf0]  ;;  %v2697_v23 = vld [vmem:[%s5983_s1 + $0x50] sm:$0xf] }
   0x6   :  { %1786 = vmatpush.bf16.msra.mxu2 %v2842_v8  ;;  %v2897_v20 = vld [vmem:[%s5983_s1 + $0x1e0] sm:$0xf]  ;;  %v2834_v21 = vor.u32 %v3756_v19, %v2833_v18  ;;  %v3772_v22 = vld [vmem:[%s5983_s1 + $0x1e4] sm:$0xf0]  ;;  %v3722_v24 = vld [vmem:[%s5983_s1 + $0x54] sm:$0xf0] }
   0x7   :  { %1805 = vmatpush.bf16.msra.mxu3 %v2906_v12  ;;  %v2898_v25 = vor.u32 %v3772_v22, %v2897_v20  ;;  %v2761_v26 = vld [vmem:[%s5983_s1 + $0xd0] sm:$0xf]  ;;  %v3738_v27 = vld [vmem:[%s5983_s1 + $0xd4] sm:$0xf0]  ;;  %v2698_v29 = vor.u32 %v3722_v24, %v2697_v23  ;;  %v2689_v35 = vld [vmem:[%s5983_s1 + $0x40] sm:$0xf] }
   0x8   :  { %v2825_v28 = vld [vmem:[%s5983_s1 + $0x150] sm:$0xf]  ;;  %1749 = vmatpush.bf16.msra.mxu0 %v2706_v16  ;;  %v3754_v30 = vld [vmem:[%s5983_s1 + $0x154] sm:$0xf0]  ;;  %v2762_v33 = vor.u32 %v3738_v27, %v2761_v26  ;;  %v3720_v36 = vld [vmem:[%s5983_s1 + $0x44] sm:$0xf0] }
   0x9   :  { %v2889_v31 = vld [vmem:[%s5983_s1 + $0x1d0] sm:$0xf]  ;;  %v3770_v32 = vld [vmem:[%s5983_s1 + $0x1d4] sm:$0xf0]  ;;  %1768 = vmatpush.bf16.msra.mxu1 %v2770_v17  ;;  %v2826_v34 = vor.u32 %v3754_v30, %v2825_v28  ;;  %v2753_v37 = vld [vmem:[%s5983_s1 + $0xc0] sm:$0xf]  ;;  %v2690_v44 = vor.u32 %v3720_v36, %v2689_v35 }
   0xa   :  { %1787 = vmatpush.bf16.msra.mxu2 %v2834_v21  ;;  %v2890_v38 = vor.u32 %v3770_v32, %v2889_v31  ;;  %v3736_v39 = vld [vmem:[%s5983_s1 + $0xc4] sm:$0xf0]  ;;  %v2817_v40 = vld [vmem:[%s5983_s1 + $0x140] sm:$0xf]  ;;  %v2681_v47 = vld [vmem:[%s5983_s1 + $0x30] sm:$0xf] }
   0xb   :  { %1806 = vmatpush.bf16.msra.mxu3 %v2898_v25  ;;  %v3752_v41 = vld [vmem:[%s5983_s1 + $0x144] sm:$0xf0]  ;;  %v2881_v42 = vld [vmem:[%s5983_s1 + $0x1c0] sm:$0xf]  ;;  %v2754_v45 = vor.u32 %v3736_v39, %v2753_v37  ;;  %v3718_v48 = vld [vmem:[%s5983_s1 + $0x34] sm:$0xf0] }
   0xc   :  { %v3768_v43 = vld [vmem:[%s5983_s1 + $0x1c4] sm:$0xf0]  ;;  %1750 = vmatpush.bf16.msra.mxu0 %v2698_v29  ;;  %v2818_v46 = vor.u32 %v3752_v41, %v2817_v40  ;;  %v2745_v49 = vld [vmem:[%s5983_s1 + $0xb0] sm:$0xf]  ;;  %v3734_v51 = vld [vmem:[%s5983_s1 + $0xb4] sm:$0xf0]  ;;  %v2682_v56 = vor.u32 %v3718_v48, %v2681_v47 }
   0xd   :  { %1769 = vmatpush.bf16.msra.mxu1 %v2762_v33  ;;  %v2882_v50 = vor.u32 %v3768_v43, %v2881_v42  ;;  %v2809_v52 = vld [vmem:[%s5983_s1 + $0x130] sm:$0xf]  ;;  %v3750_v53 = vld [vmem:[%s5983_s1 + $0x134] sm:$0xf0]  ;;  %v2746_v57 = vor.u32 %v3734_v51, %v2745_v49  ;;  %v2673_v59 = vld [vmem:[%s5983_s1 + $0x20] sm:$0xf] }
   0xe   :  { %1788 = vmatpush.bf16.msra.mxu2 %v2826_v34  ;;  %v2873_v54 = vld [vmem:[%s5983_s1 + $0x1b0] sm:$0xf]  ;;  %v3766_v55 = vld [vmem:[%s5983_s1 + $0x1b4] sm:$0xf0]  ;;  %v2810_v58 = vor.u32 %v3750_v53, %v2809_v52  ;;  %v3716_v60 = vld [vmem:[%s5983_s1 + $0x24] sm:$0xf0] }
   0xf   :  { %1807 = vmatpush.bf16.msra.mxu3 %v2890_v38  ;;  %v2737_v61 = vld [vmem:[%s5983_s1 + $0xa0] sm:$0xf]  ;;  %v2874_v62 = vor.u32 %v3766_v55, %v2873_v54  ;;  %v3732_v63 = vld [vmem:[%s5983_s1 + $0xa4] sm:$0xf0]  ;;  %v2674_v4 = vor.u32 %v3716_v60, %v2673_v59  ;;  %v2665_v7 = vld [vmem:[%s5983_s1 + $0x10] sm:$0xf] }
  0x10   :  { %1751 = vmatpush.bf16.msra.mxu0 %v2690_v44  ;;  %v2801_v0 = vld [vmem:[%s5983_s1 + $0x120] sm:$0xf]  ;;  %v3748_v1 = vld [vmem:[%s5983_s1 + $0x124] sm:$0xf0]  ;;  %v2738_v5 = vor.u32 %v3732_v63, %v2737_v61  ;;  %v3714_v8 = vld [vmem:[%s5983_s1 + $0x14] sm:$0xf0] }
  0x11   :  { %1770 = vmatpush.bf16.msra.mxu1 %v2754_v45  ;;  %v2865_v2 = vld [vmem:[%s5983_s1 + $0x1a0] sm:$0xf]  ;;  %v3764_v3 = vld [vmem:[%s5983_s1 + $0x1a4] sm:$0xf0]  ;;  %v2802_v6 = vor.u32 %v3748_v1, %v2801_v0  ;;  %v2729_v9 = vld [vmem:[%s5983_s1 + $0x90] sm:$0xf]  ;;  %v2666_v17 = vor.u32 %v3714_v8, %v2665_v7 }
  0x12   :  { %1789 = vmatpush.bf16.msra.mxu2 %v2818_v46  ;;  %v2866_v10 = vor.u32 %v3764_v3, %v2865_v2  ;;  %v3730_v11 = vld [vmem:[%s5983_s1 + $0x94] sm:$0xf0]  ;;  %v2793_v12 = vld [vmem:[%s5983_s1 + $0x110] sm:$0xf]  ;;  %v2657_v16 = vld [vmem:[%s5983_s1] sm:$0xf] }
  0x13   :  { %1808 = vmatpush.bf16.msra.mxu3 %v2882_v50  ;;  %v3746_v13 = vld [vmem:[%s5983_s1 + $0x114] sm:$0xf0]  ;;  %v2857_v14 = vld [vmem:[%s5983_s1 + $0x190] sm:$0xf]  ;;  %v3712_v18 = vld [vmem:[%s5983_s1 + $0x4] sm:$0xf0]  ;;  %v2730_v21 = vor.u32 %v3730_v11, %v2729_v9 }
  0x14   :  { %1752 = vmatpush.bf16.msra.mxu0 %v2682_v56  ;;  %v3762_v15 = vld [vmem:[%s5983_s1 + $0x194] sm:$0xf0]  ;;  %v2721_v19 = vld [vmem:[%s5983_s1 + $0x80] sm:$0xf]  ;;  %v3728_v20 = vld [vmem:[%s5983_s1 + $0x84] sm:$0xf0]  ;;  %v2794_v22 = vor.u32 %v3746_v13, %v2793_v12  ;;  %v2658_v34 = vor.u32 %v3712_v18, %v2657_v16 }
  0x15   :  { %1771 = vmatpush.bf16.msra.mxu1 %v2746_v57  ;;  %v2785_v23 = vld [vmem:[%s5983_s1 + $0x100] sm:$0xf]  ;;  %v3744_v24 = vld [vmem:[%s5983_s1 + $0x104] sm:$0xf0]  ;;  %v2858_v26 = vor.u32 %v3762_v15, %v2857_v14  ;;  %v3679_v30 = vld [vmem:[%s5984_s0 + $0x4] sm:$0xf]  ;;  %v2722_v38 = vor.u32 %v3728_v20, %v2721_v19 }
  0x16   :  { %1790 = vmatpush.bf16.msra.mxu2 %v2810_v58  ;;  %v2849_v25 = vld [vmem:[%s5983_s1 + $0x180] sm:$0xf]  ;;  %v3760_v27 = vld [vmem:[%s5983_s1 + $0x184] sm:$0xf0]  ;;  %v2531_v31 = vld [vmem:[%s5984_s0 + $0x40] sm:$0xf0]  ;;  %v2786_v39 = vor.u32 %v3744_v24, %v2785_v23 }
  0x17   :  { %1809 = vmatpush.bf16.msra.mxu3 %v2874_v62  ;;  %v2529_v28 = vld [vmem:[%s5984_s0] sm:$0xf]  ;;  %v3097_v32 = vld [vmem:[%s5983_s1 + $0x370] sm:$0xf]  ;;  %v3822_v33 = vld [vmem:[%s5983_s1 + $0x374] sm:$0xf0]  ;;  %v2850_v43 = vor.u32 %v3760_v27, %v2849_v25  ;;  %v4249_v53 = vor.u32 %v3679_v30, %v2531_v31 }
  0x18   :  { %1753 = vmatpush.bf16.msra.mxu0 %v2674_v4  ;;  %v3687_v29 = vld [vmem:[%s5984_s0 + $0x3c] sm:$0xf0]  ;;  %v2537_v35 = vld [vmem:[%s5984_s0 + $0x8] sm:$0xf]  ;;  %v3033_v36 = vld [vmem:[%s5983_s1 + $0x2f0] sm:$0xf]  ;;  %v3098_v44 = vor.u32 %v3822_v33, %v3097_v32 }
  0x19   :  { %1772 = vmatpush.bf16.msra.mxu1 %v2738_v5  ;;  %v3806_v37 = vld [vmem:[%s5983_s1 + $0x2f4] sm:$0xf0]  ;;  %v3688_v40 = vld [vmem:[%s5984_s0 + $0x44] sm:$0xf0]  ;;  %v3680_v41 = vld [vmem:[%s5984_s0 + $0xc] sm:$0xf]  ;;  %v4238_v48 = vor.u32 %v3687_v29, %v2529_v28 }
  0x1a   :  { %1791 = vmatpush.bf16.msra.mxu2 %v2802_v6  ;;  %v2539_v42 = vld [vmem:[%s5984_s0 + $0x48] sm:$0xf0]  ;;  %v2969_v45 = vld [vmem:[%s5983_s1 + $0x270] sm:$0xf]  ;;  %v3790_v46 = vld [vmem:[%s5983_s1 + $0x274] sm:$0xf0]  ;;  %v3034_v49 = vor.u32 %v3806_v37, %v3033_v36  ;;  %v4251_v54 = vor.u32 %v3688_v40, %v2537_v35 }
  0x1b   :  { %1810 = vmatpush.bf16.msra.mxu3 %v2866_v10  ;;  %v3161_v47 = vld [vmem:[%s5983_s1 + $0x3f0] sm:$0xf]  ;;  %v3838_v50 = vld [vmem:[%s5983_s1 + $0x3f4] sm:$0xf0]  ;;  %v3089_v51 = vld [vmem:[%s5983_s1 + $0x360] sm:$0xf]  ;;  %v4259_v57 = vor.u32 %v3680_v41, %v2539_v42  ;;  %v2970_v58 = vor.u32 %v3790_v46, %v2969_v45 }
  0x1c   :  { %1754 = vmatpush.bf16.msra.mxu0 %v2666_v17  ;;  %v3820_v52 = vld [vmem:[%s5983_s1 + $0x364] sm:$0xf0]  ;;  %v3025_v55 = vld [vmem:[%s5983_s1 + $0x2e0] sm:$0xf]  ;;  %v3162_v59 = vor.u32 %v3838_v50, %v3161_v47  ;;  %v3081_v2 = vld [vmem:[%s5983_s1 + $0x350] sm:$0xf] }
  0x1d   :  { %1773 = vmatpush.bf16.msra.mxu1 %v2730_v21  ;;  %v3804_v56 = vld [vmem:[%s5983_s1 + $0x2e4] sm:$0xf0]  ;;  %v3090_v60 = vor.u32 %v3820_v52, %v3089_v51  ;;  %v2961_v61 = vld [vmem:[%s5983_s1 + $0x260] sm:$0xf]  ;;  %v3818_v3 = vld [vmem:[%s5983_s1 + $0x354] sm:$0xf0] }
  0x1e   :  { %1792 = vmatpush.bf16.msra.mxu2 %v2794_v22  ;;  %v3788_v62 = vld [vmem:[%s5983_s1 + $0x264] sm:$0xf0]  ;;  %v3153_v63 = vld [vmem:[%s5983_s1 + $0x3e0] sm:$0xf]  ;;  %v3026_v0 = vor.u32 %v3804_v56, %v3025_v55  ;;  %v3017_v4 = vld [vmem:[%s5983_s1 + $0x2d0] sm:$0xf]  ;;  %v3082_v8 = vor.u32 %v3818_v3, %v3081_v2 }
  0x1f   :  { %1811 = vmatpush.bf16.msra.mxu3 %v2858_v26  ;;  %v3836_v1 = vld [vmem:[%s5983_s1 + $0x3e4] sm:$0xf0]  ;;  %v3802_v5 = vld [vmem:[%s5983_s1 + $0x2d4] sm:$0xf0]  ;;  %v2962_v6 = vor.u32 %v3788_v62, %v2961_v61  ;;  %v2953_v9 = vld [vmem:[%s5983_s1 + $0x250] sm:$0xf] }
  0x20   :  { %1755 = vmatpush.bf16.msra.mxu0 %v2658_v34  ;;  %v3154_v7 = vor.u32 %v3836_v1, %v3153_v63  ;;  %v3786_v10 = vld [vmem:[%s5983_s1 + $0x254] sm:$0xf0]  ;;  %v3145_v11 = vld [vmem:[%s5983_s1 + $0x3d0] sm:$0xf]  ;;  %v3018_v12 = vor.u32 %v3802_v5, %v3017_v4  ;;  %v3073_v14 = vld [vmem:[%s5983_s1 + $0x340] sm:$0xf] }
  0x21   :  { %1774 = vmatpush.bf16.msra.mxu1 %v2722_v38  ;;  %v3834_v13 = vld [vmem:[%s5983_s1 + $0x3d4] sm:$0xf0]  ;;  %v3816_v15 = vld [vmem:[%s5983_s1 + $0x344] sm:$0xf0]  ;;  %v3009_v16 = vld [vmem:[%s5983_s1 + $0x2c0] sm:$0xf]  ;;  %v2954_v18 = vor.u32 %v3786_v10, %v2953_v9 }
  0x22   :  { %1793 = vmatpush.bf16.msra.mxu2 %v2786_v39  ;;  %v3800_v17 = vld [vmem:[%s5983_s1 + $0x2c4] sm:$0xf0]  ;;  %v2945_v19 = vld [vmem:[%s5983_s1 + $0x240] sm:$0xf]  ;;  %v3146_v22 = vor.u32 %v3834_v13, %v3145_v11  ;;  %v3074_v23 = vor.u32 %v3816_v15, %v3073_v14  ;;  %v3695_v28 = vld [vmem:[%s5984_s0 + $0x84] sm:$0xf] }
  0x23   :  { %1812 = vmatpush.bf16.msra.mxu3 %v2850_v43  ;;  %1756 = vmatmul.bf16.vlgmr.msra.gmra.mxu0 %v4238_v48  ;;  %v3784_v20 = vld [vmem:[%s5983_s1 + $0x244] sm:$0xf0]  ;;  %v3137_v21 = vld [vmem:[%s5983_s1 + $0x3c0] sm:$0xf]  ;;  %v3010_v27 = vor.u32 %v3800_v17, %v3009_v16  ;;  %v2595_v29 = vld [vmem:[%s5984_s0 + $0xc0] sm:$0xf0] }
  0x24   :  { %1775 = vmatmul.bf16.vlgmr.msra.gmra.mxu1 %v4249_v53  ;;  %1824 = vmatpush.bf16.msrb.mxu0 %v2970_v58  ;;  %v3832_v24 = vld [vmem:[%s5983_s1 + $0x3c4] sm:$0xf0]  ;;  %v2593_v25 = vld [vmem:[%s5984_s0 + $0x80] sm:$0xf]  ;;  %v3065_v30 = vld [vmem:[%s5983_s1 + $0x330] sm:$0xf]  ;;  %v2946_v35 = vor.u32 %v3784_v20, %v2945_v19  ;;  %v4381_v50 = vor.u32 %v3695_v28, %v2595_v29 }
  0x25   :  { %1843 = vmatpush.bf16.msrb.mxu1 %v3034_v49  ;;  %1794 = vmatmul.bf16.vlgmr.msra.gmra.mxu2 %v4251_v54  ;;  %v3703_v26 = vld [vmem:[%s5984_s0 + $0xbc] sm:$0xf0]  ;;  %v3814_v31 = vld [vmem:[%s5983_s1 + $0x334] sm:$0xf0]  ;;  %v2601_v32 = vld [vmem:[%s5984_s0 + $0x88] sm:$0xf]  ;;  %v3138_v39 = vor.u32 %v3832_v24, %v3137_v21 }
  0x26   :  { %1862 = vmatpush.bf16.msrb.mxu2 %v3098_v44  ;;  %1813 = vmatmul.bf16.vlgmr.msra.gmra.mxu3 %v4259_v57  ;;  %v3001_v33 = vld [vmem:[%s5983_s1 + $0x2b0] sm:$0xf]  ;;  %v3798_v34 = vld [vmem:[%s5983_s1 + $0x2b4] sm:$0xf0]  ;;  %v3704_v36 = vld [vmem:[%s5984_s0 + $0xc4] sm:$0xf0]  ;;  %v3066_v40 = vor.u32 %v3814_v31, %v3065_v30  ;;  %v4370_v44 = vor.u32 %v3703_v26, %v2593_v25 }
  0x27   :  { %1881 = vmatpush.bf16.msrb.mxu3 %v3162_v59  ;;  %v3696_v37 = vld [vmem:[%s5984_s0 + $0x8c] sm:$0xf]  ;;  %v2937_v41 = vld [vmem:[%s5983_s1 + $0x230] sm:$0xf]  ;;  %v3782_v42 = vld [vmem:[%s5983_s1 + $0x234] sm:$0xf0]  ;;  %v3002_v45 = vor.u32 %v3798_v34, %v3001_v33  ;;  %v4383_v51 = vor.u32 %v3704_v36, %v2601_v32 }
  0x28   :  { %1825 = vmatpush.bf16.msrb.mxu0 %v2962_v6  ;;  %v2603_v38 = vld [vmem:[%s5984_s0 + $0xc8] sm:$0xf0]  ;;  %v3129_v43 = vld [vmem:[%s5983_s1 + $0x3b0] sm:$0xf]  ;;  %v3830_v46 = vld [vmem:[%s5983_s1 + $0x3b4] sm:$0xf0]  ;;  %v2938_v58 = vor.u32 %v3782_v42, %v2937_v41 }
  0x29   :  { %1844 = vmatpush.bf16.msrb.mxu1 %v3026_v0  ;;  %v3057_v47 = vld [vmem:[%s5983_s1 + $0x320] sm:$0xf]  ;;  %v3812_v49 = vld [vmem:[%s5983_s1 + $0x324] sm:$0xf0]  ;;  %v4391_v56 = vor.u32 %v3696_v37, %v2603_v38  ;;  %v3130_v59 = vor.u32 %v3830_v46, %v3129_v43  ;;  %v3049_v2 = vld [vmem:[%s5983_s1 + $0x310] sm:$0xf] }
  0x2a   :  { %1863 = vmatpush.bf16.msrb.mxu2 %v3090_v60  ;;  %v2993_v52 = vld [vmem:[%s5983_s1 + $0x2a0] sm:$0xf]  ;;  %v3796_v55 = vld [vmem:[%s5983_s1 + $0x2a4] sm:$0xf0]  ;;  %v3058_v60 = vor.u32 %v3812_v49, %v3057_v47  ;;  %v3810_v3 = vld [vmem:[%s5983_s1 + $0x314] sm:$0xf0] }
  0x2b   :  { %1882 = vmatpush.bf16.msrb.mxu3 %v3154_v7  ;;  %v2929_v61 = vld [vmem:[%s5983_s1 + $0x220] sm:$0xf]  ;;  %v3780_v62 = vld [vmem:[%s5983_s1 + $0x224] sm:$0xf0]  ;;  %v2994_v0 = vor.u32 %v3796_v55, %v2993_v52  ;;  %v2985_v4 = vld [vmem:[%s5983_s1 + $0x290] sm:$0xf]  ;;  %v3050_v9 = vor.u32 %v3810_v3, %v3049_v2 }
  0x2c   :  { %1826 = vmatpush.bf16.msrb.mxu0 %v2954_v18  ;;  %v3121_v63 = vld [vmem:[%s5983_s1 + $0x3a0] sm:$0xf]  ;;  %v3828_v1 = vld [vmem:[%s5983_s1 + $0x3a4] sm:$0xf0]  ;;  %v3794_v5 = vld [vmem:[%s5983_s1 + $0x294] sm:$0xf0]  ;;  %v2930_v6 = vor.u32 %v3780_v62, %v2929_v61 }
  0x2d   :  { %1845 = vmatpush.bf16.msrb.mxu1 %v3018_v12  ;;  %v2921_v7 = vld [vmem:[%s5983_s1 + $0x210] sm:$0xf]  ;;  %v3778_v10 = vld [vmem:[%s5983_s1 + $0x214] sm:$0xf0]  ;;  %v2986_v13 = vor.u32 %v3794_v5, %v2985_v4  ;;  %v3041_v14 = vld [vmem:[%s5983_s1 + $0x300] sm:$0xf] }
  0x2e   :  { %1864 = vmatpush.bf16.msrb.mxu2 %v3082_v8  ;;  %v3122_v8 = vor.u32 %v3828_v1, %v3121_v63  ;;  %v3113_v11 = vld [vmem:[%s5983_s1 + $0x390] sm:$0xf]  ;;  %v3826_v12 = vld [vmem:[%s5983_s1 + $0x394] sm:$0xf0]  ;;  %v3808_v15 = vld [vmem:[%s5983_s1 + $0x304] sm:$0xf0]  ;;  %v2922_v20 = vor.u32 %v3778_v10, %v2921_v7 }
  0x2f   :  { %1883 = vmatpush.bf16.msrb.mxu3 %v3146_v22  ;;  %v2977_v16 = vld [vmem:[%s5983_s1 + $0x280] sm:$0xf]  ;;  %v3792_v17 = vld [vmem:[%s5983_s1 + $0x284] sm:$0xf0]  ;;  %v3353_v18 = vld [vmem:[%s5983_s1 + $0x570] sm:$0xf]  ;;  %v3114_v24 = vor.u32 %v3826_v12, %v3113_v11  ;;  %v3042_v25 = vor.u32 %v3808_v15, %v3041_v14 }
  0x30   :  { %1827 = vmatpush.bf16.msrb.mxu0 %v2946_v35  ;;  %v3886_v19 = vld [vmem:[%s5983_s1 + $0x574] sm:$0xf0]  ;;  %v2913_v21 = vld [vmem:[%s5983_s1 + $0x200] sm:$0xf]  ;;  %v3289_v22 = vld [vmem:[%s5983_s1 + $0x4f0] sm:$0xf]  ;;  %v2978_v29 = vor.u32 %v3792_v17, %v2977_v16 }
  0x31   :  { %1846 = vmatpush.bf16.msrb.mxu1 %v3010_v27  ;;  %v3776_v26 = vld [vmem:[%s5983_s1 + $0x204] sm:$0xf0]  ;;  %v3105_v27 = vld [vmem:[%s5983_s1 + $0x380] sm:$0xf]  ;;  %v2545_v30 = vld [vmem:[%s5984_s0 + $0x10] sm:$0xf]  ;;  %v3354_v34 = vor.u32 %v3886_v19, %v3353_v18 }
  0x32   :  { %1865 = vmatpush.bf16.msrb.mxu2 %v3074_v23  ;;  %v3870_v23 = vld [vmem:[%s5983_s1 + $0x4f4] sm:$0xf0]  ;;  %v3824_v28 = vld [vmem:[%s5983_s1 + $0x384] sm:$0xf0]  ;;  %v3689_v31 = vld [vmem:[%s5984_s0 + $0x4c] sm:$0xf0]  ;;  %v2914_v42 = vor.u32 %v3776_v26, %v2913_v21 }
  0x33   :  { %1884 = vmatpush.bf16.msrb.mxu3 %v3138_v39  ;;  %1761 = vmatmul.bf16.gmra.mxu0 %v4370_v44  ;;  %v3681_v32 = vld [vmem:[%s5984_s0 + $0x14] sm:$0xf]  ;;  %v3225_v35 = vld [vmem:[%s5983_s1 + $0x470] sm:$0xf]  ;;  %v3854_v36 = vld [vmem:[%s5983_s1 + $0x474] sm:$0xf0]  ;;  %v3290_v38 = vor.u32 %v3870_v23, %v3289_v22  ;;  %v3106_v47 = vor.u32 %v3824_v28, %v3105_v27 }
  0x34   :  { %1780 = vmatmul.bf16.gmra.mxu1 %v4381_v50  ;;  %1828 = vmatpush.bf16.msrb.mxu0 %v2938_v58  ;;  %v2547_v33 = vld [vmem:[%s5984_s0 + $0x50] sm:$0xf0]  ;;  %v3417_v37 = vld [vmem:[%s5983_s1 + $0x5f0] sm:$0xf]  ;;  %v3902_v39 = vld [vmem:[%s5983_s1 + $0x5f4] sm:$0xf0]  ;;  %v3226_v52 = vor.u32 %v3854_v36, %v3225_v35 }
  0x35   :  { %1847 = vmatpush.bf16.msrb.mxu1 %v3002_v45  ;;  %1799 = vmatmul.bf16.gmra.mxu2 %v4383_v51  ;;  %v3884_v41 = vld [vmem:[%s5983_s1 + $0x564] sm:$0xf0]  ;;  %v2553_v43 = vld [vmem:[%s5984_s0 + $0x18] sm:$0xf]  ;;  %v3682_v46 = vld [vmem:[%s5984_s0 + $0x1c] sm:$0xf]  ;;  %v4528_v1 = vor.u32 %v3681_v32, %v2547_v33 }
  0x36   :  { %1866 = vmatpush.bf16.msrb.mxu2 %v3066_v40  ;;  %1818 = vmatmul.bf16.gmra.mxu3 %v4391_v56  ;;  %v3345_v40 = vld [vmem:[%s5983_s1 + $0x560] sm:$0xf]  ;;  %v3690_v45 = vld [vmem:[%s5984_s0 + $0x54] sm:$0xf0]  ;;  %v2555_v49 = vld [vmem:[%s5984_s0 + $0x58] sm:$0xf0] }
  0x37   :  { %1885 = vmatpush.bf16.msrb.mxu3 %v3130_v59  ;;  %v3217_v55 = vld [vmem:[%s5983_s1 + $0x460] sm:$0xf]  ;;  %v3852_v58 = vld [vmem:[%s5983_s1 + $0x464] sm:$0xf0]  ;;  %v3418_v59 = vor.u32 %v3902_v39, %v3417_v37  ;;  %v3337_v3 = vld [vmem:[%s5983_s1 + $0x550] sm:$0xf]  ;;  %v4539_v5 = vor.u32 %v3690_v45, %v2553_v43 }
  0x38   :  { %1829 = vmatpush.bf16.msrb.mxu0 %v2930_v6  ;;  %v3281_v61 = vld [vmem:[%s5983_s1 + $0x4e0] sm:$0xf]  ;;  %v3868_v62 = vld [vmem:[%s5983_s1 + $0x4e4] sm:$0xf0]  ;;  %v3882_v4 = vld [vmem:[%s5983_s1 + $0x554] sm:$0xf0]  ;;  %v4541_v6 = vor.u32 %v3682_v46, %v2555_v49  ;;  %v3218_v7 = vor.u32 %v3852_v58, %v3217_v55 }
  0x39   :  { %1848 = vmatpush.bf16.msrb.mxu1 %v2994_v0  ;;  %v3409_v63 = vld [vmem:[%s5983_s1 + $0x5e0] sm:$0xf]  ;;  %v4526_v0 = vor.u32 %v3689_v31, %v2545_v30  ;;  %v3900_v2 = vld [vmem:[%s5983_s1 + $0x5e4] sm:$0xf0]  ;;  %v3850_v10 = vld [vmem:[%s5983_s1 + $0x454] sm:$0xf0]  ;;  %v3338_v12 = vor.u32 %v3882_v4, %v3337_v3 }
  0x3a   :  { %1867 = vmatpush.bf16.msrb.mxu2 %v3058_v60  ;;  %v3346_v60 = vor.u32 %v3884_v41, %v3345_v40  ;;  %v3410_v11 = vor.u32 %v3900_v2, %v3409_v63  ;;  %v3866_v14 = vld [vmem:[%s5983_s1 + $0x4d4] sm:$0xf0]  ;;  %v3401_v15 = vld [vmem:[%s5983_s1 + $0x5d0] sm:$0xf]  ;;  %v3329_v17 = vld [vmem:[%s5983_s1 + $0x540] sm:$0xf] }
  0x3b   :  { %1886 = vmatpush.bf16.msrb.mxu3 %v3122_v8  ;;  %v3282_v8 = vor.u32 %v3868_v62, %v3281_v61  ;;  %v3898_v16 = vld [vmem:[%s5983_s1 + $0x5d4] sm:$0xf0]  ;;  %v3880_v18 = vld [vmem:[%s5983_s1 + $0x544] sm:$0xf0]  ;;  %v3201_v21 = vld [vmem:[%s5983_s1 + $0x440] sm:$0xf] }
  0x3c   :  { %1830 = vmatpush.bf16.msrb.mxu0 %v2922_v20  ;;  %v3848_v22 = vld [vmem:[%s5983_s1 + $0x444] sm:$0xf0]  ;;  %v3402_v23 = vor.u32 %v3898_v16, %v3401_v15  ;;  %v3393_v27 = vld [vmem:[%s5983_s1 + $0x5c0] sm:$0xf]  ;;  %v3878_v30 = vld [vmem:[%s5983_s1 + $0x534] sm:$0xf0] }
  0x3d   :  { %1849 = vmatpush.bf16.msrb.mxu1 %v2986_v13  ;;  %v3273_v13 = vld [vmem:[%s5983_s1 + $0x4d0] sm:$0xf]  ;;  %v3864_v26 = vld [vmem:[%s5983_s1 + $0x4c4] sm:$0xf0]  ;;  %v3202_v31 = vor.u32 %v3848_v22, %v3201_v21  ;;  %v2611_v39 = vld [vmem:[%s5984_s0 + $0xd0] sm:$0xf0] }
  0x3e   :  { %1868 = vmatpush.bf16.msrb.mxu2 %v3050_v9  ;;  %v3209_v9 = vld [vmem:[%s5983_s1 + $0x450] sm:$0xf]  ;;  %v3274_v20 = vor.u32 %v3866_v14, %v3273_v13  ;;  %v3896_v28 = vld [vmem:[%s5983_s1 + $0x5c4] sm:$0xf0]  ;;  %v3894_v45 = vld [vmem:[%s5983_s1 + $0x5b4] sm:$0xf0] }
  0x3f   :  { %1887 = vmatpush.bf16.msrb.mxu3 %v3114_v24  ;;  %v3210_v19 = vor.u32 %v3850_v10, %v3209_v9  ;;  %v3330_v24 = vor.u32 %v3880_v18, %v3329_v17  ;;  %v3193_v33 = vld [vmem:[%s5983_s1 + $0x430] sm:$0xf]  ;;  %v3394_v35 = vor.u32 %v3896_v28, %v3393_v27  ;;  %v3313_v46 = vld [vmem:[%s5983_s1 + $0x520] sm:$0xf]  ;;  %v2617_v49 = vld [vmem:[%s5984_s0 + $0x98] sm:$0xf] }
  0x40   :  { %1831 = vmatpush.bf16.msrb.mxu0 %v2914_v42  ;;  %v2609_v36 = vld [vmem:[%s5984_s0 + $0x90] sm:$0xf]  ;;  %v3862_v42 = vld [vmem:[%s5983_s1 + $0x4b4] sm:$0xf0]  ;;  %v3698_v55 = vld [vmem:[%s5984_s0 + $0x9c] sm:$0xf] }
  0x41   :  { %1850 = vmatpush.bf16.msrb.mxu1 %v2978_v29  ;;  %v3321_v29 = vld [vmem:[%s5983_s1 + $0x530] sm:$0xf]  ;;  %v2619_v58 = vld [vmem:[%s5984_s0 + $0xd8] sm:$0xf0]  ;;  %v3185_v61 = vld [vmem:[%s5983_s1 + $0x420] sm:$0xf] }
  0x42   :  { %1869 = vmatpush.bf16.msrb.mxu2 %v3042_v25  ;;  %v3265_v25 = vld [vmem:[%s5983_s1 + $0x4c0] sm:$0xf]  ;;  %v3705_v37 = vld [vmem:[%s5984_s0 + $0xcc] sm:$0xf0]  ;;  %v3322_v40 = vor.u32 %v3878_v30, %v3321_v29  ;;  %v3844_v62 = vld [vmem:[%s5983_s1 + $0x424] sm:$0xf0]  ;;  %v4673_v14 = vor.u32 %v3698_v55, %v2619_v58 }
  0x43   :  { %1888 = vmatpush.bf16.msrb.mxu3 %v3106_v47  ;;  %1832 = vmatmul.bf16.vlgmr.msrb.gmra.mxu0 %v4526_v0  ;;  %v3266_v32 = vor.u32 %v3864_v26, %v3265_v25  ;;  %v3257_v41 = vld [vmem:[%s5983_s1 + $0x4b0] sm:$0xf]  ;;  %v3876_v47 = vld [vmem:[%s5983_s1 + $0x524] sm:$0xf0]  ;;  %v3249_v3 = vld [vmem:[%s5983_s1 + $0x4a0] sm:$0xf]  ;;  %v3186_v15 = vor.u32 %v3844_v62, %v3185_v61 }
  0x44   :  { %1900 = vmatpush.bf16.msra.mxu0 %v3226_v52  ;;  %1851 = vmatmul.bf16.vlgmr.msrb.gmra.mxu1 %v4528_v1  ;;  %v3385_v43 = vld [vmem:[%s5983_s1 + $0x5b0] sm:$0xf]  ;;  %v3706_v52 = vld [vmem:[%s5984_s0 + $0xd4] sm:$0xf0]  ;;  %v3314_v2 = vor.u32 %v3876_v47, %v3313_v46  ;;  %v3860_v4 = vld [vmem:[%s5983_s1 + $0x4a4] sm:$0xf0] }
  0x45   :  { %1919 = vmatpush.bf16.msra.mxu1 %v3290_v38  ;;  %1870 = vmatmul.bf16.vlgmr.msrb.gmra.mxu2 %v4539_v5  ;;  %v3697_v38 = vld [vmem:[%s5984_s0 + $0x94] sm:$0xf]  ;;  %v3386_v63 = vor.u32 %v3894_v45, %v3385_v43  ;;  %v3892_v10 = vld [vmem:[%s5983_s1 + $0x5a4] sm:$0xf0]  ;;  %v4671_v13 = vor.u32 %v3706_v52, %v2617_v49  ;;  %v3250_v16 = vor.u32 %v3860_v4, %v3249_v3  ;;  %v3177_v17 = vld [vmem:[%s5983_s1 + $0x410] sm:$0xf] }
  0x46   :  { %1938 = vmatpush.bf16.msra.mxu2 %v3354_v34  ;;  %1889 = vmatmul.bf16.vlgmr.msrb.gmra.mxu3 %v4541_v6  ;;  %v3846_v34 = vld [vmem:[%s5983_s1 + $0x434] sm:$0xf0]  ;;  %v4660_v9 = vor.u32 %v3697_v38, %v2611_v39  ;;  %v3241_v21 = vld [vmem:[%s5983_s1 + $0x490] sm:$0xf]  ;;  %v3297_v25 = vld [vmem:[%s5983_s1 + $0x500] sm:$0xf] }
  0x47   :  { %1957 = vmatpush.bf16.msra.mxu3 %v3418_v59  ;;  %v3194_v59 = vor.u32 %v3846_v34, %v3193_v33  ;;  %v3842_v18 = vld [vmem:[%s5983_s1 + $0x414] sm:$0xf0]  ;;  %v3872_v26 = vld [vmem:[%s5983_s1 + $0x504] sm:$0xf0]  ;;  %v3609_v27 = vld [vmem:[%s5983_s1 + $0x770] sm:$0xf] }
  0x48   :  { %1901 = vmatpush.bf16.msra.mxu0 %v3218_v7  ;;  %v3377_v7 = vld [vmem:[%s5983_s1 + $0x5a0] sm:$0xf]  ;;  %v3858_v22 = vld [vmem:[%s5983_s1 + $0x494] sm:$0xf0]  ;;  %v3178_v29 = vor.u32 %v3842_v18, %v3177_v17  ;;  %v3888_v38 = vld [vmem:[%s5983_s1 + $0x584] sm:$0xf0] }
  0x49   :  { %1920 = vmatpush.bf16.msra.mxu1 %v3282_v8  ;;  %v4658_v8 = vor.u32 %v3705_v37, %v2609_v36  ;;  %v3950_v28 = vld [vmem:[%s5983_s1 + $0x774] sm:$0xf0]  ;;  %v3242_v30 = vor.u32 %v3858_v22, %v3241_v21  ;;  %v3233_v33 = vld [vmem:[%s5983_s1 + $0x480] sm:$0xf]  ;;  %v3856_v36 = vld [vmem:[%s5983_s1 + $0x484] sm:$0xf0] }
  0x4a   :  { %1939 = vmatpush.bf16.msra.mxu2 %v3346_v60  ;;  %v3258_v60 = vor.u32 %v3862_v42, %v3257_v41  ;;  %v3361_v37 = vld [vmem:[%s5983_s1 + $0x580] sm:$0xf]  ;;  %v3610_v39 = vor.u32 %v3950_v28, %v3609_v27  ;;  %v3918_v41 = vld [vmem:[%s5983_s1 + $0x674] sm:$0xf0]  ;;  %v3545_v42 = vld [vmem:[%s5983_s1 + $0x6f0] sm:$0xf]  ;;  %v3234_v49 = vor.u32 %v3856_v36, %v3233_v33 }
  0x4b   :  { %1958 = vmatpush.bf16.msra.mxu3 %v3410_v11  ;;  %v3305_v11 = vld [vmem:[%s5983_s1 + $0x510] sm:$0xf]  ;;  %v3934_v43 = vld [vmem:[%s5983_s1 + $0x6f4] sm:$0xf0]  ;;  %v3601_v52 = vld [vmem:[%s5983_s1 + $0x760] sm:$0xf]  ;;  %v3362_v58 = vor.u32 %v3888_v38, %v3361_v37 }
  0x4c   :  { %1902 = vmatpush.bf16.msra.mxu0 %v3210_v19  ;;  %v3378_v19 = vor.u32 %v3892_v10, %v3377_v7  ;;  %v3673_v45 = vld [vmem:[%s5983_s1 + $0x7f0] sm:$0xf]  ;;  %v3966_v46 = vld [vmem:[%s5983_s1 + $0x7f4] sm:$0xf0]  ;;  %v3948_v55 = vld [vmem:[%s5983_s1 + $0x764] sm:$0xf0] }
  0x4d   :  { %1921 = vmatpush.bf16.msra.mxu1 %v3274_v20  ;;  %v3683_v61 = vld [vmem:[%s5984_s0 + $0x24] sm:$0xf]  ;;  %v3674_v3 = vor.u32 %v3966_v46, %v3673_v45  ;;  %v3473_v4 = vld [vmem:[%s5983_s1 + $0x660] sm:$0xf]  ;;  %v3916_v7 = vld [vmem:[%s5983_s1 + $0x664] sm:$0xf0] }
  0x4e   :  { %1940 = vmatpush.bf16.msra.mxu2 %v3338_v12  ;;  %v3874_v12 = vld [vmem:[%s5983_s1 + $0x514] sm:$0xf0]  ;;  %v2569_v10 = vld [vmem:[%s5984_s0 + $0x28] sm:$0xf]  ;;  %v3537_v17 = vld [vmem:[%s5983_s1 + $0x6e0] sm:$0xf] }
  0x4f   :  { %1959 = vmatpush.bf16.msra.mxu3 %v3402_v23  ;;  %v3306_v20 = vor.u32 %v3874_v12, %v3305_v11  ;;  %v3369_v23 = vld [vmem:[%s5983_s1 + $0x590] sm:$0xf]  ;;  %v3692_v11 = vld [vmem:[%s5984_s0 + $0x64] sm:$0xf0]  ;;  %v3684_v12 = vld [vmem:[%s5984_s0 + $0x2c] sm:$0xf] }
  0x50   :  { %1903 = vmatpush.bf16.msra.mxu0 %v3202_v31  ;;  %v3169_v31 = vld [vmem:[%s5983_s1 + $0x400] sm:$0xf]  ;;  %v3932_v18 = vld [vmem:[%s5983_s1 + $0x6e4] sm:$0xf0]  ;;  %v3593_v22 = vld [vmem:[%s5983_s1 + $0x750] sm:$0xf]  ;;  %v4809_v28 = vor.u32 %v3692_v11, %v2569_v10 }
  0x51   :  { %1922 = vmatpush.bf16.msra.mxu1 %v3266_v32  ;;  %v3840_v32 = vld [vmem:[%s5983_s1 + $0x404] sm:$0xf0]  ;;  %v3914_v27 = vld [vmem:[%s5983_s1 + $0x654] sm:$0xf0]  ;;  %v3657_v36 = vld [vmem:[%s5983_s1 + $0x7d0] sm:$0xf] }
  0x52   :  { %1941 = vmatpush.bf16.msra.mxu2 %v3330_v24  ;;  %v3890_v24 = vld [vmem:[%s5983_s1 + $0x594] sm:$0xf0]  ;;  %v3170_v47 = vor.u32 %v3840_v32, %v3169_v31  ;;  %v3964_v21 = vld [vmem:[%s5983_s1 + $0x7e4] sm:$0xf0]  ;;  %v3529_v32 = vld [vmem:[%s5983_s1 + $0x6d0] sm:$0xf] }
  0x53   :  { %1960 = vmatpush.bf16.msra.mxu3 %v3394_v35  ;;  %1837 = vmatmul.bf16.gmra.mxu0 %v4658_v8  ;;  %v3370_v34 = vor.u32 %v3890_v24, %v3369_v23  ;;  %v3298_v35 = vor.u32 %v3872_v26, %v3297_v25  ;;  %v3946_v25 = vld [vmem:[%s5983_s1 + $0x754] sm:$0xf0]  ;;  %v3465_v26 = vld [vmem:[%s5983_s1 + $0x650] sm:$0xf]  ;;  %v3585_v38 = vld [vmem:[%s5983_s1 + $0x740] sm:$0xf] }
  0x54   :  { %1904 = vmatpush.bf16.msra.mxu0 %v3194_v59  ;;  %1856 = vmatmul.bf16.gmra.mxu1 %v4660_v9  ;;  %v2561_v59 = vld [vmem:[%s5984_s0 + $0x20] sm:$0xf]  ;;  %v3930_v33 = vld [vmem:[%s5983_s1 + $0x6d4] sm:$0xf0]  ;;  %v3928_v46 = vld [vmem:[%s5983_s1 + $0x6c4] sm:$0xf0] }
  0x55   :  { %1923 = vmatpush.bf16.msra.mxu1 %v3258_v60  ;;  %1875 = vmatmul.bf16.gmra.mxu2 %v4671_v13  ;;  %v3691_v60 = vld [vmem:[%s5984_s0 + $0x5c] sm:$0xf0]  ;;  %v3962_v37 = vld [vmem:[%s5983_s1 + $0x7d4] sm:$0xf0]  ;;  %v3699_v10 = vld [vmem:[%s5984_s0 + $0xa4] sm:$0xf] }
  0x56   :  { %1942 = vmatpush.bf16.msra.mxu2 %v3322_v40  ;;  %1894 = vmatmul.bf16.gmra.mxu3 %v4673_v14  ;;  %v3481_v40 = vld [vmem:[%s5983_s1 + $0x670] sm:$0xf]  ;;  %v4796_v23 = vor.u32 %v3691_v60, %v2561_v59  ;;  %v3521_v45 = vld [vmem:[%s5983_s1 + $0x6c0] sm:$0xf]  ;;  %v3942_v59 = vld [vmem:[%s5983_s1 + $0x734] sm:$0xf0] }
  0x57   :  { %1961 = vmatpush.bf16.msra.mxu3 %v3386_v63  ;;  %v3482_v62 = vor.u32 %v3918_v41, %v3481_v40  ;;  %v2563_v63 = vld [vmem:[%s5984_s0 + $0x60] sm:$0xf0]  ;;  %v3457_v40 = vld [vmem:[%s5983_s1 + $0x640] sm:$0xf]  ;;  %v3912_v41 = vld [vmem:[%s5983_s1 + $0x644] sm:$0xf0] }
  0x58   :  { %1905 = vmatpush.bf16.msra.mxu0 %v3186_v15  ;;  %v3602_v15 = vor.u32 %v3948_v55, %v3601_v52  ;;  %v4798_v24 = vor.u32 %v3683_v61, %v2563_v63  ;;  %v3649_v52 = vld [vmem:[%s5983_s1 + $0x7c0] sm:$0xf]  ;;  %v3960_v55 = vld [vmem:[%s5983_s1 + $0x7c4] sm:$0xf0]  ;;  %v3449_v60 = vld [vmem:[%s5983_s1 + $0x630] sm:$0xf] }
  0x59   :  { %1924 = vmatpush.bf16.msra.mxu1 %v3250_v16  ;;  %v2571_v16 = vld [vmem:[%s5984_s0 + $0x68] sm:$0xf0]  ;;  %v3910_v61 = vld [vmem:[%s5983_s1 + $0x634] sm:$0xf0]  ;;  %v3650_v63 = vor.u32 %v3960_v55, %v3649_v52  ;;  %v2627_v11 = vld [vmem:[%s5984_s0 + $0xe0] sm:$0xf0] }
  0x5a   :  { %1943 = vmatpush.bf16.msra.mxu2 %v3314_v2  ;;  %v3546_v2 = vor.u32 %v3934_v43, %v3545_v42  ;;  %v3530_v42 = vor.u32 %v3930_v33, %v3529_v32  ;;  %v3658_v43 = vor.u32 %v3962_v37, %v3657_v36  ;;  %v3505_v32 = vld [vmem:[%s5983_s1 + $0x6a0] sm:$0xf]  ;;  %v3924_v33 = vld [vmem:[%s5983_s1 + $0x6a4] sm:$0xf0]  ;;  %v3497_v52 = vld [vmem:[%s5983_s1 + $0x690] sm:$0xf] }
  0x5b   :  { %1962 = vmatpush.bf16.msra.mxu3 %v3378_v19  ;;  %v3474_v19 = vor.u32 %v3916_v7, %v3473_v4  ;;  %v2625_v4 = vld [vmem:[%s5984_s0 + $0xa0] sm:$0xf]  ;;  %v3956_v37 = vld [vmem:[%s5983_s1 + $0x7a4] sm:$0xf0]  ;;  %v3922_v55 = vld [vmem:[%s5983_s1 + $0x694] sm:$0xf0] }
  0x5c   :  { %1906 = vmatpush.bf16.msra.mxu0 %v3178_v29  ;;  %v4811_v29 = vor.u32 %v3684_v12, %v2571_v16  ;;  %v3707_v7 = vld [vmem:[%s5984_s0 + $0xdc] sm:$0xf0]  ;;  %v3641_v16 = vld [vmem:[%s5983_s1 + $0x7b0] sm:$0xf] }
  0x5d   :  { %1925 = vmatpush.bf16.msra.mxu1 %v3242_v30  ;;  %v3538_v30 = vor.u32 %v3932_v18, %v3537_v17  ;;  %v3958_v17 = vld [vmem:[%s5983_s1 + $0x7b4] sm:$0xf0]  ;;  %v3569_v18 = vld [vmem:[%s5983_s1 + $0x720] sm:$0xf] }
  0x5e   :  { %1944 = vmatpush.bf16.msra.mxu2 %v3306_v20  ;;  %v3665_v20 = vld [vmem:[%s5983_s1 + $0x7e0] sm:$0xf] }
  0x5f   :  { %1963 = vmatpush.bf16.msra.mxu3 %v3370_v34  ;;  %v3666_v31 = vor.u32 %v3964_v21, %v3665_v20  ;;  %v3594_v34 = vor.u32 %v3946_v25, %v3593_v22  ;;  %v3441_v20 = vld [vmem:[%s5983_s1 + $0x620] sm:$0xf]  ;;  %v3908_v21 = vld [vmem:[%s5983_s1 + $0x624] sm:$0xf0] }
  0x60   :  { %1907 = vmatpush.bf16.msra.mxu0 %v3170_v47  ;;  %v2633_v22 = vld [vmem:[%s5984_s0 + $0xa8] sm:$0xf]  ;;  %v3633_v36 = vld [vmem:[%s5983_s1 + $0x7a0] sm:$0xf] }
  0x61   :  { %1926 = vmatpush.bf16.msra.mxu1 %v3234_v49  ;;  %v3458_v49 = vor.u32 %v3912_v41, %v3457_v40  ;;  %v3708_v25 = vld [vmem:[%s5984_s0 + $0xe4] sm:$0xf0]  ;;  %v4930_v40 = vor.u32 %v3699_v10, %v2627_v11  ;;  %v3938_v41 = vld [vmem:[%s5983_s1 + $0x714] sm:$0xf0]  ;;  %v3725_v10 = vld [vmem:[%s5983_s1 + $0x74] sm:$0xf] }
  0x62   :  { %1945 = vmatpush.bf16.msra.mxu2 %v3298_v35  ;;  %v3466_v35 = vor.u32 %v3914_v27, %v3465_v26  ;;  %v3700_v26 = vld [vmem:[%s5984_s0 + $0xac] sm:$0xf]  ;;  %v2715_v11 = vld [vmem:[%s5983_s1 + $0x78] sm:$0xf0] }
  0x63   :  { %1964 = vmatpush.bf16.msra.mxu3 %v3362_v58  ;;  %1908 = vmatmul.bf16.vlgmr.msra.gmra.mxu0 %v4796_v23  ;;  %v3577_v58 = vld [vmem:[%s5983_s1 + $0x730] sm:$0xf]  ;;  %v2635_v27 = vld [vmem:[%s5984_s0 + $0xe8] sm:$0xf0] }
  0x64   :  { %1976 = vmatpush.bf16.msrb.mxu0 %v3482_v62  ;;  %1927 = vmatmul.bf16.vlgmr.msra.gmra.mxu1 %v4798_v24  ;;  %v3522_v62 = vor.u32 %v3928_v46, %v3521_v45  ;;  %v3578_v12 = vor.u32 %v3942_v59, %v3577_v58  ;;  %v4941_v45 = vor.u32 %v3708_v25, %v2633_v22  ;;  %v3625_v58 = vld [vmem:[%s5983_s1 + $0x790] sm:$0xf]  ;;  %v3741_v22 = vld [vmem:[%s5983_s1 + $0xf4] sm:$0xf]  ;;  %v2779_v25 = vld [vmem:[%s5983_s1 + $0xf8] sm:$0xf0] }
  0x65   :  { %1995 = vmatpush.bf16.msrb.mxu1 %v3546_v2  ;;  %1946 = vmatmul.bf16.vlgmr.msra.gmra.mxu2 %v4809_v28  ;;  %v3513_v2 = vld [vmem:[%s5983_s1 + $0x6b0] sm:$0xf]  ;;  %v4943_v46 = vor.u32 %v3700_v26, %v2635_v27  ;;  %v2718_v27 = vor.u32 %v3725_v10, %v2715_v11 }
  0x66   :  { %2014 = vmatpush.bf16.msrb.mxu2 %v3610_v39  ;;  %v3944_v39 = vld [vmem:[%s5983_s1 + $0x744] sm:$0xf0]  ;;  %1965 = vmatmul.bf16.vlgmr.msra.gmra.mxu3 %v4811_v29 }
  0x67   :  { %2033 = vmatpush.bf16.msrb.mxu3 %v3674_v3  ;;  %v3586_v47 = vor.u32 %v3944_v39, %v3585_v38  ;;  %v3926_v3 = vld [vmem:[%s5983_s1 + $0x6b4] sm:$0xf0]  ;;  %v3561_v38 = vld [vmem:[%s5983_s1 + $0x710] sm:$0xf]  ;;  %v4928_v39 = vor.u32 %v3707_v7, %v2625_v4  ;;  %v3757_v4 = vld [vmem:[%s5983_s1 + $0x174] sm:$0xf] }
  0x68   :  { %1977 = vmatpush.bf16.msrb.mxu0 %v3474_v19  ;;  %v3940_v19 = vld [vmem:[%s5983_s1 + $0x724] sm:$0xf0]  ;;  %v3562_v59 = vor.u32 %v3938_v41, %v3561_v38  ;;  %v2843_v7 = vld [vmem:[%s5983_s1 + $0x178] sm:$0xf0]  ;;  %v2577_v38 = vld [vmem:[%s5984_s0 + $0x30] sm:$0xf] }
  0x69   :  { %1996 = vmatpush.bf16.msrb.mxu1 %v3538_v30  ;;  %v3514_v30 = vor.u32 %v3926_v3, %v3513_v2  ;;  %v3425_v2 = vld [vmem:[%s5983_s1 + $0x600] sm:$0xf]  ;;  %v3904_v3 = vld [vmem:[%s5983_s1 + $0x604] sm:$0xf0]  ;;  %v2846_v26 = vor.u32 %v3757_v4, %v2843_v7  ;;  %v3693_v41 = vld [vmem:[%s5984_s0 + $0x6c] sm:$0xf0] }
  0x6a   :  { %2015 = vmatpush.bf16.msrb.mxu2 %v3602_v15  ;;  %v3450_v15 = vor.u32 %v3910_v61, %v3449_v60  ;;  %v3954_v61 = vld [vmem:[%s5983_s1 + $0x794] sm:$0xf0]  ;;  %v3753_v4 = vld [vmem:[%s5983_s1 + $0x154] sm:$0xf]  ;;  %v2827_v7 = vld [vmem:[%s5983_s1 + $0x158] sm:$0xf0] }
  0x6b   :  { %2034 = vmatpush.bf16.msrb.mxu3 %v3666_v31  ;;  %v3642_v31 = vor.u32 %v3958_v17, %v3641_v16  ;;  %v3489_v16 = vld [vmem:[%s5983_s1 + $0x680] sm:$0xf]  ;;  %v3920_v17 = vld [vmem:[%s5983_s1 + $0x684] sm:$0xf0] }
  0x6c   :  { %1978 = vmatpush.bf16.msrb.mxu0 %v3466_v35  ;;  %v3442_v35 = vor.u32 %v3908_v21, %v3441_v20  ;;  %v3426_v20 = vor.u32 %v3904_v3, %v3425_v2  ;;  %v3952_v21 = vld [vmem:[%s5983_s1 + $0x784] sm:$0xf0]  ;;  %v3686_v2 = vld [vmem:[%s5984_s0 + $0x3c] sm:$0xf] }
  0x6d   :  { %1997 = vmatpush.bf16.msrb.mxu1 %v3530_v42  ;;  %v3433_v42 = vld [vmem:[%s5983_s1 + $0x610] sm:$0xf]  ;;  %v2587_v3 = vld [vmem:[%s5984_s0 + $0x78] sm:$0xf0] }
  0x6e   :  { %2016 = vmatpush.bf16.msrb.mxu2 %v3594_v34  ;;  %v3570_v34 = vor.u32 %v3940_v19, %v3569_v18  ;;  %v3617_v18 = vld [vmem:[%s5983_s1 + $0x780] sm:$0xf] }
  0x6f   :  { %2035 = vmatpush.bf16.msrb.mxu3 %v3658_v43  ;;  %v3906_v43 = vld [vmem:[%s5983_s1 + $0x614] sm:$0xf0] }
  0x70   :  { %1979 = vmatpush.bf16.msrb.mxu0 %v3458_v49  ;;  %v3634_v49 = vor.u32 %v3956_v37, %v3633_v36  ;;  %v3434_v60 = vor.u32 %v3906_v43, %v3433_v42  ;;  %v3490_v36 = vor.u32 %v3920_v17, %v3489_v16  ;;  %v3618_v37 = vor.u32 %v3952_v21, %v3617_v18  ;;  %v3685_v42 = vld [vmem:[%s5984_s0 + $0x34] sm:$0xf]  ;;  %v2891_v21 = vld [vmem:[%s5983_s1 + $0x1d8] sm:$0xf0] }
  0x71   :  { %1998 = vmatpush.bf16.msrb.mxu1 %v3522_v62  ;;  %v3553_v62 = vld [vmem:[%s5983_s1 + $0x700] sm:$0xf]  ;;  %v2579_v43 = vld [vmem:[%s5984_s0 + $0x70] sm:$0xf0]  ;;  %v5072_v17 = vor.u32 %v3693_v41, %v2577_v38  ;;  %v3767_v38 = vld [vmem:[%s5983_s1 + $0x1c4] sm:$0xf] }
  0x72   :  { %2017 = vmatpush.bf16.msrb.mxu2 %v3586_v47  ;;  %v3506_v47 = vor.u32 %v3924_v33, %v3505_v32  ;;  %v3755_v32 = vld [vmem:[%s5983_s1 + $0x164] sm:$0xf]  ;;  %v2835_v33 = vld [vmem:[%s5983_s1 + $0x168] sm:$0xf0]  ;;  %v3737_v16 = vld [vmem:[%s5983_s1 + $0xd4] sm:$0xf]  ;;  %v5074_v18 = vor.u32 %v3685_v42, %v2579_v43 }
  0x73   :  { %2036 = vmatpush.bf16.msrb.mxu3 %v3650_v63  ;;  %v3936_v63 = vld [vmem:[%s5983_s1 + $0x704] sm:$0xf0]  ;;  %1913 = vmatmul.bf16.gmra.mxu0 %v4928_v39  ;;  %v2883_v41 = vld [vmem:[%s5983_s1 + $0x1c8] sm:$0xf0] }
  0x74   :  { %1980 = vmatpush.bf16.msrb.mxu0 %v3450_v15  ;;  %1932 = vmatmul.bf16.gmra.mxu1 %v4930_v40  ;;  %v3626_v15 = vor.u32 %v3954_v61, %v3625_v58  ;;  %v3554_v19 = vor.u32 %v3936_v63, %v3553_v62  ;;  %v2899_v61 = vld [vmem:[%s5983_s1 + $0x1e8] sm:$0xf0]  ;;  %v2585_v62 = vld [vmem:[%s5984_s0 + $0x38] sm:$0xf] }
  0x75   :  { %1999 = vmatpush.bf16.msrb.mxu1 %v3514_v30  ;;  %1951 = vmatmul.bf16.gmra.mxu2 %v4941_v45  ;;  %v3773_v30 = vld [vmem:[%s5983_s1 + $0x1f4] sm:$0xf]  ;;  %v3694_v63 = vld [vmem:[%s5984_s0 + $0x74] sm:$0xf0] }
  0x76   :  { %2018 = vmatpush.bf16.msrb.mxu2 %v3578_v12  ;;  %1970 = vmatmul.bf16.gmra.mxu3 %v4943_v46  ;;  %v3498_v12 = vor.u32 %v3922_v55, %v3497_v52  ;;  %v3739_v52 = vld [vmem:[%s5983_s1 + $0xe4] sm:$0xf]  ;;  %v2838_v55 = vor.u32 %v3755_v32, %v2835_v33 }
  0x77   :  { %2037 = vmatpush.bf16.msrb.mxu3 %v3642_v31  ;;  %v2907_v31 = vld [vmem:[%s5983_s1 + $0x1f8] sm:$0xf0] }
  0x78   :  { %1981 = vmatpush.bf16.msrb.mxu0 %v3442_v35  ;;  %v2707_v35 = vld [vmem:[%s5983_s1 + $0x68] sm:$0xf0] }
  0x79   :  { %2000 = vmatpush.bf16.msrb.mxu1 %v3506_v47  ;;  %v2782_v47 = vor.u32 %v3741_v22, %v2779_v25  ;;  %v5085_v22 = vor.u32 %v3694_v63, %v2585_v62  ;;  %v5087_v25 = vor.u32 %v3686_v2, %v2587_v3  ;;  %v3765_v62 = vld [vmem:[%s5983_s1 + $0x1b4] sm:$0xf]  ;;  %v2875_v63 = vld [vmem:[%s5983_s1 + $0x1b8] sm:$0xf0] }
  0x7a   :  { %2019 = vmatpush.bf16.msrb.mxu2 %v3570_v34  ;;  %v3723_v34 = vld [vmem:[%s5983_s1 + $0x64] sm:$0xf] }
  0x7b   :  { %2038 = vmatpush.bf16.msrb.mxu3 %v3634_v49  ;;  %v2910_v49 = vor.u32 %v3773_v30, %v2907_v31  ;;  %v2710_v58 = vor.u32 %v3723_v34, %v2707_v35  ;;  %v3751_v30 = vld [vmem:[%s5983_s1 + $0x144] sm:$0xf]  ;;  %v2819_v31 = vld [vmem:[%s5983_s1 + $0x148] sm:$0xf0] }
  0x7c   :  { %1982 = vmatpush.bf16.msrb.mxu0 %v3434_v60  ;;  %v3771_v60 = vld [vmem:[%s5983_s1 + $0x1e4] sm:$0xf]  ;;  %v2691_v35 = vld [vmem:[%s5983_s1 + $0x48] sm:$0xf0]  ;;  %v2822_v42 = vor.u32 %v3751_v30, %v2819_v31 }
  0x7d   :  { %2001 = vmatpush.bf16.msrb.mxu1 %v3498_v12  ;;  %v2902_v11 = vor.u32 %v3771_v60, %v2899_v61  ;;  %v3721_v12 = vld [vmem:[%s5983_s1 + $0x54] sm:$0xf]  ;;  %v3719_v34 = vld [vmem:[%s5983_s1 + $0x44] sm:$0xf]  ;;  %v2747_v61 = vld [vmem:[%s5983_s1 + $0xb8] sm:$0xf0] }
  0x7e   :  { %2020 = vmatpush.bf16.msrb.mxu2 %v3562_v59  ;;  %v2771_v59 = vld [vmem:[%s5983_s1 + $0xe8] sm:$0xf0]  ;;  %v2694_v43 = vor.u32 %v3719_v34, %v2691_v35  ;;  %v3733_v60 = vld [vmem:[%s5983_s1 + $0xb4] sm:$0xf]  ;;  %v3763_v30 = vld [vmem:[%s5983_s1 + $0x1a4] sm:$0xf] }
  0x7f   :  { %2039 = vmatpush.bf16.msrb.mxu3 %v3626_v15  ;;  %v2774_v10 = vor.u32 %v3739_v52, %v2771_v59  ;;  %v2699_v15 = vld [vmem:[%s5983_s1 + $0x58] sm:$0xf0]  ;;  %v2867_v31 = vld [vmem:[%s5983_s1 + $0x1a8] sm:$0xf0] }
  0x80   :  { %1983 = vmatpush.bf16.msrb.mxu0 %v3426_v20  ;;  %v3769_v20 = vld [vmem:[%s5983_s1 + $0x1d4] sm:$0xf]  ;;  %v2683_v59 = vld [vmem:[%s5983_s1 + $0x38] sm:$0xf0] }
  0x81   :  { %2002 = vmatpush.bf16.msrb.mxu1 %v3490_v36  ;;  %v2894_v33 = vor.u32 %v3769_v20, %v2891_v21  ;;  %v3735_v36 = vld [vmem:[%s5983_s1 + $0xc4] sm:$0xf]  ;;  %v2675_v21 = vld [vmem:[%s5983_s1 + $0x28] sm:$0xf0]  ;;  %v3702_v34 = vld [vmem:[%s5984_s0 + $0xbc] sm:$0xf] }
  0x82   :  { %2021 = vmatpush.bf16.msrb.mxu2 %v3554_v19  ;;  %v2763_v19 = vld [vmem:[%s5983_s1 + $0xd8] sm:$0xf0]  ;;  %v3715_v20 = vld [vmem:[%s5983_s1 + $0x24] sm:$0xf] }
  0x83   :  { %2040 = vmatpush.bf16.msrb.mxu3 %v3618_v37  ;;  %v2766_v32 = vor.u32 %v3737_v16, %v2763_v19  ;;  %1984 = vmatmul.bf16.vlgmr.msrb.gmra.mxu0 %v5072_v17  ;;  %v2755_v37 = vld [vmem:[%s5983_s1 + $0xc8] sm:$0xf0]  ;;  %v2750_v16 = vor.u32 %v3733_v60, %v2747_v61  ;;  %v2878_v19 = vor.u32 %v3765_v62, %v2875_v63  ;;  %v2651_v35 = vld [vmem:[%s5984_s0 + $0xf8] sm:$0xf0]  ;;  %v3761_v60 = vld [vmem:[%s5983_s1 + $0x194] sm:$0xf] }
  0x84   :  { %2052 = vmatpush.bf16.msra.mxu0 %v2718_v27  ;;  %v2702_v27 = vor.u32 %v3721_v12, %v2699_v15  ;;  %2003 = vmatmul.bf16.vlgmr.msrb.gmra.mxu1 %v5074_v18  ;;  %v2758_v52 = vor.u32 %v3735_v36, %v2755_v37  ;;  %v3701_v12 = vld [vmem:[%s5984_s0 + $0xb4] sm:$0xf]  ;;  %v2678_v37 = vor.u32 %v3715_v20, %v2675_v21  ;;  %v2859_v61 = vld [vmem:[%s5983_s1 + $0x198] sm:$0xf0]  ;;  %v3759_v20 = vld [vmem:[%s5983_s1 + $0x184] sm:$0xf] }
  0x85   :  { %2071 = vmatpush.bf16.msra.mxu1 %v2782_v47  ;;  %2022 = vmatmul.bf16.vlgmr.msrb.gmra.mxu2 %v5085_v22  ;;  %v3749_v47 = vld [vmem:[%s5983_s1 + $0x134] sm:$0xf]  ;;  %v5219_v63 = vor.u32 %v3702_v34, %v2651_v35  ;;  %v2851_v21 = vld [vmem:[%s5983_s1 + $0x188] sm:$0xf0]  ;;  %v3035_v35 = vld [vmem:[%s5983_s1 + $0x2f8] sm:$0xf0] }
  0x86   :  { %2090 = vmatpush.bf16.msra.mxu2 %v2846_v26  ;;  %v2830_v26 = vor.u32 %v3753_v4, %v2827_v7  ;;  %2041 = vmatmul.bf16.vlgmr.msrb.gmra.mxu3 %v5087_v25  ;;  %v3747_v4 = vld [vmem:[%s5983_s1 + $0x124] sm:$0xf]  ;;  %v2803_v7 = vld [vmem:[%s5983_s1 + $0x128] sm:$0xf0]  ;;  %v2643_v15 = vld [vmem:[%s5984_s0 + $0xf0] sm:$0xf0] }
  0x87   :  { %2109 = vmatpush.bf16.msra.mxu3 %v2910_v49  ;;  %v2811_v49 = vld [vmem:[%s5983_s1 + $0x138] sm:$0xf0]  ;;  %v2806_v36 = vor.u32 %v3747_v4, %v2803_v7  ;;  %v2787_v7 = vld [vmem:[%s5983_s1 + $0x108] sm:$0xf0] }
  0x88   :  { %2053 = vmatpush.bf16.msra.mxu0 %v2710_v58  ;;  %v3717_v58 = vld [vmem:[%s5983_s1 + $0x34] sm:$0xf]  ;;  %v2814_v2 = vor.u32 %v3749_v47, %v2811_v49  ;;  %v2667_v49 = vld [vmem:[%s5983_s1 + $0x18] sm:$0xf0] }
  0x89   :  { %2072 = vmatpush.bf16.msra.mxu1 %v2774_v10  ;;  %v2686_v3 = vor.u32 %v3717_v58, %v2683_v59  ;;  %v2641_v10 = vld [vmem:[%s5984_s0 + $0xb0] sm:$0xf]  ;;  %v3713_v47 = vld [vmem:[%s5983_s1 + $0x14] sm:$0xf]  ;;  %v5206_v58 = vor.u32 %v3701_v12, %v2643_v15  ;;  %v2731_v59 = vld [vmem:[%s5983_s1 + $0x98] sm:$0xf0]  ;;  %v2862_v15 = vor.u32 %v3761_v60, %v2859_v61 }
  0x8a   :  { %2091 = vmatpush.bf16.msra.mxu2 %v2838_v55  ;;  %v2886_v55 = vor.u32 %v3767_v38, %v2883_v41  ;;  %v3745_v38 = vld [vmem:[%s5983_s1 + $0x114] sm:$0xf]  ;;  %v2795_v41 = vld [vmem:[%s5983_s1 + $0x118] sm:$0xf0]  ;;  %v2670_v4 = vor.u32 %v3713_v47, %v2667_v49  ;;  %v3819_v47 = vld [vmem:[%s5983_s1 + $0x364] sm:$0xf] }
  0x8b   :  { %2110 = vmatpush.bf16.msra.mxu3 %v2902_v11  ;;  %v3709_v11 = vld [vmem:[%s5984_s0 + $0xec] sm:$0xf0]  ;;  %v3091_v49 = vld [vmem:[%s5983_s1 + $0x368] sm:$0xf0]  ;;  %v3787_v60 = vld [vmem:[%s5983_s1 + $0x264] sm:$0xf] }
  0x8c   :  { %2054 = vmatpush.bf16.msra.mxu0 %v2702_v27  ;;  %v2739_v27 = vld [vmem:[%s5983_s1 + $0xa8] sm:$0xf0] }
  0x8d   :  { %2073 = vmatpush.bf16.msra.mxu1 %v2766_v32  ;;  %v2649_v32 = vld [vmem:[%s5984_s0 + $0xb8] sm:$0xf]  ;;  %v2963_v61 = vld [vmem:[%s5983_s1 + $0x268] sm:$0xf0] }
  0x8e   :  { %2092 = vmatpush.bf16.msra.mxu2 %v2830_v26  ;;  %v3731_v26 = vld [vmem:[%s5983_s1 + $0xa4] sm:$0xf] }
  0x8f   :  { %2111 = vmatpush.bf16.msra.mxu3 %v2894_v33  ;;  %v3710_v33 = vld [vmem:[%s5984_s0 + $0xf4] sm:$0xf0] }
  0x90   :  { %2055 = vmatpush.bf16.msra.mxu0 %v2694_v43  ;;  %v2870_v43 = vor.u32 %v3763_v30, %v2867_v31  ;;  %v5217_v62 = vor.u32 %v3710_v33, %v2649_v32  ;;  %v3789_v30 = vld [vmem:[%s5983_s1 + $0x274] sm:$0xf]  ;;  %v2971_v31 = vld [vmem:[%s5983_s1 + $0x278] sm:$0xf0] }
  0x91   :  { %2074 = vmatpush.bf16.msra.mxu1 %v2758_v52  ;;  %v3729_v52 = vld [vmem:[%s5983_s1 + $0x94] sm:$0xf] }
  0x92   :  { %2093 = vmatpush.bf16.msra.mxu2 %v2822_v42  ;;  %v2742_v42 = vor.u32 %v3731_v26, %v2739_v27  ;;  %v2734_v12 = vor.u32 %v3729_v52, %v2731_v59  ;;  %v3821_v26 = vld [vmem:[%s5983_s1 + $0x374] sm:$0xf]  ;;  %v3099_v27 = vld [vmem:[%s5983_s1 + $0x378] sm:$0xf0] }
  0x93   :  { %2112 = vmatpush.bf16.msra.mxu3 %v2886_v55  ;;  %v5204_v55 = vor.u32 %v3709_v11, %v2641_v10  ;;  %v3711_v10 = vld [vmem:[%s5983_s1 + $0x4] sm:$0xf]  ;;  %v2659_v11 = vld [vmem:[%s5983_s1 + $0x8] sm:$0xf0]  ;;  %v3805_v32 = vld [vmem:[%s5983_s1 + $0x2f4] sm:$0xf] }
  0x94   :  { %2056 = vmatpush.bf16.msra.mxu0 %v2686_v3  ;;  %v2798_v3 = vor.u32 %v3745_v38, %v2795_v41  ;;  %2008 = vmatmul.bf16.gmra.mxu1 %v5206_v58  ;;  %v2662_v34 = vor.u32 %v3711_v10, %v2659_v11  ;;  %v2854_v41 = vor.u32 %v3759_v20, %v2851_v21  ;;  %v3785_v20 = vld [vmem:[%s5983_s1 + $0x254] sm:$0xf]  ;;  %v2955_v21 = vld [vmem:[%s5983_s1 + $0x258] sm:$0xf0] }
  0x95   :  { %2075 = vmatpush.bf16.msra.mxu1 %v2750_v16  ;;  %v3727_v16 = vld [vmem:[%s5983_s1 + $0x84] sm:$0xf]  ;;  %1989 = vmatmul.bf16.gmra.mxu0 %v5204_v55  ;;  %v3038_v52 = vor.u32 %v3805_v32, %v3035_v35  ;;  %v3094_v10 = vor.u32 %v3819_v47, %v3091_v49  ;;  %v2966_v11 = vor.u32 %v3787_v60, %v2963_v61  ;;  %v3147_v32 = vld [vmem:[%s5983_s1 + $0x3d8] sm:$0xf0]  ;;  %v2947_v47 = vld [vmem:[%s5983_s1 + $0x248] sm:$0xf0] }
  0x96   :  { %2094 = vmatpush.bf16.msra.mxu2 %v2814_v2  ;;  %v3743_v2 = vld [vmem:[%s5983_s1 + $0x104] sm:$0xf]  ;;  %2046 = vmatmul.bf16.gmra.mxu3 %v5219_v63  ;;  %v3139_v60 = vld [vmem:[%s5983_s1 + $0x3c8] sm:$0xf0]  ;;  %v3813_v61 = vld [vmem:[%s5983_s1 + $0x334] sm:$0xf] }
  0x97   :  { %2113 = vmatpush.bf16.msra.mxu3 %v2878_v19  ;;  %v2723_v19 = vld [vmem:[%s5983_s1 + $0x88] sm:$0xf0]  ;;  %2027 = vmatmul.bf16.gmra.mxu2 %v5217_v62  ;;  %v2790_v33 = vor.u32 %v3743_v2, %v2787_v7  ;;  %v3803_v2 = vld [vmem:[%s5983_s1 + $0x2e4] sm:$0xf] }
  0x98   :  { %2057 = vmatpush.bf16.msra.mxu0 %v2678_v37  ;;  %v3163_v37 = vld [vmem:[%s5983_s1 + $0x3f8] sm:$0xf0]  ;;  %v2726_v38 = vor.u32 %v3727_v16, %v2723_v19  ;;  %v3155_v7 = vld [vmem:[%s5983_s1 + $0x3e8] sm:$0xf0]  ;;  %v3817_v16 = vld [vmem:[%s5983_s1 + $0x354] sm:$0xf] }
  0x99   :  { %2076 = vmatpush.bf16.msra.mxu1 %v2742_v42  ;;  %v3102_v42 = vor.u32 %v3821_v26, %v3099_v27  ;;  %v3083_v19 = vld [vmem:[%s5983_s1 + $0x358] sm:$0xf0]  ;;  %v3801_v26 = vld [vmem:[%s5983_s1 + $0x2d4] sm:$0xf]  ;;  %v3799_v49 = vld [vmem:[%s5983_s1 + $0x2c4] sm:$0xf] }
  0x9a   :  { %2095 = vmatpush.bf16.msra.mxu2 %v2806_v36  ;;  %v3837_v36 = vld [vmem:[%s5983_s1 + $0x3f4] sm:$0xf]  ;;  %v3086_v35 = vor.u32 %v3817_v16, %v3083_v19  ;;  %v3003_v16 = vld [vmem:[%s5983_s1 + $0x2b8] sm:$0xf0] }
  0x9b   :  { %2114 = vmatpush.bf16.msra.mxu3 %v2870_v43  ;;  %v2974_v43 = vor.u32 %v3789_v30, %v2971_v31  ;;  %v3166_v59 = vor.u32 %v3837_v36, %v3163_v37  ;;  %v3019_v30 = vld [vmem:[%s5983_s1 + $0x2d8] sm:$0xf0]  ;;  %v3833_v31 = vld [vmem:[%s5983_s1 + $0x3d4] sm:$0xf]  ;;  %v2958_v36 = vor.u32 %v3785_v20, %v2955_v21  ;;  %v3815_v37 = vld [vmem:[%s5983_s1 + $0x344] sm:$0xf] }
  0x9c   :  { %2058 = vmatpush.bf16.msra.mxu0 %v2670_v4  ;;  %v3835_v4 = vld [vmem:[%s5983_s1 + $0x3e4] sm:$0xf]  ;;  %v3829_v19 = vld [vmem:[%s5983_s1 + $0x3b4] sm:$0xf]  ;;  %v3131_v20 = vld [vmem:[%s5983_s1 + $0x3b8] sm:$0xf0] }
  0x9d   :  { %2077 = vmatpush.bf16.msra.mxu1 %v2734_v12 }
  0x9e   :  { %2096 = vmatpush.bf16.msra.mxu2 %v2798_v3  ;;  %v3027_v3 = vld [vmem:[%s5983_s1 + $0x2e8] sm:$0xf0] }
  0x9f   :  { %2115 = vmatpush.bf16.msra.mxu3 %v2862_v15  ;;  %v3030_v12 = vor.u32 %v3803_v2, %v3027_v3  ;;  %v3158_v15 = vor.u32 %v3835_v4, %v3155_v7  ;;  %v3067_v2 = vld [vmem:[%s5983_s1 + $0x338] sm:$0xf0] }
  0xa0   :  { %2059 = vmatpush.bf16.msra.mxu0 %v2662_v34  ;;  %v1757_v27 = vpop.f32.mrf.mxu0 }
  0xa1   :  { %2078 = vmatpush.bf16.msra.mxu1 %v2726_v38  ;;  %v3075_v38 = vld [vmem:[%s5983_s1 + $0x348] sm:$0xf0] }
  0xa2   :  { %2097 = vmatpush.bf16.msra.mxu2 %v2790_v33  ;;  %v1776_v33 = vpop.f32.mrf.mxu1 }
  0xa3   :  { %2116 = vmatpush.bf16.msra.mxu3 %v2854_v41  ;;  %v1777_v34 = vadd.f32 %v1776_v33, %v1757_v27  ;;  %v3022_v41 = vor.u32 %v3801_v26, %v3019_v30  ;;  %v3070_v26 = vor.u32 %v3813_v61, %v3067_v2  ;;  %v3059_v33 = vld [vmem:[%s5983_s1 + $0x328] sm:$0xf0]  ;;  %v3777_v61 = vld [vmem:[%s5983_s1 + $0x214] sm:$0xf]  ;;  %v2923_v2 = vld [vmem:[%s5983_s1 + $0x218] sm:$0xf0] }
  0xa4   :  { %2128 = vmatpush.bf16.msrb.mxu0 %v2974_v43  ;;  %v3783_v43 = vld [vmem:[%s5983_s1 + $0x244] sm:$0xf]  ;;  %2079 = vmatmul.bf16.vlgmr.msra.gmra.mxu1 %v4249_v53 }
  0xa5   :  { %2147 = vmatpush.bf16.msrb.mxu1 %v3038_v52  ;;  %2060 = vmatmul.bf16.vlgmr.msra.gmra.mxu0 %v4238_v48  ;;  %v3011_v52 = vld [vmem:[%s5983_s1 + $0x2c8] sm:$0xf0]  ;;  %v3078_v48 = vor.u32 %v3815_v37, %v3075_v38  ;;  %v2950_v53 = vor.u32 %v3783_v43, %v2947_v47  ;;  %v3795_v38 = vld [vmem:[%s5983_s1 + $0x2a4] sm:$0xf] }
  0xa6   :  { %2166 = vmatpush.bf16.msrb.mxu2 %v3102_v42  ;;  %v3150_v42 = vor.u32 %v3833_v31, %v3147_v32  ;;  %2117 = vmatmul.bf16.vlgmr.msra.gmra.mxu3 %v4259_v57  ;;  %v3014_v4 = vor.u32 %v3799_v49, %v3011_v52  ;;  %v2939_v57 = vld [vmem:[%s5983_s1 + $0x238] sm:$0xf0]  ;;  %v3811_v32 = vld [vmem:[%s5983_s1 + $0x324] sm:$0xf]  ;;  %v2931_v37 = vld [vmem:[%s5983_s1 + $0x228] sm:$0xf0] }
  0xa7   :  { %2185 = vmatpush.bf16.msrb.mxu3 %v3166_v59  ;;  %v3831_v59 = vld [vmem:[%s5983_s1 + $0x3c4] sm:$0xf]  ;;  %2098 = vmatmul.bf16.vlgmr.msra.gmra.mxu2 %v4251_v54  ;;  %v3781_v54 = vld [vmem:[%s5983_s1 + $0x234] sm:$0xf]  ;;  %v3123_v43 = vld [vmem:[%s5983_s1 + $0x3a8] sm:$0xf0]  ;;  %v3062_v47 = vor.u32 %v3811_v32, %v3059_v33 }
  0xa8   :  { %2129 = vmatpush.bf16.msrb.mxu0 %v2966_v11  ;;  %v1795_v3 = vpop.f32.mrf.mxu2  ;;  %v3142_v7 = vor.u32 %v3831_v59, %v3139_v60  ;;  %v2942_v31 = vor.u32 %v3781_v54, %v2939_v57  ;;  %v3809_v52 = vld [vmem:[%s5983_s1 + $0x314] sm:$0xf]  ;;  %v3051_v59 = vld [vmem:[%s5983_s1 + $0x318] sm:$0xf0] }
  0xa9   :  { %2148 = vmatpush.bf16.msrb.mxu1 %v3030_v12  ;;  %v1796_v11 = vadd.f32 %v1795_v3, %v1777_v34  ;;  %v1814_v12 = vpop.f32.mrf.mxu3  ;;  %v3793_v3 = vld [vmem:[%s5983_s1 + $0x294] sm:$0xf]  ;;  %v2987_v57 = vld [vmem:[%s5983_s1 + $0x298] sm:$0xf0] }
  0xaa   :  { %2167 = vmatpush.bf16.msrb.mxu2 %v3094_v10  ;;  %v3797_v10 = vld [vmem:[%s5983_s1 + $0x2b4] sm:$0xf]  ;;  %v1778_v21 = vpop.f32.mrf.mxu1  ;;  %v2990_v32 = vor.u32 %v3793_v3, %v2987_v57 }
  0xab   :  { %2186 = vmatpush.bf16.msrb.mxu3 %v3158_v15  ;;  %v1759_v15 = vpop.f32.mrf.mxu0  ;;  %v5373_v27 = vadd.f32 %v1814_v12, %v1796_v11  ;;  %v3006_v34 = vor.u32 %v3797_v10, %v3003_v16  ;;  %v3825_v10 = vld [vmem:[%s5983_s1 + $0x394] sm:$0xf]  ;;  %v3115_v11 = vld [vmem:[%s5983_s1 + $0x398] sm:$0xf0]  ;;  %v3807_v16 = vld [vmem:[%s5983_s1 + $0x304] sm:$0xf] }
  0xac   :  { %2130 = vmatpush.bf16.msrb.mxu0 %v2958_v36  ;;  %v1779_v30 = vadd.f32 %v1778_v21, %v1759_v15  ;;  %v3779_v36 = vld [vmem:[%s5983_s1 + $0x224] sm:$0xf]  ;;  %v3054_v15 = vor.u32 %v3809_v52, %v3051_v59  ;;  %v2926_v21 = vor.u32 %v3777_v61, %v2923_v2  ;;  %v3118_v33 = vor.u32 %v3825_v10, %v3115_v11 }
  0xad   :  { %2149 = vmatpush.bf16.msrb.mxu1 %v3022_v41  ;;  %v2995_v41 = vld [vmem:[%s5983_s1 + $0x2a8] sm:$0xf0]  ;;  %v2934_v49 = vor.u32 %v3779_v36, %v2931_v37  ;;  %v3823_v36 = vld [vmem:[%s5983_s1 + $0x384] sm:$0xf] }
  0xae   :  { %2168 = vmatpush.bf16.msrb.mxu2 %v3086_v35  ;;  %v3134_v35 = vor.u32 %v3829_v19, %v3131_v20  ;;  %v3107_v37 = vld [vmem:[%s5983_s1 + $0x388] sm:$0xf0]  ;;  %v3851_v11 = vld [vmem:[%s5983_s1 + $0x464] sm:$0xf] }
  0xaf   :  { %2187 = vmatpush.bf16.msrb.mxu3 %v3150_v42  ;;  %v3827_v42 = vld [vmem:[%s5983_s1 + $0x3a4] sm:$0xf] }
  0xb0   :  { %2131 = vmatpush.bf16.msrb.mxu0 %v2950_v53  ;;  %v1797_v60 = vpop.f32.mrf.mxu2  ;;  %v3126_v53 = vor.u32 %v3827_v42, %v3123_v43  ;;  %v3869_v42 = vld [vmem:[%s5983_s1 + $0x4f4] sm:$0xf] }
  0xb1   :  { %2150 = vmatpush.bf16.msrb.mxu1 %v3014_v4  ;;  %v1798_v4 = vadd.f32 %v1797_v60, %v1779_v30  ;;  %v3775_v30 = vld [vmem:[%s5983_s1 + $0x204] sm:$0xf]  ;;  %v3110_v60 = vor.u32 %v3823_v36, %v3107_v37  ;;  %v3339_v36 = vld [vmem:[%s5983_s1 + $0x558] sm:$0xf0] }
  0xb2   :  { %2169 = vmatpush.bf16.msrb.mxu2 %v3078_v48  ;;  %v2998_v48 = vor.u32 %v3795_v38, %v2995_v41  ;;  %v1781_v12 = vpop.f32.mrf.mxu1  ;;  %v3885_v38 = vld [vmem:[%s5983_s1 + $0x574] sm:$0xf]  ;;  %v3355_v41 = vld [vmem:[%s5983_s1 + $0x578] sm:$0xf0] }
  0xb3   :  { %2188 = vmatpush.bf16.msrb.mxu3 %v3142_v7  ;;  %v1816_v7 = vpop.f32.mrf.mxu3  ;;  %v1762_v54 = vpop.f32.mrf.mxu0  ;;  %v3358_v2 = vor.u32 %v3885_v38, %v3355_v41  ;;  %v3849_v38 = vld [vmem:[%s5983_s1 + $0x454] sm:$0xf]  ;;  %v3211_v41 = vld [vmem:[%s5983_s1 + $0x458] sm:$0xf0] }
  0xb4   :  { %2132 = vmatpush.bf16.msrb.mxu0 %v2942_v31  ;;  %v5426_v19 = vadd.f32 %v1816_v7, %v1798_v4  ;;  %v1782_v20 = vadd.f32 %v1781_v12, %v1762_v54  ;;  %v2915_v31 = vld [vmem:[%s5983_s1 + $0x208] sm:$0xf0]  ;;  %2084 = vmatmul.bf16.gmra.mxu1 %v4381_v50  ;;  %v3227_v50 = vld [vmem:[%s5983_s1 + $0x478] sm:$0xf0]  ;;  %v3883_v4 = vld [vmem:[%s5983_s1 + $0x564] sm:$0xf] }
  0xb5   :  { %2151 = vmatpush.bf16.msrb.mxu1 %v3006_v34  ;;  %v3791_v34 = vld [vmem:[%s5983_s1 + $0x284] sm:$0xf]  ;;  %2065 = vmatmul.bf16.gmra.mxu0 %v4370_v44  ;;  %v3853_v44 = vld [vmem:[%s5983_s1 + $0x474] sm:$0xf]  ;;  %v3347_v7 = vld [vmem:[%s5983_s1 + $0x568] sm:$0xf0] }
  0xb6   :  { %2170 = vmatpush.bf16.msrb.mxu2 %v3070_v26  ;;  %v3043_v26 = vld [vmem:[%s5983_s1 + $0x308] sm:$0xf0]  ;;  %2122 = vmatmul.bf16.gmra.mxu3 %v4391_v56  ;;  %v3901_v56 = vld [vmem:[%s5983_s1 + $0x5f4] sm:$0xf]  ;;  %v3230_v3 = vor.u32 %v3853_v44, %v3227_v50 }
  0xb7   :  { %2189 = vmatpush.bf16.msrb.mxu3 %v3134_v35  ;;  %v2979_v35 = vld [vmem:[%s5983_s1 + $0x288] sm:$0xf0]  ;;  %2103 = vmatmul.bf16.gmra.mxu2 %v4383_v51  ;;  %v3046_v43 = vor.u32 %v3807_v16, %v3043_v26  ;;  %v3291_v51 = vld [vmem:[%s5983_s1 + $0x4f8] sm:$0xf0]  ;;  %v3899_v26 = vld [vmem:[%s5983_s1 + $0x5e4] sm:$0xf] }
  0xb8   :  { %2133 = vmatpush.bf16.msrb.mxu0 %v2934_v49  ;;  %v3419_v49 = vld [vmem:[%s5983_s1 + $0x5f8] sm:$0xf0]  ;;  %v1800_v52 = vpop.f32.mrf.mxu2  ;;  %v2982_v59 = vor.u32 %v3791_v34, %v2979_v35  ;;  %v3294_v57 = vor.u32 %v3869_v42, %v3291_v51  ;;  %v3219_v12 = vld [vmem:[%s5983_s1 + $0x468] sm:$0xf0]  ;;  %v3881_v35 = vld [vmem:[%s5983_s1 + $0x554] sm:$0xf] }
  0xb9   :  { %2152 = vmatpush.bf16.msrb.mxu1 %v2998_v48  ;;  %v1801_v48 = vadd.f32 %v1800_v52, %v1782_v20  ;;  %v3422_v10 = vor.u32 %v3901_v56, %v3419_v49  ;;  %v3865_v44 = vld [vmem:[%s5983_s1 + $0x4d4] sm:$0xf]  ;;  %v3403_v51 = vld [vmem:[%s5983_s1 + $0x5d8] sm:$0xf0] }
  0xba   :  { %2171 = vmatpush.bf16.msrb.mxu2 %v3062_v47  ;;  %v2918_v47 = vor.u32 %v3775_v30, %v2915_v31  ;;  %v1783_v54 = vpop.f32.mrf.mxu1  ;;  %v3411_v30 = vld [vmem:[%s5983_s1 + $0x5e8] sm:$0xf0]  ;;  %v3350_v31 = vor.u32 %v3883_v4, %v3347_v7  ;;  %v3847_v4 = vld [vmem:[%s5983_s1 + $0x444] sm:$0xf] }
  0xbb   :  { %2190 = vmatpush.bf16.msrb.mxu3 %v3126_v53  ;;  %v1819_v53 = vpop.f32.mrf.mxu3  ;;  %v1764_v61 = vpop.f32.mrf.mxu0  ;;  %v3414_v34 = vor.u32 %v3899_v26, %v3411_v30  ;;  %v3863_v7 = vld [vmem:[%s5983_s1 + $0x4c4] sm:$0xf]  ;;  %v3861_v26 = vld [vmem:[%s5983_s1 + $0x4b4] sm:$0xf] }
  0xbc   :  { %2134 = vmatpush.bf16.msrb.mxu0 %v2926_v21  ;;  %v5492_v16 = vadd.f32 %v1819_v53, %v1801_v48  ;;  %v1784_v20 = vadd.f32 %v1783_v54, %v1764_v61  ;;  %v3283_v21 = vld [vmem:[%s5983_s1 + $0x4e8] sm:$0xf0]  ;;  %v3214_v48 = vor.u32 %v3849_v38, %v3211_v41  ;;  %v3879_v53 = vld [vmem:[%s5983_s1 + $0x544] sm:$0xf] }
  0xbd   :  { %2153 = vmatpush.bf16.msrb.mxu1 %v2990_v32  ;;  %v3222_v32 = vor.u32 %v3851_v11, %v3219_v12  ;;  %v3331_v61 = vld [vmem:[%s5983_s1 + $0x548] sm:$0xf0]  ;;  %v3877_v12 = vld [vmem:[%s5983_s1 + $0x534] sm:$0xf] }
  0xbe   :  { %2172 = vmatpush.bf16.msrb.mxu2 %v3054_v15  ;;  %v3867_v15 = vld [vmem:[%s5983_s1 + $0x4e4] sm:$0xf]  ;;  %v3395_v11 = vld [vmem:[%s5983_s1 + $0x5c8] sm:$0xf0] }
  0xbf   :  { %2191 = vmatpush.bf16.msrb.mxu3 %v3118_v33  ;;  %v3286_v33 = vor.u32 %v3867_v15, %v3283_v21  ;;  %v3323_v15 = vld [vmem:[%s5983_s1 + $0x538] sm:$0xf0] }
  0xc0   :  { %2135 = vmatpush.bf16.msrb.mxu0 %v2918_v47  ;;  %v1802_v37 = vpop.f32.mrf.mxu2  ;;  %v3897_v47 = vld [vmem:[%s5983_s1 + $0x5d4] sm:$0xf]  ;;  %v3326_v41 = vor.u32 %v3877_v12, %v3323_v15  ;;  %v3371_v15 = vld [vmem:[%s5983_s1 + $0x598] sm:$0xf0] }
  0xc1   :  { %2154 = vmatpush.bf16.msrb.mxu1 %v2982_v59  ;;  %v1803_v50 = vadd.f32 %v1802_v37, %v1784_v20  ;;  %v3889_v12 = vld [vmem:[%s5983_s1 + $0x594] sm:$0xf] }
  0xc2   :  { %2173 = vmatpush.bf16.msrb.mxu2 %v3046_v43  ;;  %v3275_v43 = vld [vmem:[%s5983_s1 + $0x4d8] sm:$0xf0]  ;;  %v1852_v49 = vpop.f32.mrf.mxu1 }
  0xc3   :  { %2192 = vmatpush.bf16.msrb.mxu3 %v3110_v60  ;;  %v1821_v42 = vpop.f32.mrf.mxu3  ;;  %v1833_v56 = vpop.f32.mrf.mxu0  ;;  %v3342_v60 = vor.u32 %v3881_v35, %v3339_v36 }
  0xc4   :  { %2204 = vmatpush.bf16.msra.mxu0 %v3230_v3  ;;  %v5527_v52 = vadd.f32 %v1821_v42, %v1803_v50  ;;  %v1834_v59 = vadd.f32 %v1833_v56, %v5373_v27  ;;  %v3406_v3 = vor.u32 %v3897_v47, %v3403_v51  ;;  %v3203_v27 = vld [vmem:[%s5983_s1 + $0x448] sm:$0xf0]  ;;  %2155 = vmatmul.bf16.vlgmr.msrb.gmra.mxu1 %v4528_v1  ;;  %v3875_v50 = vld [vmem:[%s5983_s1 + $0x524] sm:$0xf] }
  0xc5   :  { %2223 = vmatpush.bf16.msra.mxu1 %v3294_v57  ;;  %2136 = vmatmul.bf16.vlgmr.msrb.gmra.mxu0 %v4526_v0  ;;  %v3267_v57 = vld [vmem:[%s5983_s1 + $0x4c8] sm:$0xf0]  ;;  %v3334_v0 = vor.u32 %v3879_v53, %v3331_v61  ;;  %v3206_v1 = vor.u32 %v3847_v4, %v3203_v27  ;;  %v3307_v4 = vld [vmem:[%s5983_s1 + $0x518] sm:$0xf0] }
  0xc6   :  { %2242 = vmatpush.bf16.msra.mxu2 %v3358_v2  ;;  %v3278_v2 = vor.u32 %v3865_v44, %v3275_v43  ;;  %v1853_v54 = vadd.f32 %v1852_v49, %v1834_v59  ;;  %2193 = vmatmul.bf16.vlgmr.msrb.gmra.mxu3 %v4541_v6  ;;  %v3270_v20 = vor.u32 %v3863_v7, %v3267_v57  ;;  %v3195_v6 = vld [vmem:[%s5983_s1 + $0x438] sm:$0xf0]  ;;  %v3315_v42 = vld [vmem:[%s5983_s1 + $0x528] sm:$0xf0]  ;;  %v3859_v49 = vld [vmem:[%s5983_s1 + $0x4a4] sm:$0xf] }
  0xc7   :  { %2261 = vmatpush.bf16.msra.mxu3 %v3422_v10  ;;  %v3895_v10 = vld [vmem:[%s5983_s1 + $0x5c4] sm:$0xf]  ;;  %2174 = vmatmul.bf16.vlgmr.msrb.gmra.mxu2 %v4539_v5  ;;  %v3845_v5 = vld [vmem:[%s5983_s1 + $0x434] sm:$0xf]  ;;  %v3187_v56 = vld [vmem:[%s5983_s1 + $0x428] sm:$0xf0]  ;;  %v3318_v61 = vor.u32 %v3875_v50, %v3315_v42 }
  0xc8   :  { %2205 = vmatpush.bf16.msra.mxu0 %v3222_v32  ;;  %v3398_v21 = vor.u32 %v3895_v10, %v3395_v11  ;;  %v1871_v30 = vpop.f32.mrf.mxu2  ;;  %v3259_v32 = vld [vmem:[%s5983_s1 + $0x4b8] sm:$0xf0]  ;;  %v3198_v44 = vor.u32 %v3845_v5, %v3195_v6  ;;  %v3379_v53 = vld [vmem:[%s5983_s1 + $0x5a8] sm:$0xf0]  ;;  %v3857_v10 = vld [vmem:[%s5983_s1 + $0x494] sm:$0xf] }
  0xc9   :  { %2224 = vmatpush.bf16.msra.mxu1 %v3286_v33  ;;  %v3893_v33 = vld [vmem:[%s5983_s1 + $0x5b4] sm:$0xf]  ;;  %v1872_v35 = vadd.f32 %v1871_v30, %v1853_v54  ;;  %v3262_v47 = vor.u32 %v3861_v26, %v3259_v32  ;;  %v3179_v57 = vld [vmem:[%s5983_s1 + $0x418] sm:$0xf0]  ;;  %v3871_v6 = vld [vmem:[%s5983_s1 + $0x504] sm:$0xf] }
  0xca   :  { %2243 = vmatpush.bf16.msra.mxu2 %v3350_v31  ;;  %v1854_v37 = vpop.f32.mrf.mxu1  ;;  %v3841_v54 = vld [vmem:[%s5983_s1 + $0x414] sm:$0xf]  ;;  %v3299_v32 = vld [vmem:[%s5983_s1 + $0x508] sm:$0xf0] }
  0xcb   :  { %2262 = vmatpush.bf16.msra.mxu3 %v3414_v34  ;;  %v1890_v31 = vpop.f32.mrf.mxu3  ;;  %v3387_v34 = vld [vmem:[%s5983_s1 + $0x5b8] sm:$0xf0]  ;;  %v1835_v36 = vpop.f32.mrf.mxu0  ;;  %v3363_v50 = vld [vmem:[%s5983_s1 + $0x588] sm:$0xf0]  ;;  %v3949_v42 = vld [vmem:[%s5983_s1 + $0x774] sm:$0xf] }
  0xcc   :  { %2206 = vmatpush.bf16.msra.mxu0 %v3214_v48  ;;  %v1836_v38 = vadd.f32 %v1835_v36, %v5426_v19  ;;  %v5589_v43 = vadd.f32 %v1890_v31, %v1872_v35  ;;  %v3390_v51 = vor.u32 %v3893_v33, %v3387_v34  ;;  %v3843_v19 = vld [vmem:[%s5983_s1 + $0x424] sm:$0xf]  ;;  %v3182_v31 = vor.u32 %v3841_v54, %v3179_v57  ;;  %v3171_v34 = vld [vmem:[%s5983_s1 + $0x408] sm:$0xf0] }
  0xcd   :  { %2225 = vmatpush.bf16.msra.mxu1 %v3278_v2  ;;  %v3891_v48 = vld [vmem:[%s5983_s1 + $0x5a4] sm:$0xf]  ;;  %v3190_v2 = vor.u32 %v3843_v19, %v3187_v56  ;;  %v3374_v36 = vor.u32 %v3889_v12, %v3371_v15  ;;  %v3302_v19 = vor.u32 %v3871_v6, %v3299_v32  ;;  %v3539_v15 = vld [vmem:[%s5983_s1 + $0x6e8] sm:$0xf0]  ;;  %v3945_v32 = vld [vmem:[%s5983_s1 + $0x754] sm:$0xf] }
  0xce   :  { %2244 = vmatpush.bf16.msra.mxu2 %v3342_v60  ;;  %v1855_v59 = vadd.f32 %v1854_v37, %v1836_v38  ;;  %v3251_v60 = vld [vmem:[%s5983_s1 + $0x4a8] sm:$0xf0]  ;;  %v3382_v7 = vor.u32 %v3891_v48, %v3379_v53  ;;  %v3839_v33 = vld [vmem:[%s5983_s1 + $0x404] sm:$0xf] }
  0xcf   :  { %2263 = vmatpush.bf16.msra.mxu3 %v3406_v3  ;;  %v3873_v3 = vld [vmem:[%s5983_s1 + $0x514] sm:$0xf]  ;;  %v3254_v27 = vor.u32 %v3859_v49, %v3251_v60  ;;  %v3855_v37 = vld [vmem:[%s5983_s1 + $0x484] sm:$0xf]  ;;  %v3235_v38 = vld [vmem:[%s5983_s1 + $0x488] sm:$0xf0]  ;;  %v3174_v56 = vor.u32 %v3839_v33, %v3171_v34 }
  0xd0   :  { %2207 = vmatpush.bf16.msra.mxu0 %v3206_v1  ;;  %v1873_v11 = vpop.f32.mrf.mxu2  ;;  %v3243_v1 = vld [vmem:[%s5983_s1 + $0x498] sm:$0xf0]  ;;  %v3310_v30 = vor.u32 %v3873_v3, %v3307_v4  ;;  %v3947_v3 = vld [vmem:[%s5983_s1 + $0x764] sm:$0xf]  ;;  %v3603_v4 = vld [vmem:[%s5983_s1 + $0x768] sm:$0xf0] }
  0xd1   :  { %2226 = vmatpush.bf16.msra.mxu1 %v3270_v20  ;;  %v1874_v20 = vadd.f32 %v1873_v11, %v1855_v59  ;;  %v3675_v49 = vld [vmem:[%s5983_s1 + $0x7f8] sm:$0xf0]  ;;  %v3238_v59 = vor.u32 %v3855_v37, %v3235_v38  ;;  %v3915_v11 = vld [vmem:[%s5983_s1 + $0x664] sm:$0xf]  ;;  %v3913_v34 = vld [vmem:[%s5983_s1 + $0x654] sm:$0xf] }
  0xd2   :  { %2245 = vmatpush.bf16.msra.mxu2 %v3334_v0  ;;  %v1857_v5 = vpop.f32.mrf.mxu1  ;;  %v3595_v33 = vld [vmem:[%s5983_s1 + $0x758] sm:$0xf0] }
  0xd3   :  { %2264 = vmatpush.bf16.msra.mxu3 %v3398_v21  ;;  %v1892_v0 = vpop.f32.mrf.mxu3  ;;  %v1838_v21 = vpop.f32.mrf.mxu0 }
  0xd4   :  { %2208 = vmatpush.bf16.msra.mxu0 %v3198_v44  ;;  %v1839_v26 = vadd.f32 %v1838_v21, %v5492_v16  ;;  %v5646_v35 = vadd.f32 %v1892_v0, %v1874_v20  ;;  %v3246_v16 = vor.u32 %v3857_v10, %v3243_v1  ;;  %2160 = vmatmul.bf16.gmra.mxu1 %v4660_v9  ;;  %v3483_v9 = vld [vmem:[%s5983_s1 + $0x678] sm:$0xf0]  ;;  %v3475_v0 = vld [vmem:[%s5983_s1 + $0x668] sm:$0xf0]  ;;  %v3931_v1 = vld [vmem:[%s5983_s1 + $0x6e4] sm:$0xf] }
  0xd5   :  { %2227 = vmatpush.bf16.msra.mxu1 %v3262_v47  ;;  %2141 = vmatmul.bf16.gmra.mxu0 %v4658_v8  ;;  %v3611_v47 = vld [vmem:[%s5983_s1 + $0x778] sm:$0xf0]  ;;  %v3917_v8 = vld [vmem:[%s5983_s1 + $0x674] sm:$0xf]  ;;  %v3963_v20 = vld [vmem:[%s5983_s1 + $0x7e4] sm:$0xf] }
  0xd6   :  { %2246 = vmatpush.bf16.msra.mxu2 %v3326_v41  ;;  %v3887_v41 = vld [vmem:[%s5983_s1 + $0x584] sm:$0xf]  ;;  %v1858_v44 = vadd.f32 %v1857_v5, %v1839_v26  ;;  %2198 = vmatmul.bf16.gmra.mxu3 %v4673_v14  ;;  %v3965_v14 = vld [vmem:[%s5983_s1 + $0x7f4] sm:$0xf]  ;;  %v3667_v21 = vld [vmem:[%s5983_s1 + $0x7e8] sm:$0xf0]  ;;  %v3478_v26 = vor.u32 %v3915_v11, %v3475_v0 }
  0xd7   :  { %2265 = vmatpush.bf16.msra.mxu3 %v3390_v51  ;;  %2179 = vmatmul.bf16.gmra.mxu2 %v4671_v13  ;;  %v3933_v51 = vld [vmem:[%s5983_s1 + $0x6f4] sm:$0xf]  ;;  %v3547_v13 = vld [vmem:[%s5983_s1 + $0x6f8] sm:$0xf0]  ;;  %v3366_v60 = vor.u32 %v3887_v41, %v3363_v50  ;;  %v3678_v10 = vor.u32 %v3965_v14, %v3675_v49 }
  0xd8   :  { %2209 = vmatpush.bf16.msra.mxu0 %v3190_v2  ;;  %v1876_v48 = vpop.f32.mrf.mxu2  ;;  %v3486_v2 = vor.u32 %v3917_v8, %v3483_v9  ;;  %v3550_v57 = vor.u32 %v3933_v51, %v3547_v13  ;;  %v3531_v41 = vld [vmem:[%s5983_s1 + $0x6d8] sm:$0xf0]  ;;  %v3598_v51 = vor.u32 %v3945_v32, %v3595_v33  ;;  %v3587_v13 = vld [vmem:[%s5983_s1 + $0x748] sm:$0xf0] }
  0xd9   :  { %2228 = vmatpush.bf16.msra.mxu1 %v3254_v27  ;;  %v1877_v27 = vadd.f32 %v1876_v48, %v1858_v44  ;;  %v3961_v44 = vld [vmem:[%s5983_s1 + $0x7d4] sm:$0xf]  ;;  %v3659_v50 = vld [vmem:[%s5983_s1 + $0x7d8] sm:$0xf0]  ;;  %v3927_v48 = vld [vmem:[%s5983_s1 + $0x6c4] sm:$0xf] }
  0xda   :  { %2247 = vmatpush.bf16.msra.mxu2 %v3318_v61  ;;  %v3614_v61 = vor.u32 %v3949_v42, %v3611_v47  ;;  %v1859_v54 = vpop.f32.mrf.mxu1  ;;  %v3515_v0 = vld [vmem:[%s5983_s1 + $0x6b8] sm:$0xf0] }
  0xdb   :  { %2266 = vmatpush.bf16.msra.mxu3 %v3382_v7  ;;  %v1895_v53 = vpop.f32.mrf.mxu3  ;;  %v1840_v7 = vpop.f32.mrf.mxu0 }
  0xdc   :  { %2210 = vmatpush.bf16.msra.mxu0 %v3182_v31  ;;  %v1841_v12 = vadd.f32 %v1840_v7, %v5527_v52  ;;  %v5713_v5 = vadd.f32 %v1895_v53, %v1877_v27  ;;  %v3606_v52 = vor.u32 %v3947_v3, %v3603_v4  ;;  %v3670_v31 = vor.u32 %v3963_v20, %v3667_v21  ;;  %v3651_v3 = vld [vmem:[%s5983_s1 + $0x7c8] sm:$0xf0]  ;;  %v3941_v4 = vld [vmem:[%s5983_s1 + $0x734] sm:$0xf]  ;;  %v3579_v27 = vld [vmem:[%s5983_s1 + $0x738] sm:$0xf0] }
  0xdd   :  { %2229 = vmatpush.bf16.msra.mxu1 %v3246_v16  ;;  %v3467_v16 = vld [vmem:[%s5983_s1 + $0x658] sm:$0xf0] }
  0xde   :  { %2248 = vmatpush.bf16.msra.mxu2 %v3310_v30  ;;  %v1860_v6 = vadd.f32 %v1859_v54, %v1841_v12  ;;  %v3542_v30 = vor.u32 %v3931_v1, %v3539_v15  ;;  %v3957_v1 = vld [vmem:[%s5983_s1 + $0x7b4] sm:$0xf]  ;;  %v3643_v12 = vld [vmem:[%s5983_s1 + $0x7b8] sm:$0xf0] }
  0xdf   :  { %2267 = vmatpush.bf16.msra.mxu3 %v3374_v36  ;;  %v3929_v36 = vld [vmem:[%s5983_s1 + $0x6d4] sm:$0xf] }
  0xe0   :  { %2211 = vmatpush.bf16.msra.mxu0 %v3174_v56  ;;  %v1878_v37 = vpop.f32.mrf.mxu2  ;;  %v3943_v56 = vld [vmem:[%s5983_s1 + $0x744] sm:$0xf]  ;;  %v3534_v49 = vor.u32 %v3929_v36, %v3531_v41 }
  0xe1   :  { %2230 = vmatpush.bf16.msra.mxu1 %v3238_v59  ;;  %v1879_v42 = vadd.f32 %v1878_v37, %v1860_v6  ;;  %v3662_v59 = vor.u32 %v3961_v44, %v3659_v50  ;;  %v3923_v36 = vld [vmem:[%s5983_s1 + $0x6a4] sm:$0xf]  ;;  %v3635_v44 = vld [vmem:[%s5983_s1 + $0x7a8] sm:$0xf0] }
  0xe2   :  { %2249 = vmatpush.bf16.msra.mxu2 %v3302_v19  ;;  %v1928_v8 = vpop.f32.mrf.mxu1  ;;  %v3470_v19 = vor.u32 %v3913_v34, %v3467_v16  ;;  %v3646_v34 = vor.u32 %v3957_v1, %v3643_v12  ;;  %v3443_v16 = vld [vmem:[%s5983_s1 + $0x628] sm:$0xf0]  ;;  %v3955_v41 = vld [vmem:[%s5983_s1 + $0x7a4] sm:$0xf] }
  0xe3   :  { %2268 = vmatpush.bf16.msra.mxu3 %v3366_v60  ;;  %v1897_v38 = vpop.f32.mrf.mxu3  ;;  %v1909_v47 = vpop.f32.mrf.mxu0  ;;  %v3911_v60 = vld [vmem:[%s5983_s1 + $0x644] sm:$0xf]  ;;  %v3619_v1 = vld [vmem:[%s5983_s1 + $0x788] sm:$0xf0] }
  0xe4   :  { %2280 = vmatpush.bf16.msrb.mxu0 %v3486_v2  ;;  %v1910_v9 = vadd.f32 %v1909_v47, %v5589_v43  ;;  %v5746_v14 = vadd.f32 %v1897_v38, %v1879_v42  ;;  %v3459_v43 = vld [vmem:[%s5983_s1 + $0x648] sm:$0xf0]  ;;  %2231 = vmatmul.bf16.vlgmr.msra.gmra.mxu1 %v4798_v24  ;;  %v3959_v2 = vld [vmem:[%s5983_s1 + $0x7c4] sm:$0xf]  ;;  %v3937_v47 = vld [vmem:[%s5983_s1 + $0x714] sm:$0xf] }
  0xe5   :  { %2299 = vmatpush.bf16.msrb.mxu1 %v3550_v57  ;;  %2212 = vmatmul.bf16.vlgmr.msra.gmra.mxu0 %v4796_v23  ;;  %v3590_v23 = vor.u32 %v3943_v56, %v3587_v13  ;;  %v3462_v24 = vor.u32 %v3911_v60, %v3459_v43  ;;  %v3654_v54 = vor.u32 %v3959_v2, %v3651_v3  ;;  %v3925_v57 = vld [vmem:[%s5983_s1 + $0x6b4] sm:$0xf]  ;;  %v3507_v38 = vld [vmem:[%s5983_s1 + $0x6a8] sm:$0xf0]  ;;  %v3435_v56 = vld [vmem:[%s5983_s1 + $0x618] sm:$0xf0] }
  0xe6   :  { %2318 = vmatpush.bf16.msrb.mxu2 %v3614_v61  ;;  %v1929_v53 = vadd.f32 %v1928_v8, %v1910_v9  ;;  %v3523_v61 = vld [vmem:[%s5983_s1 + $0x6c8] sm:$0xf0]  ;;  %2269 = vmatmul.bf16.vlgmr.msra.gmra.mxu3 %v4811_v29  ;;  %v3451_v29 = vld [vmem:[%s5983_s1 + $0x638] sm:$0xf0]  ;;  %v3518_v33 = vor.u32 %v3925_v57, %v3515_v0  ;;  %v3510_v9 = vor.u32 %v3923_v36, %v3507_v38  ;;  %v3921_v13 = vld [vmem:[%s5983_s1 + $0x694] sm:$0xf] }
  0xe7   :  { %2337 = vmatpush.bf16.msrb.mxu3 %v3678_v10  ;;  %2250 = vmatmul.bf16.vlgmr.msra.gmra.mxu2 %v4809_v28  ;;  %v3526_v7 = vor.u32 %v3927_v48, %v3523_v61  ;;  %v3909_v28 = vld [vmem:[%s5983_s1 + $0x634] sm:$0xf]  ;;  %v3563_v8 = vld [vmem:[%s5983_s1 + $0x718] sm:$0xf0]  ;;  %v3919_v57 = vld [vmem:[%s5983_s1 + $0x684] sm:$0xf] }
  0xe8   :  { %2281 = vmatpush.bf16.msrb.mxu0 %v3478_v26  ;;  %v1947_v10 = vpop.f32.mrf.mxu2  ;;  %v3454_v26 = vor.u32 %v3909_v28, %v3451_v29  ;;  %v3499_v60 = vld [vmem:[%s5983_s1 + $0x698] sm:$0xf0]  ;;  %v3953_v43 = vld [vmem:[%s5983_s1 + $0x794] sm:$0xf]  ;;  %v3427_v29 = vld [vmem:[%s5983_s1 + $0x608] sm:$0xf0] }
  0xe9   :  { %2300 = vmatpush.bf16.msrb.mxu1 %v3542_v30  ;;  %v1948_v15 = vadd.f32 %v1947_v10, %v1929_v53  ;;  %v3939_v30 = vld [vmem:[%s5983_s1 + $0x724] sm:$0xf]  ;;  %v3627_v48 = vld [vmem:[%s5983_s1 + $0x798] sm:$0xf0] }
  0xea   :  { %2319 = vmatpush.bf16.msrb.mxu2 %v3606_v52  ;;  %v1930_v21 = vpop.f32.mrf.mxu1  ;;  %v3582_v52 = vor.u32 %v3941_v4, %v3579_v27  ;;  %v3935_v4 = vld [vmem:[%s5983_s1 + $0x704] sm:$0xf]  ;;  %v3555_v27 = vld [vmem:[%s5983_s1 + $0x708] sm:$0xf0]  ;;  %v3630_v28 = vor.u32 %v3953_v43, %v3627_v48 }
  0xeb   :  { %2338 = vmatpush.bf16.msrb.mxu3 %v3670_v31  ;;  %v1966_v11 = vpop.f32.mrf.mxu3  ;;  %v1911_v20 = vpop.f32.mrf.mxu0  ;;  %v3571_v31 = vld [vmem:[%s5983_s1 + $0x728] sm:$0xf0]  ;;  %v3951_v0 = vld [vmem:[%s5983_s1 + $0x784] sm:$0xf] }
  0xec   :  { %2282 = vmatpush.bf16.msrb.mxu0 %v3470_v19  ;;  %v1912_v6 = vadd.f32 %v1911_v20, %v5646_v35  ;;  %v5801_v32 = vadd.f32 %v1966_v11, %v1948_v15  ;;  %v3907_v35 = vld [vmem:[%s5983_s1 + $0x624] sm:$0xf]  ;;  %v3574_v50 = vor.u32 %v3939_v30, %v3571_v31  ;;  %v3905_v19 = vld [vmem:[%s5983_s1 + $0x614] sm:$0xf]  ;;  %v3491_v11 = vld [vmem:[%s5983_s1 + $0x688] sm:$0xf0]  ;;  %v3622_v15 = vor.u32 %v3951_v0, %v3619_v1 }
  0xed   :  { %2301 = vmatpush.bf16.msrb.mxu1 %v3534_v49  ;;  %v3446_v42 = vor.u32 %v3907_v35, %v3443_v16  ;;  %v3494_v12 = vor.u32 %v3919_v57, %v3491_v11 }
  0xee   :  { %2320 = vmatpush.bf16.msrb.mxu2 %v3598_v51  ;;  %v1931_v37 = vadd.f32 %v1930_v21, %v1912_v6  ;;  %v3638_v51 = vor.u32 %v3955_v41, %v3635_v44 }
  0xef   :  { %2339 = vmatpush.bf16.msrb.mxu3 %v3662_v59 }
  0xf0   :  { %2283 = vmatpush.bf16.msrb.mxu0 %v3462_v24  ;;  %v1949_v49 = vpop.f32.mrf.mxu2  ;;  %v3438_v24 = vor.u32 %v3905_v19, %v3435_v56 }
  0xf1   :  { %2302 = vmatpush.bf16.msrb.mxu1 %v3526_v7  ;;  %v1950_v53 = vadd.f32 %v1949_v49, %v1931_v37 }
  0xf2   :  { %2321 = vmatpush.bf16.msrb.mxu2 %v3590_v23  ;;  %v1933_v2 = vpop.f32.mrf.mxu1  ;;  %v3566_v23 = vor.u32 %v3937_v47, %v3563_v8 }
  0xf3   :  { %2340 = vmatpush.bf16.msrb.mxu3 %v3654_v54  ;;  %v1968_v59 = vpop.f32.mrf.mxu3  ;;  %v1914_v61 = vpop.f32.mrf.mxu0  ;;  %v3502_v54 = vor.u32 %v3921_v13, %v3499_v60 }
  0xf4   :  { %2284 = vmatpush.bf16.msrb.mxu0 %v3454_v26  ;;  %v1915_v3 = vadd.f32 %v1914_v61, %v5713_v5  ;;  %v1969_v7 = vadd.f32 %v1968_v59, %v1950_v53  ;;  %v3903_v5 = vld [vmem:[%s5983_s1 + $0x604] sm:$0xf]  ;;  %2236 = vmatmul.bf16.gmra.mxu1 %v4930_v40 }
  0xf5   :  { %2303 = vmatpush.bf16.msrb.mxu1 %v3518_v33  ;;  %2217 = vmatmul.bf16.gmra.mxu0 %v4928_v39  ;;  %v3558_v39 = vor.u32 %v3935_v4, %v3555_v27  ;;  %v3430_v40 = vor.u32 %v3903_v5, %v3427_v29 }
  0xf6   :  { %2322 = vmatpush.bf16.msrb.mxu2 %v3582_v52  ;;  %v1934_v10 = vadd.f32 %v1933_v2, %v1915_v3  ;;  %2274 = vmatmul.bf16.gmra.mxu3 %v4943_v46 }
  0xf7   :  { %2341 = vmatpush.bf16.msrb.mxu3 %v3646_v34  ;;  %2255 = vmatmul.bf16.gmra.mxu2 %v4941_v45 }
  0xf8   :  { %2285 = vmatpush.bf16.msrb.mxu0 %v3446_v42  ;;  %v1952_v20 = vpop.f32.mrf.mxu2 }
  0xf9   :  { %2304 = vmatpush.bf16.msrb.mxu1 %v3510_v9  ;;  %v1953_v6 = vadd.f32 %v1952_v20, %v1934_v10 }
  0xfa   :  { %2323 = vmatpush.bf16.msrb.mxu2 %v3574_v50  ;;  %v1935_v26 = vpop.f32.mrf.mxu1 }
  0xfb   :  { %2342 = vmatpush.bf16.msrb.mxu3 %v3638_v51  ;;  %v1971_v21 = vpop.f32.mrf.mxu3  ;;  %v1916_v52 = vpop.f32.mrf.mxu0 }
  0xfc   :  { %2286 = vmatpush.bf16.msrb.mxu0 %v3438_v24  ;;  %v1917_v30 = vadd.f32 %v1916_v52, %v5746_v14  ;;  %v1972_v45 = vadd.f32 %v1971_v21, %v1953_v6 }
  0xfd   :  { %2305 = vmatpush.bf16.msrb.mxu1 %v3502_v54 }
  0xfe   :  { %2324 = vmatpush.bf16.msrb.mxu2 %v3566_v23  ;;  %v1936_v46 = vadd.f32 %v1935_v26, %v1917_v30 }
  0xff   :  { %2343 = vmatpush.bf16.msrb.mxu3 %v3630_v28 }
 0x100   :  { %2287 = vmatpush.bf16.msrb.mxu0 %v3430_v40  ;;  %v1954_v31 = vpop.f32.mrf.mxu2 }
 0x101   :  { %2306 = vmatpush.bf16.msrb.mxu1 %v3494_v12  ;;  %v1955_v34 = vadd.f32 %v1954_v31, %v1936_v46 }
 0x102   :  { %2325 = vmatpush.bf16.msrb.mxu2 %v3558_v39  ;;  %v2004_v16 = vpop.f32.mrf.mxu1 }
 0x103   :  { %2344 = vmatpush.bf16.msrb.mxu3 %v3622_v15  ;;  %v1973_v33 = vpop.f32.mrf.mxu3  ;;  %v1985_v35 = vpop.f32.mrf.mxu0 }
 0x104   :  { %v1986_v36 = vadd.f32 %v1985_v35, %v5801_v32  ;;  %v1974_v37 = vadd.f32 %v1973_v33, %v1955_v34  ;;  %2307 = vmatmul.bf16.vlgmr.msrb.gmra.mxu1 %v5074_v18 }
 0x105   :  { %2288 = vmatmul.bf16.vlgmr.msrb.gmra.mxu0 %v5072_v17 }
 0x106   :  { %v2005_v38 = vadd.f32 %v2004_v16, %v1986_v36  ;;  %2345 = vmatmul.bf16.vlgmr.msrb.gmra.mxu3 %v5087_v25 }
 0x107   :  { %2326 = vmatmul.bf16.vlgmr.msrb.gmra.mxu2 %v5085_v22 }
 0x108   :  { %v2023_v14 = vpop.f32.mrf.mxu2 }
 0x109   :  { %v2024_v44 = vadd.f32 %v2023_v14, %v2005_v38 }
 0x10a   :  { %v2006_v42 = vpop.f32.mrf.mxu1 }
 0x10b   :  { %v2042_v41 = vpop.f32.mrf.mxu3  ;;  %v1987_v50 = vpop.f32.mrf.mxu0 }
 0x10c   :  { %v1988_v47 = vadd.f32 %v1987_v50, %v1969_v7  ;;  %v5880_v8 = vadd.f32 %v2042_v41, %v2024_v44 }
 0x10e   :  { %v2007_v9 = vadd.f32 %v2006_v42, %v1988_v47  ;;  %v2374_v25 = vmul.f32 %v5880_v8, %v5880_v8 }
 0x110   :  { %v2025_v32 = vpop.f32.mrf.mxu2 }
 0x111   :  { %v2026_v19 = vadd.f32 %v2025_v32, %v2007_v9 }
 0x112   :  { %v2009_v17 = vpop.f32.mrf.mxu1 }
 0x113   :  { %v2044_v51 = vpop.f32.mrf.mxu3  ;;  %v1990_v56 = vpop.f32.mrf.mxu0 }
 0x114   :  { %v1991_v13 = vadd.f32 %v1990_v56, %v1972_v45  ;;  %v5882_v18 = vadd.f32 %v2044_v51, %v2026_v19  ;;  %2312 = vmatmul.bf16.gmra.mxu1 %v5206_v58 }
 0x115   :  { %2293 = vmatmul.bf16.gmra.mxu0 %v5204_v55 }
 0x116   :  { %v2010_v22 = vadd.f32 %v2009_v17, %v1991_v13  ;;  %v2356_v49 = vadd.f32 %v5882_v18, %v5880_v8  ;;  %v2376_v59 = vmul.f32 %v5882_v18, %v5882_v18  ;;  %2350 = vmatmul.bf16.gmra.mxu3 %v5219_v63 }
 0x117   :  { %2331 = vmatmul.bf16.gmra.mxu2 %v5217_v62 }
 0x118   :  { %v2382_v60 = vadd.f32 %v2376_v59, %v2374_v25 }
 0x11a   :  { %v2028_v43 = vpop.f32.mrf.mxu2  ;;  %v2011_v61 = vpop.f32.mrf.mxu1 }
 0x11b   :  { %v2047_v48 = vpop.f32.mrf.mxu3  ;;  %v2029_v53 = vadd.f32 %v2028_v43, %v2010_v22  ;;  %v1992_v55 = vpop.f32.mrf.mxu0 }
 0x11c   :  { %v1993_v58 = vadd.f32 %v1992_v55, %v1974_v37 }
 0x11d   :  { %v5894_v2 = vadd.f32 %v2047_v48, %v2029_v53 }
 0x11e   :  { %v2012_v3 = vadd.f32 %v2011_v61, %v1993_v58 }
 0x11f   :  { %v2357_v23 = vadd.f32 %v2356_v49, %v5894_v2  ;;  %v2378_v24 = vmul.f32 %v5894_v2, %v5894_v2 }
 0x121   :  { %v2383_v4 = vadd.f32 %v2382_v60, %v2378_v24 }
 0x122   :  { %v2030_v27 = vpop.f32.mrf.mxu2  ;;  %v2080_v54 = vpop.f32.mrf.mxu1 }
 0x123   :  { %v2049_v62 = vpop.f32.mrf.mxu3  ;;  %v2031_v7 = vadd.f32 %v2030_v27, %v2012_v3  ;;  %v2061_v63 = vpop.f32.mrf.mxu0 }
 0x124   :  { %v2081_v28 = vadd.f32 %v2080_v54, %v2061_v63 }
 0x125   :  { %v5899_v5 = vadd.f32 %v2049_v62, %v2031_v7 }
 0x127   :  { %v2358_v29 = vadd.f32 %v2357_v23, %v5899_v5  ;;  %v2380_v57 = vmul.f32 %v5899_v5, %v5899_v5 }
 0x129   :  { %v2359_v10 = vrot.slane %v2358_v29, 4  ;;  %v2384_v11 = vadd.f32 %v2383_v4, %v2380_v57 }
 0x12a   :  { %v2099_v0 = vpop.f32.mrf.mxu2  ;;  %v2082_v20 = vpop.f32.mrf.mxu1 }
 0x12b   :  { %v2118_v1 = vpop.f32.mrf.mxu3  ;;  %v2360_v39 = vadd.f32 %v2359_v10, %v2358_v29  ;;  %v2385_v40 = vrot.slane %v2384_v11, 4  ;;  %v2100_v12 = vadd.f32 %v2099_v0, %v2081_v28  ;;  %v2063_v15 = vpop.f32.mrf.mxu0 }
 0x12c   :  { %v2083_v21 = vadd.f32 %v2082_v20, %v2063_v15 }
 0x12d   :  { %v2361_v6 = vrot.slane %v2360_v39, 2  ;;  %v2386_v52 = vadd.f32 %v2385_v40, %v2384_v11  ;;  %v2119_v26 = vadd.f32 %v2118_v1, %v2100_v12 }
 0x12f   :  { %v2362_v30 = vadd.f32 %v2361_v6, %v2360_v39  ;;  %v2387_v45 = vrot.slane %v2386_v52, 2 }
 0x131   :  { %v2363_v46 = vrot.slane %v2362_v30, 1  ;;  %v2388_v31 = vadd.f32 %v2387_v45, %v2386_v52 }
 0x132   :  { %v2101_v33 = vpop.f32.mrf.mxu2  ;;  %v2085_v38 = vpop.f32.mrf.mxu1 }
 0x133   :  { %v2120_v34 = vpop.f32.mrf.mxu3  ;;  %v2364_v35 = vadd.f32 %v2363_v46, %v2362_v30  ;;  %v2389_v16 = vrot.slane %v2388_v31, 1  ;;  %v2102_v36 = vadd.f32 %v2101_v33, %v2083_v21  ;;  %v2066_v37 = vpop.f32.mrf.mxu0 }
 0x134   :  { %v2086_v14 = vadd.f32 %v2085_v38, %v2066_v37 }
 0x135   :  { %v2390_v41 = vadd.f32 %v2389_v16, %v2388_v31  ;;  %v2400_v44 = vmul.f32 0.03125, %v2364_v35  ;;  %v5904_v50 = vadd.f32 %v2120_v34, %v2102_v36 }
 0x137   :  { %v2402_v42 = vmul.f32 0.03125, %v2390_v41  ;;  %v2404_v47 = vmul.f32 %v2400_v44, %v2400_v44  ;;  %v2414_v9 = vsub.f32 %v5899_v5, %v2400_v44  ;;  %v2412_v32 = vsub.f32 %v5894_v2, %v2400_v44 }
 0x138   :  { %v2408_v51 = vsub.f32 %v5880_v8, %v2400_v44  ;;  %v2410_v19 = vsub.f32 %v5882_v18, %v2400_v44 }
 0x139   :  { %v2406_v56 = vsub.f32 %v2402_v42, %v2404_v47 }
 0x13a   :  { %v2104_v17 = vpop.f32.mrf.mxu2  ;;  %v2087_v59 = vpop.f32.mrf.mxu1 }
 0x13b   :  { %v2123_v13 = vpop.f32.mrf.mxu3  ;;  %v2416_v22 = vadd.f32 1e-05, %v2406_v56  ;;  %v2105_v25 = vadd.f32 %v2104_v17, %v2086_v14  ;;  %v2068_v49 = vpop.f32.mrf.mxu0 }
 0x13c   :  { %v2088_v60 = vadd.f32 %v2087_v59, %v2068_v49 }
 0x13d   :  { %3967 = vrsqrt.f32 %v2416_v22  ;;  %v2124_v43 = vadd.f32 %v2123_v13, %v2105_v25  ;;  %vm2424_vm1 = vweird.f32 %v2416_v22 }
 0x142   :  { %v2106_v48 = vpop.f32.mrf.mxu2  ;;  %v2156_v2 = vpop.f32.mrf.mxu1 }
 0x143   :  { %v2125_v53 = vpop.f32.mrf.mxu3  ;;  %v3968_v55 = vpop.eup %3967  ;;  %v2107_v61 = vadd.f32 %v2106_v48, %v2088_v60 }
 0x144   :  { %v2137_v58 = vpop.f32.mrf.mxu0  ;;  %v2419_v3 = vmul.f32 %v3968_v55, %v2416_v22  ;;  %vm2425_vm0 = vweird.f32 %v3968_v55 }
 0x145   :  { %v2138_v8 = vadd.f32 %v2137_v58, %v2119_v26  ;;  %v2126_v23 = vadd.f32 %v2125_v53, %v2107_v61  ;;  %vm2426_vm2 = vmor %vm2424_vm1, %vm2425_vm0 }
 0x146   :  { %v2420_v18 = vmul.f32 %v3968_v55, %v2419_v3 }
 0x147   :  { %v2157_v24 = vadd.f32 %v2156_v2, %v2138_v8 }
 0x148   :  { %v2421_v4 = vmul.f32 0.5, %v2420_v18 }
 0x14a   :  { %v2422_v27 = vsub.f32 1.5, %v2421_v4  ;;  %v2175_v62 = vpop.f32.mrf.mxu2  ;;  %v2158_v28 = vpop.f32.mrf.mxu1 }
 0x14b   :  { %v2194_v7 = vpop.f32.mrf.mxu3  ;;  %v2176_v63 = vadd.f32 %v2175_v62, %v2157_v24 }
 0x14c   :  { %v2139_v54 = vpop.f32.mrf.mxu0  ;;  %v2423_v5 = vmul.f32 %v3968_v55, %v2422_v27 }
 0x14d   :  { %v2195_v29 = vadd.f32 %v2194_v7, %v2176_v63  ;;  %v2140_v14 = vadd.f32 %v2139_v54, %v5904_v50 }
 0x14e   :  { %v2427_v57 = vsel %vm2426_vm2, %v3968_v55, %v2423_v5 }
 0x14f   :  { %v5910_v10 = vmul.f32 %v2427_v57, %v2414_v9  ;;  %v5912_v11 = vmul.f32 %v2427_v57, %v2412_v32  ;;  %v5914_v0 = vmul.f32 %v2427_v57, %v2408_v51  ;;  %v5916_v1 = vmul.f32 %v2427_v57, %v2410_v19 }
 0x150   :  { %v2159_v41 = vadd.f32 %v2158_v28, %v2140_v14 }
 0x152   :  { %v2177_v39 = vpop.f32.mrf.mxu2  ;;  %v2161_v15 = vpop.f32.mrf.mxu1 }
 0x153   :  { %v2196_v40 = vpop.f32.mrf.mxu3  ;;  %v2178_v47 = vadd.f32 %v2177_v39, %v2159_v41 }
 0x154   :  { %v2142_v12 = vpop.f32.mrf.mxu0 }
 0x155   :  { %v2143_v51 = vadd.f32 %v2142_v12, %v2124_v43  ;;  %v2197_v56 = vadd.f32 %v2196_v40, %v2178_v47 }
 0x157   :  { %v2162_v17 = vadd.f32 %v2161_v15, %v2143_v51 }
 0x15a   :  { %v2180_v20 = vpop.f32.mrf.mxu2  ;;  %v2163_v52 = vpop.f32.mrf.mxu1 }
 0x15b   :  { %v2199_v21 = vpop.f32.mrf.mxu3  ;;  %v2181_v59 = vadd.f32 %v2180_v20, %v2162_v17 }
 0x15c   :  { %v2144_v6 = vpop.f32.mrf.mxu0 }
 0x15d   :  { %v2145_v55 = vadd.f32 %v2144_v6, %v2126_v23  ;;  %v2200_v61 = vadd.f32 %v2199_v21, %v2181_v59 }
 0x15f   :  { %v2164_v3 = vadd.f32 %v2163_v52, %v2145_v55 }
 0x162   :  { %v2182_v26 = vpop.f32.mrf.mxu2  ;;  %v2232_v46 = vpop.f32.mrf.mxu1 }
 0x163   :  { %v2201_v30 = vpop.f32.mrf.mxu3  ;;  %v2183_v4 = vadd.f32 %v2182_v26, %v2164_v3 }
 0x164   :  { %v2213_v45 = vpop.f32.mrf.mxu0 }
 0x165   :  { %v2214_v19 = vadd.f32 %v2213_v45, %v2195_v29  ;;  %v2202_v5 = vadd.f32 %v2201_v30, %v2183_v4 }
 0x167   :  { %v2233_v13 = vadd.f32 %v2232_v46, %v2214_v19 }
 0x16a   :  { %v2251_v31 = vpop.f32.mrf.mxu2  ;;  %v2234_v35 = vpop.f32.mrf.mxu1 }
 0x16b   :  { %v2270_v33 = vpop.f32.mrf.mxu3  ;;  %v2252_v60 = vadd.f32 %v2251_v31, %v2233_v13 }
 0x16c   :  { %v2215_v34 = vpop.f32.mrf.mxu0 }
 0x16d   :  { %v2216_v22 = vadd.f32 %v2215_v34, %v2197_v56  ;;  %v2271_v58 = vadd.f32 %v2270_v33, %v2252_v60 }
 0x16f   :  { %v2235_v50 = vadd.f32 %v2234_v35, %v2216_v22 }
 0x172   :  { %v2253_v16 = vpop.f32.mrf.mxu2  ;;  %v2237_v38 = vpop.f32.mrf.mxu1 }
 0x173   :  { %v2272_v36 = vpop.f32.mrf.mxu3  ;;  %v2254_v2 = vadd.f32 %v2253_v16, %v2235_v50 }
 0x174   :  { %v2218_v37 = vpop.f32.mrf.mxu0 }
 0x175   :  { %v2219_v8 = vadd.f32 %v2218_v37, %v2200_v61  ;;  %v2273_v27 = vadd.f32 %v2272_v36, %v2254_v2 }
 0x177   :  { %v2238_v63 = vadd.f32 %v2237_v38, %v2219_v8 }
 0x17a   :  { %v2256_v44 = vpop.f32.mrf.mxu2  ;;  %v2239_v32 = vpop.f32.mrf.mxu1 }
 0x17b   :  { %v2275_v42 = vpop.f32.mrf.mxu3  ;;  %v2257_v29 = vadd.f32 %v2256_v44, %v2238_v63 }
 0x17c   :  { %v2220_v9 = vpop.f32.mrf.mxu0 }
 0x17d   :  { %v2221_v23 = vadd.f32 %v2220_v9, %v2202_v5  ;;  %v2276_v15 = vadd.f32 %v2275_v42, %v2257_v29  ;;  %v2446_v29 = vld [vmem:[%s5985_s2] sm:$0x3] }
 0x17f   :  { %v2240_v52 = vadd.f32 %v2239_v32, %v2221_v23  ;;  %v2448_v23 = vperm.slane %v2446_v29, 0 }
 0x182   :  { %v2258_v25 = vpop.f32.mrf.mxu2  ;;  %v2308_v53 = vpop.f32.mrf.mxu1 }
 0x183   :  { %v2277_v49 = vpop.f32.mrf.mxu3  ;;  %v2259_v31 = vadd.f32 %v2258_v25, %v2240_v52  ;;  %v2452_v52 = vmul.f32 %v2448_v23, %v5914_v0 }
 0x184   :  { %v2289_v48 = vpop.f32.mrf.mxu0 }
 0x185   :  { %v2290_v18 = vadd.f32 %v2289_v48, %v2271_v58  ;;  %v2278_v38 = vadd.f32 %v2277_v49, %v2259_v31 }
 0x187   :  { %v2309_v54 = vadd.f32 %v2308_v53, %v2290_v18 }
 0x18a   :  { %v2327_v43 = vpop.f32.mrf.mxu2  ;;  %v2310_v7 = vpop.f32.mrf.mxu1 }
 0x18b   :  { %v2346_v24 = vpop.f32.mrf.mxu3  ;;  %v2328_v57 = vadd.f32 %v2327_v43, %v2309_v54 }
 0x18c   :  { %v2291_v62 = vpop.f32.mrf.mxu0 }
 0x18d   :  { %v2292_v28 = vadd.f32 %v2291_v62, %v2273_v27  ;;  %v5919_v20 = vadd.f32 %v2346_v24, %v2328_v57 }
 0x18f   :  { %v2311_v39 = vadd.f32 %v2310_v7, %v2292_v28  ;;  %v2375_v30 = vmul.f32 %v5919_v20, %v5919_v20 }
 0x192   :  { %v2329_v40 = vpop.f32.mrf.mxu2  ;;  %v2313_v46 = vpop.f32.mrf.mxu1 }
 0x193   :  { %v2348_v12 = vpop.f32.mrf.mxu3  ;;  %v2330_v21 = vadd.f32 %v2329_v40, %v2311_v39  ;;  %v2460_v40 = vld [vmem:[%s5986_s3] sm:$0x3] }
 0x194   :  { %v2294_v6 = vpop.f32.mrf.mxu0 }
 0x195   :  { %v5921_v26 = vadd.f32 %v2348_v12, %v2330_v21  ;;  %v2295_v45 = vadd.f32 %v2294_v6, %v2276_v15  ;;  %v2456_v15 = vmul.f32 %v2448_v23, %v5912_v11  ;;  %v2458_v21 = vmul.f32 %v2448_v23, %v5910_v10 }
 0x197   :  { %v2365_v33 = vadd.f32 %v5921_v26, %v5919_v20  ;;  %v2377_v34 = vmul.f32 %v5921_v26, %v5921_v26  ;;  %v2314_v16 = vadd.f32 %v2313_v46, %v2295_v45  ;;  %v2454_v45 = vmul.f32 %v2448_v23, %v5916_v1 }
 0x199   :  { %v2391_v35 = vadd.f32 %v2377_v34, %v2375_v30  ;;  %v2449_v34 = vperm.slane %v2446_v29, 1 }
 0x19a   :  { %v2332_v36 = vpop.f32.mrf.mxu2  ;;  %v2315_v32 = vpop.f32.mrf.mxu1 }
 0x19b   :  { %v2351_v37 = vpop.f32.mrf.mxu3  ;;  %v2333_v14 = vadd.f32 %v2332_v36, %v2314_v16  ;;  %v2463_v16 = vperm.slane %v2460_v40, 1 }
 0x19c   :  { %v2296_v41 = vpop.f32.mrf.mxu0 }
 0x19d   :  { %v5929_v44 = vadd.f32 %v2351_v37, %v2333_v14  ;;  %v2297_v42 = vadd.f32 %v2296_v41, %v2278_v38 }
 0x19f   :  { %v2366_v47 = vadd.f32 %v2365_v33, %v5929_v44  ;;  %v2379_v9 = vmul.f32 %v5929_v44, %v5929_v44  ;;  %v2316_v19 = vadd.f32 %v2315_v32, %v2297_v42 }
 0x1a1   :  { %v2392_v51 = vadd.f32 %v2391_v35, %v2379_v9 }
 0x1a2   :  { %v2334_v56 = vpop.f32.mrf.mxu2 }
 0x1a3   :  { %v2335_v17 = vadd.f32 %v2334_v56, %v2316_v19  ;;  %v2353_v13 = vpop.f32.mrf.mxu3 }
 0x1a5   :  { %v2354_v22 = vadd.f32 %v2353_v13, %v2335_v17  ;;  %v2494_v13 = vld [vmem:[%s5987_s4 + $0x20] sm:$0xff] }
 0x1a7   :  { %v2367_v25 = vadd.f32 %v2366_v47, %v2354_v22  ;;  %v2381_v59 = vmul.f32 %v2354_v22, %v2354_v22 }
 0x1a9   :  { %v2368_v49 = vrot.slane %v2367_v25, 4  ;;  %v2393_v60 = vadd.f32 %v2392_v51, %v2381_v59  ;;  %v2496_v59 = vld [vmem:[%s5987_s4 + $0x30] sm:$0xff] }
 0x1ab   :  { %v2369_v48 = vadd.f32 %v2368_v49, %v2367_v25  ;;  %v2394_v53 = vrot.slane %v2393_v60, 4  ;;  %v2490_v25 = vld [vmem:[%s5987_s4] sm:$0xff] }
 0x1ad   :  { %v2370_v55 = vrot.slane %v2369_v48, 2  ;;  %v2395_v50 = vadd.f32 %v2394_v53, %v2393_v60 }
 0x1af   :  { %v2371_v61 = vadd.f32 %v2370_v55, %v2369_v48  ;;  %v2396_v58 = vrot.slane %v2395_v50, 2  ;;  %v2495_v55 = vld [vmem:[%s5987_s4 + $0x28] sm:$0xff] }
 0x1b1   :  { %v2372_v2 = vrot.slane %v2371_v61, 1  ;;  %v2397_v3 = vadd.f32 %v2396_v58, %v2395_v50  ;;  %v2491_v50 = vld [vmem:[%s5987_s4 + $0x8] sm:$0xff] }
 0x1b3   :  { %v2373_v8 = vadd.f32 %v2372_v2, %v2371_v61  ;;  %v2398_v18 = vrot.slane %v2397_v3, 1  ;;  %v2497_v61 = vld [vmem:[%s5987_s4 + $0x38] sm:$0xff] }
 0x1b5   :  { %v2399_v43 = vadd.f32 %v2398_v18, %v2397_v3  ;;  %v2401_v24 = vmul.f32 0.03125, %v2373_v8 }
 0x1b7   :  { %v2403_v4 = vmul.f32 0.03125, %v2399_v43  ;;  %v2405_v27 = vmul.f32 %v2401_v24, %v2401_v24  ;;  %v2415_v62 = vsub.f32 %v2354_v22, %v2401_v24  ;;  %v2413_v7 = vsub.f32 %v5929_v44, %v2401_v24  ;;  %v2492_v43 = vld [vmem:[%s5987_s4 + $0x10] sm:$0xff] }
 0x1b8   :  { %v2409_v63 = vsub.f32 %v5919_v20, %v2401_v24  ;;  %v2411_v54 = vsub.f32 %v5921_v26, %v2401_v24  ;;  %v2462_v20 = vperm.slane %v2460_v40, 0  ;;  %v2493_v24 = vld [vmem:[%s5987_s4 + $0x18] sm:$0xff] }
 0x1b9   :  { %v2407_v28 = vsub.f32 %v2403_v4, %v2405_v27 }
 0x1ba   :  { %v2470_v46 = vadd.f32 %v2462_v20, %v2456_v15  ;;  %v2466_v30 = vadd.f32 %v2462_v20, %v2452_v52  ;;  %v2472_v33 = vadd.f32 %v2462_v20, %v2458_v21  ;;  %v2468_v11 = vadd.f32 %v2462_v20, %v2454_v45 }
 0x1bb   :  { %v2417_v5 = vadd.f32 1e-05, %v2407_v28 }
 0x1bc   :  { %v2478_v14 = vmul.f32 0.2, %v2470_v46  ;;  %v2474_v0 = vmul.f32 0.2, %v2466_v30  ;;  %v2480_v41 = vmul.f32 0.2, %v2472_v33 }
 0x1bd   :  { %3969 = vrsqrt.f32 %v2417_v5  ;;  %vm2434_vm4 = vweird.f32 %v2417_v5  ;;  %v2476_v9 = vmul.f32 0.2, %v2468_v11 }
 0x1be   :  { %v2486_v17 = vmax.f32 %v2470_v46, %v2478_v14  ;;  %v2482_v22 = vmax.f32 %v2466_v30, %v2474_v0  ;;  %v2488_v53 = vmax.f32 %v2472_v33, %v2480_v41 }
 0x1bf   :  { %v2484_v2 = vmax.f32 %v2468_v11, %v2476_v9 }
 0x1c0   :  { %v2502_v4 = vmul.f32 %v2494_v13, %v2486_v17  ;;  %v2498_v27 = vmul.f32 %v2490_v25, %v2482_v22 }
 0x1c3   :  { %v3970_v57 = vpop.eup %3969 }
 0x1c4   :  { %v2429_v39 = vmul.f32 %v3970_v57, %v2417_v5  ;;  %vm2435_vm3 = vweird.f32 %v3970_v57  ;;  %v2500_v5 = vmul.f32 %v2492_v43, %v2484_v2 }
 0x1c5   :  { %vm2436_vm5 = vmor %vm2434_vm4, %vm2435_vm3 }
 0x1c6   :  { %v2430_v12 = vmul.f32 %v3970_v57, %v2429_v39 }
 0x1c8   :  { %v2431_v6 = vmul.f32 0.5, %v2430_v12 }
 0x1ca   :  { %v2432_v26 = vsub.f32 1.5, %v2431_v6 }
 0x1cc   :  { %v2433_v31 = vmul.f32 %v3970_v57, %v2432_v26 }
 0x1ce   :  { %v2437_v35 = vsel %vm2436_vm5, %v3970_v57, %v2433_v31 }
 0x1cf   :  { %v2445_v36 = vmul.f32 %v2437_v35, %v2415_v62  ;;  %v2443_v37 = vmul.f32 %v2437_v35, %v2413_v7  ;;  %v2439_v10 = vmul.f32 %v2437_v35, %v2409_v63  ;;  %v2441_v38 = vmul.f32 %v2437_v35, %v2411_v54 }
 0x1d0   :  { %v2504_v54 = vmul.f32 %v2496_v59, %v2488_v53 }
 0x1d1   :  { %v2459_v44 = vmul.f32 %v2449_v34, %v2445_v36  ;;  %v2457_v42 = vmul.f32 %v2449_v34, %v2443_v37  ;;  %v2453_v1 = vmul.f32 %v2449_v34, %v2439_v10  ;;  %v2455_v47 = vmul.f32 %v2449_v34, %v2441_v38 }
 0x1d3   :  { %v2471_v32 = vadd.f32 %v2463_v16, %v2457_v42  ;;  %v2467_v51 = vadd.f32 %v2463_v16, %v2453_v1  ;;  %v2473_v19 = vadd.f32 %v2463_v16, %v2459_v44  ;;  %v2469_v56 = vadd.f32 %v2463_v16, %v2455_v47 }
 0x1d5   :  { %v2479_v49 = vmul.f32 0.2, %v2471_v32  ;;  %v2475_v60 = vmul.f32 0.2, %v2467_v51  ;;  %v2481_v48 = vmul.f32 0.2, %v2473_v19 }
 0x1d6   :  { %v2477_v58 = vmul.f32 0.2, %v2469_v56 }
 0x1d7   :  { %v2487_v3 = vmax.f32 %v2471_v32, %v2479_v49  ;;  %v2483_v8 = vmax.f32 %v2467_v51, %v2475_v60  ;;  %v2489_v18 = vmax.f32 %v2473_v19, %v2481_v48 }
 0x1d8   :  { %v2485_v62 = vmax.f32 %v2469_v56, %v2477_v58 }
 0x1d9   :  { %v2503_v7 = vmul.f32 %v2495_v55, %v2487_v3  ;;  %v2499_v63 = vmul.f32 %v2491_v50, %v2483_v8  ;;  %v2505_v28 = vmul.f32 %v2497_v61, %v2489_v18 }
 0x1da   :  { %v2501_v29 = vmul.f32 %v2493_v24, %v2485_v62 }
 0x1db   :  { %v2512_v57 = vadd.f32 %v2503_v7, %v2502_v4  ;;  %v2506_v23 = vadd.f32 %v2499_v63, %v2498_v27  ;;  %v2515_v39 = vadd.f32 %v2505_v28, %v2504_v54 }
 0x1dc   :  { %v2509_v40 = vadd.f32 %v2501_v29, %v2500_v5 }
 0x1dd   :  { %2513 = vadd.xlane.f32.xlu1 %v2512_v57  ;;  %2507 = vadd.xlane.f32.xlu0 %v2506_v23 }
 0x1e5   :  { %2516 = vadd.xlane.f32.xlu1 %v2515_v39  ;;  %2510 = vadd.xlane.f32.xlu0 %v2509_v40 }
 0x250   :  { %v2514_v12 = vpop.xlane.xlu1 %2513  ;;  %v2508_v15 = vpop.xlane.xlu0 %2507 }
 0x251   :  { %2521 = vst.msk [vmem:[%s5988_s5 + $0x10] sm:$0xff] %vm2518_vm6, %v2514_v12 }
 0x252   :  { %2519 = vst.msk [vmem:[%s5988_s5] sm:$0xff] %vm2518_vm6, %v2508_v15 }
 0x258   :  { %v2517_v20 = vpop.xlane.xlu1 %2516  ;;  %v2511_v21 = vpop.xlane.xlu0 %2510 }
 0x259   :  { %2522 = vst.msk [vmem:[%s5988_s5 + $0x18] sm:$0xff] %vm2518_vm6, %v2517_v20 }
 0x25a   :  { %2520 = vst.msk [vmem:[%s5988_s5 + $0x8] sm:$0xff] %vm2518_vm6, %v2511_v21 }

</bundles_post_ra>
